<compile_context>
chip_gen: v5e
topology: v5e:2x2
jax: 0.10.0
libtpu: 0.0.40
codegen_flags: <defaults>
</compile_context>

<pallas_src>
import functools

import jax
import jax.numpy as jnp
from jax import lax
from jax.experimental import pallas as pl
from jax.experimental.pallas import tpu as pltpu

EPS = 1e-5
_PAD_L = 8                       # interior stored at sublane-aligned offset 8
_VMEM_LIMIT = 32 * 1024 * 1024   # safe explicit scoped-VMEM cap on v5e/v6e/v7x


def _cparams():
    return pltpu.CompilerParams(
        dimension_semantics=("parallel",),
        vmem_limit_bytes=_VMEM_LIMIT,
    )


# ---------------------------------------------------------------------------
# Kernel 1: (optional fused BN+ReLU on the input) conv3x3 + per-channel moments
# ---------------------------------------------------------------------------
def _conv3x3_moments_kernel(*refs, pre_act):
    # pre_act=False: refs = (x, w, y, m1, m2, xpad)
    # pre_act=True : refs = (x, scale, shift, w, y, m1, m2, xpad)
    if pre_act:
        x_ref, s_ref, t_ref, w_ref, y_ref, m1_ref, m2_ref, xpad_ref = refs
    else:
        x_ref, w_ref, y_ref, m1_ref, m2_ref, xpad_ref = refs

    H, W = y_ref.shape[1], y_ref.shape[2]
    Cin = x_ref.shape[3]
    Cout = y_ref.shape[3]

    v = x_ref[0].astype(jnp.float32)
    if pre_act:
        # Fused BN+ReLU of the previous conv's output (per-channel affine).
        v = jnp.maximum(v * s_ref[...] + t_ref[...], 0.0)

    # Zero halo built entirely in VMEM (no HBM pad pass).  Only the 1-px border
    # actually needs the zeros; zeroing the whole scratch is cheap VPU work.
    # Interior lands at sublane offset _PAD_L so the store is tile-aligned.
    xpad_ref[...] = jnp.zeros_like(xpad_ref)
    xpad_ref[1:H + 1, _PAD_L:_PAD_L + W, :] = v

    acc = jnp.zeros((H * W, Cout), jnp.float32)
    for kh in range(3):                      # 9 static taps -> 9 MXU dots
        for kw in range(3):
            c0 = _PAD_L - 1 + kw
            patch = xpad_ref[kh:kh + H, c0:c0 + W, :]
            acc = acc + jnp.dot(patch.reshape(H * W, Cin), w_ref[kh, kw],
                                preferred_element_type=jnp.float32)

    y_ref[0] = acc.reshape(H, W, Cout).astype(y_ref.dtype)
    # Per-batch-element partial moments (reduced over N in tiny JAX glue).
    m1_ref[0] = jnp.sum(acc, axis=0, keepdims=True)
    m2_ref[0] = jnp.sum(acc * acc, axis=0, keepdims=True)


def conv3x3_moments(x_nhwc, w_hwio, scale=None, shift=None, *, pre_act=False):
    N, H, W, Cin = x_nhwc.shape
    Cout = w_hwio.shape[3]

    in_specs = [pl.BlockSpec((1, H, W, Cin), lambda n: (n, 0, 0, 0))]
    operands = [x_nhwc]
    if pre_act:
        in_specs += [pl.BlockSpec((1, Cin), lambda n: (0, 0)),
                     pl.BlockSpec((1, Cin), lambda n: (0, 0))]
        operands += [scale.reshape(1, Cin), shift.reshape(1, Cin)]
    in_specs.append(pl.BlockSpec((3, 3, Cin, Cout), lambda n: (0, 0, 0, 0)))
    operands.append(w_hwio)

    return pl.pallas_call(
        functools.partial(_conv3x3_moments_kernel, pre_act=pre_act),
        out_shape=(
            jax.ShapeDtypeStruct((N, H, W, Cout), jnp.float32),
            jax.ShapeDtypeStruct((N, 1, Cout), jnp.float32),
            jax.ShapeDtypeStruct((N, 1, Cout), jnp.float32),
        ),
        grid=(N,),
        in_specs=in_specs,
        out_specs=(
            pl.BlockSpec((1, H, W, Cout), lambda n: (n, 0, 0, 0)),
            pl.BlockSpec((1, 1, Cout), lambda n: (n, 0, 0)),
            pl.BlockSpec((1, 1, Cout), lambda n: (n, 0, 0)),
        ),
        scratch_shapes=[pltpu.VMEM((H + 2, _PAD_L + W + 1, Cin), jnp.float32)],
        compiler_params=_cparams(),
    )(*operands)


# ---------------------------------------------------------------------------
# Kernel 2: fused BN + ReLU + residual add (identity or fused 1x1 projection)
# ---------------------------------------------------------------------------
def _bn_relu_add_id_kernel(y_ref, s_ref, t_ref, x_ref, o_ref):
    act = jnp.maximum(y_ref[0].astype(jnp.float32) * s_ref[...] + t_ref[...], 0.0)
    o_ref[0] = (act + x_ref[0].astype(jnp.float32)).astype(o_ref.dtype)


def _bn_relu_add_proj_kernel(y_ref, s_ref, t_ref, x_ref, w_ref, b_ref, o_ref):
    H, W = y_ref.shape[1], y_ref.shape[2]
    Cin = x_ref.shape[3]
    Cout = y_ref.shape[3]
    act = jnp.maximum(y_ref[0].astype(jnp.float32) * s_ref[...] + t_ref[...], 0.0)
    res = jnp.dot(x_ref[0].astype(jnp.float32).reshape(H * W, Cin), w_ref[...],
                  preferred_element_type=jnp.float32) + b_ref[...]
    o_ref[0] = (act + res.reshape(H, W, Cout)).astype(o_ref.dtype)


def bn_relu_residual(y_nhwc, scale, shift, x_nhwc, ws=None, bs=None):
    N, H, W, Cout = y_nhwc.shape
    Cin = x_nhwc.shape[3]

    in_specs = [
        pl.BlockSpec((1, H, W, Cout), lambda n: (n, 0, 0, 0)),
        pl.BlockSpec((1, Cout), lambda n: (0, 0)),
        pl.BlockSpec((1, Cout), lambda n: (0, 0)),
        pl.BlockSpec((1, H, W, Cin), lambda n: (n, 0, 0, 0)),
    ]
    operands = [y_nhwc, scale.reshape(1, Cout), shift.reshape(1, Cout), x_nhwc]
    if ws is not None:
        kernel = _bn_relu_add_proj_kernel
        in_specs += [pl.BlockSpec((Cin, Cout), lambda n: (0, 0)),
                     pl.BlockSpec((1, Cout), lambda n: (0, 0))]
        operands += [ws, bs.reshape(1, Cout)]
    else:
        kernel = _bn_relu_add_id_kernel

    return pl.pallas_call(
        kernel,
        out_shape=jax.ShapeDtypeStruct((N, H, W, Cout), jnp.float32),
        grid=(N,),
        in_specs=in_specs,
        out_specs=pl.BlockSpec((1, H, W, Cout), lambda n: (n, 0, 0, 0)),
        compiler_params=_cparams(),
    )(*operands)


# ---------------------------------------------------------------------------
# BN affine from in-kernel moments (tiny (N, C) reduction in plain JAX)
# ---------------------------------------------------------------------------
def _bn_affine_from_moments(m1, m2, count, gamma, beta):
    s = jnp.sum(m1, axis=(0, 1))
    ss = jnp.sum(m2, axis=(0, 1))
    mean = s / count
    var = jnp.maximum(ss / count - mean * mean, 0.0)   # biased training-mode var
    scale = gamma * lax.rsqrt(var + EPS)
    shift = beta - mean * scale
    return scale, shift


# ---------------------------------------------------------------------------
# ConvBlockRes / Intermediate forward
# ---------------------------------------------------------------------------
def conv_block_res(x_nhwc, p):
    N, H, W, _ = x_nhwc.shape
    count = float(N * H * W)

    y1, a1, q1 = conv3x3_moments(x_nhwc, p["w1"])
    s1, t1 = _bn_affine_from_moments(a1, q1, count, p["g1"], p["b1"])

    # Second conv with BN1+ReLU fused onto its input tile (`h` never hits HBM).
    y2, a2, q2 = conv3x3_moments(y1, p["w2"], s1, t1, pre_act=True)
    s2, t2 = _bn_affine_from_moments(a2, q2, count, p["g2"], p["b2"])

    return bn_relu_residual(y2, s2, t2, x_nhwc, p.get("ws"), p.get("bs"))


def intermediate_forward(x_nchw, blocks):
    x = jnp.transpose(x_nchw, (0, 2, 3, 1)).astype(jnp.float32)   # NCHW -> NHWC
    for p in blocks:
        x = conv_block_res(x, p)
    return jnp.transpose(x, (0, 3, 1, 2))                         # -> NCHW


# ---------------------------------------------------------------------------
# Deterministic parameter init (synthetic; shapes match the nn.Module)
# ---------------------------------------------------------------------------
def init_conv_block_params(key, cin, cout):
    ks = jax.random.split(key, 8)
    p = {
        "w1": 0.1 * jax.random.normal(ks[0], (3, 3, cin, cout), jnp.float32),
        "g1": 1.0 + 0.1 * jax.random.normal(ks[1], (cout,), jnp.float32),
        "b1": 0.1 * jax.random.normal(ks[2], (cout,), jnp.float32),
        "w2": 0.1 * jax.random.normal(ks[3], (3, 3, cout, cout), jnp.float32),
        "g2": 1.0 + 0.1 * jax.random.normal(ks[4], (cout,), jnp.float32),
        "b2": 0.1 * jax.random.normal(ks[5], (cout,), jnp.float32),
    }
    if cin != cout:
        p["ws"] = 0.1 * jax.random.normal(ks[6], (cin, cout), jnp.float32)
        p["bs"] = 0.1 * jax.random.normal(ks[7], (cout,), jnp.float32)
    return p


def init_intermediate_params(key, in_channels, out_channels, n_inters, n_blocks):
    blocks = []
    cin = in_channels
    keys = jax.random.split(key, n_inters * n_blocks)
    idx = 0
    for _ in range(n_inters):              # ResEncoderBlock chain (no pooling)
        for _ in range(n_blocks):          # ConvBlockRes chain
            blocks.append(init_conv_block_params(keys[idx], cin, out_channels))
            cin = out_channels
            idx += 1
    return blocks


# ---------------------------------------------------------------------------
# Pure-JAX reference (independent: lax.conv + two-pass batch stats)
# ---------------------------------------------------------------------------
def _ref_conv3x3(x_nhwc, w_hwio):
    dn = lax.conv_dimension_numbers(x_nhwc.shape, w_hwio.shape,
                                    ("NHWC", "HWIO", "NHWC"))
    return lax.conv_general_dilated(x_nhwc, w_hwio, (1, 1), "SAME",
                                    dimension_numbers=dn)


def _ref_bn_affine(y, gamma, beta):
    mean = jnp.mean(y, axis=(0, 1, 2))
    var = jnp.mean((y - mean) ** 2, axis=(0, 1, 2))
    scale = gamma / jnp.sqrt(var + EPS)
    return scale, beta - mean * scale


def ref_conv_block_res(x_nhwc, p):
    y1 = _ref_conv3x3(x_nhwc, p["w1"])
    s1, t1 = _ref_bn_affine(y1, p["g1"], p["b1"])
    h = jnp.maximum(y1 * s1 + t1, 0.0)
    y2 = _ref_conv3x3(h, p["w2"])
    s2, t2 = _ref_bn_affine(y2, p["g2"], p["b2"])
    h2 = jnp.maximum(y2 * s2 + t2, 0.0)
    if "ws" in p:
        res = jnp.einsum("nhwc,cd->nhwd", x_nhwc, p["ws"]) + p["bs"]
    else:
        res = x_nhwc
    return h2 + res


def ref_intermediate(x_nchw, blocks):
    x = jnp.transpose(x_nchw, (0, 2, 3, 1)).astype(jnp.float32)
    for p in blocks:
        x = ref_conv_block_res(x, p)
    return jnp.transpose(x, (0, 3, 1, 2))


# ---------------------------------------------------------------------------
if __name__ == "__main__":
    key = jax.random.PRNGKey(0)
    k_x, k_p = jax.random.split(key)

    in_channels, out_channels = 4, 8
    n_inters, n_blocks = 2, 2                      # 4 ConvBlockRes total
    x = jax.random.normal(k_x, (2, in_channels, 16, 16), jnp.float32)   # NCHW
    blocks = init_intermediate_params(k_p, in_channels, out_channels,
                                      n_inters, n_blocks)

    fwd = jax.jit(intermediate_forward)
    out = jax.block_until_ready(fwd(x, blocks))
    ref = jax.block_until_ready(ref_intermediate(x, blocks))

    assert out.shape == (2, out_channels, 16, 16), out.shape
    err = float(jnp.max(jnp.abs(out - ref)))
    assert err < 5e-4, err
    print("KERNEL_OK")
</pallas_src>

<mosaic_0001>
module attributes {stable_mosaic.version = 11 : i64} {
  func.func @_conv3x3_moments_kernel(%arg0: i32, %arg1: memref<1x16x16x8xf32, #tpu.memory_space<vmem>>, %arg2: memref<1x8xf32, #tpu.memory_space<vmem>>, %arg3: memref<1x8xf32, #tpu.memory_space<vmem>>, %arg4: memref<3x3x8x8xf32, #tpu.memory_space<vmem>>, %arg5: memref<1x16x16x8xf32, #tpu.memory_space<vmem>>, %arg6: memref<1x1x8xf32, #tpu.memory_space<vmem>>, %arg7: memref<1x1x8xf32, #tpu.memory_space<vmem>>, %arg8: memref<18x25x8xf32, #tpu.memory_space<vmem>>) attributes {dimension_semantics = [#tpu.dimension_semantics<parallel>], iteration_bounds = array<i64: 2>, scalar_prefetch = 0 : i64, scratch_operands = 1 : i64, tpu.core_type = #tpu.core_type<tc>, window_params = [{transform_indices = @transform_0, window_bounds = array<i64: 1, 16, 16, 8>}, {pipeline_mode = #tpu.pipeline_mode<synchronous>, transform_indices = @transform_1, window_bounds = array<i64: 1, 8>}, {pipeline_mode = #tpu.pipeline_mode<synchronous>, transform_indices = @transform_2, window_bounds = array<i64: 1, 8>}, {pipeline_mode = #tpu.pipeline_mode<synchronous>, transform_indices = @transform_3, window_bounds = array<i64: 3, 3, 8, 8>}, {transform_indices = @transform_4, window_bounds = array<i64: 1, 16, 16, 8>}, {transform_indices = @transform_5, window_bounds = array<i64: 1, 1, 8>}, {transform_indices = @transform_6, window_bounds = array<i64: 1, 1, 8>}]} {
    %c0 = arith.constant 0 : index
    %c0_0 = arith.constant 0 : index
    %c0_1 = arith.constant 0 : index
    %c0_2 = arith.constant 0 : index
    %0 = vector.load %arg1[%c0, %c0_0, %c0_1, %c0_2] : memref<1x16x16x8xf32, #tpu.memory_space<vmem>>, vector<1x16x16x8xf32>
    %1 = vector.shape_cast %0 : vector<1x16x16x8xf32> to vector<16x16x8xf32>
    %c0_3 = arith.constant 0 : index
    %c0_4 = arith.constant 0 : index
    %2 = vector.load %arg2[%c0_3, %c0_4] : memref<1x8xf32, #tpu.memory_space<vmem>>, vector<1x8xf32>
    %3 = vector.shape_cast %2 : vector<1x8xf32> to vector<1x1x8xf32>
    %4 = vector.broadcast %3 : vector<1x1x8xf32> to vector<16x16x8xf32>
    %5 = arith.mulf %1, %4 : vector<16x16x8xf32>
    %c0_5 = arith.constant 0 : index
    %c0_6 = arith.constant 0 : index
    %6 = vector.load %arg3[%c0_5, %c0_6] : memref<1x8xf32, #tpu.memory_space<vmem>>, vector<1x8xf32>
    %7 = vector.shape_cast %6 : vector<1x8xf32> to vector<1x1x8xf32>
    %8 = vector.broadcast %7 : vector<1x1x8xf32> to vector<16x16x8xf32>
    %9 = arith.addf %5, %8 : vector<16x16x8xf32>
    %cst = arith.constant 0.000000e+00 : f32
    %10 = vector.broadcast %cst : f32 to vector<16x16x8xf32>
    %11 = arith.maximumf %9, %10 : vector<16x16x8xf32>
    %cst_7 = arith.constant 0.000000e+00 : f32
    %12 = vector.broadcast %cst_7 : f32 to vector<18x25x8xf32>
    %c0_8 = arith.constant 0 : index
    %c0_9 = arith.constant 0 : index
    %c0_10 = arith.constant 0 : index
    %13 = vector.load %arg8[%c0_8, %c0_9, %c0_10] : memref<18x25x8xf32, #tpu.memory_space<vmem>>, vector<18x25x8xf32>
    tpu.vector_store %arg8[%c0_8, %c0_9, %c0_10], %12 {strides = array<i32>} : memref<18x25x8xf32, #tpu.memory_space<vmem>>, vector<18x25x8xf32>,
    %c1 = arith.constant 1 : index
    %c8 = arith.constant 8 : index
    %c0_11 = arith.constant 0 : index
    %14 = vector.load %arg8[%c1, %c8, %c0_11] : memref<18x25x8xf32, #tpu.memory_space<vmem>>, vector<16x16x8xf32>
    tpu.vector_store %arg8[%c1, %c8, %c0_11], %11 {strides = array<i32>} : memref<18x25x8xf32, #tpu.memory_space<vmem>>, vector<16x16x8xf32>,
    %cst_12 = arith.constant 0.000000e+00 : f32
    %15 = vector.broadcast %cst_12 : f32 to vector<256x8xf32>
    %c0_13 = arith.constant 0 : index
    %c7 = arith.constant 7 : index
    %c0_14 = arith.constant 0 : index
    %16 = vector.load %arg8[%c0_13, %c7, %c0_14] : memref<18x25x8xf32, #tpu.memory_space<vmem>>, vector<16x16x8xf32>
    %17 = vector.shape_cast %16 : vector<16x16x8xf32> to vector<256x8xf32>
    %c0_15 = arith.constant 0 : index
    %c0_16 = arith.constant 0 : index
    %c0_17 = arith.constant 0 : index
    %c0_18 = arith.constant 0 : index
    %18 = vector.load %arg4[%c0_15, %c0_16, %c0_17, %c0_18] : memref<3x3x8x8xf32, #tpu.memory_space<vmem>>, vector<1x1x8x8xf32>
    %19 = vector.shape_cast %18 : vector<1x1x8x8xf32> to vector<8x8xf32>
    %cst_19 = arith.constant dense<0.000000e+00> : vector<256x8xf32>
    %20 = tpu.matmul %17, %19, %cst_19 {dimension_numbers = #tpu.dot_dimension_numbers<[1], [0], [0], [1], [0, 0, 1, 1], [], []>} : vector<256x8xf32>, vector<8x8xf32>, vector<256x8xf32> -> vector<256x8xf32>
    %21 = arith.addf %15, %20 : vector<256x8xf32>
    %c0_20 = arith.constant 0 : index
    %c8_21 = arith.constant 8 : index
    %c0_22 = arith.constant 0 : index
    %22 = vector.load %arg8[%c0_20, %c8_21, %c0_22] : memref<18x25x8xf32, #tpu.memory_space<vmem>>, vector<16x16x8xf32>
    %23 = vector.shape_cast %22 : vector<16x16x8xf32> to vector<256x8xf32>
    %c0_23 = arith.constant 0 : index
    %c1_24 = arith.constant 1 : index
    %c0_25 = arith.constant 0 : index
    %c0_26 = arith.constant 0 : index
    %24 = vector.load %arg4[%c0_23, %c1_24, %c0_25, %c0_26] : memref<3x3x8x8xf32, #tpu.memory_space<vmem>>, vector<1x1x8x8xf32>
    %25 = vector.shape_cast %24 : vector<1x1x8x8xf32> to vector<8x8xf32>
    %cst_27 = arith.constant dense<0.000000e+00> : vector<256x8xf32>
    %26 = tpu.matmul %23, %25, %cst_27 {dimension_numbers = #tpu.dot_dimension_numbers<[1], [0], [0], [1], [0, 0, 1, 1], [], []>} : vector<256x8xf32>, vector<8x8xf32>, vector<256x8xf32> -> vector<256x8xf32>
    %27 = arith.addf %21, %26 : vector<256x8xf32>
    %c0_28 = arith.constant 0 : index
    %c9 = arith.constant 9 : index
    %c0_29 = arith.constant 0 : index
    %28 = vector.load %arg8[%c0_28, %c9, %c0_29] : memref<18x25x8xf32, #tpu.memory_space<vmem>>, vector<16x16x8xf32>
    %29 = vector.shape_cast %28 : vector<16x16x8xf32> to vector<256x8xf32>
    %c0_30 = arith.constant 0 : index
    %c2 = arith.constant 2 : index
    %c0_31 = arith.constant 0 : index
    %c0_32 = arith.constant 0 : index
    %30 = vector.load %arg4[%c0_30, %c2, %c0_31, %c0_32] : memref<3x3x8x8xf32, #tpu.memory_space<vmem>>, vector<1x1x8x8xf32>
    %31 = vector.shape_cast %30 : vector<1x1x8x8xf32> to vector<8x8xf32>
    %cst_33 = arith.constant dense<0.000000e+00> : vector<256x8xf32>
    %32 = tpu.matmul %29, %31, %cst_33 {dimension_numbers = #tpu.dot_dimension_numbers<[1], [0], [0], [1], [0, 0, 1, 1], [], []>} : vector<256x8xf32>, vector<8x8xf32>, vector<256x8xf32> -> vector<256x8xf32>
    %33 = arith.addf %27, %32 : vector<256x8xf32>
    %c1_34 = arith.constant 1 : index
    %c7_35 = arith.constant 7 : index
    %c0_36 = arith.constant 0 : index
    %34 = vector.load %arg8[%c1_34, %c7_35, %c0_36] : memref<18x25x8xf32, #tpu.memory_space<vmem>>, vector<16x16x8xf32>
    %35 = vector.shape_cast %34 : vector<16x16x8xf32> to vector<256x8xf32>
    %c1_37 = arith.constant 1 : index
    %c0_38 = arith.constant 0 : index
    %c0_39 = arith.constant 0 : index
    %c0_40 = arith.constant 0 : index
    %36 = vector.load %arg4[%c1_37, %c0_38, %c0_39, %c0_40] : memref<3x3x8x8xf32, #tpu.memory_space<vmem>>, vector<1x1x8x8xf32>
    %37 = vector.shape_cast %36 : vector<1x1x8x8xf32> to vector<8x8xf32>
    %cst_41 = arith.constant dense<0.000000e+00> : vector<256x8xf32>
    %38 = tpu.matmul %35, %37, %cst_41 {dimension_numbers = #tpu.dot_dimension_numbers<[1], [0], [0], [1], [0, 0, 1, 1], [], []>} : vector<256x8xf32>, vector<8x8xf32>, vector<256x8xf32> -> vector<256x8xf32>
    %39 = arith.addf %33, %38 : vector<256x8xf32>
    %c1_42 = arith.constant 1 : index
    %c8_43 = arith.constant 8 : index
    %c0_44 = arith.constant 0 : index
    %40 = vector.load %arg8[%c1_42, %c8_43, %c0_44] : memref<18x25x8xf32, #tpu.memory_space<vmem>>, vector<16x16x8xf32>
    %41 = vector.shape_cast %40 : vector<16x16x8xf32> to vector<256x8xf32>
    %c1_45 = arith.constant 1 : index
    %c1_46 = arith.constant 1 : index
    %c0_47 = arith.constant 0 : index
    %c0_48 = arith.constant 0 : index
    %42 = vector.load %arg4[%c1_45, %c1_46, %c0_47, %c0_48] : memref<3x3x8x8xf32, #tpu.memory_space<vmem>>, vector<1x1x8x8xf32>
    %43 = vector.shape_cast %42 : vector<1x1x8x8xf32> to vector<8x8xf32>
    %cst_49 = arith.constant dense<0.000000e+00> : vector<256x8xf32>
    %44 = tpu.matmul %41, %43, %cst_49 {dimension_numbers = #tpu.dot_dimension_numbers<[1], [0], [0], [1], [0, 0, 1, 1], [], []>} : vector<256x8xf32>, vector<8x8xf32>, vector<256x8xf32> -> vector<256x8xf32>
    %45 = arith.addf %39, %44 : vector<256x8xf32>
    %c1_50 = arith.constant 1 : index
    %c9_51 = arith.constant 9 : index
    %c0_52 = arith.constant 0 : index
    %46 = vector.load %arg8[%c1_50, %c9_51, %c0_52] : memref<18x25x8xf32, #tpu.memory_space<vmem>>, vector<16x16x8xf32>
    %47 = vector.shape_cast %46 : vector<16x16x8xf32> to vector<256x8xf32>
    %c1_53 = arith.constant 1 : index
    %c2_54 = arith.constant 2 : index
    %c0_55 = arith.constant 0 : index
    %c0_56 = arith.constant 0 : index
    %48 = vector.load %arg4[%c1_53, %c2_54, %c0_55, %c0_56] : memref<3x3x8x8xf32, #tpu.memory_space<vmem>>, vector<1x1x8x8xf32>
    %49 = vector.shape_cast %48 : vector<1x1x8x8xf32> to vector<8x8xf32>
    %cst_57 = arith.constant dense<0.000000e+00> : vector<256x8xf32>
    %50 = tpu.matmul %47, %49, %cst_57 {dimension_numbers = #tpu.dot_dimension_numbers<[1], [0], [0], [1], [0, 0, 1, 1], [], []>} : vector<256x8xf32>, vector<8x8xf32>, vector<256x8xf32> -> vector<256x8xf32>
    %51 = arith.addf %45, %50 : vector<256x8xf32>
    %c2_58 = arith.constant 2 : index
    %c7_59 = arith.constant 7 : index
    %c0_60 = arith.constant 0 : index
    %52 = vector.load %arg8[%c2_58, %c7_59, %c0_60] : memref<18x25x8xf32, #tpu.memory_space<vmem>>, vector<16x16x8xf32>
    %53 = vector.shape_cast %52 : vector<16x16x8xf32> to vector<256x8xf32>
    %c2_61 = arith.constant 2 : index
    %c0_62 = arith.constant 0 : index
    %c0_63 = arith.constant 0 : index
    %c0_64 = arith.constant 0 : index
    %54 = vector.load %arg4[%c2_61, %c0_62, %c0_63, %c0_64] : memref<3x3x8x8xf32, #tpu.memory_space<vmem>>, vector<1x1x8x8xf32>
    %55 = vector.shape_cast %54 : vector<1x1x8x8xf32> to vector<8x8xf32>
    %cst_65 = arith.constant dense<0.000000e+00> : vector<256x8xf32>
    %56 = tpu.matmul %53, %55, %cst_65 {dimension_numbers = #tpu.dot_dimension_numbers<[1], [0], [0], [1], [0, 0, 1, 1], [], []>} : vector<256x8xf32>, vector<8x8xf32>, vector<256x8xf32> -> vector<256x8xf32>
    %57 = arith.addf %51, %56 : vector<256x8xf32>
    %c2_66 = arith.constant 2 : index
    %c8_67 = arith.constant 8 : index
    %c0_68 = arith.constant 0 : index
    %58 = vector.load %arg8[%c2_66, %c8_67, %c0_68] : memref<18x25x8xf32, #tpu.memory_space<vmem>>, vector<16x16x8xf32>
    %59 = vector.shape_cast %58 : vector<16x16x8xf32> to vector<256x8xf32>
    %c2_69 = arith.constant 2 : index
    %c1_70 = arith.constant 1 : index
    %c0_71 = arith.constant 0 : index
    %c0_72 = arith.constant 0 : index
    %60 = vector.load %arg4[%c2_69, %c1_70, %c0_71, %c0_72] : memref<3x3x8x8xf32, #tpu.memory_space<vmem>>, vector<1x1x8x8xf32>
    %61 = vector.shape_cast %60 : vector<1x1x8x8xf32> to vector<8x8xf32>
    %cst_73 = arith.constant dense<0.000000e+00> : vector<256x8xf32>
    %62 = tpu.matmul %59, %61, %cst_73 {dimension_numbers = #tpu.dot_dimension_numbers<[1], [0], [0], [1], [0, 0, 1, 1], [], []>} : vector<256x8xf32>, vector<8x8xf32>, vector<256x8xf32> -> vector<256x8xf32>
    %63 = arith.addf %57, %62 : vector<256x8xf32>
    %c2_74 = arith.constant 2 : index
    %c9_75 = arith.constant 9 : index
    %c0_76 = arith.constant 0 : index
    %64 = vector.load %arg8[%c2_74, %c9_75, %c0_76] : memref<18x25x8xf32, #tpu.memory_space<vmem>>, vector<16x16x8xf32>
    %65 = vector.shape_cast %64 : vector<16x16x8xf32> to vector<256x8xf32>
    %c2_77 = arith.constant 2 : index
    %c2_78 = arith.constant 2 : index
    %c0_79 = arith.constant 0 : index
    %c0_80 = arith.constant 0 : index
    %66 = vector.load %arg4[%c2_77, %c2_78, %c0_79, %c0_80] : memref<3x3x8x8xf32, #tpu.memory_space<vmem>>, vector<1x1x8x8xf32>
    %67 = vector.shape_cast %66 : vector<1x1x8x8xf32> to vector<8x8xf32>
    %cst_81 = arith.constant dense<0.000000e+00> : vector<256x8xf32>
    %68 = tpu.matmul %65, %67, %cst_81 {dimension_numbers = #tpu.dot_dimension_numbers<[1], [0], [0], [1], [0, 0, 1, 1], [], []>} : vector<256x8xf32>, vector<8x8xf32>, vector<256x8xf32> -> vector<256x8xf32>
    %69 = arith.addf %63, %68 : vector<256x8xf32>
    %70 = vector.shape_cast %69 : vector<256x8xf32> to vector<16x16x8xf32>
    %c0_82 = arith.constant 0 : index
    %c0_83 = arith.constant 0 : index
    %c0_84 = arith.constant 0 : index
    %c0_85 = arith.constant 0 : index
    %71 = vector.load %arg5[%c0_82, %c0_83, %c0_84, %c0_85] : memref<1x16x16x8xf32, #tpu.memory_space<vmem>>, vector<1x16x16x8xf32>
    %72 = vector.shape_cast %71 : vector<1x16x16x8xf32> to vector<16x16x8xf32>
    %73 = vector.shape_cast %70 : vector<16x16x8xf32> to vector<1x16x16x8xf32>
    tpu.vector_store %arg5[%c0_82, %c0_83, %c0_84, %c0_85], %73 {strides = array<i32>} : memref<1x16x16x8xf32, #tpu.memory_space<vmem>>, vector<1x16x16x8xf32>,
    %cst_86 = arith.constant dense<0.000000e+00> : vector<8xf32>
    %74 = vector.multi_reduction <add>, %69, %cst_86 [0] : vector<256x8xf32> to vector<8xf32>
    %75 = vector.shape_cast %74 : vector<8xf32> to vector<1x8xf32>
    %c0_87 = arith.constant 0 : index
    %c0_88 = arith.constant 0 : index
    %c0_89 = arith.constant 0 : index
    %76 = vector.load %arg6[%c0_87, %c0_88, %c0_89] : memref<1x1x8xf32, #tpu.memory_space<vmem>>, vector<1x1x8xf32>
    %77 = vector.shape_cast %76 : vector<1x1x8xf32> to vector<1x8xf32>
    %78 = vector.shape_cast %75 : vector<1x8xf32> to vector<1x1x8xf32>
    tpu.vector_store %arg6[%c0_87, %c0_88, %c0_89], %78 {strides = array<i32>} : memref<1x1x8xf32, #tpu.memory_space<vmem>>, vector<1x1x8xf32>,
    %79 = arith.mulf %69, %69 : vector<256x8xf32>
    %cst_90 = arith.constant dense<0.000000e+00> : vector<8xf32>
    %80 = vector.multi_reduction <add>, %79, %cst_90 [0] : vector<256x8xf32> to vector<8xf32>
    %81 = vector.shape_cast %80 : vector<8xf32> to vector<1x8xf32>
    %c0_91 = arith.constant 0 : index
    %c0_92 = arith.constant 0 : index
    %c0_93 = arith.constant 0 : index
    %82 = vector.load %arg7[%c0_91, %c0_92, %c0_93] : memref<1x1x8xf32, #tpu.memory_space<vmem>>, vector<1x1x8xf32>
    %83 = vector.shape_cast %82 : vector<1x1x8xf32> to vector<1x8xf32>
    %84 = vector.shape_cast %81 : vector<1x8xf32> to vector<1x1x8xf32>
    tpu.vector_store %arg7[%c0_91, %c0_92, %c0_93], %84 {strides = array<i32>} : memref<1x1x8xf32, #tpu.memory_space<vmem>>, vector<1x1x8xf32>,
    return
  }
  func.func @transform_0(%arg0: i32) -> (i32, i32, i32, i32) {
    %c0_i32 = arith.constant 0 : i32
    %c0_i32_0 = arith.constant 0 : i32
    %c0_i32_1 = arith.constant 0 : i32
    %c0_i32_2 = arith.constant 0 : i32
    return %arg0, %c0_i32, %c0_i32_0, %c0_i32_1 : i32, i32, i32, i32
  }
  func.func @transform_1(%arg0: i32) -> (i32, i32) {
    %c0_i32 = arith.constant 0 : i32
    %c0_i32_0 = arith.constant 0 : i32
    %c0_i32_1 = arith.constant 0 : i32
    return %c0_i32, %c0_i32_0 : i32, i32
  }
  func.func @transform_2(%arg0: i32) -> (i32, i32) {
    %c0_i32 = arith.constant 0 : i32
    %c0_i32_0 = arith.constant 0 : i32
    %c0_i32_1 = arith.constant 0 : i32
    return %c0_i32, %c0_i32_0 : i32, i32
  }
  func.func @transform_3(%arg0: i32) -> (i32, i32, i32, i32) {
    %c0_i32 = arith.constant 0 : i32
    %c0_i32_0 = arith.constant 0 : i32
    %c0_i32_1 = arith.constant 0 : i32
    %c0_i32_2 = arith.constant 0 : i32
    %c0_i32_3 = arith.constant 0 : i32
    return %c0_i32, %c0_i32_0, %c0_i32_1, %c0_i32_2 : i32, i32, i32, i32
  }
  func.func @transform_4(%arg0: i32) -> (i32, i32, i32, i32) {
    %c0_i32 = arith.constant 0 : i32
    %c0_i32_0 = arith.constant 0 : i32
    %c0_i32_1 = arith.constant 0 : i32
    %c0_i32_2 = arith.constant 0 : i32
    return %arg0, %c0_i32, %c0_i32_0, %c0_i32_1 : i32, i32, i32, i32
  }
  func.func @transform_5(%arg0: i32) -> (i32, i32, i32) {
    %c0_i32 = arith.constant 0 : i32
    %c0_i32_0 = arith.constant 0 : i32
    %c0_i32_1 = arith.constant 0 : i32
    return %arg0, %c0_i32, %c0_i32_0 : i32, i32, i32
  }
  func.func @transform_6(%arg0: i32) -> (i32, i32, i32) {
    %c0_i32 = arith.constant 0 : i32
    %c0_i32_0 = arith.constant 0 : i32
    %c0_i32_1 = arith.constant 0 : i32
    return %arg0, %c0_i32, %c0_i32_0 : i32, i32, i32
  }
}

module attributes {stable_mosaic.version = 11 : i64} {
  func.func @_conv3x3_moments_kernel(%arg0: i32, %arg1: memref<1x16x16x4xf32, #tpu.memory_space<vmem>>, %arg2: memref<3x3x4x8xf32, #tpu.memory_space<vmem>>, %arg3: memref<1x16x16x8xf32, #tpu.memory_space<vmem>>, %arg4: memref<1x1x8xf32, #tpu.memory_space<vmem>>, %arg5: memref<1x1x8xf32, #tpu.memory_space<vmem>>, %arg6: memref<18x25x4xf32, #tpu.memory_space<vmem>>) attributes {dimension_semantics = [#tpu.dimension_semantics<parallel>], iteration_bounds = array<i64: 2>, scalar_prefetch = 0 : i64, scratch_operands = 1 : i64, tpu.core_type = #tpu.core_type<tc>, window_params = [{transform_indices = @transform_0, window_bounds = array<i64: 1, 16, 16, 4>}, {pipeline_mode = #tpu.pipeline_mode<synchronous>, transform_indices = @transform_1, window_bounds = array<i64: 3, 3, 4, 8>}, {transform_indices = @transform_2, window_bounds = array<i64: 1, 16, 16, 8>}, {transform_indices = @transform_3, window_bounds = array<i64: 1, 1, 8>}, {transform_indices = @transform_4, window_bounds = array<i64: 1, 1, 8>}]} {
    %c0 = arith.constant 0 : index
    %c0_0 = arith.constant 0 : index
    %c0_1 = arith.constant 0 : index
    %c0_2 = arith.constant 0 : index
    %0 = vector.load %arg1[%c0, %c0_0, %c0_1, %c0_2] : memref<1x16x16x4xf32, #tpu.memory_space<vmem>>, vector<1x16x16x4xf32>
    %1 = vector.shape_cast %0 : vector<1x16x16x4xf32> to vector<16x16x4xf32>
    %cst = arith.constant 0.000000e+00 : f32
    %2 = vector.broadcast %cst : f32 to vector<18x25x4xf32>
    %c0_3 = arith.constant 0 : index
    %c0_4 = arith.constant 0 : index
    %c0_5 = arith.constant 0 : index
    %3 = vector.load %arg6[%c0_3, %c0_4, %c0_5] : memref<18x25x4xf32, #tpu.memory_space<vmem>>, vector<18x25x4xf32>
    tpu.vector_store %arg6[%c0_3, %c0_4, %c0_5], %2 {strides = array<i32>} : memref<18x25x4xf32, #tpu.memory_space<vmem>>, vector<18x25x4xf32>,
    %c1 = arith.constant 1 : index
    %c8 = arith.constant 8 : index
    %c0_6 = arith.constant 0 : index
    %4 = vector.load %arg6[%c1, %c8, %c0_6] : memref<18x25x4xf32, #tpu.memory_space<vmem>>, vector<16x16x4xf32>
    tpu.vector_store %arg6[%c1, %c8, %c0_6], %1 {strides = array<i32>} : memref<18x25x4xf32, #tpu.memory_space<vmem>>, vector<16x16x4xf32>,
    %cst_7 = arith.constant 0.000000e+00 : f32
    %5 = vector.broadcast %cst_7 : f32 to vector<256x8xf32>
    %c0_8 = arith.constant 0 : index
    %c7 = arith.constant 7 : index
    %c0_9 = arith.constant 0 : index
    %6 = vector.load %arg6[%c0_8, %c7, %c0_9] : memref<18x25x4xf32, #tpu.memory_space<vmem>>, vector<16x16x4xf32>
    %7 = vector.shape_cast %6 : vector<16x16x4xf32> to vector<256x4xf32>
    %c0_10 = arith.constant 0 : index
    %c0_11 = arith.constant 0 : index
    %c0_12 = arith.constant 0 : index
    %c0_13 = arith.constant 0 : index
    %8 = vector.load %arg2[%c0_10, %c0_11, %c0_12, %c0_13] : memref<3x3x4x8xf32, #tpu.memory_space<vmem>>, vector<1x1x4x8xf32>
    %9 = vector.shape_cast %8 : vector<1x1x4x8xf32> to vector<4x8xf32>
    %cst_14 = arith.constant dense<0.000000e+00> : vector<256x8xf32>
    %10 = tpu.matmul %7, %9, %cst_14 {dimension_numbers = #tpu.dot_dimension_numbers<[1], [0], [0], [1], [0, 0, 1, 1], [], []>} : vector<256x4xf32>, vector<4x8xf32>, vector<256x8xf32> -> vector<256x8xf32>
    %11 = arith.addf %5, %10 : vector<256x8xf32>
    %c0_15 = arith.constant 0 : index
    %c8_16 = arith.constant 8 : index
    %c0_17 = arith.constant 0 : index
    %12 = vector.load %arg6[%c0_15, %c8_16, %c0_17] : memref<18x25x4xf32, #tpu.memory_space<vmem>>, vector<16x16x4xf32>
    %13 = vector.shape_cast %12 : vector<16x16x4xf32> to vector<256x4xf32>
    %c0_18 = arith.constant 0 : index
    %c1_19 = arith.constant 1 : index
    %c0_20 = arith.constant 0 : index
    %c0_21 = arith.constant 0 : index
    %14 = vector.load %arg2[%c0_18, %c1_19, %c0_20, %c0_21] : memref<3x3x4x8xf32, #tpu.memory_space<vmem>>, vector<1x1x4x8xf32>
    %15 = vector.shape_cast %14 : vector<1x1x4x8xf32> to vector<4x8xf32>
    %cst_22 = arith.constant dense<0.000000e+00> : vector<256x8xf32>
    %16 = tpu.matmul %13, %15, %cst_22 {dimension_numbers = #tpu.dot_dimension_numbers<[1], [0], [0], [1], [0, 0, 1, 1], [], []>} : vector<256x4xf32>, vector<4x8xf32>, vector<256x8xf32> -> vector<256x8xf32>
    %17 = arith.addf %11, %16 : vector<256x8xf32>
    %c0_23 = arith.constant 0 : index
    %c9 = arith.constant 9 : index
    %c0_24 = arith.constant 0 : index
    %18 = vector.load %arg6[%c0_23, %c9, %c0_24] : memref<18x25x4xf32, #tpu.memory_space<vmem>>, vector<16x16x4xf32>
    %19 = vector.shape_cast %18 : vector<16x16x4xf32> to vector<256x4xf32>
    %c0_25 = arith.constant 0 : index
    %c2 = arith.constant 2 : index
    %c0_26 = arith.constant 0 : index
    %c0_27 = arith.constant 0 : index
    %20 = vector.load %arg2[%c0_25, %c2, %c0_26, %c0_27] : memref<3x3x4x8xf32, #tpu.memory_space<vmem>>, vector<1x1x4x8xf32>
    %21 = vector.shape_cast %20 : vector<1x1x4x8xf32> to vector<4x8xf32>
    %cst_28 = arith.constant dense<0.000000e+00> : vector<256x8xf32>
    %22 = tpu.matmul %19, %21, %cst_28 {dimension_numbers = #tpu.dot_dimension_numbers<[1], [0], [0], [1], [0, 0, 1, 1], [], []>} : vector<256x4xf32>, vector<4x8xf32>, vector<256x8xf32> -> vector<256x8xf32>
    %23 = arith.addf %17, %22 : vector<256x8xf32>
    %c1_29 = arith.constant 1 : index
    %c7_30 = arith.constant 7 : index
    %c0_31 = arith.constant 0 : index
    %24 = vector.load %arg6[%c1_29, %c7_30, %c0_31] : memref<18x25x4xf32, #tpu.memory_space<vmem>>, vector<16x16x4xf32>
    %25 = vector.shape_cast %24 : vector<16x16x4xf32> to vector<256x4xf32>
    %c1_32 = arith.constant 1 : index
    %c0_33 = arith.constant 0 : index
    %c0_34 = arith.constant 0 : index
    %c0_35 = arith.constant 0 : index
    %26 = vector.load %arg2[%c1_32, %c0_33, %c0_34, %c0_35] : memref<3x3x4x8xf32, #tpu.memory_space<vmem>>, vector<1x1x4x8xf32>
    %27 = vector.shape_cast %26 : vector<1x1x4x8xf32> to vector<4x8xf32>
    %cst_36 = arith.constant dense<0.000000e+00> : vector<256x8xf32>
    %28 = tpu.matmul %25, %27, %cst_36 {dimension_numbers = #tpu.dot_dimension_numbers<[1], [0], [0], [1], [0, 0, 1, 1], [], []>} : vector<256x4xf32>, vector<4x8xf32>, vector<256x8xf32> -> vector<256x8xf32>
    %29 = arith.addf %23, %28 : vector<256x8xf32>
    %c1_37 = arith.constant 1 : index
    %c8_38 = arith.constant 8 : index
    %c0_39 = arith.constant 0 : index
    %30 = vector.load %arg6[%c1_37, %c8_38, %c0_39] : memref<18x25x4xf32, #tpu.memory_space<vmem>>, vector<16x16x4xf32>
    %31 = vector.shape_cast %30 : vector<16x16x4xf32> to vector<256x4xf32>
    %c1_40 = arith.constant 1 : index
    %c1_41 = arith.constant 1 : index
    %c0_42 = arith.constant 0 : index
    %c0_43 = arith.constant 0 : index
    %32 = vector.load %arg2[%c1_40, %c1_41, %c0_42, %c0_43] : memref<3x3x4x8xf32, #tpu.memory_space<vmem>>, vector<1x1x4x8xf32>
    %33 = vector.shape_cast %32 : vector<1x1x4x8xf32> to vector<4x8xf32>
    %cst_44 = arith.constant dense<0.000000e+00> : vector<256x8xf32>
    %34 = tpu.matmul %31, %33, %cst_44 {dimension_numbers = #tpu.dot_dimension_numbers<[1], [0], [0], [1], [0, 0, 1, 1], [], []>} : vector<256x4xf32>, vector<4x8xf32>, vector<256x8xf32> -> vector<256x8xf32>
    %35 = arith.addf %29, %34 : vector<256x8xf32>
    %c1_45 = arith.constant 1 : index
    %c9_46 = arith.constant 9 : index
    %c0_47 = arith.constant 0 : index
    %36 = vector.load %arg6[%c1_45, %c9_46, %c0_47] : memref<18x25x4xf32, #tpu.memory_space<vmem>>, vector<16x16x4xf32>
    %37 = vector.shape_cast %36 : vector<16x16x4xf32> to vector<256x4xf32>
    %c1_48 = arith.constant 1 : index
    %c2_49 = arith.constant 2 : index
    %c0_50 = arith.constant 0 : index
    %c0_51 = arith.constant 0 : index
    %38 = vector.load %arg2[%c1_48, %c2_49, %c0_50, %c0_51] : memref<3x3x4x8xf32, #tpu.memory_space<vmem>>, vector<1x1x4x8xf32>
    %39 = vector.shape_cast %38 : vector<1x1x4x8xf32> to vector<4x8xf32>
    %cst_52 = arith.constant dense<0.000000e+00> : vector<256x8xf32>
    %40 = tpu.matmul %37, %39, %cst_52 {dimension_numbers = #tpu.dot_dimension_numbers<[1], [0], [0], [1], [0, 0, 1, 1], [], []>} : vector<256x4xf32>, vector<4x8xf32>, vector<256x8xf32> -> vector<256x8xf32>
    %41 = arith.addf %35, %40 : vector<256x8xf32>
    %c2_53 = arith.constant 2 : index
    %c7_54 = arith.constant 7 : index
    %c0_55 = arith.constant 0 : index
    %42 = vector.load %arg6[%c2_53, %c7_54, %c0_55] : memref<18x25x4xf32, #tpu.memory_space<vmem>>, vector<16x16x4xf32>
    %43 = vector.shape_cast %42 : vector<16x16x4xf32> to vector<256x4xf32>
    %c2_56 = arith.constant 2 : index
    %c0_57 = arith.constant 0 : index
    %c0_58 = arith.constant 0 : index
    %c0_59 = arith.constant 0 : index
    %44 = vector.load %arg2[%c2_56, %c0_57, %c0_58, %c0_59] : memref<3x3x4x8xf32, #tpu.memory_space<vmem>>, vector<1x1x4x8xf32>
    %45 = vector.shape_cast %44 : vector<1x1x4x8xf32> to vector<4x8xf32>
    %cst_60 = arith.constant dense<0.000000e+00> : vector<256x8xf32>
    %46 = tpu.matmul %43, %45, %cst_60 {dimension_numbers = #tpu.dot_dimension_numbers<[1], [0], [0], [1], [0, 0, 1, 1], [], []>} : vector<256x4xf32>, vector<4x8xf32>, vector<256x8xf32> -> vector<256x8xf32>
    %47 = arith.addf %41, %46 : vector<256x8xf32>
    %c2_61 = arith.constant 2 : index
    %c8_62 = arith.constant 8 : index
    %c0_63 = arith.constant 0 : index
    %48 = vector.load %arg6[%c2_61, %c8_62, %c0_63] : memref<18x25x4xf32, #tpu.memory_space<vmem>>, vector<16x16x4xf32>
    %49 = vector.shape_cast %48 : vector<16x16x4xf32> to vector<256x4xf32>
    %c2_64 = arith.constant 2 : index
    %c1_65 = arith.constant 1 : index
    %c0_66 = arith.constant 0 : index
    %c0_67 = arith.constant 0 : index
    %50 = vector.load %arg2[%c2_64, %c1_65, %c0_66, %c0_67] : memref<3x3x4x8xf32, #tpu.memory_space<vmem>>, vector<1x1x4x8xf32>
    %51 = vector.shape_cast %50 : vector<1x1x4x8xf32> to vector<4x8xf32>
    %cst_68 = arith.constant dense<0.000000e+00> : vector<256x8xf32>
    %52 = tpu.matmul %49, %51, %cst_68 {dimension_numbers = #tpu.dot_dimension_numbers<[1], [0], [0], [1], [0, 0, 1, 1], [], []>} : vector<256x4xf32>, vector<4x8xf32>, vector<256x8xf32> -> vector<256x8xf32>
    %53 = arith.addf %47, %52 : vector<256x8xf32>
    %c2_69 = arith.constant 2 : index
    %c9_70 = arith.constant 9 : index
    %c0_71 = arith.constant 0 : index
    %54 = vector.load %arg6[%c2_69, %c9_70, %c0_71] : memref<18x25x4xf32, #tpu.memory_space<vmem>>, vector<16x16x4xf32>
    %55 = vector.shape_cast %54 : vector<16x16x4xf32> to vector<256x4xf32>
    %c2_72 = arith.constant 2 : index
    %c2_73 = arith.constant 2 : index
    %c0_74 = arith.constant 0 : index
    %c0_75 = arith.constant 0 : index
    %56 = vector.load %arg2[%c2_72, %c2_73, %c0_74, %c0_75] : memref<3x3x4x8xf32, #tpu.memory_space<vmem>>, vector<1x1x4x8xf32>
    %57 = vector.shape_cast %56 : vector<1x1x4x8xf32> to vector<4x8xf32>
    %cst_76 = arith.constant dense<0.000000e+00> : vector<256x8xf32>
    %58 = tpu.matmul %55, %57, %cst_76 {dimension_numbers = #tpu.dot_dimension_numbers<[1], [0], [0], [1], [0, 0, 1, 1], [], []>} : vector<256x4xf32>, vector<4x8xf32>, vector<256x8xf32> -> vector<256x8xf32>
    %59 = arith.addf %53, %58 : vector<256x8xf32>
    %60 = vector.shape_cast %59 : vector<256x8xf32> to vector<16x16x8xf32>
    %c0_77 = arith.constant 0 : index
    %c0_78 = arith.constant 0 : index
    %c0_79 = arith.constant 0 : index
    %c0_80 = arith.constant 0 : index
    %61 = vector.load %arg3[%c0_77, %c0_78, %c0_79, %c0_80] : memref<1x16x16x8xf32, #tpu.memory_space<vmem>>, vector<1x16x16x8xf32>
    %62 = vector.shape_cast %61 : vector<1x16x16x8xf32> to vector<16x16x8xf32>
    %63 = vector.shape_cast %60 : vector<16x16x8xf32> to vector<1x16x16x8xf32>
    tpu.vector_store %arg3[%c0_77, %c0_78, %c0_79, %c0_80], %63 {strides = array<i32>} : memref<1x16x16x8xf32, #tpu.memory_space<vmem>>, vector<1x16x16x8xf32>,
    %cst_81 = arith.constant dense<0.000000e+00> : vector<8xf32>
    %64 = vector.multi_reduction <add>, %59, %cst_81 [0] : vector<256x8xf32> to vector<8xf32>
    %65 = vector.shape_cast %64 : vector<8xf32> to vector<1x8xf32>
    %c0_82 = arith.constant 0 : index
    %c0_83 = arith.constant 0 : index
    %c0_84 = arith.constant 0 : index
    %66 = vector.load %arg4[%c0_82, %c0_83, %c0_84] : memref<1x1x8xf32, #tpu.memory_space<vmem>>, vector<1x1x8xf32>
    %67 = vector.shape_cast %66 : vector<1x1x8xf32> to vector<1x8xf32>
    %68 = vector.shape_cast %65 : vector<1x8xf32> to vector<1x1x8xf32>
    tpu.vector_store %arg4[%c0_82, %c0_83, %c0_84], %68 {strides = array<i32>} : memref<1x1x8xf32, #tpu.memory_space<vmem>>, vector<1x1x8xf32>,
    %69 = arith.mulf %59, %59 : vector<256x8xf32>
    %cst_85 = arith.constant dense<0.000000e+00> : vector<8xf32>
    %70 = vector.multi_reduction <add>, %69, %cst_85 [0] : vector<256x8xf32> to vector<8xf32>
    %71 = vector.shape_cast %70 : vector<8xf32> to vector<1x8xf32>
    %c0_86 = arith.constant 0 : index
    %c0_87 = arith.constant 0 : index
    %c0_88 = arith.constant 0 : index
    %72 = vector.load %arg5[%c0_86, %c0_87, %c0_88] : memref<1x1x8xf32, #tpu.memory_space<vmem>>, vector<1x1x8xf32>
    %73 = vector.shape_cast %72 : vector<1x1x8xf32> to vector<1x8xf32>
    %74 = vector.shape_cast %71 : vector<1x8xf32> to vector<1x1x8xf32>
    tpu.vector_store %arg5[%c0_86, %c0_87, %c0_88], %74 {strides = array<i32>} : memref<1x1x8xf32, #tpu.memory_space<vmem>>, vector<1x1x8xf32>,
    return
  }
  func.func @transform_0(%arg0: i32) -> (i32, i32, i32, i32) {
    %c0_i32 = arith.constant 0 : i32
    %c0_i32_0 = arith.constant 0 : i32
    %c0_i32_1 = arith.constant 0 : i32
    %c0_i32_2 = arith.constant 0 : i32
    return %arg0, %c0_i32, %c0_i32_0, %c0_i32_1 : i32, i32, i32, i32
  }
  func.func @transform_1(%arg0: i32) -> (i32, i32, i32, i32) {
    %c0_i32 = arith.constant 0 : i32
    %c0_i32_0 = arith.constant 0 : i32
    %c0_i32_1 = arith.constant 0 : i32
    %c0_i32_2 = arith.constant 0 : i32
    %c0_i32_3 = arith.constant 0 : i32
    return %c0_i32, %c0_i32_0, %c0_i32_1, %c0_i32_2 : i32, i32, i32, i32
  }
  func.func @transform_2(%arg0: i32) -> (i32, i32, i32, i32) {
    %c0_i32 = arith.constant 0 : i32
    %c0_i32_0 = arith.constant 0 : i32
    %c0_i32_1 = arith.constant 0 : i32
    %c0_i32_2 = arith.constant 0 : i32
    return %arg0, %c0_i32, %c0_i32_0, %c0_i32_1 : i32, i32, i32, i32
  }
  func.func @transform_3(%arg0: i32) -> (i32, i32, i32) {
    %c0_i32 = arith.constant 0 : i32
    %c0_i32_0 = arith.constant 0 : i32
    %c0_i32_1 = arith.constant 0 : i32
    return %arg0, %c0_i32, %c0_i32_0 : i32, i32, i32
  }
  func.func @transform_4(%arg0: i32) -> (i32, i32, i32) {
    %c0_i32 = arith.constant 0 : i32
    %c0_i32_0 = arith.constant 0 : i32
    %c0_i32_1 = arith.constant 0 : i32
    return %arg0, %c0_i32, %c0_i32_0 : i32, i32, i32
  }
}

module attributes {stable_mosaic.version = 11 : i64} {
  func.func @_bn_relu_add_proj_kernel(%arg0: i32, %arg1: memref<1x16x16x8xf32, #tpu.memory_space<vmem>>, %arg2: memref<1x8xf32, #tpu.memory_space<vmem>>, %arg3: memref<1x8xf32, #tpu.memory_space<vmem>>, %arg4: memref<1x16x16x4xf32, #tpu.memory_space<vmem>>, %arg5: memref<4x8xf32, #tpu.memory_space<vmem>>, %arg6: memref<1x8xf32, #tpu.memory_space<vmem>>, %arg7: memref<1x16x16x8xf32, #tpu.memory_space<vmem>>) attributes {dimension_semantics = [#tpu.dimension_semantics<parallel>], iteration_bounds = array<i64: 2>, scalar_prefetch = 0 : i64, scratch_operands = 0 : i64, tpu.core_type = #tpu.core_type<tc>, window_params = [{transform_indices = @transform_0, window_bounds = array<i64: 1, 16, 16, 8>}, {pipeline_mode = #tpu.pipeline_mode<synchronous>, transform_indices = @transform_1, window_bounds = array<i64: 1, 8>}, {pipeline_mode = #tpu.pipeline_mode<synchronous>, transform_indices = @transform_2, window_bounds = array<i64: 1, 8>}, {transform_indices = @transform_3, window_bounds = array<i64: 1, 16, 16, 4>}, {pipeline_mode = #tpu.pipeline_mode<synchronous>, transform_indices = @transform_4, window_bounds = array<i64: 4, 8>}, {pipeline_mode = #tpu.pipeline_mode<synchronous>, transform_indices = @transform_5, window_bounds = array<i64: 1, 8>}, {transform_indices = @transform_6, window_bounds = array<i64: 1, 16, 16, 8>}]} {
    %c0 = arith.constant 0 : index
    %c0_0 = arith.constant 0 : index
    %c0_1 = arith.constant 0 : index
    %c0_2 = arith.constant 0 : index
    %0 = vector.load %arg1[%c0, %c0_0, %c0_1, %c0_2] : memref<1x16x16x8xf32, #tpu.memory_space<vmem>>, vector<1x16x16x8xf32>
    %1 = vector.shape_cast %0 : vector<1x16x16x8xf32> to vector<16x16x8xf32>
    %c0_3 = arith.constant 0 : index
    %c0_4 = arith.constant 0 : index
    %2 = vector.load %arg2[%c0_3, %c0_4] : memref<1x8xf32, #tpu.memory_space<vmem>>, vector<1x8xf32>
    %3 = vector.shape_cast %2 : vector<1x8xf32> to vector<1x1x8xf32>
    %4 = vector.broadcast %3 : vector<1x1x8xf32> to vector<16x16x8xf32>
    %5 = arith.mulf %1, %4 : vector<16x16x8xf32>
    %c0_5 = arith.constant 0 : index
    %c0_6 = arith.constant 0 : index
    %6 = vector.load %arg3[%c0_5, %c0_6] : memref<1x8xf32, #tpu.memory_space<vmem>>, vector<1x8xf32>
    %7 = vector.shape_cast %6 : vector<1x8xf32> to vector<1x1x8xf32>
    %8 = vector.broadcast %7 : vector<1x1x8xf32> to vector<16x16x8xf32>
    %9 = arith.addf %5, %8 : vector<16x16x8xf32>
    %cst = arith.constant 0.000000e+00 : f32
    %10 = vector.broadcast %cst : f32 to vector<16x16x8xf32>
    %11 = arith.maximumf %9, %10 : vector<16x16x8xf32>
    %c0_7 = arith.constant 0 : index
    %c0_8 = arith.constant 0 : index
    %c0_9 = arith.constant 0 : index
    %c0_10 = arith.constant 0 : index
    %12 = vector.load %arg4[%c0_7, %c0_8, %c0_9, %c0_10] : memref<1x16x16x4xf32, #tpu.memory_space<vmem>>, vector<1x16x16x4xf32>
    %13 = vector.shape_cast %12 : vector<1x16x16x4xf32> to vector<16x16x4xf32>
    %14 = vector.shape_cast %13 : vector<16x16x4xf32> to vector<256x4xf32>
    %c0_11 = arith.constant 0 : index
    %c0_12 = arith.constant 0 : index
    %15 = vector.load %arg5[%c0_11, %c0_12] : memref<4x8xf32, #tpu.memory_space<vmem>>, vector<4x8xf32>
    %cst_13 = arith.constant dense<0.000000e+00> : vector<256x8xf32>
    %16 = tpu.matmul %14, %15, %cst_13 {dimension_numbers = #tpu.dot_dimension_numbers<[1], [0], [0], [1], [0, 0, 1, 1], [], []>} : vector<256x4xf32>, vector<4x8xf32>, vector<256x8xf32> -> vector<256x8xf32>
    %c0_14 = arith.constant 0 : index
    %c0_15 = arith.constant 0 : index
    %17 = vector.load %arg6[%c0_14, %c0_15] : memref<1x8xf32, #tpu.memory_space<vmem>>, vector<1x8xf32>
    %18 = vector.broadcast %17 : vector<1x8xf32> to vector<256x8xf32>
    %19 = arith.addf %16, %18 : vector<256x8xf32>
    %20 = vector.shape_cast %19 : vector<256x8xf32> to vector<16x16x8xf32>
    %21 = arith.addf %11, %20 : vector<16x16x8xf32>
    %c0_16 = arith.constant 0 : index
    %c0_17 = arith.constant 0 : index
    %c0_18 = arith.constant 0 : index
    %c0_19 = arith.constant 0 : index
    %22 = vector.load %arg7[%c0_16, %c0_17, %c0_18, %c0_19] : memref<1x16x16x8xf32, #tpu.memory_space<vmem>>, vector<1x16x16x8xf32>
    %23 = vector.shape_cast %22 : vector<1x16x16x8xf32> to vector<16x16x8xf32>
    %24 = vector.shape_cast %21 : vector<16x16x8xf32> to vector<1x16x16x8xf32>
    tpu.vector_store %arg7[%c0_16, %c0_17, %c0_18, %c0_19], %24 {strides = array<i32>} : memref<1x16x16x8xf32, #tpu.memory_space<vmem>>, vector<1x16x16x8xf32>,
    return
  }
  func.func @transform_0(%arg0: i32) -> (i32, i32, i32, i32) {
    %c0_i32 = arith.constant 0 : i32
    %c0_i32_0 = arith.constant 0 : i32
    %c0_i32_1 = arith.constant 0 : i32
    %c0_i32_2 = arith.constant 0 : i32
    return %arg0, %c0_i32, %c0_i32_0, %c0_i32_1 : i32, i32, i32, i32
  }
  func.func @transform_1(%arg0: i32) -> (i32, i32) {
    %c0_i32 = arith.constant 0 : i32
    %c0_i32_0 = arith.constant 0 : i32
    %c0_i32_1 = arith.constant 0 : i32
    return %c0_i32, %c0_i32_0 : i32, i32
  }
  func.func @transform_2(%arg0: i32) -> (i32, i32) {
    %c0_i32 = arith.constant 0 : i32
    %c0_i32_0 = arith.constant 0 : i32
    %c0_i32_1 = arith.constant 0 : i32
    return %c0_i32, %c0_i32_0 : i32, i32
  }
  func.func @transform_3(%arg0: i32) -> (i32, i32, i32, i32) {
    %c0_i32 = arith.constant 0 : i32
    %c0_i32_0 = arith.constant 0 : i32
    %c0_i32_1 = arith.constant 0 : i32
    %c0_i32_2 = arith.constant 0 : i32
    return %arg0, %c0_i32, %c0_i32_0, %c0_i32_1 : i32, i32, i32, i32
  }
  func.func @transform_4(%arg0: i32) -> (i32, i32) {
    %c0_i32 = arith.constant 0 : i32
    %c0_i32_0 = arith.constant 0 : i32
    %c0_i32_1 = arith.constant 0 : i32
    return %c0_i32, %c0_i32_0 : i32, i32
  }
  func.func @transform_5(%arg0: i32) -> (i32, i32) {
    %c0_i32 = arith.constant 0 : i32
    %c0_i32_0 = arith.constant 0 : i32
    %c0_i32_1 = arith.constant 0 : i32
    return %c0_i32, %c0_i32_0 : i32, i32
  }
  func.func @transform_6(%arg0: i32) -> (i32, i32, i32, i32) {
    %c0_i32 = arith.constant 0 : i32
    %c0_i32_0 = arith.constant 0 : i32
    %c0_i32_1 = arith.constant 0 : i32
    %c0_i32_2 = arith.constant 0 : i32
    return %arg0, %c0_i32, %c0_i32_0, %c0_i32_1 : i32, i32, i32, i32
  }
}

module attributes {stable_mosaic.version = 11 : i64} {
  func.func @_conv3x3_moments_kernel(%arg0: i32, %arg1: memref<1x16x16x8xf32, #tpu.memory_space<vmem>>, %arg2: memref<3x3x8x8xf32, #tpu.memory_space<vmem>>, %arg3: memref<1x16x16x8xf32, #tpu.memory_space<vmem>>, %arg4: memref<1x1x8xf32, #tpu.memory_space<vmem>>, %arg5: memref<1x1x8xf32, #tpu.memory_space<vmem>>, %arg6: memref<18x25x8xf32, #tpu.memory_space<vmem>>) attributes {dimension_semantics = [#tpu.dimension_semantics<parallel>], iteration_bounds = array<i64: 2>, scalar_prefetch = 0 : i64, scratch_operands = 1 : i64, tpu.core_type = #tpu.core_type<tc>, window_params = [{transform_indices = @transform_0, window_bounds = array<i64: 1, 16, 16, 8>}, {pipeline_mode = #tpu.pipeline_mode<synchronous>, transform_indices = @transform_1, window_bounds = array<i64: 3, 3, 8, 8>}, {transform_indices = @transform_2, window_bounds = array<i64: 1, 16, 16, 8>}, {transform_indices = @transform_3, window_bounds = array<i64: 1, 1, 8>}, {transform_indices = @transform_4, window_bounds = array<i64: 1, 1, 8>}]} {
    %c0 = arith.constant 0 : index
    %c0_0 = arith.constant 0 : index
    %c0_1 = arith.constant 0 : index
    %c0_2 = arith.constant 0 : index
    %0 = vector.load %arg1[%c0, %c0_0, %c0_1, %c0_2] : memref<1x16x16x8xf32, #tpu.memory_space<vmem>>, vector<1x16x16x8xf32>
    %1 = vector.shape_cast %0 : vector<1x16x16x8xf32> to vector<16x16x8xf32>
    %cst = arith.constant 0.000000e+00 : f32
    %2 = vector.broadcast %cst : f32 to vector<18x25x8xf32>
    %c0_3 = arith.constant 0 : index
    %c0_4 = arith.constant 0 : index
    %c0_5 = arith.constant 0 : index
    %3 = vector.load %arg6[%c0_3, %c0_4, %c0_5] : memref<18x25x8xf32, #tpu.memory_space<vmem>>, vector<18x25x8xf32>
    tpu.vector_store %arg6[%c0_3, %c0_4, %c0_5], %2 {strides = array<i32>} : memref<18x25x8xf32, #tpu.memory_space<vmem>>, vector<18x25x8xf32>,
    %c1 = arith.constant 1 : index
    %c8 = arith.constant 8 : index
    %c0_6 = arith.constant 0 : index
    %4 = vector.load %arg6[%c1, %c8, %c0_6] : memref<18x25x8xf32, #tpu.memory_space<vmem>>, vector<16x16x8xf32>
    tpu.vector_store %arg6[%c1, %c8, %c0_6], %1 {strides = array<i32>} : memref<18x25x8xf32, #tpu.memory_space<vmem>>, vector<16x16x8xf32>,
    %cst_7 = arith.constant 0.000000e+00 : f32
    %5 = vector.broadcast %cst_7 : f32 to vector<256x8xf32>
    %c0_8 = arith.constant 0 : index
    %c7 = arith.constant 7 : index
    %c0_9 = arith.constant 0 : index
    %6 = vector.load %arg6[%c0_8, %c7, %c0_9] : memref<18x25x8xf32, #tpu.memory_space<vmem>>, vector<16x16x8xf32>
    %7 = vector.shape_cast %6 : vector<16x16x8xf32> to vector<256x8xf32>
    %c0_10 = arith.constant 0 : index
    %c0_11 = arith.constant 0 : index
    %c0_12 = arith.constant 0 : index
    %c0_13 = arith.constant 0 : index
    %8 = vector.load %arg2[%c0_10, %c0_11, %c0_12, %c0_13] : memref<3x3x8x8xf32, #tpu.memory_space<vmem>>, vector<1x1x8x8xf32>
    %9 = vector.shape_cast %8 : vector<1x1x8x8xf32> to vector<8x8xf32>
    %cst_14 = arith.constant dense<0.000000e+00> : vector<256x8xf32>
    %10 = tpu.matmul %7, %9, %cst_14 {dimension_numbers = #tpu.dot_dimension_numbers<[1], [0], [0], [1], [0, 0, 1, 1], [], []>} : vector<256x8xf32>, vector<8x8xf32>, vector<256x8xf32> -> vector<256x8xf32>
    %11 = arith.addf %5, %10 : vector<256x8xf32>
    %c0_15 = arith.constant 0 : index
    %c8_16 = arith.constant 8 : index
    %c0_17 = arith.constant 0 : index
    %12 = vector.load %arg6[%c0_15, %c8_16, %c0_17] : memref<18x25x8xf32, #tpu.memory_space<vmem>>, vector<16x16x8xf32>
    %13 = vector.shape_cast %12 : vector<16x16x8xf32> to vector<256x8xf32>
    %c0_18 = arith.constant 0 : index
    %c1_19 = arith.constant 1 : index
    %c0_20 = arith.constant 0 : index
    %c0_21 = arith.constant 0 : index
    %14 = vector.load %arg2[%c0_18, %c1_19, %c0_20, %c0_21] : memref<3x3x8x8xf32, #tpu.memory_space<vmem>>, vector<1x1x8x8xf32>
    %15 = vector.shape_cast %14 : vector<1x1x8x8xf32> to vector<8x8xf32>
    %cst_22 = arith.constant dense<0.000000e+00> : vector<256x8xf32>
    %16 = tpu.matmul %13, %15, %cst_22 {dimension_numbers = #tpu.dot_dimension_numbers<[1], [0], [0], [1], [0, 0, 1, 1], [], []>} : vector<256x8xf32>, vector<8x8xf32>, vector<256x8xf32> -> vector<256x8xf32>
    %17 = arith.addf %11, %16 : vector<256x8xf32>
    %c0_23 = arith.constant 0 : index
    %c9 = arith.constant 9 : index
    %c0_24 = arith.constant 0 : index
    %18 = vector.load %arg6[%c0_23, %c9, %c0_24] : memref<18x25x8xf32, #tpu.memory_space<vmem>>, vector<16x16x8xf32>
    %19 = vector.shape_cast %18 : vector<16x16x8xf32> to vector<256x8xf32>
    %c0_25 = arith.constant 0 : index
    %c2 = arith.constant 2 : index
    %c0_26 = arith.constant 0 : index
    %c0_27 = arith.constant 0 : index
    %20 = vector.load %arg2[%c0_25, %c2, %c0_26, %c0_27] : memref<3x3x8x8xf32, #tpu.memory_space<vmem>>, vector<1x1x8x8xf32>
    %21 = vector.shape_cast %20 : vector<1x1x8x8xf32> to vector<8x8xf32>
    %cst_28 = arith.constant dense<0.000000e+00> : vector<256x8xf32>
    %22 = tpu.matmul %19, %21, %cst_28 {dimension_numbers = #tpu.dot_dimension_numbers<[1], [0], [0], [1], [0, 0, 1, 1], [], []>} : vector<256x8xf32>, vector<8x8xf32>, vector<256x8xf32> -> vector<256x8xf32>
    %23 = arith.addf %17, %22 : vector<256x8xf32>
    %c1_29 = arith.constant 1 : index
    %c7_30 = arith.constant 7 : index
    %c0_31 = arith.constant 0 : index
    %24 = vector.load %arg6[%c1_29, %c7_30, %c0_31] : memref<18x25x8xf32, #tpu.memory_space<vmem>>, vector<16x16x8xf32>
    %25 = vector.shape_cast %24 : vector<16x16x8xf32> to vector<256x8xf32>
    %c1_32 = arith.constant 1 : index
    %c0_33 = arith.constant 0 : index
    %c0_34 = arith.constant 0 : index
    %c0_35 = arith.constant 0 : index
    %26 = vector.load %arg2[%c1_32, %c0_33, %c0_34, %c0_35] : memref<3x3x8x8xf32, #tpu.memory_space<vmem>>, vector<1x1x8x8xf32>
    %27 = vector.shape_cast %26 : vector<1x1x8x8xf32> to vector<8x8xf32>
    %cst_36 = arith.constant dense<0.000000e+00> : vector<256x8xf32>
    %28 = tpu.matmul %25, %27, %cst_36 {dimension_numbers = #tpu.dot_dimension_numbers<[1], [0], [0], [1], [0, 0, 1, 1], [], []>} : vector<256x8xf32>, vector<8x8xf32>, vector<256x8xf32> -> vector<256x8xf32>
    %29 = arith.addf %23, %28 : vector<256x8xf32>
    %c1_37 = arith.constant 1 : index
    %c8_38 = arith.constant 8 : index
    %c0_39 = arith.constant 0 : index
    %30 = vector.load %arg6[%c1_37, %c8_38, %c0_39] : memref<18x25x8xf32, #tpu.memory_space<vmem>>, vector<16x16x8xf32>
    %31 = vector.shape_cast %30 : vector<16x16x8xf32> to vector<256x8xf32>
    %c1_40 = arith.constant 1 : index
    %c1_41 = arith.constant 1 : index
    %c0_42 = arith.constant 0 : index
    %c0_43 = arith.constant 0 : index
    %32 = vector.load %arg2[%c1_40, %c1_41, %c0_42, %c0_43] : memref<3x3x8x8xf32, #tpu.memory_space<vmem>>, vector<1x1x8x8xf32>
    %33 = vector.shape_cast %32 : vector<1x1x8x8xf32> to vector<8x8xf32>
    %cst_44 = arith.constant dense<0.000000e+00> : vector<256x8xf32>
    %34 = tpu.matmul %31, %33, %cst_44 {dimension_numbers = #tpu.dot_dimension_numbers<[1], [0], [0], [1], [0, 0, 1, 1], [], []>} : vector<256x8xf32>, vector<8x8xf32>, vector<256x8xf32> -> vector<256x8xf32>
    %35 = arith.addf %29, %34 : vector<256x8xf32>
    %c1_45 = arith.constant 1 : index
    %c9_46 = arith.constant 9 : index
    %c0_47 = arith.constant 0 : index
    %36 = vector.load %arg6[%c1_45, %c9_46, %c0_47] : memref<18x25x8xf32, #tpu.memory_space<vmem>>, vector<16x16x8xf32>
    %37 = vector.shape_cast %36 : vector<16x16x8xf32> to vector<256x8xf32>
    %c1_48 = arith.constant 1 : index
    %c2_49 = arith.constant 2 : index
    %c0_50 = arith.constant 0 : index
    %c0_51 = arith.constant 0 : index
    %38 = vector.load %arg2[%c1_48, %c2_49, %c0_50, %c0_51] : memref<3x3x8x8xf32, #tpu.memory_space<vmem>>, vector<1x1x8x8xf32>
    %39 = vector.shape_cast %38 : vector<1x1x8x8xf32> to vector<8x8xf32>
    %cst_52 = arith.constant dense<0.000000e+00> : vector<256x8xf32>
    %40 = tpu.matmul %37, %39, %cst_52 {dimension_numbers = #tpu.dot_dimension_numbers<[1], [0], [0], [1], [0, 0, 1, 1], [], []>} : vector<256x8xf32>, vector<8x8xf32>, vector<256x8xf32> -> vector<256x8xf32>
    %41 = arith.addf %35, %40 : vector<256x8xf32>
    %c2_53 = arith.constant 2 : index
    %c7_54 = arith.constant 7 : index
    %c0_55 = arith.constant 0 : index
    %42 = vector.load %arg6[%c2_53, %c7_54, %c0_55] : memref<18x25x8xf32, #tpu.memory_space<vmem>>, vector<16x16x8xf32>
    %43 = vector.shape_cast %42 : vector<16x16x8xf32> to vector<256x8xf32>
    %c2_56 = arith.constant 2 : index
    %c0_57 = arith.constant 0 : index
    %c0_58 = arith.constant 0 : index
    %c0_59 = arith.constant 0 : index
    %44 = vector.load %arg2[%c2_56, %c0_57, %c0_58, %c0_59] : memref<3x3x8x8xf32, #tpu.memory_space<vmem>>, vector<1x1x8x8xf32>
    %45 = vector.shape_cast %44 : vector<1x1x8x8xf32> to vector<8x8xf32>
    %cst_60 = arith.constant dense<0.000000e+00> : vector<256x8xf32>
    %46 = tpu.matmul %43, %45, %cst_60 {dimension_numbers = #tpu.dot_dimension_numbers<[1], [0], [0], [1], [0, 0, 1, 1], [], []>} : vector<256x8xf32>, vector<8x8xf32>, vector<256x8xf32> -> vector<256x8xf32>
    %47 = arith.addf %41, %46 : vector<256x8xf32>
    %c2_61 = arith.constant 2 : index
    %c8_62 = arith.constant 8 : index
    %c0_63 = arith.constant 0 : index
    %48 = vector.load %arg6[%c2_61, %c8_62, %c0_63] : memref<18x25x8xf32, #tpu.memory_space<vmem>>, vector<16x16x8xf32>
    %49 = vector.shape_cast %48 : vector<16x16x8xf32> to vector<256x8xf32>
    %c2_64 = arith.constant 2 : index
    %c1_65 = arith.constant 1 : index
    %c0_66 = arith.constant 0 : index
    %c0_67 = arith.constant 0 : index
    %50 = vector.load %arg2[%c2_64, %c1_65, %c0_66, %c0_67] : memref<3x3x8x8xf32, #tpu.memory_space<vmem>>, vector<1x1x8x8xf32>
    %51 = vector.shape_cast %50 : vector<1x1x8x8xf32> to vector<8x8xf32>
    %cst_68 = arith.constant dense<0.000000e+00> : vector<256x8xf32>
    %52 = tpu.matmul %49, %51, %cst_68 {dimension_numbers = #tpu.dot_dimension_numbers<[1], [0], [0], [1], [0, 0, 1, 1], [], []>} : vector<256x8xf32>, vector<8x8xf32>, vector<256x8xf32> -> vector<256x8xf32>
    %53 = arith.addf %47, %52 : vector<256x8xf32>
    %c2_69 = arith.constant 2 : index
    %c9_70 = arith.constant 9 : index
    %c0_71 = arith.constant 0 : index
    %54 = vector.load %arg6[%c2_69, %c9_70, %c0_71] : memref<18x25x8xf32, #tpu.memory_space<vmem>>, vector<16x16x8xf32>
    %55 = vector.shape_cast %54 : vector<16x16x8xf32> to vector<256x8xf32>
    %c2_72 = arith.constant 2 : index
    %c2_73 = arith.constant 2 : index
    %c0_74 = arith.constant 0 : index
    %c0_75 = arith.constant 0 : index
    %56 = vector.load %arg2[%c2_72, %c2_73, %c0_74, %c0_75] : memref<3x3x8x8xf32, #tpu.memory_space<vmem>>, vector<1x1x8x8xf32>
    %57 = vector.shape_cast %56 : vector<1x1x8x8xf32> to vector<8x8xf32>
    %cst_76 = arith.constant dense<0.000000e+00> : vector<256x8xf32>
    %58 = tpu.matmul %55, %57, %cst_76 {dimension_numbers = #tpu.dot_dimension_numbers<[1], [0], [0], [1], [0, 0, 1, 1], [], []>} : vector<256x8xf32>, vector<8x8xf32>, vector<256x8xf32> -> vector<256x8xf32>
    %59 = arith.addf %53, %58 : vector<256x8xf32>
    %60 = vector.shape_cast %59 : vector<256x8xf32> to vector<16x16x8xf32>
    %c0_77 = arith.constant 0 : index
    %c0_78 = arith.constant 0 : index
    %c0_79 = arith.constant 0 : index
    %c0_80 = arith.constant 0 : index
    %61 = vector.load %arg3[%c0_77, %c0_78, %c0_79, %c0_80] : memref<1x16x16x8xf32, #tpu.memory_space<vmem>>, vector<1x16x16x8xf32>
    %62 = vector.shape_cast %61 : vector<1x16x16x8xf32> to vector<16x16x8xf32>
    %63 = vector.shape_cast %60 : vector<16x16x8xf32> to vector<1x16x16x8xf32>
    tpu.vector_store %arg3[%c0_77, %c0_78, %c0_79, %c0_80], %63 {strides = array<i32>} : memref<1x16x16x8xf32, #tpu.memory_space<vmem>>, vector<1x16x16x8xf32>,
    %cst_81 = arith.constant dense<0.000000e+00> : vector<8xf32>
    %64 = vector.multi_reduction <add>, %59, %cst_81 [0] : vector<256x8xf32> to vector<8xf32>
    %65 = vector.shape_cast %64 : vector<8xf32> to vector<1x8xf32>
    %c0_82 = arith.constant 0 : index
    %c0_83 = arith.constant 0 : index
    %c0_84 = arith.constant 0 : index
    %66 = vector.load %arg4[%c0_82, %c0_83, %c0_84] : memref<1x1x8xf32, #tpu.memory_space<vmem>>, vector<1x1x8xf32>
    %67 = vector.shape_cast %66 : vector<1x1x8xf32> to vector<1x8xf32>
    %68 = vector.shape_cast %65 : vector<1x8xf32> to vector<1x1x8xf32>
    tpu.vector_store %arg4[%c0_82, %c0_83, %c0_84], %68 {strides = array<i32>} : memref<1x1x8xf32, #tpu.memory_space<vmem>>, vector<1x1x8xf32>,
    %69 = arith.mulf %59, %59 : vector<256x8xf32>
    %cst_85 = arith.constant dense<0.000000e+00> : vector<8xf32>
    %70 = vector.multi_reduction <add>, %69, %cst_85 [0] : vector<256x8xf32> to vector<8xf32>
    %71 = vector.shape_cast %70 : vector<8xf32> to vector<1x8xf32>
    %c0_86 = arith.constant 0 : index
    %c0_87 = arith.constant 0 : index
    %c0_88 = arith.constant 0 : index
    %72 = vector.load %arg5[%c0_86, %c0_87, %c0_88] : memref<1x1x8xf32, #tpu.memory_space<vmem>>, vector<1x1x8xf32>
    %73 = vector.shape_cast %72 : vector<1x1x8xf32> to vector<1x8xf32>
    %74 = vector.shape_cast %71 : vector<1x8xf32> to vector<1x1x8xf32>
    tpu.vector_store %arg5[%c0_86, %c0_87, %c0_88], %74 {strides = array<i32>} : memref<1x1x8xf32, #tpu.memory_space<vmem>>, vector<1x1x8xf32>,
    return
  }
  func.func @transform_0(%arg0: i32) -> (i32, i32, i32, i32) {
    %c0_i32 = arith.constant 0 : i32
    %c0_i32_0 = arith.constant 0 : i32
    %c0_i32_1 = arith.constant 0 : i32
    %c0_i32_2 = arith.constant 0 : i32
    return %arg0, %c0_i32, %c0_i32_0, %c0_i32_1 : i32, i32, i32, i32
  }
  func.func @transform_1(%arg0: i32) -> (i32, i32, i32, i32) {
    %c0_i32 = arith.constant 0 : i32
    %c0_i32_0 = arith.constant 0 : i32
    %c0_i32_1 = arith.constant 0 : i32
    %c0_i32_2 = arith.constant 0 : i32
    %c0_i32_3 = arith.constant 0 : i32
    return %c0_i32, %c0_i32_0, %c0_i32_1, %c0_i32_2 : i32, i32, i32, i32
  }
  func.func @transform_2(%arg0: i32) -> (i32, i32, i32, i32) {
    %c0_i32 = arith.constant 0 : i32
    %c0_i32_0 = arith.constant 0 : i32
    %c0_i32_1 = arith.constant 0 : i32
    %c0_i32_2 = arith.constant 0 : i32
    return %arg0, %c0_i32, %c0_i32_0, %c0_i32_1 : i32, i32, i32, i32
  }
  func.func @transform_3(%arg0: i32) -> (i32, i32, i32) {
    %c0_i32 = arith.constant 0 : i32
    %c0_i32_0 = arith.constant 0 : i32
    %c0_i32_1 = arith.constant 0 : i32
    return %arg0, %c0_i32, %c0_i32_0 : i32, i32, i32
  }
  func.func @transform_4(%arg0: i32) -> (i32, i32, i32) {
    %c0_i32 = arith.constant 0 : i32
    %c0_i32_0 = arith.constant 0 : i32
    %c0_i32_1 = arith.constant 0 : i32
    return %arg0, %c0_i32, %c0_i32_0 : i32, i32, i32
  }
}

module attributes {stable_mosaic.version = 11 : i64} {
  func.func @_bn_relu_add_id_kernel(%arg0: i32, %arg1: memref<1x16x16x8xf32, #tpu.memory_space<vmem>>, %arg2: memref<1x8xf32, #tpu.memory_space<vmem>>, %arg3: memref<1x8xf32, #tpu.memory_space<vmem>>, %arg4: memref<1x16x16x8xf32, #tpu.memory_space<vmem>>, %arg5: memref<1x16x16x8xf32, #tpu.memory_space<vmem>>) attributes {dimension_semantics = [#tpu.dimension_semantics<parallel>], iteration_bounds = array<i64: 2>, scalar_prefetch = 0 : i64, scratch_operands = 0 : i64, tpu.core_type = #tpu.core_type<tc>, window_params = [{transform_indices = @transform_0, window_bounds = array<i64: 1, 16, 16, 8>}, {pipeline_mode = #tpu.pipeline_mode<synchronous>, transform_indices = @transform_1, window_bounds = array<i64: 1, 8>}, {pipeline_mode = #tpu.pipeline_mode<synchronous>, transform_indices = @transform_2, window_bounds = array<i64: 1, 8>}, {transform_indices = @transform_3, window_bounds = array<i64: 1, 16, 16, 8>}, {transform_indices = @transform_4, window_bounds = array<i64: 1, 16, 16, 8>}]} {
    %c0 = arith.constant 0 : index
    %c0_0 = arith.constant 0 : index
    %c0_1 = arith.constant 0 : index
    %c0_2 = arith.constant 0 : index
    %0 = vector.load %arg1[%c0, %c0_0, %c0_1, %c0_2] : memref<1x16x16x8xf32, #tpu.memory_space<vmem>>, vector<1x16x16x8xf32>
    %1 = vector.shape_cast %0 : vector<1x16x16x8xf32> to vector<16x16x8xf32>
    %c0_3 = arith.constant 0 : index
    %c0_4 = arith.constant 0 : index
    %2 = vector.load %arg2[%c0_3, %c0_4] : memref<1x8xf32, #tpu.memory_space<vmem>>, vector<1x8xf32>
    %3 = vector.shape_cast %2 : vector<1x8xf32> to vector<1x1x8xf32>
    %4 = vector.broadcast %3 : vector<1x1x8xf32> to vector<16x16x8xf32>
    %5 = arith.mulf %1, %4 : vector<16x16x8xf32>
    %c0_5 = arith.constant 0 : index
    %c0_6 = arith.constant 0 : index
    %6 = vector.load %arg3[%c0_5, %c0_6] : memref<1x8xf32, #tpu.memory_space<vmem>>, vector<1x8xf32>
    %7 = vector.shape_cast %6 : vector<1x8xf32> to vector<1x1x8xf32>
    %8 = vector.broadcast %7 : vector<1x1x8xf32> to vector<16x16x8xf32>
    %9 = arith.addf %5, %8 : vector<16x16x8xf32>
    %cst = arith.constant 0.000000e+00 : f32
    %10 = vector.broadcast %cst : f32 to vector<16x16x8xf32>
    %11 = arith.maximumf %9, %10 : vector<16x16x8xf32>
    %c0_7 = arith.constant 0 : index
    %c0_8 = arith.constant 0 : index
    %c0_9 = arith.constant 0 : index
    %c0_10 = arith.constant 0 : index
    %12 = vector.load %arg4[%c0_7, %c0_8, %c0_9, %c0_10] : memref<1x16x16x8xf32, #tpu.memory_space<vmem>>, vector<1x16x16x8xf32>
    %13 = vector.shape_cast %12 : vector<1x16x16x8xf32> to vector<16x16x8xf32>
    %14 = arith.addf %11, %13 : vector<16x16x8xf32>
    %c0_11 = arith.constant 0 : index
    %c0_12 = arith.constant 0 : index
    %c0_13 = arith.constant 0 : index
    %c0_14 = arith.constant 0 : index
    %15 = vector.load %arg5[%c0_11, %c0_12, %c0_13, %c0_14] : memref<1x16x16x8xf32, #tpu.memory_space<vmem>>, vector<1x16x16x8xf32>
    %16 = vector.shape_cast %15 : vector<1x16x16x8xf32> to vector<16x16x8xf32>
    %17 = vector.shape_cast %14 : vector<16x16x8xf32> to vector<1x16x16x8xf32>
    tpu.vector_store %arg5[%c0_11, %c0_12, %c0_13, %c0_14], %17 {strides = array<i32>} : memref<1x16x16x8xf32, #tpu.memory_space<vmem>>, vector<1x16x16x8xf32>,
    return
  }
  func.func @transform_0(%arg0: i32) -> (i32, i32, i32, i32) {
    %c0_i32 = arith.constant 0 : i32
    %c0_i32_0 = arith.constant 0 : i32
    %c0_i32_1 = arith.constant 0 : i32
    %c0_i32_2 = arith.constant 0 : i32
    return %arg0, %c0_i32, %c0_i32_0, %c0_i32_1 : i32, i32, i32, i32
  }
  func.func @transform_1(%arg0: i32) -> (i32, i32) {
    %c0_i32 = arith.constant 0 : i32
    %c0_i32_0 = arith.constant 0 : i32
    %c0_i32_1 = arith.constant 0 : i32
    return %c0_i32, %c0_i32_0 : i32, i32
  }
  func.func @transform_2(%arg0: i32) -> (i32, i32) {
    %c0_i32 = arith.constant 0 : i32
    %c0_i32_0 = arith.constant 0 : i32
    %c0_i32_1 = arith.constant 0 : i32
    return %c0_i32, %c0_i32_0 : i32, i32
  }
  func.func @transform_3(%arg0: i32) -> (i32, i32, i32, i32) {
    %c0_i32 = arith.constant 0 : i32
    %c0_i32_0 = arith.constant 0 : i32
    %c0_i32_1 = arith.constant 0 : i32
    %c0_i32_2 = arith.constant 0 : i32
    return %arg0, %c0_i32, %c0_i32_0, %c0_i32_1 : i32, i32, i32, i32
  }
  func.func @transform_4(%arg0: i32) -> (i32, i32, i32, i32) {
    %c0_i32 = arith.constant 0 : i32
    %c0_i32_0 = arith.constant 0 : i32
    %c0_i32_1 = arith.constant 0 : i32
    %c0_i32_2 = arith.constant 0 : i32
    return %arg0, %c0_i32, %c0_i32_0, %c0_i32_1 : i32, i32, i32, i32
  }
}

</mosaic_0001>

<bundles_post_ra>
// kernel: intermediate_forward.14
= control target key start
LH: loop header
LB: loop body
LE: loop exit
PB: predicated region body
PF: predicated region fallthrough
CT: control target
= control target key end

     0   :  { %s897_s21 = smov 0   ;;  %s1202_s0 = inlined_call_operand.vmem [shape: f32[2,16,16,8], index: 0, kind: input, shape index: {}]   ;;  %s1203_s1 = inlined_call_operand.vmem [shape: f32[1,8], index: 1, kind: input, shape index: {}]   ;;  %s1204_s2 = inlined_call_operand.vmem [shape: f32[1,8], index: 2, kind: input, shape index: {}]   ;;  %s1205_s3 = inlined_call_operand.vmem [shape: f32[2,16,16,4], index: 3, kind: input, shape index: {}]   ;;  %s1206_s4 = inlined_call_operand.vmem [shape: f32[4,8], index: 4, kind: input, shape index: {}]   ;;  %s1207_s5 = inlined_call_operand.vmem [shape: f32[1,8], index: 5, kind: input, shape index: {}]   ;;  %s1208_s6 = inlined_call_operand.vmem [shape: f32[2,16,16,8], index: 6, kind: output, shape index: {}]  }
   0x1 LB: > { %s791_s22 = sadd.s32 4294967295, %s860_s21   ;;  %p795_p0 = scmp.ge.s32.totalorder %s860_s21, 1  ;;  %s860_s21 = sphi %s897_s21, %s16_s21  }
   0x2   : > { %p222_p1 = scmp.lt.s32.totalorder %s860_s21, 3 }
   0x4   : > { %p223_p2 = pnand %p795_p0, %p222_p1 }
   0x5   : > { %p257_p3 = scmp.lt.s32.totalorder (!%p223_p2), %s791_s22, 1 }
   0x6   : > { %226 = sbr.rel (%p223_p2) target bundleno = 209 (0xd1), region = 44 }
   0xb   : > { %v440_v0 = vld [vmem:[%s1206_s4] sm:$0xf]  ;;  %vm542_vm0 = vcmask 1043456   ;;  %s1210_s22 = smov (!%p257_p3, %s791_s22), 1  ;;  %vm445_vm1 = vcmask 31744   ;;  %vm691_vm2 = vcmask 64512  }
   0xc   : > { %841 = vmatpush.msk.msra.mxu2 %vm542_vm0, %v440_v0  ;;  %842 = vmatpush.msk.msra.mxu3 %vm542_vm0, %v440_v0  ;;  %s908_s25 = sshll.u32 %s1210_s22, 8  ;;  %v989_v33 = vld [vmem:[%s1203_s1] ss:$0 sm:$0xff] }
   0xd   : > { %802 = vmatpush.msk.msra.mxu0 %vm542_vm0, %v440_v0  ;;  %840 = vmatpush.msk.msra.mxu1 %vm542_vm0, %v440_v0  ;;  %s914_s28 = scalar_lea.vmem %s1205_s3, %s908_s25  ;;  %s984_s7 = scalar_lea.vmem %s1202_s0, %s908_s25  ;;  %v997_v37 = vld [vmem:[%s1204_s2] ss:$0 sm:$0xff] }
   0xe   : > { %v424_v1 = vld [vmem:[%s914_s28 + $0x80] sm:$0xff]  ;;  %v425_v5 = vld [vmem:[%s914_s28 + $0x88] sm:$0xff]  ;;  %v426_v9 = vld [vmem:[%s914_s28 + $0x90] sm:$0xff]  ;;  %s1025_s16 = scalar_lea.vmem %s1208_s6, %s908_s25 }
   0xf   : > { %v432_v2 = vld [vmem:[%s914_s28 + $0xc0] sm:$0xff]  ;;  %819 = vmatmul.msk.f32.vlgmr.msra.gmra.mxu2 %vm445_vm1, %v424_v1  ;;  %v433_v6 = vld [vmem:[%s914_s28 + $0xc8] sm:$0xff]  ;;  %v434_v10 = vld [vmem:[%s914_s28 + $0xd0] sm:$0xff] }
  0x10   : > { %v408_v3 = vld [vmem:[%s914_s28] sm:$0xff]  ;;  %827 = vmatmul.msk.f32.vlgmr.msra.gmra.mxu3 %vm445_vm1, %v432_v2  ;;  %v409_v7 = vld [vmem:[%s914_s28 + $0x8] sm:$0xff]  ;;  %v410_v11 = vld [vmem:[%s914_s28 + $0x10] sm:$0xff] }
  0x11   : > { %v416_v4 = vld [vmem:[%s914_s28 + $0x40] sm:$0xff]  ;;  %803 = vmatmul.msk.f32.vlgmr.msra.gmra.mxu0 %vm445_vm1, %v408_v3  ;;  %v417_v8 = vld [vmem:[%s914_s28 + $0x48] sm:$0xff]  ;;  %v418_v12 = vld [vmem:[%s914_s28 + $0x50] sm:$0xff] }
  0x12   : > { %811 = vmatmul.msk.f32.vlgmr.msra.gmra.mxu1 %vm445_vm1, %v416_v4  ;;  %v427_v13 = vld [vmem:[%s914_s28 + $0x98] sm:$0xff]  ;;  %v428_v17 = vld [vmem:[%s914_s28 + $0xa0] sm:$0xff]  ;;  %v429_v21 = vld [vmem:[%s914_s28 + $0xa8] sm:$0xff] }
  0x13   : > { %v435_v14 = vld [vmem:[%s914_s28 + $0xd8] sm:$0xff]  ;;  %v436_v18 = vld [vmem:[%s914_s28 + $0xe0] sm:$0xff]  ;;  %v437_v22 = vld [vmem:[%s914_s28 + $0xe8] sm:$0xff] }
  0x14   : > { %v411_v15 = vld [vmem:[%s914_s28 + $0x18] sm:$0xff]  ;;  %v412_v19 = vld [vmem:[%s914_s28 + $0x20] sm:$0xff]  ;;  %v413_v23 = vld [vmem:[%s914_s28 + $0x28] sm:$0xff] }
  0x15   : > { %v419_v16 = vld [vmem:[%s914_s28 + $0x58] sm:$0xff]  ;;  %v420_v20 = vld [vmem:[%s914_s28 + $0x60] sm:$0xff]  ;;  %v421_v24 = vld [vmem:[%s914_s28 + $0x68] sm:$0xff] }
  0x16   : > { %v430_v25 = vld [vmem:[%s914_s28 + $0xb0] sm:$0xff]  ;;  %v431_v29 = vld [vmem:[%s914_s28 + $0xb8] sm:$0xff]  ;;  %v272_v34 = vld [vmem:[%s984_s7] sm:$0xff] }
  0x17   : > { %820 = vmatmul.msk.f32.gmra.mxu2 %vm445_vm1, %v425_v5  ;;  %v438_v26 = vld [vmem:[%s914_s28 + $0xf0] sm:$0xff]  ;;  %v439_v30 = vld [vmem:[%s914_s28 + $0xf8] sm:$0xff]  ;;  %v280_v35 = vld [vmem:[%s984_s7 + $0x40] sm:$0xff]  ;;  %v308_v36 = vmul.f32 %v989_v33, %v272_v34 }
  0x18   : > { %828 = vmatmul.msk.f32.gmra.mxu3 %vm445_vm1, %v433_v6  ;;  %v414_v27 = vld [vmem:[%s914_s28 + $0x30] sm:$0xff]  ;;  %v415_v31 = vld [vmem:[%s914_s28 + $0x38] sm:$0xff]  ;;  %v316_v38 = vmul.f32 %v989_v33, %v280_v35  ;;  %v288_v39 = vld [vmem:[%s984_s7 + $0x80] sm:$0xff] }
  0x19   : > { %804 = vmatmul.msk.f32.gmra.mxu0 %vm445_vm1, %v409_v7  ;;  %v422_v28 = vld [vmem:[%s914_s28 + $0x70] sm:$0xff]  ;;  %v423_v32 = vld [vmem:[%s914_s28 + $0x78] sm:$0xff]  ;;  %v296_v40 = vld [vmem:[%s984_s7 + $0xc0] sm:$0xff]  ;;  %v344_v41 = vadd.f32 %v997_v37, %v308_v36  ;;  %v324_v43 = vmul.f32 %v989_v33, %v288_v39 }
  0x1a   : > { %812 = vmatmul.msk.f32.gmra.mxu1 %vm445_vm1, %v417_v8  ;;  %v352_v42 = vadd.f32 %v997_v37, %v316_v38  ;;  %v332_v44 = vmul.f32 %v989_v33, %v296_v40  ;;  %v273_v45 = vld [vmem:[%s984_s7 + $0x8] sm:$0xff]  ;;  %v1011_v47 = vld [vmem:[%s1207_s5] ss:$0 sm:$0xff]  ;;  %v274_v4 = vld [vmem:[%s984_s7 + $0x10] sm:$0xff] }
  0x1b   : > { %v281_v46 = vld [vmem:[%s984_s7 + $0x48] sm:$0xff]  ;;  %v376_v48 = vmax.f32 %v344_v41, 0.0  ;;  %v309_v50 = vmul.f32 %v989_v33, %v273_v45  ;;  %v360_v54 = vadd.f32 %v997_v37, %v324_v43  ;;  %v282_v5 = vld [vmem:[%s984_s7 + $0x50] sm:$0xff]  ;;  %v283_v34 = vld [vmem:[%s984_s7 + $0x58] sm:$0xff] }
  0x1c   : > { %v384_v49 = vmax.f32 %v352_v42, 0.0  ;;  %v317_v51 = vmul.f32 %v989_v33, %v281_v46  ;;  %v368_v55 = vadd.f32 %v997_v37, %v332_v44  ;;  %v289_v58 = vld [vmem:[%s984_s7 + $0x88] sm:$0xff]  ;;  %v319_v43 = vmul.f32 %v989_v33, %v283_v34 }
  0x1d   : > { %v297_v59 = vld [vmem:[%s984_s7 + $0xc8] sm:$0xff]  ;;  %v345_v62 = vadd.f32 %v997_v37, %v309_v50  ;;  %v392_v0 = vmax.f32 %v360_v54, 0.0  ;;  %v325_v2 = vmul.f32 %v989_v33, %v289_v58  ;;  %v299_v54 = vld [vmem:[%s984_s7 + $0xd8] sm:$0xff] }
  0x1e   : > { %v353_v63 = vadd.f32 %v997_v37, %v317_v51  ;;  %v400_v1 = vmax.f32 %v368_v55, 0.0  ;;  %v333_v3 = vmul.f32 %v989_v33, %v297_v59  ;;  %v355_v58 = vadd.f32 %v997_v37, %v319_v43 }
  0x1f   : > { %821 = vmatmul.msk.f32.gmra.mxu2 %vm445_vm1, %v426_v9 }
  0x20   : > { %829 = vmatmul.msk.f32.gmra.mxu3 %vm445_vm1, %v434_v10  ;;  %v377_v10 = vmax.f32 %v345_v62, 0.0  ;;  %v335_v62 = vmul.f32 %v989_v33, %v299_v54 }
  0x21   : > { %805 = vmatmul.msk.f32.gmra.mxu0 %vm445_vm1, %v410_v11  ;;  %v385_v11 = vmax.f32 %v353_v63, 0.0  ;;  %v276_v63 = vld [vmem:[%s984_s7 + $0x20] sm:$0xff] }
  0x22   : > { %813 = vmatmul.msk.f32.gmra.mxu1 %vm445_vm1, %v418_v12  ;;  %v310_v12 = vmul.f32 %v989_v33, %v274_v4 }
  0x27   : > { %822 = vmatmul.msk.f32.gmra.mxu2 %vm445_vm1, %v427_v13  ;;  %v318_v13 = vmul.f32 %v989_v33, %v282_v5 }
  0x28   : > { %830 = vmatmul.msk.f32.gmra.mxu3 %vm445_vm1, %v435_v14 }
  0x29   : > { %806 = vmatmul.msk.f32.gmra.mxu0 %vm445_vm1, %v411_v15 }
  0x2a   : > { %814 = vmatmul.msk.f32.gmra.mxu1 %vm445_vm1, %v419_v16 }
  0x2f   : > { %823 = vmatmul.msk.f32.gmra.mxu2 %vm445_vm1, %v428_v17 }
  0x30   : > { %831 = vmatmul.msk.f32.gmra.mxu3 %vm445_vm1, %v436_v18  ;;  %v361_v18 = vadd.f32 %v997_v37, %v325_v2 }
  0x31   : > { %807 = vmatmul.msk.f32.gmra.mxu0 %vm445_vm1, %v412_v19  ;;  %v369_v19 = vadd.f32 %v997_v37, %v333_v3 }
  0x32   : > { %815 = vmatmul.msk.f32.gmra.mxu1 %vm445_vm1, %v420_v20 }
  0x37   : > { %824 = vmatmul.msk.f32.gmra.mxu2 %vm445_vm1, %v429_v21 }
  0x38   : > { %832 = vmatmul.msk.f32.gmra.mxu3 %vm445_vm1, %v437_v22  ;;  %v290_v22 = vld [vmem:[%s984_s7 + $0x90] sm:$0xff] }
  0x39   : > { %808 = vmatmul.msk.f32.gmra.mxu0 %vm445_vm1, %v413_v23  ;;  %v298_v23 = vld [vmem:[%s984_s7 + $0xd0] sm:$0xff] }
  0x3a   : > { %816 = vmatmul.msk.f32.gmra.mxu1 %vm445_vm1, %v421_v24 }
  0x3f   : > { %825 = vmatmul.msk.f32.gmra.mxu2 %vm445_vm1, %v430_v25 }
  0x40   : > { %833 = vmatmul.msk.f32.gmra.mxu3 %vm445_vm1, %v438_v26  ;;  %v346_v26 = vadd.f32 %v997_v37, %v310_v12 }
  0x41   : > { %809 = vmatmul.msk.f32.gmra.mxu0 %vm445_vm1, %v414_v27  ;;  %v354_v27 = vadd.f32 %v997_v37, %v318_v13 }
  0x42   : > { %817 = vmatmul.msk.f32.gmra.mxu1 %vm445_vm1, %v422_v28  ;;  %v393_v28 = vmax.f32 %v361_v18, 0.0  ;;  %v378_v40 = vmax.f32 %v346_v26, 0.0  ;;  %v300_v18 = vld [vmem:[%s984_s7 + $0xe0] sm:$0xff] }
  0x43   : > { %v386_v41 = vmax.f32 %v354_v27, 0.0  ;;  %v336_v26 = vmul.f32 %v989_v33, %v300_v18  ;;  %v277_v27 = vld [vmem:[%s984_s7 + $0x28] sm:$0xff] }
  0x47   : > { %826 = vmatmul.msk.f32.gmra.mxu2 %vm445_vm1, %v431_v29  ;;  %v401_v29 = vmax.f32 %v369_v19, 0.0 }
  0x48   : > { %834 = vmatmul.msk.f32.gmra.mxu3 %vm445_vm1, %v439_v30  ;;  %v326_v30 = vmul.f32 %v989_v33, %v290_v22 }
  0x49   : > { %810 = vmatmul.msk.f32.gmra.mxu0 %vm445_vm1, %v415_v31  ;;  %v334_v31 = vmul.f32 %v989_v33, %v298_v23 }
  0x4a   : > { %818 = vmatmul.msk.f32.gmra.mxu1 %vm445_vm1, %v423_v32  ;;  %v275_v32 = vld [vmem:[%s984_s7 + $0x18] sm:$0xff] }
  0x4b   : > { %v311_v42 = vmul.f32 %v989_v33, %v275_v32  ;;  %v370_v50 = vadd.f32 %v997_v37, %v334_v31 }
  0x8e   : > { %v563_v52 = vpop.f32.mrf.mxu0 }
  0x8f   : > { %v587_v53 = vpop.f32.mrf.mxu1  ;;  %v564_v56 = vadd.f32 %v1011_v47, %v563_v52 }
  0x90   : > { %v588_v57 = vadd.f32 %v1011_v47, %v587_v53  ;;  %v291_v53 = vld [vmem:[%s984_s7 + $0x98] sm:$0xff] }
  0x91   : > { %v659_v60 = vadd.f32 %v564_v56, %v376_v48 }
  0x92   : > { %v667_v61 = vadd.f32 %v588_v57, %v384_v49  ;;  %v611_v6 = vpop.f32.mrf.mxu2  ;;  %v362_v49 = vadd.f32 %v997_v37, %v326_v30  ;;  %v347_v57 = vadd.f32 %v997_v37, %v311_v42 }
  0x93   : > { %692 = vst.msk [vmem:[%s1025_s16] sm:$0xff] %vm691_vm2, %v659_v60  ;;  %v635_v7 = vpop.f32.mrf.mxu3  ;;  %v612_v8 = vadd.f32 %v1011_v47, %v611_v6  ;;  %v402_v60 = vmax.f32 %v370_v50, 0.0  ;;  %v387_v6 = vmax.f32 %v355_v58, 0.0  ;;  %v278_v58 = vld [vmem:[%s984_s7 + $0x30] sm:$0xff] }
  0x94   : > { %700 = vst.msk [vmem:[%s1025_s16 + $0x40] sm:$0xff] %vm691_vm2, %v667_v61  ;;  %v636_v9 = vadd.f32 %v1011_v47, %v635_v7  ;;  %v394_v59 = vmax.f32 %v362_v49, 0.0  ;;  %v327_v61 = vmul.f32 %v989_v33, %v291_v53  ;;  %v379_v5 = vmax.f32 %v347_v57, 0.0  ;;  %v301_v49 = vld [vmem:[%s984_s7 + $0xe8] sm:$0xff] }
  0x95   : > { %v675_v14 = vadd.f32 %v612_v8, %v392_v0  ;;  %v284_v0 = vld [vmem:[%s984_s7 + $0x60] sm:$0xff]  ;;  %v312_v7 = vmul.f32 %v989_v33, %v276_v63  ;;  %v337_v57 = vmul.f32 %v989_v33, %v301_v49 }
  0x96   : > { %v683_v15 = vadd.f32 %v636_v9, %v400_v1  ;;  %v566_v16 = vpop.f32.mrf.mxu0  ;;  %v320_v8 = vmul.f32 %v989_v33, %v284_v0  ;;  %v363_v13 = vadd.f32 %v997_v37, %v327_v61 }
  0x97   : > { %v590_v17 = vpop.f32.mrf.mxu1  ;;  %v567_v20 = vadd.f32 %v1011_v47, %v566_v16  ;;  %708 = vst.msk [vmem:[%s1025_s16 + $0x80] sm:$0xff] %vm691_vm2, %v675_v14  ;;  %v371_v14 = vadd.f32 %v997_v37, %v335_v62 }
  0x98   : > { %v591_v21 = vadd.f32 %v1011_v47, %v590_v17  ;;  %716 = vst.msk [vmem:[%s1025_s16 + $0xc0] sm:$0xff] %vm691_vm2, %v683_v15  ;;  %v292_v17 = vld [vmem:[%s984_s7 + $0xa0] sm:$0xff]  ;;  %v356_v22 = vadd.f32 %v997_v37, %v320_v8  ;;  %v395_v23 = vmax.f32 %v363_v13, 0.0  ;;  %v302_v13 = vld [vmem:[%s984_s7 + $0xf0] sm:$0xff] }
  0x99   : > { %v660_v24 = vadd.f32 %v567_v20, %v377_v10 }
  0x9a   : > { %v668_v25 = vadd.f32 %v591_v21, %v385_v11  ;;  %v614_v35 = vpop.f32.mrf.mxu2  ;;  %v348_v21 = vadd.f32 %v997_v37, %v312_v7 }
  0x9b   : > { %693 = vst.msk [vmem:[%s1025_s16 + $0x8] sm:$0xff] %vm691_vm2, %v660_v24  ;;  %v638_v36 = vpop.f32.mrf.mxu3  ;;  %v615_v38 = vadd.f32 %v1011_v47, %v614_v35  ;;  %v403_v24 = vmax.f32 %v371_v14, 0.0  ;;  %v388_v35 = vmax.f32 %v356_v22, 0.0  ;;  %v279_v22 = vld [vmem:[%s984_s7 + $0x38] sm:$0xff] }
  0x9c   : > { %701 = vst.msk [vmem:[%s1025_s16 + $0x48] sm:$0xff] %vm691_vm2, %v668_v25  ;;  %v639_v39 = vadd.f32 %v1011_v47, %v638_v36  ;;  %v328_v25 = vmul.f32 %v989_v33, %v292_v17  ;;  %v380_v34 = vmax.f32 %v348_v21, 0.0  ;;  %v313_v36 = vmul.f32 %v989_v33, %v277_v27 }
  0x9d   : > { %v676_v44 = vadd.f32 %v615_v38, %v393_v28  ;;  %v285_v28 = vld [vmem:[%s984_s7 + $0x68] sm:$0xff]  ;;  %v338_v21 = vmul.f32 %v989_v33, %v302_v13 }
  0x9e   : > { %v684_v45 = vadd.f32 %v639_v39, %v401_v29  ;;  %v569_v46 = vpop.f32.mrf.mxu0  ;;  %v321_v38 = vmul.f32 %v989_v33, %v285_v28  ;;  %v364_v43 = vadd.f32 %v997_v37, %v328_v25 }
  0x9f   : > { %v593_v48 = vpop.f32.mrf.mxu1  ;;  %v570_v51 = vadd.f32 %v1011_v47, %v569_v46  ;;  %709 = vst.msk [vmem:[%s1025_s16 + $0x88] sm:$0xff] %vm691_vm2, %v676_v44  ;;  %v372_v44 = vadd.f32 %v997_v37, %v336_v26 }
  0xa0   : > { %v594_v52 = vadd.f32 %v1011_v47, %v593_v48  ;;  %717 = vst.msk [vmem:[%s1025_s16 + $0xc8] sm:$0xff] %vm691_vm2, %v684_v45  ;;  %v293_v48 = vld [vmem:[%s984_s7 + $0xa8] sm:$0xff]  ;;  %v357_v53 = vadd.f32 %v997_v37, %v321_v38  ;;  %v396_v54 = vmax.f32 %v364_v43, 0.0  ;;  %v303_v43 = vld [vmem:[%s984_s7 + $0xf8] sm:$0xff] }
  0xa1   : > { %v661_v55 = vadd.f32 %v570_v51, %v378_v40 }
  0xa2   : > { %v669_v56 = vadd.f32 %v594_v52, %v386_v41  ;;  %v617_v1 = vpop.f32.mrf.mxu2  ;;  %v349_v52 = vadd.f32 %v997_v37, %v313_v36 }
  0xa3   : > { %694 = vst.msk [vmem:[%s1025_s16 + $0x10] sm:$0xff] %vm691_vm2, %v661_v55  ;;  %v641_v2 = vpop.f32.mrf.mxu3  ;;  %v618_v3 = vadd.f32 %v1011_v47, %v617_v1  ;;  %v404_v55 = vmax.f32 %v372_v44, 0.0  ;;  %v389_v1 = vmax.f32 %v357_v53, 0.0 }
  0xa4   : > { %702 = vst.msk [vmem:[%s1025_s16 + $0x50] sm:$0xff] %vm691_vm2, %v669_v56  ;;  %v642_v4 = vadd.f32 %v1011_v47, %v641_v2  ;;  %v329_v56 = vmul.f32 %v989_v33, %v293_v48  ;;  %v381_v0 = vmax.f32 %v349_v52, 0.0  ;;  %v314_v2 = vmul.f32 %v989_v33, %v278_v58 }
  0xa5   : > { %v677_v9 = vadd.f32 %v618_v3, %v394_v59  ;;  %v286_v59 = vld [vmem:[%s984_s7 + $0x70] sm:$0xff]  ;;  %v339_v52 = vmul.f32 %v989_v33, %v303_v43 }
  0xa6   : > { %v685_v10 = vadd.f32 %v642_v4, %v402_v60  ;;  %v572_v11 = vpop.f32.mrf.mxu0  ;;  %v322_v3 = vmul.f32 %v989_v33, %v286_v59  ;;  %v365_v8 = vadd.f32 %v997_v37, %v329_v56 }
  0xa7   : > { %v596_v12 = vpop.f32.mrf.mxu1  ;;  %v573_v15 = vadd.f32 %v1011_v47, %v572_v11  ;;  %710 = vst.msk [vmem:[%s1025_s16 + $0x90] sm:$0xff] %vm691_vm2, %v677_v9  ;;  %v373_v9 = vadd.f32 %v997_v37, %v337_v57 }
  0xa8   : > { %v597_v16 = vadd.f32 %v1011_v47, %v596_v12  ;;  %718 = vst.msk [vmem:[%s1025_s16 + $0xd0] sm:$0xff] %vm691_vm2, %v685_v10  ;;  %v294_v12 = vld [vmem:[%s984_s7 + $0xb0] sm:$0xff]  ;;  %v358_v17 = vadd.f32 %v997_v37, %v322_v3  ;;  %v397_v18 = vmax.f32 %v365_v8, 0.0 }
  0xa9   : > { %v662_v19 = vadd.f32 %v573_v15, %v379_v5 }
  0xaa   : > { %v670_v20 = vadd.f32 %v597_v16, %v387_v6  ;;  %v620_v29 = vpop.f32.mrf.mxu2  ;;  %v350_v16 = vadd.f32 %v997_v37, %v314_v2 }
  0xab   : > { %695 = vst.msk [vmem:[%s1025_s16 + $0x18] sm:$0xff] %vm691_vm2, %v662_v19  ;;  %v644_v30 = vpop.f32.mrf.mxu3  ;;  %v621_v31 = vadd.f32 %v1011_v47, %v620_v29  ;;  %v405_v19 = vmax.f32 %v373_v9, 0.0  ;;  %v390_v29 = vmax.f32 %v358_v17, 0.0 }
  0xac   : > { %703 = vst.msk [vmem:[%s1025_s16 + $0x58] sm:$0xff] %vm691_vm2, %v670_v20  ;;  %v645_v32 = vadd.f32 %v1011_v47, %v644_v30  ;;  %v330_v20 = vmul.f32 %v989_v33, %v294_v12  ;;  %v382_v28 = vmax.f32 %v350_v16, 0.0  ;;  %v315_v30 = vmul.f32 %v989_v33, %v279_v22 }
  0xad   : > { %v678_v39 = vadd.f32 %v621_v31, %v395_v23  ;;  %v287_v23 = vld [vmem:[%s984_s7 + $0x78] sm:$0xff] }
  0xae   : > { %v686_v40 = vadd.f32 %v645_v32, %v403_v24  ;;  %v575_v41 = vpop.f32.mrf.mxu0  ;;  %v323_v31 = vmul.f32 %v989_v33, %v287_v23  ;;  %v366_v38 = vadd.f32 %v997_v37, %v330_v20 }
  0xaf   : > { %v599_v42 = vpop.f32.mrf.mxu1  ;;  %v576_v45 = vadd.f32 %v1011_v47, %v575_v41  ;;  %711 = vst.msk [vmem:[%s1025_s16 + $0x98] sm:$0xff] %vm691_vm2, %v678_v39  ;;  %v374_v39 = vadd.f32 %v997_v37, %v338_v21 }
  0xb0   : > { %v600_v46 = vadd.f32 %v1011_v47, %v599_v42  ;;  %719 = vst.msk [vmem:[%s1025_s16 + $0xd8] sm:$0xff] %vm691_vm2, %v686_v40  ;;  %v295_v42 = vld [vmem:[%s984_s7 + $0xb8] sm:$0xff]  ;;  %v359_v48 = vadd.f32 %v997_v37, %v323_v31  ;;  %v398_v49 = vmax.f32 %v366_v38, 0.0 }
  0xb1   : > { %v663_v50 = vadd.f32 %v576_v45, %v380_v34 }
  0xb2   : > { %v671_v51 = vadd.f32 %v600_v46, %v388_v35  ;;  %v623_v60 = vpop.f32.mrf.mxu2  ;;  %v351_v46 = vadd.f32 %v997_v37, %v315_v30  ;;  %v391_v58 = vmax.f32 %v359_v48, 0.0 }
  0xb3   : > { %696 = vst.msk [vmem:[%s1025_s16 + $0x20] sm:$0xff] %vm691_vm2, %v663_v50  ;;  %v647_v61 = vpop.f32.mrf.mxu3  ;;  %v624_v62 = vadd.f32 %v1011_v47, %v623_v60  ;;  %v406_v50 = vmax.f32 %v374_v39, 0.0 }
  0xb4   : > { %704 = vst.msk [vmem:[%s1025_s16 + $0x60] sm:$0xff] %vm691_vm2, %v671_v51  ;;  %v648_v63 = vadd.f32 %v1011_v47, %v647_v61  ;;  %v331_v51 = vmul.f32 %v989_v33, %v295_v42  ;;  %v383_v57 = vmax.f32 %v351_v46, 0.0 }
  0xb5   : > { %v679_v4 = vadd.f32 %v624_v62, %v396_v54 }
  0xb6   : > { %v687_v5 = vadd.f32 %v648_v63, %v404_v55  ;;  %v578_v6 = vpop.f32.mrf.mxu0  ;;  %v367_v62 = vadd.f32 %v997_v37, %v331_v51  ;;  %v375_v63 = vadd.f32 %v997_v37, %v339_v52 }
  0xb7   : > { %v602_v7 = vpop.f32.mrf.mxu1  ;;  %v579_v10 = vadd.f32 %v1011_v47, %v578_v6  ;;  %712 = vst.msk [vmem:[%s1025_s16 + $0xa0] sm:$0xff] %vm691_vm2, %v679_v4 }
  0xb8   : > { %v603_v11 = vadd.f32 %v1011_v47, %v602_v7  ;;  %720 = vst.msk [vmem:[%s1025_s16 + $0xe0] sm:$0xff] %vm691_vm2, %v687_v5  ;;  %v399_v4 = vmax.f32 %v367_v62, 0.0  ;;  %v407_v5 = vmax.f32 %v375_v63, 0.0 }
  0xb9   : > { %v664_v14 = vadd.f32 %v579_v10, %v381_v0 }
  0xba   : > { %v672_v15 = vadd.f32 %v603_v11, %v389_v1  ;;  %v626_v24 = vpop.f32.mrf.mxu2 }
  0xbb   : > { %697 = vst.msk [vmem:[%s1025_s16 + $0x28] sm:$0xff] %vm691_vm2, %v664_v14  ;;  %v650_v25 = vpop.f32.mrf.mxu3  ;;  %v627_v26 = vadd.f32 %v1011_v47, %v626_v24 }
  0xbc   : > { %705 = vst.msk [vmem:[%s1025_s16 + $0x68] sm:$0xff] %vm691_vm2, %v672_v15  ;;  %v651_v27 = vadd.f32 %v1011_v47, %v650_v25 }
  0xbd   : > { %v680_v32 = vadd.f32 %v627_v26, %v397_v18 }
  0xbe   : > { %v688_v34 = vadd.f32 %v651_v27, %v405_v19  ;;  %v581_v35 = vpop.f32.mrf.mxu0 }
  0xbf   : > { %v605_v36 = vpop.f32.mrf.mxu1  ;;  %v582_v40 = vadd.f32 %v1011_v47, %v581_v35  ;;  %713 = vst.msk [vmem:[%s1025_s16 + $0xa8] sm:$0xff] %vm691_vm2, %v680_v32 }
  0xc0   : > { %v606_v41 = vadd.f32 %v1011_v47, %v605_v36  ;;  %721 = vst.msk [vmem:[%s1025_s16 + $0xe8] sm:$0xff] %vm691_vm2, %v688_v34 }
  0xc1   : > { %v665_v44 = vadd.f32 %v582_v40, %v382_v28 }
  0xc2   : > { %v673_v45 = vadd.f32 %v606_v41, %v390_v29  ;;  %v629_v53 = vpop.f32.mrf.mxu2 }
  0xc3   : > { %698 = vst.msk [vmem:[%s1025_s16 + $0x30] sm:$0xff] %vm691_vm2, %v665_v44  ;;  %v653_v54 = vpop.f32.mrf.mxu3  ;;  %v630_v55 = vadd.f32 %v1011_v47, %v629_v53 }
  0xc4   : > { %706 = vst.msk [vmem:[%s1025_s16 + $0x70] sm:$0xff] %vm691_vm2, %v673_v45  ;;  %v654_v56 = vadd.f32 %v1011_v47, %v653_v54 }
  0xc5   : > { %v681_v59 = vadd.f32 %v630_v55, %v398_v49 }
  0xc6   : > { %v689_v60 = vadd.f32 %v654_v56, %v406_v50  ;;  %v584_v61 = vpop.f32.mrf.mxu0 }
  0xc7   : > { %v608_v33 = vpop.f32.mrf.mxu1  ;;  %v585_v0 = vadd.f32 %v1011_v47, %v584_v61  ;;  %714 = vst.msk [vmem:[%s1025_s16 + $0xb0] sm:$0xff] %vm691_vm2, %v681_v59 }
  0xc8   : > { %v609_v1 = vadd.f32 %v1011_v47, %v608_v33  ;;  %722 = vst.msk [vmem:[%s1025_s16 + $0xf0] sm:$0xff] %vm691_vm2, %v689_v60 }
  0xc9   : > { %v666_v2 = vadd.f32 %v585_v0, %v383_v57 }
  0xca   : > { %v674_v3 = vadd.f32 %v609_v1, %v391_v58  ;;  %v632_v6 = vpop.f32.mrf.mxu2 }
  0xcb   : > { %699 = vst.msk [vmem:[%s1025_s16 + $0x38] sm:$0xff] %vm691_vm2, %v666_v2  ;;  %v656_v7 = vpop.f32.mrf.mxu3  ;;  %v633_v37 = vadd.f32 %v1011_v47, %v632_v6 }
  0xcc   : > { %707 = vst.msk [vmem:[%s1025_s16 + $0x78] sm:$0xff] %vm691_vm2, %v674_v3  ;;  %v657_v8 = vadd.f32 %v1011_v47, %v656_v7 }
  0xcd   : > { %v682_v9 = vadd.f32 %v633_v37, %v399_v4 }
  0xce   : > { %v690_v10 = vadd.f32 %v657_v8, %v407_v5 }
  0xcf   : > { %715 = vst.msk [vmem:[%s1025_s16 + $0xb8] sm:$0xff] %vm691_vm2, %v682_v9 }
  0xd0   : > { %723 = vst.msk [vmem:[%s1025_s16 + $0xf8] sm:$0xff] %vm691_vm2, %v690_v10 }
  0xd1 PF: > { %s16_s21 = sadd.s32 1, %s860_s21  }
  0xd2   : > { %p13_p4 = scmp.ge.s32.totalorder %s16_s21, 4  }
  0xd4   :  { %15 = sbr.rel (!%p13_p4) target bundleno = 1 (0x1), region = 77 }

// kernel: intermediate_forward.17
= control target key start
LH: loop header
LB: loop body
LE: loop exit
PB: predicated region body
PF: predicated region fallthrough
CT: control target
= control target key end

     0   :  { %s577_s15 = smov 0   ;;  %s810_s0 = inlined_call_operand.vmem [shape: f32[2,16,16,8], index: 0, kind: input, shape index: {}]   ;;  %s811_s1 = inlined_call_operand.vmem [shape: f32[1,8], index: 1, kind: input, shape index: {}]   ;;  %s812_s2 = inlined_call_operand.vmem [shape: f32[1,8], index: 2, kind: input, shape index: {}]   ;;  %s813_s3 = inlined_call_operand.vmem [shape: f32[2,16,16,8], index: 3, kind: input, shape index: {}]   ;;  %s814_s4 = inlined_call_operand.vmem [shape: f32[2,16,16,8], index: 4, kind: output, shape index: {}]  }
   0x1 LB: > { %s518_s16 = sadd.s32 4294967295, %s550_s15   ;;  %p522_p0 = scmp.ge.s32.totalorder %s550_s15, 1  ;;  %s550_s15 = sphi %s577_s15, %s14_s15  }
   0x2   : > { %p172_p1 = scmp.lt.s32.totalorder %s550_s15, 3 }
   0x4   : > { %p173_p2 = pnand %p522_p0, %p172_p1 }
   0x5   : > { %p203_p3 = scmp.lt.s32.totalorder (!%p173_p2), %s518_s16, 1 }
   0x6   : > { %176 = sbr.rel (%p173_p2) target bundleno = 55 (0x37), region = 36 }
   0xb   : > { %s816_s16 = smov (!%p203_p3, %s518_s16), 1  ;;  %v588_v0 = vld [vmem:[%s811_s1] ss:$0 sm:$0xff]  ;;  %vm418_vm0 = vcmask 64512  }
   0xc   : > { %s590_s19 = sshll.u32 %s816_s16, 8  ;;  %v601_v1 = vld [vmem:[%s812_s2] ss:$0 sm:$0xff] }
   0xd   : > { %s596_s22 = scalar_lea.vmem %s810_s0, %s590_s19  ;;  %s607_s27 = scalar_lea.vmem %s813_s3, %s590_s19 }
   0xe   : > { %v218_v2 = vld [vmem:[%s596_s22] sm:$0xff]  ;;  %v219_v3 = vld [vmem:[%s596_s22 + $0x8] sm:$0xff]  ;;  %v220_v6 = vld [vmem:[%s596_s22 + $0x10] sm:$0xff]  ;;  %s636_s30 = scalar_lea.vmem %s814_s4, %s590_s19 }
   0xf   : > { %v254_v4 = vmul.f32 %v588_v0, %v218_v2  ;;  %v255_v5 = vmul.f32 %v588_v0, %v219_v3  ;;  %v256_v7 = vmul.f32 %v588_v0, %v220_v6  ;;  %v221_v8 = vld [vmem:[%s596_s22 + $0x18] sm:$0xff]  ;;  %v222_v9 = vld [vmem:[%s596_s22 + $0x20] sm:$0xff]  ;;  %v223_v15 = vld [vmem:[%s596_s22 + $0x28] sm:$0xff] }
  0x10   : > { %v354_v11 = vld [vmem:[%s607_s27] sm:$0xff]  ;;  %v257_v13 = vmul.f32 %v588_v0, %v221_v8  ;;  %v258_v14 = vmul.f32 %v588_v0, %v222_v9  ;;  %v355_v16 = vld [vmem:[%s607_s27 + $0x8] sm:$0xff]  ;;  %v259_v18 = vmul.f32 %v588_v0, %v223_v15  ;;  %v224_v19 = vld [vmem:[%s596_s22 + $0x30] sm:$0xff] }
  0x11   : > { %v290_v10 = vadd.f32 %v601_v1, %v254_v4  ;;  %v291_v12 = vadd.f32 %v601_v1, %v255_v5  ;;  %v292_v17 = vadd.f32 %v601_v1, %v256_v7  ;;  %v225_v20 = vld [vmem:[%s596_s22 + $0x38] sm:$0xff]  ;;  %v356_v23 = vld [vmem:[%s607_s27 + $0x10] sm:$0xff]  ;;  %v358_v28 = vld [vmem:[%s607_s27 + $0x20] sm:$0xff]  ;;  %v260_v30 = vmul.f32 %v588_v0, %v224_v19 }
  0x12   : > { %v293_v24 = vadd.f32 %v601_v1, %v257_v13  ;;  %v357_v25 = vld [vmem:[%s607_s27 + $0x18] sm:$0xff]  ;;  %v294_v26 = vadd.f32 %v601_v1, %v258_v14  ;;  %v295_v29 = vadd.f32 %v601_v1, %v259_v18  ;;  %v261_v31 = vmul.f32 %v588_v0, %v225_v20  ;;  %v226_v32 = vld [vmem:[%s596_s22 + $0x40] sm:$0xff]  ;;  %v227_v33 = vld [vmem:[%s596_s22 + $0x48] sm:$0xff] }
  0x13   : > { %v322_v21 = vmax.f32 %v290_v10, 0.0  ;;  %v323_v22 = vmax.f32 %v291_v12, 0.0  ;;  %v324_v27 = vmax.f32 %v292_v17, 0.0  ;;  %v359_v38 = vld [vmem:[%s607_s27 + $0x28] sm:$0xff]  ;;  %v228_v39 = vld [vmem:[%s596_s22 + $0x50] sm:$0xff]  ;;  %v296_v42 = vadd.f32 %v601_v1, %v260_v30  ;;  %v229_v44 = vld [vmem:[%s596_s22 + $0x58] sm:$0xff] }
  0x14   : > { %v325_v36 = vmax.f32 %v293_v24, 0.0  ;;  %v326_v37 = vmax.f32 %v294_v26, 0.0  ;;  %v327_v41 = vmax.f32 %v295_v29, 0.0  ;;  %v297_v43 = vadd.f32 %v601_v1, %v261_v31  ;;  %v230_v45 = vld [vmem:[%s596_s22 + $0x60] sm:$0xff]  ;;  %v360_v48 = vld [vmem:[%s607_s27 + $0x30] sm:$0xff]  ;;  %v361_v49 = vld [vmem:[%s607_s27 + $0x38] sm:$0xff] }
  0x15   : > { %v386_v34 = vadd.f32 %v354_v11, %v322_v21  ;;  %v387_v35 = vadd.f32 %v355_v16, %v323_v22  ;;  %v388_v40 = vadd.f32 %v356_v23, %v324_v27  ;;  %v262_v50 = vmul.f32 %v588_v0, %v226_v32  ;;  %v231_v52 = vld [vmem:[%s596_s22 + $0x68] sm:$0xff]  ;;  %v232_v61 = vld [vmem:[%s596_s22 + $0x70] sm:$0xff]  ;;  %v233_v62 = vld [vmem:[%s596_s22 + $0x78] sm:$0xff] }
  0x16   : > { %v389_v46 = vadd.f32 %v357_v25, %v325_v36  ;;  %v390_v47 = vadd.f32 %v358_v28, %v326_v37  ;;  %v263_v51 = vmul.f32 %v588_v0, %v227_v33  ;;  %v391_v53 = vadd.f32 %v359_v38, %v327_v41  ;;  %v362_v3 = vld [vmem:[%s607_s27 + $0x40] sm:$0xff]  ;;  %v363_v4 = vld [vmem:[%s607_s27 + $0x48] sm:$0xff]  ;;  %v364_v9 = vld [vmem:[%s607_s27 + $0x50] sm:$0xff] }
  0x17   : > { %419 = vst.msk [vmem:[%s636_s30] sm:$0xff] %vm418_vm0, %v386_v34  ;;  %v328_v54 = vmax.f32 %v296_v42, 0.0  ;;  %v329_v55 = vmax.f32 %v297_v43, 0.0  ;;  %v264_v56 = vmul.f32 %v588_v0, %v228_v39  ;;  %v298_v57 = vadd.f32 %v601_v1, %v262_v50  ;;  %v365_v11 = vld [vmem:[%s607_s27 + $0x58] sm:$0xff]  ;;  %v366_v14 = vld [vmem:[%s607_s27 + $0x60] sm:$0xff]  ;;  %v235_v19 = vld [vmem:[%s596_s22 + $0x88] sm:$0xff] }
  0x18   : > { %420 = vst.msk [vmem:[%s636_s30 + $0x8] sm:$0xff] %vm418_vm0, %v387_v35  ;;  %v299_v58 = vadd.f32 %v601_v1, %v263_v51  ;;  %v265_v59 = vmul.f32 %v588_v0, %v229_v44  ;;  %v266_v60 = vmul.f32 %v588_v0, %v230_v45  ;;  %v267_v6 = vmul.f32 %v588_v0, %v231_v52  ;;  %v234_v18 = vld [vmem:[%s596_s22 + $0x80] sm:$0xff]  ;;  %v367_v24 = vld [vmem:[%s607_s27 + $0x68] sm:$0xff]  ;;  %v236_v25 = vld [vmem:[%s596_s22 + $0x90] sm:$0xff] }
  0x19   : > { %421 = vst.msk [vmem:[%s636_s30 + $0x10] sm:$0xff] %vm418_vm0, %v388_v40  ;;  %v392_v63 = vadd.f32 %v360_v48, %v328_v54  ;;  %v393_v2 = vadd.f32 %v361_v49, %v329_v55  ;;  %v300_v5 = vadd.f32 %v601_v1, %v264_v56  ;;  %v330_v7 = vmax.f32 %v298_v57, 0.0  ;;  %v237_v30 = vld [vmem:[%s596_s22 + $0x98] sm:$0xff]  ;;  %v238_v31 = vld [vmem:[%s596_s22 + $0xa0] sm:$0xff]  ;;  %v368_v34 = vld [vmem:[%s607_s27 + $0x70] sm:$0xff] }
  0x1a   : > { %422 = vst.msk [vmem:[%s636_s30 + $0x18] sm:$0xff] %vm418_vm0, %v389_v46  ;;  %v331_v8 = vmax.f32 %v299_v58, 0.0  ;;  %v301_v10 = vadd.f32 %v601_v1, %v265_v59  ;;  %v302_v12 = vadd.f32 %v601_v1, %v266_v60  ;;  %v303_v15 = vadd.f32 %v601_v1, %v267_v6  ;;  %v369_v35 = vld [vmem:[%s607_s27 + $0x78] sm:$0xff]  ;;  %v239_v38 = vld [vmem:[%s596_s22 + $0xa8] sm:$0xff]  ;;  %v370_v51 = vld [vmem:[%s607_s27 + $0x80] sm:$0xff] }
  0x1b   : > { %423 = vst.msk [vmem:[%s636_s30 + $0x20] sm:$0xff] %vm418_vm0, %v390_v47  ;;  %v332_v13 = vmax.f32 %v300_v5, 0.0  ;;  %v268_v16 = vmul.f32 %v588_v0, %v232_v61  ;;  %v269_v17 = vmul.f32 %v588_v0, %v233_v62  ;;  %v394_v20 = vadd.f32 %v362_v3, %v330_v7  ;;  %v240_v47 = vld [vmem:[%s596_s22 + $0xb0] sm:$0xff]  ;;  %v241_v48 = vld [vmem:[%s596_s22 + $0xb8] sm:$0xff]  ;;  %v371_v52 = vld [vmem:[%s607_s27 + $0x88] sm:$0xff] }
  0x1c   : > { %424 = vst.msk [vmem:[%s636_s30 + $0x28] sm:$0xff] %vm418_vm0, %v391_v53  ;;  %v395_v21 = vadd.f32 %v363_v4, %v331_v8  ;;  %v333_v22 = vmax.f32 %v301_v10, 0.0  ;;  %v334_v23 = vmax.f32 %v302_v12, 0.0  ;;  %v335_v27 = vmax.f32 %v303_v15, 0.0  ;;  %v372_v57 = vld [vmem:[%s607_s27 + $0x90] sm:$0xff]  ;;  %v373_v59 = vld [vmem:[%s607_s27 + $0x98] sm:$0xff] }
  0x1d   : > { %425 = vst.msk [vmem:[%s636_s30 + $0x30] sm:$0xff] %vm418_vm0, %v392_v63  ;;  %v396_v26 = vadd.f32 %v364_v9, %v332_v13  ;;  %v304_v28 = vadd.f32 %v601_v1, %v268_v16  ;;  %v305_v29 = vadd.f32 %v601_v1, %v269_v17  ;;  %v270_v36 = vmul.f32 %v588_v0, %v234_v18  ;;  %v374_v62 = vld [vmem:[%s607_s27 + $0xa0] sm:$0xff]  ;;  %v243_v5 = vld [vmem:[%s596_s22 + $0xc8] sm:$0xff]  ;;  %v245_v16 = vld [vmem:[%s596_s22 + $0xd8] sm:$0xff] }
  0x1e   : > { %426 = vst.msk [vmem:[%s636_s30 + $0x38] sm:$0xff] %vm418_vm0, %v393_v2  ;;  %v397_v32 = vadd.f32 %v365_v11, %v333_v22  ;;  %v398_v33 = vadd.f32 %v366_v14, %v334_v23  ;;  %v271_v37 = vmul.f32 %v588_v0, %v235_v19  ;;  %v399_v39 = vadd.f32 %v367_v24, %v335_v27  ;;  %v242_v4 = vld [vmem:[%s596_s22 + $0xc0] sm:$0xff]  ;;  %v375_v10 = vld [vmem:[%s607_s27 + $0xa8] sm:$0xff]  ;;  %v244_v11 = vld [vmem:[%s596_s22 + $0xd0] sm:$0xff] }
  0x1f   : > { %427 = vst.msk [vmem:[%s636_s30 + $0x40] sm:$0xff] %vm418_vm0, %v394_v20  ;;  %v336_v40 = vmax.f32 %v304_v28, 0.0  ;;  %v337_v41 = vmax.f32 %v305_v29, 0.0  ;;  %v272_v42 = vmul.f32 %v588_v0, %v236_v25  ;;  %v306_v43 = vadd.f32 %v601_v1, %v270_v36  ;;  %v246_v17 = vld [vmem:[%s596_s22 + $0xe0] sm:$0xff]  ;;  %v376_v20 = vld [vmem:[%s607_s27 + $0xb0] sm:$0xff]  ;;  %v247_v24 = vld [vmem:[%s596_s22 + $0xe8] sm:$0xff] }
  0x20   : > { %428 = vst.msk [vmem:[%s636_s30 + $0x48] sm:$0xff] %vm418_vm0, %v395_v21  ;;  %v307_v44 = vadd.f32 %v601_v1, %v271_v37  ;;  %v273_v45 = vmul.f32 %v588_v0, %v237_v30  ;;  %v274_v46 = vmul.f32 %v588_v0, %v238_v31  ;;  %v275_v54 = vmul.f32 %v588_v0, %v239_v38  ;;  %v377_v21 = vld [vmem:[%s607_s27 + $0xb8] sm:$0xff]  ;;  %v378_v37 = vld [vmem:[%s607_s27 + $0xc0] sm:$0xff]  ;;  %v379_v38 = vld [vmem:[%s607_s27 + $0xc8] sm:$0xff] }
  0x21   : > { %429 = vst.msk [vmem:[%s636_s30 + $0x50] sm:$0xff] %vm418_vm0, %v396_v26  ;;  %v400_v49 = vadd.f32 %v368_v34, %v336_v40  ;;  %v401_v50 = vadd.f32 %v369_v35, %v337_v41  ;;  %v308_v53 = vadd.f32 %v601_v1, %v272_v42  ;;  %v338_v55 = vmax.f32 %v306_v43, 0.0  ;;  %v249_v34 = vld [vmem:[%s596_s22 + $0xf8] sm:$0xff]  ;;  %v380_v43 = vld [vmem:[%s607_s27 + $0xd0] sm:$0xff] }
  0x22   : > { %430 = vst.msk [vmem:[%s636_s30 + $0x58] sm:$0xff] %vm418_vm0, %v397_v32  ;;  %v339_v56 = vmax.f32 %v307_v44, 0.0  ;;  %v309_v58 = vadd.f32 %v601_v1, %v273_v45  ;;  %v310_v60 = vadd.f32 %v601_v1, %v274_v46  ;;  %v311_v63 = vadd.f32 %v601_v1, %v275_v54 }
  0x23   : > { %431 = vst.msk [vmem:[%s636_s30 + $0x60] sm:$0xff] %vm418_vm0, %v398_v33  ;;  %v340_v61 = vmax.f32 %v308_v53, 0.0  ;;  %v276_v2 = vmul.f32 %v588_v0, %v240_v47  ;;  %v277_v3 = vmul.f32 %v588_v0, %v241_v48  ;;  %v402_v6 = vadd.f32 %v370_v51, %v338_v55  ;;  %v248_v33 = vld [vmem:[%s596_s22 + $0xf0] sm:$0xff]  ;;  %v381_v47 = vld [vmem:[%s607_s27 + $0xd8] sm:$0xff]  ;;  %v382_v48 = vld [vmem:[%s607_s27 + $0xe0] sm:$0xff] }
  0x24   : > { %432 = vst.msk [vmem:[%s636_s30 + $0x68] sm:$0xff] %vm418_vm0, %v399_v39  ;;  %v403_v7 = vadd.f32 %v371_v52, %v339_v56  ;;  %v341_v8 = vmax.f32 %v309_v58, 0.0  ;;  %v342_v9 = vmax.f32 %v310_v60, 0.0  ;;  %v343_v13 = vmax.f32 %v311_v63, 0.0  ;;  %v383_v56 = vld [vmem:[%s607_s27 + $0xe8] sm:$0xff]  ;;  %v385_v63 = vld [vmem:[%s607_s27 + $0xf8] sm:$0xff] }
  0x25   : > { %433 = vst.msk [vmem:[%s636_s30 + $0x70] sm:$0xff] %vm418_vm0, %v400_v49  ;;  %v404_v12 = vadd.f32 %v372_v57, %v340_v61  ;;  %v312_v14 = vadd.f32 %v601_v1, %v276_v2  ;;  %v313_v15 = vadd.f32 %v601_v1, %v277_v3  ;;  %v278_v22 = vmul.f32 %v588_v0, %v242_v4 }
  0x26   : > { %434 = vst.msk [vmem:[%s636_s30 + $0x78] sm:$0xff] %vm418_vm0, %v401_v50  ;;  %v405_v18 = vadd.f32 %v373_v59, %v341_v8  ;;  %v406_v19 = vadd.f32 %v374_v62, %v342_v9  ;;  %v279_v23 = vmul.f32 %v588_v0, %v243_v5  ;;  %v407_v25 = vadd.f32 %v375_v10, %v343_v13  ;;  %v384_v62 = vld [vmem:[%s607_s27 + $0xf0] sm:$0xff] }
  0x27   : > { %435 = vst.msk [vmem:[%s636_s30 + $0x80] sm:$0xff] %vm418_vm0, %v402_v6  ;;  %v344_v26 = vmax.f32 %v312_v14, 0.0  ;;  %v345_v27 = vmax.f32 %v313_v15, 0.0  ;;  %v280_v28 = vmul.f32 %v588_v0, %v244_v11  ;;  %v314_v29 = vadd.f32 %v601_v1, %v278_v22 }
  0x28   : > { %436 = vst.msk [vmem:[%s636_s30 + $0x88] sm:$0xff] %vm418_vm0, %v403_v7  ;;  %v315_v30 = vadd.f32 %v601_v1, %v279_v23  ;;  %v281_v31 = vmul.f32 %v588_v0, %v245_v16  ;;  %v282_v32 = vmul.f32 %v588_v0, %v246_v17  ;;  %v283_v40 = vmul.f32 %v588_v0, %v247_v24 }
  0x29   : > { %437 = vst.msk [vmem:[%s636_s30 + $0x90] sm:$0xff] %vm418_vm0, %v404_v12  ;;  %v408_v35 = vadd.f32 %v376_v20, %v344_v26  ;;  %v409_v36 = vadd.f32 %v377_v21, %v345_v27  ;;  %v316_v39 = vadd.f32 %v601_v1, %v280_v28  ;;  %v346_v41 = vmax.f32 %v314_v29, 0.0 }
  0x2a   : > { %438 = vst.msk [vmem:[%s636_s30 + $0x98] sm:$0xff] %vm418_vm0, %v405_v18  ;;  %v347_v42 = vmax.f32 %v315_v30, 0.0  ;;  %v317_v44 = vadd.f32 %v601_v1, %v281_v31  ;;  %v318_v45 = vadd.f32 %v601_v1, %v282_v32  ;;  %v319_v49 = vadd.f32 %v601_v1, %v283_v40 }
  0x2b   : > { %439 = vst.msk [vmem:[%s636_s30 + $0xa0] sm:$0xff] %vm418_vm0, %v406_v19  ;;  %v348_v46 = vmax.f32 %v316_v39, 0.0  ;;  %v284_v50 = vmul.f32 %v588_v0, %v248_v33  ;;  %v285_v51 = vmul.f32 %v588_v0, %v249_v34  ;;  %v410_v52 = vadd.f32 %v378_v37, %v346_v41 }
  0x2c   : > { %440 = vst.msk [vmem:[%s636_s30 + $0xa8] sm:$0xff] %vm418_vm0, %v407_v25  ;;  %v411_v53 = vadd.f32 %v379_v38, %v347_v42  ;;  %v349_v54 = vmax.f32 %v317_v44, 0.0  ;;  %v350_v55 = vmax.f32 %v318_v45, 0.0  ;;  %v351_v58 = vmax.f32 %v319_v49, 0.0 }
  0x2d   : > { %441 = vst.msk [vmem:[%s636_s30 + $0xb0] sm:$0xff] %vm418_vm0, %v408_v35  ;;  %v412_v57 = vadd.f32 %v380_v43, %v348_v46  ;;  %v320_v59 = vadd.f32 %v601_v1, %v284_v50  ;;  %v321_v0 = vadd.f32 %v601_v1, %v285_v51 }
  0x2e   : > { %442 = vst.msk [vmem:[%s636_s30 + $0xb8] sm:$0xff] %vm418_vm0, %v409_v36  ;;  %v413_v60 = vadd.f32 %v381_v47, %v349_v54  ;;  %v414_v61 = vadd.f32 %v382_v48, %v350_v55  ;;  %v415_v2 = vadd.f32 %v383_v56, %v351_v58 }
  0x2f   : > { %443 = vst.msk [vmem:[%s636_s30 + $0xc0] sm:$0xff] %vm418_vm0, %v410_v52  ;;  %v352_v3 = vmax.f32 %v320_v59, 0.0  ;;  %v353_v4 = vmax.f32 %v321_v0, 0.0 }
  0x30   : > { %444 = vst.msk [vmem:[%s636_s30 + $0xc8] sm:$0xff] %vm418_vm0, %v411_v53 }
  0x31   : > { %445 = vst.msk [vmem:[%s636_s30 + $0xd0] sm:$0xff] %vm418_vm0, %v412_v57  ;;  %v416_v5 = vadd.f32 %v384_v62, %v352_v3  ;;  %v417_v6 = vadd.f32 %v385_v63, %v353_v4 }
  0x32   : > { %446 = vst.msk [vmem:[%s636_s30 + $0xd8] sm:$0xff] %vm418_vm0, %v413_v60 }
  0x33   : > { %447 = vst.msk [vmem:[%s636_s30 + $0xe0] sm:$0xff] %vm418_vm0, %v414_v61 }
  0x34   : > { %448 = vst.msk [vmem:[%s636_s30 + $0xe8] sm:$0xff] %vm418_vm0, %v415_v2 }
  0x35   : > { %449 = vst.msk [vmem:[%s636_s30 + $0xf0] sm:$0xff] %vm418_vm0, %v416_v5 }
  0x36   : > { %450 = vst.msk [vmem:[%s636_s30 + $0xf8] sm:$0xff] %vm418_vm0, %v417_v6 }
  0x37 PF: > { %s14_s15 = sadd.s32 1, %s550_s15  }
  0x38   : > { %p11_p4 = scmp.ge.s32.totalorder %s14_s15, 4  }
  0x3a   :  { %13 = sbr.rel (!%p11_p4) target bundleno = 1 (0x1), region = 69 }

// kernel: intermediate_forward.13
= control target key start
LH: loop header
LB: loop body
LE: loop exit
PB: predicated region body
PF: predicated region fallthrough
CT: control target
= control target key end

     0   :  { %s3601_s21 = smov 0   ;;  %s4896_s0 = inlined_call_operand.vmem [shape: f32[2,16,16,8], index: 0, kind: input, shape index: {}]   ;;  %s4897_s1 = inlined_call_operand.vmem [shape: f32[1,8], index: 1, kind: input, shape index: {}]   ;;  %s4898_s2 = inlined_call_operand.vmem [shape: f32[1,8], index: 2, kind: input, shape index: {}]   ;;  %s4899_s3 = inlined_call_operand.vmem [shape: f32[3,3,8,8], index: 3, kind: input, shape index: {}]   ;;  %s4900_s4 = inlined_call_operand.vmem [shape: f32[2,16,16,8], index: 4, kind: output, shape index: {0}]   ;;  %s4901_s5 = inlined_call_operand.vmem [shape: f32[2,1,8], index: 5, kind: output, shape index: {1}]   ;;  %s4902_s6 = inlined_call_operand.vmem [shape: f32[2,1,8], index: 6, kind: output, shape index: {2}]  }
   0x1 LB: > { %s3232_s22 = sadd.s32 4294967295, %s3563_s21   ;;  %p3236_p0 = scmp.ge.s32.totalorder %s3563_s21, 1  ;;  %s3563_s21 = sphi %s3601_s21, %s17_s21  }
   0x2   : > { %p217_p1 = scmp.lt.s32.totalorder %s3563_s21, 3 }
   0x4   : > { %p218_p2 = pnand %p3236_p0, %p217_p1 }
   0x6   : > { %221 = sbr.rel (%p218_p2) target bundleno = 799 (0x31f), region = 36 }
   0xb   : > { %v3241_v0 = vld [vmem:[%s4899_s3 + $0x8] sm:$0xff]  ;;  %p253_p3 = scmp.lt.s32.totalorder %s3232_s22, 1  ;;  %vm405_vm0 = vcmask 64512   ;;  %v3565_v1 = vmov 0.0   ;;  %v3619_v2 = vld [vmem:[%s4897_s1] ss:$0 sm:$0xff] }
   0xc   : > { %3541 = vmatpush.msra.mxu1 %v3241_v0  ;;  %3542 = vmatpush.msra.mxu2 %v3241_v0  ;;  %424 = vst.msk [vmem:[#allocation2 + $0x88] sm:$0xff] %vm405_vm0, %v3565_v1  ;;  %v3636_v3 = vld [vmem:[%s4898_s2] ss:$0 sm:$0xff]  ;;  %v3306_v9 = vld [vmem:[%s4899_s3 + $0x10] sm:$0xff]  ;;  %v3339_v10 = vld [vmem:[%s4899_s3 + $0x18] sm:$0xff]  ;;  %vm409_vm1 = vcmask 57344  }
   0xd   : > { %s5012_s22 = smov (!%p253_p3, %s3232_s22), 1  ;;  %3543 = vmatpush.msra.mxu3 %v3241_v0  ;;  %690 = vmatpush.msra.mxu0 %v3241_v0  ;;  %406 = vst.msk [vmem:[#allocation2] sm:$0xff] %vm405_vm0, %v3565_v1  ;;  %v544_v11 = vld [vmem:[%s4899_s3] sm:$0xff] }
   0xe   : > { %s3539_s27 = sshll.u32 %s5012_s22, 8  ;;  %407 = vst.msk [vmem:[#allocation2 + $0x8] sm:$0xff] %vm405_vm0, %v3565_v1  ;;  %1142 = vmatpush.msrb.mxu2 %v3306_v9  ;;  %899 = vmatpush.msrb.mxu1 %v544_v11  ;;  %v3372_v14 = vld [vmem:[%s4899_s3 + $0x20] sm:$0xff]  ;;  %s265_s12 = scalar_lea.vmem %s4901_s5, %s5012_s22 }
   0xf   : > { %s3631_s30 = scalar_lea.vmem %s4896_s0, %s3539_s27  ;;  %408 = vst.msk [vmem:[#allocation2 + $0x10] sm:$0xff] %vm405_vm0, %v3565_v1  ;;  %1417 = vmatpush.msrb.mxu3 %v3339_v10  ;;  %1692 = vmatpush.msrb.mxu0 %v3372_v14  ;;  %s4654_s10 = scalar_lea.vmem %s4900_s4, %s3539_s27 }
  0x10   : > { %v275_v4 = vld [vmem:[%s3631_s30 + $0x30] sm:$0xff]  ;;  %411 = vst.msk [vmem:[#allocation2 + $0x20] sm:$0xff] %vm405_vm0, %v3565_v1  ;;  %v276_v16 = vld [vmem:[%s3631_s30 + $0x38] sm:$0xff]  ;;  %v277_v22 = vld [vmem:[%s3631_s30 + $0x40] sm:$0xff]  ;;  %s268_s15 = scalar_lea.vmem %s4902_s6, %s5012_s22 }
  0x11   : > { %v311_v5 = vmul.f32 %v3619_v2, %v275_v4  ;;  %412 = vst.msk [vmem:[#allocation2 + $0x28] sm:$0xff] %vm405_vm0, %v3565_v1  ;;  %v283_v13 = vld [vmem:[%s3631_s30 + $0x70] sm:$0xff]  ;;  %v284_v18 = vld [vmem:[%s3631_s30 + $0x78] sm:$0xff]  ;;  %v312_v21 = vmul.f32 %v3619_v2, %v276_v16  ;;  %v285_v24 = vld [vmem:[%s3631_s30 + $0x80] sm:$0xff]  ;;  %v313_v30 = vmul.f32 %v3619_v2, %v277_v22 }
  0x12   : > { %413 = vst.msk [vmem:[#allocation2 + $0x30] sm:$0xff] %vm405_vm0, %v3565_v1  ;;  %v291_v15 = vld [vmem:[%s3631_s30 + $0xb0] sm:$0xff]  ;;  %v319_v17 = vmul.f32 %v3619_v2, %v283_v13  ;;  %v292_v20 = vld [vmem:[%s3631_s30 + $0xb8] sm:$0xff]  ;;  %v320_v23 = vmul.f32 %v3619_v2, %v284_v18  ;;  %v293_v28 = vld [vmem:[%s3631_s30 + $0xc0] sm:$0xff]  ;;  %v321_v33 = vmul.f32 %v3619_v2, %v285_v24 }
  0x13   : > { %v347_v6 = vadd.f32 %v3636_v3, %v311_v5  ;;  %415 = vst.msk [vmem:[#allocation2 + $0x40] sm:$0xff] %vm405_vm0, %v3565_v1  ;;  %v327_v19 = vmul.f32 %v3619_v2, %v291_v15  ;;  %v328_v26 = vmul.f32 %v3619_v2, %v292_v20  ;;  %v278_v31 = vld [vmem:[%s3631_s30 + $0x48] sm:$0xff]  ;;  %v348_v32 = vadd.f32 %v3636_v3, %v312_v21  ;;  %v269_v37 = vld [vmem:[%s3631_s30] sm:$0xff]  ;;  %v279_v45 = vld [vmem:[%s3631_s30 + $0x50] sm:$0xff] }
  0x14   : > { %416 = vst.msk [vmem:[#allocation2 + $0x48] sm:$0xff] %vm405_vm0, %v3565_v1  ;;  %v355_v25 = vadd.f32 %v3636_v3, %v319_v17  ;;  %v286_v34 = vld [vmem:[%s3631_s30 + $0x88] sm:$0xff]  ;;  %v356_v35 = vadd.f32 %v3636_v3, %v320_v23  ;;  %v329_v36 = vmul.f32 %v3619_v2, %v293_v28  ;;  %v314_v40 = vmul.f32 %v3619_v2, %v278_v31  ;;  %v287_v49 = vld [vmem:[%s3631_s30 + $0x90] sm:$0xff]  ;;  %v280_v61 = vld [vmem:[%s3631_s30 + $0x58] sm:$0xff] }
  0x15   : > { %v379_v7 = vmax.f32 %v347_v6, 0.0  ;;  %417 = vst.msk [vmem:[#allocation2 + $0x50] sm:$0xff] %vm405_vm0, %v3565_v1  ;;  %v545_v12 = vld [vmem:[#allocation2 + $0x8] sm:$0xff]  ;;  %v363_v29 = vadd.f32 %v3636_v3, %v327_v19  ;;  %v364_v39 = vadd.f32 %v3636_v3, %v328_v26  ;;  %v349_v43 = vadd.f32 %v3636_v3, %v313_v30  ;;  %v295_v57 = vld [vmem:[%s3631_s30 + $0xd0] sm:$0xff]  ;;  %v288_v4 = vld [vmem:[%s3631_s30 + $0x98] sm:$0xff] }
  0x16   : > { %419 = vst.msk [vmem:[#allocation2 + $0x60] sm:$0xff] %vm405_vm0, %v3565_v1  ;;  %3242 = vmatmul.msk.f32.vlgmr.msra.gmra.mxu0 %vm405_vm0, %v545_v12  ;;  %v546_v27 = vld [vmem:[#allocation2 + $0x10] sm:$0xff]  ;;  %v387_v38 = vmax.f32 %v355_v25, 0.0  ;;  %v294_v41 = vld [vmem:[%s3631_s30 + $0xc8] sm:$0xff]  ;;  %v322_v44 = vmul.f32 %v3619_v2, %v286_v34  ;;  %v380_v46 = vmax.f32 %v348_v32, 0.0  ;;  %v357_v47 = vadd.f32 %v3636_v3, %v321_v33  ;;  %v296_v13 = vld [vmem:[%s3631_s30 + $0xd8] sm:$0xff] }
  0x17   : > { %486 = vst.msk [vmem:[#allocation2 + $0x88] sm:$0xff] %vm405_vm0, %v379_v7  ;;  %v395_v42 = vmax.f32 %v363_v29, 0.0  ;;  %v305_v48 = vmul.f32 %v3619_v2, %v269_v37  ;;  %v388_v50 = vmax.f32 %v356_v35, 0.0  ;;  %v365_v51 = vadd.f32 %v3636_v3, %v329_v36  ;;  %v270_v53 = vld [vmem:[%s3631_s30 + $0x8] sm:$0xff]  ;;  %v271_v9 = vld [vmem:[%s3631_s30 + $0x10] sm:$0xff]  ;;  %v281_v30 = vld [vmem:[%s3631_s30 + $0x60] sm:$0xff] }
  0x18   : > { %420 = vst.msk [vmem:[#allocation2 + $0x68] sm:$0xff] %vm405_vm0, %v3565_v1  ;;  %v330_v52 = vmul.f32 %v3619_v2, %v294_v41  ;;  %v396_v54 = vmax.f32 %v364_v39, 0.0  ;;  %v350_v55 = vadd.f32 %v3636_v3, %v314_v40  ;;  %v315_v56 = vmul.f32 %v3619_v2, %v279_v45  ;;  %v289_v31 = vld [vmem:[%s3631_s30 + $0xa0] sm:$0xff] }
  0x19   : > { %421 = vst.msk [vmem:[#allocation2 + $0x70] sm:$0xff] %vm405_vm0, %v3565_v1  ;;  %v381_v58 = vmax.f32 %v349_v43, 0.0  ;;  %v358_v59 = vadd.f32 %v3636_v3, %v322_v44  ;;  %v323_v60 = vmul.f32 %v3619_v2, %v287_v49  ;;  %v389_v62 = vmax.f32 %v357_v47, 0.0  ;;  %v297_v39 = vld [vmem:[%s3631_s30 + $0xe0] sm:$0xff] }
  0x1a   : > { %423 = vst.msk [vmem:[#allocation2 + $0x80] sm:$0xff] %vm405_vm0, %v3565_v1  ;;  %v341_v63 = vadd.f32 %v3636_v3, %v305_v48  ;;  %v306_v0 = vmul.f32 %v3619_v2, %v270_v53  ;;  %v397_v5 = vmax.f32 %v365_v51, 0.0  ;;  %v366_v6 = vadd.f32 %v3636_v3, %v330_v52 }
  0x1b   : > { %425 = vst.msk [vmem:[#allocation2 + $0x90] sm:$0xff] %vm405_vm0, %v3565_v1  ;;  %v331_v7 = vmul.f32 %v3619_v2, %v295_v57  ;;  %v382_v10 = vmax.f32 %v350_v55, 0.0  ;;  %v351_v11 = vadd.f32 %v3636_v3, %v315_v56  ;;  %v316_v12 = vmul.f32 %v3619_v2, %v280_v61  ;;  %v282_v56 = vld [vmem:[%s3631_s30 + $0x68] sm:$0xff] }
  0x1c   : > { %427 = vst.msk [vmem:[#allocation2 + $0xa0] sm:$0xff] %vm405_vm0, %v3565_v1  ;;  %v390_v14 = vmax.f32 %v358_v59, 0.0  ;;  %v359_v15 = vadd.f32 %v3636_v3, %v323_v60  ;;  %v324_v16 = vmul.f32 %v3619_v2, %v288_v4  ;;  %v373_v17 = vmax.f32 %v341_v63, 0.0  ;;  %v290_v57 = vld [vmem:[%s3631_s30 + $0xa8] sm:$0xff] }
  0x1d   : > { %428 = vst.msk [vmem:[#allocation2 + $0xa8] sm:$0xff] %vm405_vm0, %v3565_v1  ;;  %v342_v18 = vadd.f32 %v3636_v3, %v306_v0  ;;  %v307_v19 = vmul.f32 %v3619_v2, %v271_v9  ;;  %v398_v21 = vmax.f32 %v366_v6, 0.0  ;;  %v367_v22 = vadd.f32 %v3636_v3, %v331_v7  ;;  %v298_v63 = vld [vmem:[%s3631_s30 + $0xe8] sm:$0xff] }
  0x1e   : > { %v3670_v8 = vld [vmem:[#allocation2 + $0x88] sm:$0xff]  ;;  %429 = vst.msk [vmem:[#allocation2 + $0xb0] sm:$0xff] %vm405_vm0, %v3565_v1  ;;  %3243 = vmatmul.msk.f32.gmra.mxu0 %vm405_vm0, %v546_v27  ;;  %v332_v23 = vmul.f32 %v3619_v2, %v296_v13  ;;  %v383_v25 = vmax.f32 %v351_v11, 0.0  ;;  %v352_v26 = vadd.f32 %v3636_v3, %v316_v12  ;;  %v391_v28 = vmax.f32 %v359_v15, 0.0 }
  0x1f   : > { %3250 = vmatmul.msk.f32.vlgmr.msra.gmra.mxu1 %vm405_vm0, %v3670_v8  ;;  %431 = vst.msk [vmem:[#allocation2 + $0xc0] sm:$0xff] %vm405_vm0, %v3565_v1  ;;  %v360_v29 = vadd.f32 %v3636_v3, %v324_v16  ;;  %v374_v32 = vmax.f32 %v342_v18, 0.0  ;;  %v343_v33 = vadd.f32 %v3636_v3, %v307_v19  ;;  %v317_v34 = vmul.f32 %v3619_v2, %v281_v30  ;;  %v274_v18 = vld [vmem:[%s3631_s30 + $0x28] sm:$0xff] }
  0x20   : > { %432 = vst.msk [vmem:[#allocation2 + $0xc8] sm:$0xff] %vm405_vm0, %v3565_v1  ;;  %v325_v35 = vmul.f32 %v3619_v2, %v289_v31  ;;  %v399_v36 = vmax.f32 %v367_v22, 0.0  ;;  %v368_v37 = vadd.f32 %v3636_v3, %v332_v23  ;;  %v384_v40 = vmax.f32 %v352_v26, 0.0  ;;  %v3438_v31 = vld [vmem:[%s4899_s3 + $0x30] sm:$0xff] }
  0x21   : > { %433 = vst.msk [vmem:[#allocation2 + $0xd0] sm:$0xff] %vm405_vm0, %v3565_v1  ;;  %v353_v41 = vadd.f32 %v3636_v3, %v317_v34  ;;  %v333_v43 = vmul.f32 %v3619_v2, %v297_v39  ;;  %v392_v45 = vmax.f32 %v360_v29, 0.0  ;;  %v375_v48 = vmax.f32 %v343_v33, 0.0  ;;  %v3405_v33 = vld [vmem:[%s4899_s3 + $0x28] sm:$0xff] }
  0x22   : > { %435 = vst.msk [vmem:[#allocation2 + $0xe0] sm:$0xff] %vm405_vm0, %v3565_v1  ;;  %v400_v51 = vmax.f32 %v368_v37, 0.0  ;;  %v318_v59 = vmul.f32 %v3619_v2, %v282_v56  ;;  %v326_v60 = vmul.f32 %v3619_v2, %v290_v57  ;;  %v334_v6 = vmul.f32 %v3619_v2, %v298_v63  ;;  %1967 = vmatpush.msra.mxu1 %v3405_v33 }
  0x23   : > { %436 = vst.msk [vmem:[#allocation2 + $0xe8] sm:$0xff] %vm405_vm0, %v3565_v1  ;;  %v369_v52 = vadd.f32 %v3636_v3, %v333_v43  ;;  %v385_v53 = vmax.f32 %v353_v41, 0.0  ;;  %v310_v19 = vmul.f32 %v3619_v2, %v274_v18 }
  0x24   : > { %437 = vst.msk [vmem:[#allocation2 + $0xf0] sm:$0xff] %vm405_vm0, %v3565_v1  ;;  %v354_v0 = vadd.f32 %v3636_v3, %v318_v59  ;;  %v362_v4 = vadd.f32 %v3636_v3, %v326_v60  ;;  %v370_v13 = vadd.f32 %v3636_v3, %v334_v6 }
  0x25   : > { %439 = vst.msk [vmem:[#allocation2 + $0x100] sm:$0xff] %vm405_vm0, %v3565_v1  ;;  %v401_v61 = vmax.f32 %v369_v52, 0.0  ;;  %v346_v23 = vadd.f32 %v3636_v3, %v310_v19 }
  0x26   : > { %440 = vst.msk [vmem:[#allocation2 + $0x108] sm:$0xff] %vm405_vm0, %v3565_v1  ;;  %v394_v11 = vmax.f32 %v362_v4, 0.0 }
  0x27   : > { %441 = vst.msk [vmem:[#allocation2 + $0x110] sm:$0xff] %vm405_vm0, %v3565_v1 }
  0x28   : > { %443 = vst.msk [vmem:[#allocation2 + $0x120] sm:$0xff] %vm405_vm0, %v3565_v1 }
  0x29   : > { %444 = vst.msk [vmem:[#allocation2 + $0x128] sm:$0xff] %vm405_vm0, %v3565_v1 }
  0x2a   : > { %445 = vst.msk [vmem:[#allocation2 + $0x130] sm:$0xff] %vm405_vm0, %v3565_v1 }
  0x2b   : > { %447 = vst.msk [vmem:[#allocation2 + $0x140] sm:$0xff] %vm405_vm0, %v3565_v1 }
  0x2c   : > { %448 = vst.msk [vmem:[#allocation2 + $0x148] sm:$0xff] %vm405_vm0, %v3565_v1 }
  0x2d   : > { %449 = vst.msk [vmem:[#allocation2 + $0x150] sm:$0xff] %vm405_vm0, %v3565_v1 }
  0x2e   : > { %451 = vst.msk [vmem:[#allocation2 + $0x160] sm:$0xff] %vm405_vm0, %v3565_v1 }
  0x2f   : > { %452 = vst.msk [vmem:[#allocation2 + $0x168] sm:$0xff] %vm405_vm0, %v3565_v1 }
  0x30   : > { %453 = vst.msk [vmem:[#allocation2 + $0x170] sm:$0xff] %vm405_vm0, %v3565_v1 }
  0x31   : > { %455 = vst.msk [vmem:[#allocation2 + $0x180] sm:$0xff] %vm405_vm0, %v3565_v1 }
  0x32   : > { %456 = vst.msk [vmem:[#allocation2 + $0x188] sm:$0xff] %vm405_vm0, %v3565_v1 }
  0x33   : > { %457 = vst.msk [vmem:[#allocation2 + $0x190] sm:$0xff] %vm405_vm0, %v3565_v1 }
  0x34   : > { %459 = vst.msk [vmem:[#allocation2 + $0x1a0] sm:$0xff] %vm405_vm0, %v3565_v1 }
  0x35   : > { %460 = vst.msk [vmem:[#allocation2 + $0x1a8] sm:$0xff] %vm405_vm0, %v3565_v1 }
  0x36   : > { %461 = vst.msk [vmem:[#allocation2 + $0x1b0] sm:$0xff] %vm405_vm0, %v3565_v1 }
  0x37   : > { %463 = vst.msk [vmem:[#allocation2 + $0x1c0] sm:$0xff] %vm405_vm0, %v3565_v1 }
  0x38   : > { %464 = vst.msk [vmem:[#allocation2 + $0x1c8] sm:$0xff] %vm405_vm0, %v3565_v1 }
  0x39   : > { %465 = vst.msk [vmem:[#allocation2 + $0x1d0] sm:$0xff] %vm405_vm0, %v3565_v1 }
  0x3a   : > { %467 = vst.msk [vmem:[#allocation2 + $0x1e0] sm:$0xff] %vm405_vm0, %v3565_v1 }
  0x3b   : > { %468 = vst.msk [vmem:[#allocation2 + $0x1e8] sm:$0xff] %vm405_vm0, %v3565_v1 }
  0x3c   : > { %469 = vst.msk [vmem:[#allocation2 + $0x1f0] sm:$0xff] %vm405_vm0, %v3565_v1 }
  0x3d   : > { %471 = vst.msk [vmem:[#allocation2 + $0x200] sm:$0xff] %vm405_vm0, %v3565_v1 }
  0x3e   : > { %472 = vst.msk [vmem:[#allocation2 + $0x208] sm:$0xff] %vm405_vm0, %v3565_v1 }
  0x3f   : > { %473 = vst.msk [vmem:[#allocation2 + $0x210] sm:$0xff] %vm405_vm0, %v3565_v1 }
  0x40   : > { %475 = vst.msk [vmem:[#allocation2 + $0x220] sm:$0xff] %vm405_vm0, %v3565_v1 }
  0x41   : > { %476 = vst.msk [vmem:[#allocation2 + $0x228] sm:$0xff] %vm405_vm0, %v3565_v1 }
  0x42   : > { %477 = vst.msk [vmem:[#allocation2 + $0x230] sm:$0xff] %vm405_vm0, %v3565_v1 }
  0x43   : > { %494 = vst.msk [vmem:[#allocation2 + $0x108] sm:$0xff] %vm405_vm0, %v387_v38  ;;  %v272_v38 = vld [vmem:[%s3631_s30 + $0x18] sm:$0xff] }
  0x44   : > { %502 = vst.msk [vmem:[#allocation2 + $0x188] sm:$0xff] %vm405_vm0, %v395_v42  ;;  %v308_v42 = vmul.f32 %v3619_v2, %v272_v38  ;;  %v3504_v38 = vld [vmem:[%s4899_s3 + $0x40] sm:$0xff] }
  0x45   : > { %487 = vst.msk [vmem:[#allocation2 + $0x90] sm:$0xff] %vm405_vm0, %v380_v46  ;;  %v361_v46 = vadd.f32 %v3636_v3, %v325_v35  ;;  %2793 = vmatpush.msra.mxu0 %v3504_v38 }
  0x46   : > { %495 = vst.msk [vmem:[#allocation2 + $0x110] sm:$0xff] %vm405_vm0, %v388_v50  ;;  %v344_v49 = vadd.f32 %v3636_v3, %v308_v42 }
  0x47   : > { %503 = vst.msk [vmem:[#allocation2 + $0x190] sm:$0xff] %vm405_vm0, %v396_v54  ;;  %v393_v55 = vmax.f32 %v361_v46, 0.0  ;;  %v512_v46 = vld [vmem:[#allocation2 + $0x7] sm:$0xff] }
  0x48   : > { %488 = vst.msk [vmem:[#allocation2 + $0xa8] sm:$0xff] %vm405_vm0, %v381_v58  ;;  %v376_v58 = vmax.f32 %v344_v49, 0.0  ;;  %v513_v49 = vld [vmem:[#allocation2 + $0xf] sm:$0xff] }
  0x49   : > { %496 = vst.msk [vmem:[#allocation2 + $0x128] sm:$0xff] %vm405_vm0, %v389_v62  ;;  %v273_v62 = vld [vmem:[%s3631_s30 + $0x20] sm:$0xff] }
  0x4a   : > { %v3823_v20 = vld [vmem:[#allocation2 + $0x108] sm:$0xff]  ;;  %504 = vst.msk [vmem:[#allocation2 + $0x1a8] sm:$0xff] %vm405_vm0, %v397_v5  ;;  %v309_v5 = vmul.f32 %v3619_v2, %v273_v62 }
  0x4b   : > { %3258 = vmatmul.msk.f32.vlgmr.msra.gmra.mxu2 %vm405_vm0, %v3823_v20  ;;  %v3830_v24 = vld [vmem:[#allocation2 + $0x188] sm:$0xff]  ;;  %489 = vst.msk [vmem:[#allocation2 + $0xb0] sm:$0xff] %vm405_vm0, %v382_v10  ;;  %v386_v10 = vmax.f32 %v354_v0, 0.0 }
  0x4c   : > { %3266 = vmatmul.msk.f32.vlgmr.msra.gmra.mxu3 %vm405_vm0, %v3830_v24  ;;  %v3836_v27 = vld [vmem:[#allocation2 + $0x90] sm:$0xff]  ;;  %497 = vst.msk [vmem:[#allocation2 + $0x130] sm:$0xff] %vm405_vm0, %v390_v14  ;;  %v345_v12 = vadd.f32 %v3636_v3, %v309_v5  ;;  %2243 = vmatpush.msra.mxu2 %v3438_v31  ;;  %v4104_v62 = vld [vmem:[#allocation2 + $0x87] sm:$0xff] }
  0x4d   : > { %3251 = vmatmul.msk.f32.gmra.mxu1 %vm405_vm0, %v3836_v27  ;;  %480 = vst.msk [vmem:[#allocation2 + $0x28] sm:$0xff] %vm405_vm0, %v373_v17  ;;  %v3856_v44 = vld [vmem:[#allocation2 + $0x110] sm:$0xff]  ;;  %v402_v17 = vmax.f32 %v370_v13, 0.0 }
  0x4e   : > { %505 = vst.msk [vmem:[#allocation2 + $0x1b0] sm:$0xff] %vm405_vm0, %v398_v21  ;;  %v3860_v47 = vld [vmem:[#allocation2 + $0x190] sm:$0xff]  ;;  %v377_v16 = vmax.f32 %v345_v12, 0.0 }
  0x4f   : > { %490 = vst.msk [vmem:[#allocation2 + $0xc8] sm:$0xff] %vm405_vm0, %v383_v25  ;;  %v3864_v50 = vld [vmem:[#allocation2 + $0xa8] sm:$0xff] }
  0x50   : > { %498 = vst.msk [vmem:[#allocation2 + $0x148] sm:$0xff] %vm405_vm0, %v391_v28  ;;  %v3893_v7 = vld [vmem:[#allocation2 + $0x128] sm:$0xff]  ;;  %v378_v28 = vmax.f32 %v346_v23, 0.0 }
  0x51   : > { %481 = vst.msk [vmem:[#allocation2 + $0x30] sm:$0xff] %vm405_vm0, %v374_v32  ;;  %v3896_v9 = vld [vmem:[#allocation2 + $0x1a8] sm:$0xff]  ;;  %v3471_v32 = vld [vmem:[%s4899_s3 + $0x38] sm:$0xff] }
  0x52   : > { %506 = vst.msk [vmem:[#allocation2 + $0x1c8] sm:$0xff] %vm405_vm0, %v399_v36  ;;  %v3901_v14 = vld [vmem:[#allocation2 + $0xb0] sm:$0xff]  ;;  %2518 = vmatpush.msra.mxu3 %v3471_v32  ;;  %v4134_v6 = vld [vmem:[#allocation2 + $0xa7] sm:$0xff] }
  0x53   : > { %3259 = vmatmul.msk.f32.gmra.mxu2 %vm405_vm0, %v3856_v44  ;;  %491 = vst.msk [vmem:[#allocation2 + $0xd0] sm:$0xff] %vm405_vm0, %v384_v40  ;;  %v3920_v21 = vld [vmem:[#allocation2 + $0x130] sm:$0xff] }
  0x54   : > { %3267 = vmatmul.msk.f32.gmra.mxu3 %vm405_vm0, %v3860_v47  ;;  %v3873_v54 = vld [vmem:[#allocation2 + $0x28] sm:$0xff]  ;;  %499 = vst.msk [vmem:[#allocation2 + $0x150] sm:$0xff] %vm405_vm0, %v392_v45 }
  0x55   : > { %3252 = vmatmul.msk.f32.gmra.mxu1 %vm405_vm0, %v3864_v50  ;;  %3244 = vmatmul.msk.f32.gmra.mxu0 %vm405_vm0, %v3873_v54  ;;  %482 = vst.msk [vmem:[#allocation2 + $0x48] sm:$0xff] %vm405_vm0, %v375_v48  ;;  %v3922_v22 = vld [vmem:[#allocation2 + $0x1b0] sm:$0xff]  ;;  %v1272_v48 = vld [vmem:[#allocation2 + $0x27] sm:$0xff] }
  0x56   : > { %507 = vst.msk [vmem:[#allocation2 + $0x1d0] sm:$0xff] %vm405_vm0, %v400_v51  ;;  %v3925_v25 = vld [vmem:[#allocation2 + $0xc8] sm:$0xff] }
  0x57   : > { %492 = vst.msk [vmem:[#allocation2 + $0xe8] sm:$0xff] %vm405_vm0, %v385_v53  ;;  %v3938_v2 = vld [vmem:[#allocation2 + $0x148] sm:$0xff] }
  0x58   : > { %500 = vst.msk [vmem:[#allocation2 + $0x168] sm:$0xff] %vm405_vm0, %v393_v55  ;;  %v3903_v15 = vld [vmem:[#allocation2 + $0x30] sm:$0xff]  ;;  %v4172_v19 = vld [vmem:[#allocation2 + $0xc7] sm:$0xff] }
  0x59   : > { %483 = vst.msk [vmem:[#allocation2 + $0x50] sm:$0xff] %vm405_vm0, %v376_v58  ;;  %v3940_v3 = vld [vmem:[#allocation2 + $0x1c8] sm:$0xff] }
  0x5a   : > { %508 = vst.msk [vmem:[#allocation2 + $0x1e8] sm:$0xff] %vm405_vm0, %v401_v61  ;;  %v3942_v29 = vld [vmem:[#allocation2 + $0xd0] sm:$0xff] }
  0x5b   : > { %3260 = vmatmul.msk.f32.gmra.mxu2 %vm405_vm0, %v3893_v7  ;;  %493 = vst.msk [vmem:[#allocation2 + $0xf0] sm:$0xff] %vm405_vm0, %v386_v10  ;;  %v3973_v34 = vld [vmem:[#allocation2 + $0x150] sm:$0xff] }
  0x5c   : > { %3268 = vmatmul.msk.f32.gmra.mxu3 %vm405_vm0, %v3896_v9  ;;  %501 = vst.msk [vmem:[#allocation2 + $0x170] sm:$0xff] %vm405_vm0, %v394_v11  ;;  %v3927_v26 = vld [vmem:[#allocation2 + $0x48] sm:$0xff] }
  0x5d   : > { %3253 = vmatmul.msk.f32.gmra.mxu1 %vm405_vm0, %v3901_v14  ;;  %3245 = vmatmul.msk.f32.gmra.mxu0 %vm405_vm0, %v3903_v15  ;;  %484 = vst.msk [vmem:[#allocation2 + $0x68] sm:$0xff] %vm405_vm0, %v377_v16  ;;  %v3977_v35 = vld [vmem:[#allocation2 + $0x1d0] sm:$0xff] }
  0x5e   : > { %509 = vst.msk [vmem:[#allocation2 + $0x1f0] sm:$0xff] %vm405_vm0, %v402_v17  ;;  %v3981_v36 = vld [vmem:[#allocation2 + $0xe8] sm:$0xff] }
  0x5f   : > { %485 = vst.msk [vmem:[#allocation2 + $0x70] sm:$0xff] %vm405_vm0, %v378_v28  ;;  %v4008_v39 = vld [vmem:[#allocation2 + $0x168] sm:$0xff] }
  0x60   : > { %v3944_v30 = vld [vmem:[#allocation2 + $0x50] sm:$0xff]  ;;  %410 = vst.msk [vmem:[#allocation2 + $0x18] sm:$0x1] %vm409_vm1, %v3565_v1 }
  0x61   : > { %414 = vst.msk [vmem:[#allocation2 + $0x38] sm:$0x1] %vm409_vm1, %v3565_v1  ;;  %v4012_v40 = vld [vmem:[#allocation2 + $0x1e8] sm:$0xff] }
  0x62   : > { %418 = vst.msk [vmem:[#allocation2 + $0x58] sm:$0x1] %vm409_vm1, %v3565_v1  ;;  %v4016_v41 = vld [vmem:[#allocation2 + $0xf0] sm:$0xff] }
  0x63   : > { %3261 = vmatmul.msk.f32.gmra.mxu2 %vm405_vm0, %v3920_v21  ;;  %422 = vst.msk [vmem:[#allocation2 + $0x78] sm:$0x1] %vm409_vm1, %v3565_v1  ;;  %v4034_v43 = vld [vmem:[#allocation2 + $0x170] sm:$0xff] }
  0x64   : > { %3269 = vmatmul.msk.f32.gmra.mxu3 %vm405_vm0, %v3922_v22  ;;  %426 = vst.msk [vmem:[#allocation2 + $0x98] sm:$0x1] %vm409_vm1, %v3565_v1  ;;  %v3983_v37 = vld [vmem:[#allocation2 + $0x68] sm:$0xff] }
  0x65   : > { %3254 = vmatmul.msk.f32.gmra.mxu1 %vm405_vm0, %v3925_v25  ;;  %3246 = vmatmul.msk.f32.gmra.mxu0 %vm405_vm0, %v3927_v26  ;;  %430 = vst.msk [vmem:[#allocation2 + $0xb8] sm:$0x1] %vm409_vm1, %v3565_v1  ;;  %v4036_v45 = vld [vmem:[#allocation2 + $0x1f0] sm:$0xff]  ;;  %v4080_v58 = vld [vmem:[#allocation2 + $0x67] sm:$0xff] }
  0x66   : > { %434 = vst.msk [vmem:[#allocation2 + $0xd8] sm:$0x1] %vm409_vm1, %v3565_v1  ;;  %v4018_v42 = vld [vmem:[#allocation2 + $0x70] sm:$0xff] }
  0x67   : > { %438 = vst.msk [vmem:[#allocation2 + $0xf8] sm:$0x1] %vm409_vm1, %v3565_v1  ;;  %v998_v51 = vld [vmem:[#allocation2 + $0x11] sm:$0xff]  ;;  %v4055_v53 = vld [vmem:[#allocation2 + $0x29] sm:$0xff] }
  0x68   : > { %442 = vst.msk [vmem:[#allocation2 + $0x118] sm:$0x1] %vm409_vm1, %v3565_v1  ;;  %v1273_v52 = vld [vmem:[#allocation2 + $0x2f] sm:$0xff] }
  0x69   : > { %446 = vst.msk [vmem:[#allocation2 + $0x138] sm:$0x1] %vm409_vm1, %v3565_v1  ;;  %v4066_v55 = vld [vmem:[#allocation2 + $0x31] sm:$0xff]  ;;  %v4078_v57 = vld [vmem:[#allocation2 + $0x49] sm:$0xff] }
  0x6a   : > { %450 = vst.msk [vmem:[#allocation2 + $0x158] sm:$0x1] %vm409_vm1, %v3565_v1  ;;  %v4068_v56 = vld [vmem:[#allocation2 + $0x4f] sm:$0xff] }
  0x6b   : > { %3262 = vmatmul.msk.f32.gmra.mxu2 %vm405_vm0, %v3938_v2  ;;  %454 = vst.msk [vmem:[#allocation2 + $0x178] sm:$0x1] %vm409_vm1, %v3565_v1  ;;  %v4090_v59 = vld [vmem:[#allocation2 + $0x51] sm:$0xff]  ;;  %v4102_v61 = vld [vmem:[#allocation2 + $0x69] sm:$0xff] }
  0x6c   : > { %3270 = vmatmul.msk.f32.gmra.mxu3 %vm405_vm0, %v3940_v3  ;;  %458 = vst.msk [vmem:[#allocation2 + $0x198] sm:$0x1] %vm409_vm1, %v3565_v1  ;;  %v4092_v60 = vld [vmem:[#allocation2 + $0x6f] sm:$0xff] }
  0x6d   : > { %3255 = vmatmul.msk.f32.gmra.mxu1 %vm405_vm0, %v3942_v29  ;;  %3247 = vmatmul.msk.f32.gmra.mxu0 %vm405_vm0, %v3944_v30  ;;  %462 = vst.msk [vmem:[#allocation2 + $0x1b8] sm:$0x1] %vm409_vm1, %v3565_v1  ;;  %v4116_v0 = vld [vmem:[#allocation2 + $0x71] sm:$0xff]  ;;  %v4170_v18 = vld [vmem:[#allocation2 + $0xa9] sm:$0xff] }
  0x6e   : > { %466 = vst.msk [vmem:[#allocation2 + $0x1d8] sm:$0x1] %vm409_vm1, %v3565_v1  ;;  %v4120_v4 = vld [vmem:[#allocation2 + $0x8f] sm:$0xff] }
  0x6f   : > { %470 = vst.msk [vmem:[#allocation2 + $0x1f8] sm:$0x1] %vm409_vm1, %v3565_v1  ;;  %v4150_v12 = vld [vmem:[#allocation2 + $0x91] sm:$0xff] }
  0x70   : > { %474 = vst.msk [vmem:[#allocation2 + $0x218] sm:$0x1] %vm409_vm1, %v3565_v1  ;;  %v4152_v13 = vld [vmem:[#allocation2 + $0xaf] sm:$0xff] }
  0x71   : > { %478 = vst.msk [vmem:[#allocation2 + $0x238] sm:$0x1] %vm409_vm1, %v3565_v1  ;;  %v997_v1 = vld [vmem:[#allocation2 + $0x9] sm:$0xff] }
  0x72   : > { %4931 = vst [vmem:[#allocation3_spill] sm:$0xff] %v4120_v4  ;;  %v4192_v31 = vld [vmem:[#allocation2 + $0xcf] sm:$0xff] }
  0x73   : > { %3263 = vmatmul.msk.f32.gmra.mxu2 %vm405_vm0, %v3973_v34  ;;  %4932 = vst [vmem:[#allocation4_spill] sm:$0xff] %v4134_v6 }
  0x74   : > { %3271 = vmatmul.msk.f32.gmra.mxu3 %vm405_vm0, %v3977_v35  ;;  %4934 = vst [vmem:[#allocation6_spill] sm:$0xff] %v4150_v12 }
  0x75   : > { %3256 = vmatmul.msk.f32.gmra.mxu1 %vm405_vm0, %v3981_v36  ;;  %3248 = vmatmul.msk.f32.gmra.mxu0 %vm405_vm0, %v3983_v37  ;;  %4935 = vst [vmem:[#allocation7_spill] sm:$0xff] %v4152_v13 }
  0x76   : > { %4937 = vst [vmem:[#allocation9_spill] sm:$0xff] %v4170_v18 }
  0x77   : > { %4938 = vst [vmem:[#allocation10_spill] sm:$0xff] %v4172_v19 }
  0x78   : > { %4941 = vst [vmem:[#allocation13_spill] sm:$0xff] %v4192_v31 }
  0x7b   : > { %3264 = vmatmul.msk.f32.gmra.mxu2 %vm405_vm0, %v4008_v39 }
  0x7c   : > { %3272 = vmatmul.msk.f32.gmra.mxu3 %vm405_vm0, %v4012_v40 }
  0x7d   : > { %3257 = vmatmul.msk.f32.gmra.mxu1 %vm405_vm0, %v4016_v41  ;;  %3249 = vmatmul.msk.f32.gmra.mxu0 %vm405_vm0, %v4018_v42 }
  0x83   : > { %3265 = vmatmul.msk.f32.gmra.mxu2 %vm405_vm0, %v4034_v43 }
  0x84   : > { %3273 = vmatmul.msk.f32.gmra.mxu3 %vm405_vm0, %v4036_v45 }
  0x85   : > { %3274 = vmatmul.msk.f32.vlgmr.msrb.gmra.mxu1 %vm405_vm0, %v512_v46  ;;  %3373 = vmatmul.msk.f32.vlgmr.msrb.gmra.mxu0 %vm405_vm0, %v3873_v54  ;;  %v4057_v54 = vld [vmem:[#allocation2 + $0x47] sm:$0xff] }
  0x86   : > { %v4210_v46 = vld [vmem:[#allocation2 + $0xc9] sm:$0xff] }
  0x87   : > { %4943 = vst [vmem:[#allocation15_spill] sm:$0xff] %v4210_v46 }
  0x8b   : > { %3307 = vmatmul.msk.f32.vlgmr.msrb.gmra.mxu2 %vm405_vm0, %v997_v1  ;;  %v4212_v1 = vld [vmem:[#allocation2 + $0xe7] sm:$0xff] }
  0x8c   : > { %3340 = vmatmul.msk.f32.vlgmr.msrb.gmra.mxu3 %vm405_vm0, %v1272_v48  ;;  %4944 = vst [vmem:[#allocation16_spill] sm:$0xff] %v4212_v1 }
  0x8d   : > { %3275 = vmatmul.msk.f32.gmra.mxu1 %vm405_vm0, %v513_v49  ;;  %3374 = vmatmul.msk.f32.gmra.mxu0 %vm405_vm0, %v3903_v15 }
  0x93   : > { %3308 = vmatmul.msk.f32.gmra.mxu2 %vm405_vm0, %v998_v51  ;;  %v4114_v63 = vpop.f32.mrf.mxu0 }
  0x94   : > { %3341 = vmatmul.msk.f32.gmra.mxu3 %vm405_vm0, %v1273_v52 }
  0x95   : > { %3276 = vmatmul.msk.f32.gmra.mxu1 %vm405_vm0, %v1272_v48  ;;  %3375 = vmatmul.msk.f32.gmra.mxu0 %vm405_vm0, %v3927_v26 }
  0x9b   : > { %3309 = vmatmul.msk.f32.gmra.mxu2 %vm405_vm0, %v4055_v53  ;;  %v4132_v5 = vpop.f32.mrf.mxu0 }
  0x9c   : > { %3342 = vmatmul.msk.f32.gmra.mxu3 %vm405_vm0, %v4057_v54 }
  0x9d   : > { %3277 = vmatmul.msk.f32.gmra.mxu1 %vm405_vm0, %v1273_v52  ;;  %3376 = vmatmul.msk.f32.gmra.mxu0 %vm405_vm0, %v3944_v30  ;;  %v4190_v30 = vld [vmem:[#allocation2 + $0xb1] sm:$0xff] }
  0x9e   : > { %4940 = vst [vmem:[#allocation12_spill] sm:$0xff] %v4190_v30  ;;  %v4230_v52 = vld [vmem:[#allocation2 + $0xd1] sm:$0xff] }
  0x9f   : > { %4946 = vst [vmem:[#allocation18_spill] sm:$0xff] %v4230_v52 }
  0xa3   : > { %3310 = vmatmul.msk.f32.gmra.mxu2 %vm405_vm0, %v4066_v55 }
  0xa4   : > { %3343 = vmatmul.msk.f32.gmra.mxu3 %vm405_vm0, %v4068_v56 }
  0xa5   : > { %3278 = vmatmul.msk.f32.gmra.mxu1 %vm405_vm0, %v4057_v54  ;;  %3377 = vmatmul.msk.f32.gmra.mxu0 %vm405_vm0, %v3983_v37 }
  0xab   : > { %3311 = vmatmul.msk.f32.gmra.mxu2 %vm405_vm0, %v4078_v57 }
  0xac   : > { %3344 = vmatmul.msk.f32.gmra.mxu3 %vm405_vm0, %v4080_v58 }
  0xad   : > { %3279 = vmatmul.msk.f32.gmra.mxu1 %vm405_vm0, %v4068_v56  ;;  %3378 = vmatmul.msk.f32.gmra.mxu0 %vm405_vm0, %v4018_v42 }
  0xb3   : > { %3312 = vmatmul.msk.f32.gmra.mxu2 %vm405_vm0, %v4090_v59 }
  0xb4   : > { %3345 = vmatmul.msk.f32.gmra.mxu3 %vm405_vm0, %v4092_v60 }
  0xb5   : > { %3280 = vmatmul.msk.f32.gmra.mxu1 %vm405_vm0, %v4080_v58  ;;  %3379 = vmatmul.msk.f32.gmra.mxu0 %vm405_vm0, %v3670_v8  ;;  %v4118_v8 = vpop.f32.mrf.mxu1 }
  0xbb   : > { %3313 = vmatmul.msk.f32.gmra.mxu2 %vm405_vm0, %v4102_v61 }
  0xbc   : > { %3346 = vmatmul.msk.f32.gmra.mxu3 %vm405_vm0, %v4104_v62 }
  0xbd   : > { %3281 = vmatmul.msk.f32.gmra.mxu1 %vm405_vm0, %v4092_v60  ;;  %3380 = vmatmul.msk.f32.gmra.mxu0 %vm405_vm0, %v3836_v27  ;;  %v4130_v27 = vld [vmem:[#allocation2 + $0x89] sm:$0xff] }
  0xc3   : > { %3314 = vmatmul.msk.f32.gmra.mxu2 %vm405_vm0, %v4116_v0 }
  0xc4   : > { %3347 = vmatmul.msk.f32.gmra.mxu3 %vm405_vm0, %v4120_v4 }
  0xc5   : > { %3282 = vmatmul.msk.f32.gmra.mxu1 %vm405_vm0, %v4104_v62  ;;  %3381 = vmatmul.msk.f32.gmra.mxu0 %vm405_vm0, %v3864_v50 }
  0xca   : > { %v4136_v10 = vpop.f32.mrf.mxu1 }
  0xcb   : > { %3315 = vmatmul.msk.f32.gmra.mxu2 %vm405_vm0, %v4130_v27 }
  0xcc   : > { %3348 = vmatmul.msk.f32.gmra.mxu3 %vm405_vm0, %v4134_v6 }
  0xcd   : > { %3283 = vmatmul.msk.f32.gmra.mxu1 %vm405_vm0, %v4120_v4  ;;  %3382 = vmatmul.msk.f32.gmra.mxu0 %vm405_vm0, %v3901_v14 }
  0xce   : > { %v4146_v50 = vpop.f32.mrf.mxu2 }
  0xcf   : > { %v4148_v11 = vpop.f32.mrf.mxu3 }
  0xd0   : > { %4933 = vst [vmem:[#allocation5_spill] sm:$0xff] %v4148_v11  ;;  %v4252_v11 = vld [vmem:[#allocation2 + $0x107] sm:$0xff] }
  0xd1   : > { %4951 = vst [vmem:[#allocation23_spill] sm:$0xff] %v4252_v11 }
  0xd2   : > { %v4154_v15 = vpop.f32.mrf.mxu1  ;;  %v4156_v16 = vpop.f32.mrf.mxu0 }
  0xd3   : > { %3316 = vmatmul.msk.f32.gmra.mxu2 %vm405_vm0, %v4150_v12 }
  0xd4   : > { %3349 = vmatmul.msk.f32.gmra.mxu3 %vm405_vm0, %v4152_v13 }
  0xd5   : > { %3284 = vmatmul.msk.f32.gmra.mxu1 %vm405_vm0, %v4134_v6  ;;  %3383 = vmatmul.msk.f32.gmra.mxu0 %vm405_vm0, %v3925_v25 }
  0xd6   : > { %v4166_v14 = vpop.f32.mrf.mxu2 }
  0xd7   : > { %v4168_v17 = vpop.f32.mrf.mxu3 }
  0xd8   : > { %4936 = vst [vmem:[#allocation8_spill] sm:$0xff] %v4168_v17 }
  0xda   : > { %v4174_v23 = vpop.f32.mrf.mxu1  ;;  %v4176_v26 = vpop.f32.mrf.mxu0 }
  0xdb   : > { %3317 = vmatmul.msk.f32.gmra.mxu2 %vm405_vm0, %v4170_v18 }
  0xdc   : > { %3350 = vmatmul.msk.f32.gmra.mxu3 %vm405_vm0, %v4172_v19 }
  0xdd   : > { %3285 = vmatmul.msk.f32.gmra.mxu1 %vm405_vm0, %v4152_v13  ;;  %3384 = vmatmul.msk.f32.gmra.mxu0 %vm405_vm0, %v3942_v29 }
  0xde   : > { %v4186_v25 = vpop.f32.mrf.mxu2 }
  0xdf   : > { %v4188_v28 = vpop.f32.mrf.mxu3 }
  0xe0   : > { %4939 = vst [vmem:[#allocation11_spill] sm:$0xff] %v4188_v28 }
  0xe2   : > { %v4194_v32 = vpop.f32.mrf.mxu1  ;;  %v4196_v33 = vpop.f32.mrf.mxu0 }
  0xe3   : > { %3318 = vmatmul.msk.f32.gmra.mxu2 %vm405_vm0, %v4190_v30 }
  0xe4   : > { %3351 = vmatmul.msk.f32.gmra.mxu3 %vm405_vm0, %v4192_v31 }
  0xe5   : > { %3286 = vmatmul.msk.f32.gmra.mxu1 %vm405_vm0, %v4172_v19  ;;  %3385 = vmatmul.msk.f32.gmra.mxu0 %vm405_vm0, %v3981_v36 }
  0xe6   : > { %v4206_v29 = vpop.f32.mrf.mxu2 }
  0xe7   : > { %v4208_v38 = vpop.f32.mrf.mxu3 }
  0xe8   : > { %4942 = vst [vmem:[#allocation14_spill] sm:$0xff] %v4208_v38  ;;  %v4232_v38 = vld [vmem:[#allocation2 + $0xef] sm:$0xff] }
  0xe9   : > { %4947 = vst [vmem:[#allocation19_spill] sm:$0xff] %v4232_v38 }
  0xea   : > { %v4214_v48 = vpop.f32.mrf.mxu1  ;;  %v4216_v49 = vpop.f32.mrf.mxu0 }
  0xeb   : > { %3319 = vmatmul.msk.f32.gmra.mxu2 %vm405_vm0, %v4210_v46  ;;  %v4272_v46 = vld [vmem:[#allocation2 + $0x10f] sm:$0xff] }
  0xec   : > { %3352 = vmatmul.msk.f32.gmra.mxu3 %vm405_vm0, %v4212_v1 }
  0xed   : > { %3287 = vmatmul.msk.f32.gmra.mxu1 %vm405_vm0, %v4192_v31  ;;  %3386 = vmatmul.msk.f32.gmra.mxu0 %vm405_vm0, %v4016_v41  ;;  %v4250_v31 = vld [vmem:[#allocation2 + $0xe9] sm:$0xff] }
  0xee   : > { %v4226_v36 = vpop.f32.mrf.mxu2  ;;  %4950 = vst [vmem:[#allocation22_spill] sm:$0xff] %v4250_v31 }
  0xef   : > { %v4228_v51 = vpop.f32.mrf.mxu3 }
  0xf0   : > { %4945 = vst [vmem:[#allocation17_spill] sm:$0xff] %v4228_v51 }
  0xf2   : > { %v4234_v28 = vpop.f32.mrf.mxu1  ;;  %v4236_v17 = vpop.f32.mrf.mxu0 }
  0xf3   : > { %3320 = vmatmul.msk.f32.gmra.mxu2 %vm405_vm0, %v4230_v52 }
  0xf4   : > { %3353 = vmatmul.msk.f32.gmra.mxu3 %vm405_vm0, %v4232_v38 }
  0xf5   : > { %3288 = vmatmul.msk.f32.gmra.mxu1 %vm405_vm0, %v4212_v1  ;;  %3387 = vmatmul.msk.f32.gmra.mxu0 %vm405_vm0, %v3823_v20  ;;  %v4270_v1 = vld [vmem:[#allocation2 + $0xf1] sm:$0xff] }
  0xf6   : > { %v4246_v41 = vpop.f32.mrf.mxu2  ;;  %4954 = vst [vmem:[#allocation26_spill] sm:$0xff] %v4270_v1 }
  0xf7   : > { %4948 = vst [vmem:[#allocation20_spill] sm:$0xff] %v4246_v41  ;;  %v4248_v51 = vpop.f32.mrf.mxu3  ;;  %v4301_v41 = vld [vmem:[#allocation2 + $0x12f] sm:$0xff] }
  0xf8   : > { %4949 = vst [vmem:[#allocation21_spill] sm:$0xff] %v4248_v51 }
  0xfa   : > { %v4254_v19 = vpop.f32.mrf.mxu1  ;;  %v4256_v52 = vpop.f32.mrf.mxu0 }
  0xfb   : > { %3321 = vmatmul.msk.f32.gmra.mxu2 %vm405_vm0, %v4250_v31  ;;  %v4288_v31 = vld [vmem:[#allocation2 + $0x127] sm:$0xff] }
  0xfc   : > { %3354 = vmatmul.msk.f32.gmra.mxu3 %vm405_vm0, %v4252_v11 }
  0xfd   : > { %3289 = vmatmul.msk.f32.gmra.mxu1 %vm405_vm0, %v4232_v38  ;;  %3388 = vmatmul.msk.f32.gmra.mxu0 %vm405_vm0, %v3856_v44  ;;  %v4286_v38 = vld [vmem:[#allocation2 + $0x109] sm:$0xff] }
  0xfe   : > { %v4266_v20 = vpop.f32.mrf.mxu2  ;;  %4957 = vst [vmem:[#allocation29_spill] sm:$0xff] %v4286_v38 }
  0xff   : > { %4952 = vst [vmem:[#allocation24_spill] sm:$0xff] %v4266_v20  ;;  %v4268_v51 = vpop.f32.mrf.mxu3 }
 0x100   : > { %4953 = vst [vmem:[#allocation25_spill] sm:$0xff] %v4268_v51 }
 0x102   : > { %v901_v13 = vpop.f32.mrf.mxu1  ;;  %v1694_v30 = vpop.f32.mrf.mxu0 }
 0x103   : > { %3322 = vmatmul.msk.f32.gmra.mxu2 %vm405_vm0, %v4270_v1 }
 0x104   : > { %3355 = vmatmul.msk.f32.gmra.mxu3 %vm405_vm0, %v4272_v46 }
 0x105   : > { %3290 = vmatmul.msk.f32.gmra.mxu1 %vm405_vm0, %v4252_v11  ;;  %3389 = vmatmul.msk.f32.gmra.mxu0 %vm405_vm0, %v3893_v7  ;;  %v902_v11 = vadd.f32 %v901_v13, %v4114_v63 }
 0x106   : > { %v4282_v44 = vpop.f32.mrf.mxu2 }
 0x107   : > { %4955 = vst [vmem:[#allocation27_spill] sm:$0xff] %v4282_v44  ;;  %v4284_v51 = vpop.f32.mrf.mxu3  ;;  %v4299_v44 = vld [vmem:[#allocation2 + $0x111] sm:$0xff] }
 0x108   : > { %4956 = vst [vmem:[#allocation28_spill] sm:$0xff] %v4284_v51 }
 0x10a   : > { %v904_v20 = vpop.f32.mrf.mxu1  ;;  %v1697_v6 = vpop.f32.mrf.mxu0 }
 0x10b   : > { %3323 = vmatmul.msk.f32.gmra.mxu2 %vm405_vm0, %v4286_v38 }
 0x10c   : > { %3356 = vmatmul.msk.f32.gmra.mxu3 %vm405_vm0, %v4288_v31 }
 0x10d   : > { %3291 = vmatmul.msk.f32.gmra.mxu1 %vm405_vm0, %v4272_v46  ;;  %3390 = vmatmul.msk.f32.gmra.mxu0 %vm405_vm0, %v3920_v21  ;;  %v905_v21 = vadd.f32 %v904_v20, %v4132_v5 }
 0x10e   : > { %v1144_v7 = vpop.f32.mrf.mxu2 }
 0x10f   : > { %v1240_v51 = vadd.f32 %v1144_v7, %v902_v11  ;;  %v1419_v1 = vpop.f32.mrf.mxu3 }
 0x111   : > { %v1515_v18 = vadd.f32 %v1419_v1, %v1240_v51  ;;  %v4314_v1 = vld [vmem:[#allocation2 + $0x129] sm:$0xff] }
 0x112   : > { %v907_v38 = vpop.f32.mrf.mxu1  ;;  %v1700_v4 = vpop.f32.mrf.mxu0 }
 0x113   : > { %v4303_v12 = vadd.f32 %v1694_v30, %v1515_v18  ;;  %3324 = vmatmul.msk.f32.gmra.mxu2 %vm405_vm0, %v4299_v44  ;;  %v4316_v30 = vld [vmem:[#allocation2 + $0x147] sm:$0xff] }
 0x114   : > { %3357 = vmatmul.msk.f32.gmra.mxu3 %vm405_vm0, %v4301_v41 }
 0x115   : > { %4958 = vst [vmem:[#allocation30_spill] sm:$0xff] %v4303_v12  ;;  %3292 = vmatmul.msk.f32.gmra.mxu1 %vm405_vm0, %v4288_v31  ;;  %3391 = vmatmul.msk.f32.gmra.mxu0 %vm405_vm0, %v3938_v2  ;;  %v908_v2 = vadd.f32 %v907_v38, %v4156_v16 }
 0x116   : > { %v1147_v63 = vpop.f32.mrf.mxu2 }
 0x117   : > { %v1241_v11 = vadd.f32 %v1147_v63, %v905_v21  ;;  %v1422_v13 = vpop.f32.mrf.mxu3  ;;  %v4329_v63 = vld [vmem:[#allocation2 + $0x131] sm:$0xff] }
 0x119   : > { %v1516_v18 = vadd.f32 %v1422_v13, %v1241_v11  ;;  %v4331_v11 = vld [vmem:[#allocation2 + $0x14f] sm:$0xff] }
 0x11a   : > { %v910_v51 = vpop.f32.mrf.mxu1  ;;  %v1703_v7 = vpop.f32.mrf.mxu0 }
 0x11b   : > { %v4318_v12 = vadd.f32 %v1697_v6, %v1516_v18  ;;  %3325 = vmatmul.msk.f32.gmra.mxu2 %vm405_vm0, %v4314_v1 }
 0x11c   : > { %3358 = vmatmul.msk.f32.gmra.mxu3 %vm405_vm0, %v4316_v30 }
 0x11d   : > { %4959 = vst [vmem:[#allocation31_spill] sm:$0xff] %v4318_v12  ;;  %3293 = vmatmul.msk.f32.gmra.mxu1 %vm405_vm0, %v4301_v41  ;;  %3392 = vmatmul.msk.f32.gmra.mxu0 %vm405_vm0, %v3973_v34  ;;  %v911_v34 = vadd.f32 %v910_v51, %v4176_v26 }
 0x11e   : > { %v1150_v5 = vpop.f32.mrf.mxu2 }
 0x11f   : > { %v1242_v20 = vadd.f32 %v1150_v5, %v908_v2  ;;  %v1425_v21 = vpop.f32.mrf.mxu3  ;;  %v4344_v5 = vld [vmem:[#allocation2 + $0x149] sm:$0xff] }
 0x121   : > { %v1517_v6 = vadd.f32 %v1425_v21, %v1242_v20  ;;  %v4346_v20 = vld [vmem:[#allocation2 + $0x167] sm:$0xff] }
 0x122   : > { %v913_v13 = vpop.f32.mrf.mxu1  ;;  %v1706_v18 = vpop.f32.mrf.mxu0 }
 0x123   : > { %v4333_v12 = vadd.f32 %v1700_v4, %v1517_v6  ;;  %3326 = vmatmul.msk.f32.gmra.mxu2 %vm405_vm0, %v4329_v63 }
 0x124   : > { %3359 = vmatmul.msk.f32.gmra.mxu3 %vm405_vm0, %v4331_v11 }
 0x125   : > { %4960 = vst [vmem:[#allocation32_spill] sm:$0xff] %v4333_v12  ;;  %3294 = vmatmul.msk.f32.gmra.mxu1 %vm405_vm0, %v4316_v30  ;;  %3393 = vmatmul.msk.f32.gmra.mxu0 %vm405_vm0, %v4008_v39  ;;  %v914_v39 = vadd.f32 %v913_v13, %v4196_v33 }
 0x126   : > { %v1153_v16 = vpop.f32.mrf.mxu2 }
 0x127   : > { %v1243_v38 = vadd.f32 %v1153_v16, %v911_v34  ;;  %v1428_v2 = vpop.f32.mrf.mxu3  ;;  %v4359_v16 = vld [vmem:[#allocation2 + $0x151] sm:$0xff] }
 0x129   : > { %v1518_v4 = vadd.f32 %v1428_v2, %v1243_v38  ;;  %v4361_v38 = vld [vmem:[#allocation2 + $0x16f] sm:$0xff] }
 0x12a   : > { %v916_v21 = vpop.f32.mrf.mxu1  ;;  %v1709_v6 = vpop.f32.mrf.mxu0  ;;  %4962 = vst [vmem:[#allocation34_spill] sm:$0xff] %v4361_v38 }
 0x12b   : > { %v4348_v12 = vadd.f32 %v1703_v7, %v1518_v4  ;;  %3327 = vmatmul.msk.f32.gmra.mxu2 %vm405_vm0, %v4344_v5 }
 0x12c   : > { %3360 = vmatmul.msk.f32.gmra.mxu3 %vm405_vm0, %v4346_v20 }
 0x12d   : > { %4961 = vst [vmem:[#allocation33_spill] sm:$0xff] %v4348_v12  ;;  %3295 = vmatmul.msk.f32.gmra.mxu1 %vm405_vm0, %v4331_v11  ;;  %3394 = vmatmul.msk.f32.gmra.mxu0 %vm405_vm0, %v4034_v43  ;;  %v917_v43 = vadd.f32 %v916_v21, %v4216_v49 }
 0x12e   : > { %v1156_v26 = vpop.f32.mrf.mxu2 }
 0x12f   : > { %v1244_v51 = vadd.f32 %v1156_v26, %v914_v39  ;;  %v1431_v34 = vpop.f32.mrf.mxu3  ;;  %v4374_v26 = vld [vmem:[#allocation2 + $0x169] sm:$0xff] }
 0x131   : > { %v1519_v7 = vadd.f32 %v1431_v34, %v1244_v51  ;;  %v4376_v51 = vld [vmem:[#allocation2 + $0x187] sm:$0xff] }
 0x132   : > { %v919_v2 = vpop.f32.mrf.mxu1  ;;  %v1712_v4 = vpop.f32.mrf.mxu0  ;;  %4964 = vst [vmem:[#allocation36_spill] sm:$0xff] %v4376_v51 }
 0x133   : > { %v4363_v12 = vadd.f32 %v1706_v18, %v1519_v7  ;;  %3328 = vmatmul.msk.f32.gmra.mxu2 %vm405_vm0, %v4359_v16 }
 0x134   : > { %3361 = vmatmul.msk.f32.gmra.mxu3 %vm405_vm0, %v4361_v38 }
 0x135   : > { %4963 = vst [vmem:[#allocation35_spill] sm:$0xff] %v4363_v12  ;;  %3296 = vmatmul.msk.f32.gmra.mxu1 %vm405_vm0, %v4346_v20  ;;  %3395 = vmatmul.msk.f32.gmra.mxu0 %vm405_vm0, %v3830_v24  ;;  %v920_v24 = vadd.f32 %v919_v2, %v4236_v17 }
 0x136   : > { %v1159_v33 = vpop.f32.mrf.mxu2 }
 0x137   : > { %v1245_v13 = vadd.f32 %v1159_v33, %v917_v43  ;;  %v1434_v39 = vpop.f32.mrf.mxu3  ;;  %v4389_v33 = vld [vmem:[#allocation2 + $0x171] sm:$0xff] }
 0x138   : > { %4966 = vst [vmem:[#allocation38_spill] sm:$0xff] %v4389_v33 }
 0x139   : > { %v1520_v18 = vadd.f32 %v1434_v39, %v1245_v13  ;;  %v1295_v13 = vld [vmem:[#allocation2 + $0x18f] sm:$0xff] }
 0x13a   : > { %v922_v34 = vpop.f32.mrf.mxu1  ;;  %v1715_v7 = vpop.f32.mrf.mxu0 }
 0x13b   : > { %v4378_v12 = vadd.f32 %v1709_v6, %v1520_v18  ;;  %3329 = vmatmul.msk.f32.gmra.mxu2 %vm405_vm0, %v4374_v26  ;;  %v923_v17 = vadd.f32 %v922_v34, %v4256_v52  ;;  %v299_v34 = vld [vmem:[%s3631_s30 + $0xf0] sm:$0xff] }
 0x13c   : > { %3362 = vmatmul.msk.f32.gmra.mxu3 %vm405_vm0, %v4376_v51 }
 0x13d   : > { %4965 = vst [vmem:[#allocation37_spill] sm:$0xff] %v4378_v12  ;;  %3297 = vmatmul.msk.f32.gmra.mxu1 %vm405_vm0, %v4361_v38  ;;  %3396 = vmatmul.msk.f32.gmra.mxu0 %vm405_vm0, %v3860_v47 }
 0x13e   : > { %v1162_v49 = vpop.f32.mrf.mxu2 }
 0x13f   : > { %v1246_v21 = vadd.f32 %v1162_v49, %v920_v24  ;;  %v1437_v43 = vpop.f32.mrf.mxu3  ;;  %v4401_v49 = vld [vmem:[#allocation2 + $0x189] sm:$0xff] }
 0x140   : > { %4968 = vst [vmem:[#allocation40_spill] sm:$0xff] %v4401_v49 }
 0x141   : > { %v1521_v6 = vadd.f32 %v1437_v43, %v1246_v21  ;;  %v1296_v21 = vld [vmem:[#allocation2 + $0x1a7] sm:$0xff] }
 0x142   : > { %v925_v39 = vpop.f32.mrf.mxu1  ;;  %v1718_v18 = vpop.f32.mrf.mxu0 }
 0x143   : > { %v4391_v12 = vadd.f32 %v1712_v4, %v1521_v6  ;;  %3330 = vmatmul.msk.f32.gmra.mxu2 %vm405_vm0, %v4389_v33  ;;  %v926_v52 = vadd.f32 %v925_v39, %v4118_v8  ;;  %v3556_v8 = vld [vmem:[%s4898_s2] ss:$0 sm:$0xff] }
 0x144   : > { %3363 = vmatmul.msk.f32.gmra.mxu3 %vm405_vm0, %v1295_v13 }
 0x145   : > { %4967 = vst [vmem:[#allocation39_spill] sm:$0xff] %v4391_v12  ;;  %3298 = vmatmul.msk.f32.gmra.mxu1 %vm405_vm0, %v4376_v51  ;;  %3397 = vmatmul.msk.f32.gmra.mxu0 %vm405_vm0, %v3896_v9 }
 0x146   : > { %v1165_v47 = vpop.f32.mrf.mxu2 }
 0x147   : > { %v1247_v2 = vadd.f32 %v1165_v47, %v923_v17  ;;  %v1440_v24 = vpop.f32.mrf.mxu3 }
 0x149   : > { %v1522_v4 = vadd.f32 %v1440_v24, %v1247_v2  ;;  %v1022_v24 = vld [vmem:[#allocation2 + $0x191] sm:$0xff] }
 0x14a   : > { %v928_v43 = vpop.f32.mrf.mxu1  ;;  %v1721_v6 = vpop.f32.mrf.mxu0 }
 0x14b   : > { %v4403_v12 = vadd.f32 %v1715_v7, %v1522_v4  ;;  %3331 = vmatmul.msk.f32.gmra.mxu2 %vm405_vm0, %v4401_v49  ;;  %v3555_v7 = vld [vmem:[%s4897_s1] ss:$0 sm:$0xff] }
 0x14c   : > { %3364 = vmatmul.msk.f32.gmra.mxu3 %vm405_vm0, %v1296_v21  ;;  %v335_v2 = vmul.f32 %v3555_v7, %v299_v34 }
 0x14d   : > { %4969 = vst [vmem:[#allocation41_spill] sm:$0xff] %v4403_v12  ;;  %3299 = vmatmul.msk.f32.gmra.mxu1 %vm405_vm0, %v1295_v13  ;;  %3398 = vmatmul.msk.f32.gmra.mxu0 %vm405_vm0, %v3922_v22  ;;  %v1297_v12 = vld [vmem:[#allocation2 + $0x1af] sm:$0xff] }
 0x14e   : > { %v1168_v9 = vpop.f32.mrf.mxu2  ;;  %v371_v13 = vadd.f32 %v3556_v8, %v335_v2 }
 0x14f   : > { %v1248_v17 = vadd.f32 %v1168_v9, %v926_v52  ;;  %v1443_v47 = vpop.f32.mrf.mxu3  ;;  %v929_v9 = vadd.f32 %v928_v43, %v4136_v10 }
 0x150   : > { %v403_v52 = vmax.f32 %v371_v13, 0.0 }
 0x151   : > { %v1523_v4 = vadd.f32 %v1443_v47, %v1248_v17  ;;  %v300_v17 = vld [vmem:[%s3631_s30 + $0xf8] sm:$0xff] }
 0x152   : > { %v931_v39 = vpop.f32.mrf.mxu1  ;;  %v1724_v22 = vpop.f32.mrf.mxu0  ;;  %510 = vst.msk [vmem:[#allocation2 + $0x208] sm:$0xff] %vm405_vm0, %v403_v52 }
 0x153   : > { %v4419_v51 = vadd.f32 %v1718_v18, %v1523_v4  ;;  %3332 = vmatmul.msk.f32.gmra.mxu2 %vm405_vm0, %v1022_v24  ;;  %v336_v18 = vmul.f32 %v3555_v7, %v300_v17  ;;  %v1023_v4 = vld [vmem:[#allocation2 + $0x1a9] sm:$0xff] }
 0x154   : > { %3365 = vmatmul.msk.f32.gmra.mxu3 %vm405_vm0, %v1297_v12  ;;  %v1298_v24 = vld [vmem:[#allocation2 + $0x1c7] sm:$0xff] }
 0x155   : > { %4970 = vst [vmem:[#allocation42_spill] sm:$0xff] %v4419_v51  ;;  %3300 = vmatmul.msk.f32.gmra.mxu1 %vm405_vm0, %v1296_v21  ;;  %3399 = vmatmul.msk.f32.gmra.mxu0 %vm405_vm0, %v3940_v3  ;;  %v372_v13 = vadd.f32 %v3556_v8, %v336_v18  ;;  %v932_v3 = vadd.f32 %v931_v39, %v4154_v15  ;;  %v1024_v8 = vld [vmem:[#allocation2 + $0x1b1] sm:$0xff]  ;;  %v1025_v17 = vld [vmem:[#allocation2 + $0x1c9] sm:$0xff] }
 0x156   : > { %v1171_v34 = vpop.f32.mrf.mxu2 }
 0x157   : > { %v1249_v47 = vadd.f32 %v1171_v34, %v929_v9  ;;  %v1446_v2 = vpop.f32.mrf.mxu3  ;;  %v404_v10 = vmax.f32 %v372_v13, 0.0  ;;  %v1026_v13 = vld [vmem:[#allocation2 + $0x1d1] sm:$0xff] }
 0x159   : > { %v1524_v51 = vadd.f32 %v1446_v2, %v1249_v47  ;;  %511 = vst.msk [vmem:[#allocation2 + $0x210] sm:$0xff] %vm405_vm0, %v404_v10  ;;  %v1300_v2 = vld [vmem:[#allocation2 + $0x1e7] sm:$0xff] }
 0x15a   : > { %v934_v49 = vpop.f32.mrf.mxu1  ;;  %v1727_v38 = vpop.f32.mrf.mxu0 }
 0x15b   : > { %v4429_v33 = vadd.f32 %v1721_v6, %v1524_v51  ;;  %3333 = vmatmul.msk.f32.gmra.mxu2 %vm405_vm0, %v1023_v4  ;;  %v1299_v6 = vld [vmem:[#allocation2 + $0x1cf] sm:$0xff] }
 0x15c   : > { %3366 = vmatmul.msk.f32.gmra.mxu3 %vm405_vm0, %v1298_v24 }
 0x15d   : > { %3301 = vmatmul.msk.f32.gmra.mxu1 %vm405_vm0, %v1297_v12  ;;  %3400 = vmatmul.msk.f32.gmra.mxu0 %vm405_vm0, %v3977_v35  ;;  %v935_v12 = vadd.f32 %v934_v49, %v4174_v23 }
 0x15e   : > { %v1174_v21 = vpop.f32.mrf.mxu2 }
 0x15f   : > { %v1250_v43 = vadd.f32 %v1174_v21, %v932_v3  ;;  %v1449_v7 = vpop.f32.mrf.mxu3  ;;  %v1301_v3 = vld [vmem:[#allocation2 + $0x1ef] sm:$0xff] }
 0x161   : > { %v1525_v51 = vadd.f32 %v1449_v7, %v1250_v43  ;;  %v1577_v43 = vld [vmem:[#allocation2 + $0x208] sm:$0xff] }
 0x162   : > { %v937_v52 = vpop.f32.mrf.mxu1  ;;  %v1730_v9 = vpop.f32.mrf.mxu0 }
 0x163   : > { %v4438_v34 = vadd.f32 %v1724_v22, %v1525_v51  ;;  %3334 = vmatmul.msk.f32.gmra.mxu2 %vm405_vm0, %v1024_v8  ;;  %v938_v23 = vadd.f32 %v937_v52, %v4194_v32 }
 0x164   : > { %3367 = vmatmul.msk.f32.gmra.mxu3 %vm405_vm0, %v1299_v6 }
 0x165   : > { %3302 = vmatmul.msk.f32.gmra.mxu1 %vm405_vm0, %v1298_v24  ;;  %3401 = vmatmul.msk.f32.gmra.mxu0 %vm405_vm0, %v4012_v40 }
 0x166   : > { %v1177_v35 = vpop.f32.mrf.mxu2 }
 0x167   : > { %v1251_v15 = vadd.f32 %v1177_v35, %v935_v12  ;;  %v1452_v39 = vpop.f32.mrf.mxu3  ;;  %v1302_v12 = vld [vmem:[#allocation2 + $0x207] sm:$0xff] }
 0x169   : > { %v1526_v47 = vadd.f32 %v1452_v39, %v1251_v15 }
 0x16a   : > { %v940_v18 = vpop.f32.mrf.mxu1  ;;  %v1733_v22 = vpop.f32.mrf.mxu0 }
 0x16b   : > { %v4446_v4 = vadd.f32 %v1727_v38, %v1526_v47  ;;  %3335 = vmatmul.msk.f32.gmra.mxu2 %vm405_vm0, %v1025_v17  ;;  %v941_v32 = vadd.f32 %v940_v18, %v4214_v48  ;;  %v1028_v18 = vld [vmem:[#allocation2 + $0x1f1] sm:$0xff] }
 0x16c   : > { %3368 = vmatmul.msk.f32.gmra.mxu3 %vm405_vm0, %v1300_v2 }
 0x16d   : > { %3303 = vmatmul.msk.f32.gmra.mxu1 %vm405_vm0, %v1299_v6  ;;  %3402 = vmatmul.msk.f32.gmra.mxu0 %vm405_vm0, %v4036_v45  ;;  %v1027_v6 = vld [vmem:[#allocation2 + $0x1e9] sm:$0xff] }
 0x16e   : > { %v1180_v40 = vpop.f32.mrf.mxu2 }
 0x16f   : > { %v1252_v49 = vadd.f32 %v1180_v40, %v938_v23  ;;  %v1455_v24 = vpop.f32.mrf.mxu3  ;;  %v1303_v40 = vld [vmem:[#allocation2 + $0x20f] sm:$0xff] }
 0x171   : > { %v1527_v10 = vadd.f32 %v1455_v24, %v1252_v49 }
 0x172   : > { %v943_v21 = vpop.f32.mrf.mxu1  ;;  %v1736_v38 = vpop.f32.mrf.mxu0 }
 0x173   : > { %v4454_v7 = vadd.f32 %v1730_v9, %v1527_v10  ;;  %3336 = vmatmul.msk.f32.gmra.mxu2 %vm405_vm0, %v1026_v13  ;;  %v1578_v9 = vld [vmem:[#allocation2 + $0x210] sm:$0xff]  ;;  %v944_v48 = vadd.f32 %v943_v21, %v4234_v28 }
 0x174   : > { %3369 = vmatmul.msk.f32.gmra.mxu3 %vm405_vm0, %v1301_v3 }
 0x175   : > { %3304 = vmatmul.msk.f32.gmra.mxu1 %vm405_vm0, %v1300_v2  ;;  %3403 = vmatmul.msk.f32.gmra.mxu0 %vm405_vm0, %v1577_v43  ;;  %v2373_v43 = vld [vmem:[#allocation2 + $0x48] sm:$0xff] }
 0x176   : > { %v1183_v45 = vpop.f32.mrf.mxu2 }
 0x177   : > { %v1253_v8 = vadd.f32 %v1183_v45, %v941_v32  ;;  %v1458_v51 = vpop.f32.mrf.mxu3 }
 0x179   : > { %v1528_v52 = vadd.f32 %v1458_v51, %v1253_v8 }
 0x17a   : > { %v946_v35 = vpop.f32.mrf.mxu1  ;;  %v1739_v15 = vpop.f32.mrf.mxu0 }
 0x17b   : > { %v4461_v39 = vadd.f32 %v1733_v22, %v1528_v52  ;;  %3337 = vmatmul.msk.f32.gmra.mxu2 %vm405_vm0, %v1027_v6  ;;  %v947_v28 = vadd.f32 %v946_v35, %v4254_v19  ;;  %v2374_v52 = vld [vmem:[#allocation2 + $0x50] sm:$0xff] }
 0x17c   : > { %3370 = vmatmul.msk.f32.gmra.mxu3 %vm405_vm0, %v1302_v12 }
 0x17d   : > { %3305 = vmatmul.msk.f32.gmra.mxu1 %vm405_vm0, %v1301_v3  ;;  %3404 = vmatmul.msk.f32.gmra.mxu0 %vm405_vm0, %v1578_v9 }
 0x17e   : > { %v1186_v17 = vpop.f32.mrf.mxu2 }
 0x17f   : > { %v1254_v47 = vadd.f32 %v1186_v17, %v944_v48  ;;  %v1461_v2 = vpop.f32.mrf.mxu3 }
 0x181   : > { %v1529_v23 = vadd.f32 %v1461_v2, %v1254_v47 }
 0x182   : > { %v949_v49 = vpop.f32.mrf.mxu1  ;;  %v1742_v24 = vpop.f32.mrf.mxu0 }
 0x183   : > { %v4468_v22 = vadd.f32 %v1736_v38, %v1529_v23  ;;  %3338 = vmatmul.msk.f32.gmra.mxu2 %vm405_vm0, %v1028_v18  ;;  %v950_v19 = vadd.f32 %v949_v49, %v4146_v50 }
 0x184   : > { %3371 = vmatmul.msk.f32.gmra.mxu3 %vm405_vm0, %v1303_v40 }
 0x185   : > { %3406 = vmatmul.msk.f32.vlgmr.msra.gmra.mxu1 %vm405_vm0, %v4055_v53  ;;  %3505 = vmatmul.msk.f32.vlgmr.msra.gmra.mxu0 %vm405_vm0, %v4078_v57 }
 0x186   : > { %v1189_v13 = vpop.f32.mrf.mxu2 }
 0x187   : > { %v1255_v10 = vadd.f32 %v1189_v13, %v947_v28  ;;  %v1464_v3 = vpop.f32.mrf.mxu3  ;;  %v2377_v13 = vld [vmem:[#allocation2 + $0x88] sm:$0xff] }
 0x189   : > { %v1530_v21 = vadd.f32 %v1464_v3, %v1255_v10 }
 0x18a   : > { %v952_v32 = vpop.f32.mrf.mxu1  ;;  %v1745_v38 = vpop.f32.mrf.mxu0 }
 0x18b   : > { %v4477_v45 = vadd.f32 %v1739_v15, %v1530_v21  ;;  %3439 = vmatmul.msk.f32.vlgmr.msra.gmra.mxu2 %vm405_vm0, %v4057_v54  ;;  %v953_v54 = vadd.f32 %v952_v32, %v4166_v14 }
 0x18c   : > { %3472 = vmatmul.msk.f32.vlgmr.msra.gmra.mxu3 %vm405_vm0, %v2373_v43 }
 0x18d   : > { %3407 = vmatmul.msk.f32.gmra.mxu1 %vm405_vm0, %v4066_v55  ;;  %3506 = vmatmul.msk.f32.gmra.mxu0 %vm405_vm0, %v4090_v59 }
 0x18e   : > { %v1192_v53 = vpop.f32.mrf.mxu2 }
 0x18f   : > { %v1256_v8 = vadd.f32 %v1192_v53, %v950_v19  ;;  %v1467_v51 = vpop.f32.mrf.mxu3 }
 0x191   : > { %v1531_v6 = vadd.f32 %v1467_v51, %v1256_v8 }
 0x192   : > { %v955_v12 = vpop.f32.mrf.mxu1  ;;  %v1748_v35 = vpop.f32.mrf.mxu0 }
 0x193   : > { %v4487_v15 = vadd.f32 %v1742_v24, %v1531_v6  ;;  %3440 = vmatmul.msk.f32.gmra.mxu2 %vm405_vm0, %v4068_v56  ;;  %v956_v56 = vadd.f32 %v955_v12, %v4186_v25 }
 0x194   : > { %3473 = vmatmul.msk.f32.gmra.mxu3 %vm405_vm0, %v2374_v52 }
 0x195   : > { %3408 = vmatmul.msk.f32.gmra.mxu1 %vm405_vm0, %v4078_v57  ;;  %3507 = vmatmul.msk.f32.gmra.mxu0 %vm405_vm0, %v4102_v61 }
 0x196   : > { %v1195_v55 = vpop.f32.mrf.mxu2 }
 0x197   : > { %v1257_v50 = vadd.f32 %v1195_v55, %v953_v54  ;;  %v1470_v9 = vpop.f32.mrf.mxu3  ;;  %v2379_v54 = vld [vmem:[#allocation2 + $0xa8] sm:$0xff] }
 0x199   : > { %v1532_v48 = vadd.f32 %v1470_v9, %v1257_v50 }
 0x19a   : > { %v958_v17 = vpop.f32.mrf.mxu1  ;;  %v1751_v47 = vpop.f32.mrf.mxu0 }
 0x19b   : > { %v4497_v2 = vadd.f32 %v1745_v38, %v1532_v48  ;;  %3441 = vmatmul.msk.f32.gmra.mxu2 %vm405_vm0, %v4080_v58  ;;  %v2378_v38 = vld [vmem:[#allocation2 + $0x90] sm:$0xff]  ;;  %v4975_v48 = vld [vmem:[#allocation4_spill] sm:$0xff] }
 0x19c   : > { %3474 = vmatmul.msk.f32.gmra.mxu3 %vm405_vm0, %v3983_v37  ;;  %v959_v37 = vadd.f32 %v958_v17, %v4206_v29  ;;  %v4976_v17 = vld [vmem:[#allocation24_spill] sm:$0xff] }
 0x19d   : > { %3409 = vmatmul.msk.f32.gmra.mxu1 %vm405_vm0, %v4090_v59  ;;  %3508 = vmatmul.msk.f32.gmra.mxu0 %vm405_vm0, %v4116_v0 }
 0x19e   : > { %v1198_v57 = vpop.f32.mrf.mxu2 }
 0x19f   : > { %v1258_v14 = vadd.f32 %v1198_v57, %v956_v56  ;;  %v1473_v18 = vpop.f32.mrf.mxu3 }
 0x1a1   : > { %v1533_v23 = vadd.f32 %v1473_v18, %v1258_v14 }
 0x1a2   : > { %v961_v40 = vpop.f32.mrf.mxu1  ;;  %v1754_v49 = vpop.f32.mrf.mxu0 }
 0x1a3   : > { %v4508_v24 = vadd.f32 %v1748_v35, %v1533_v23  ;;  %3442 = vmatmul.msk.f32.gmra.mxu2 %vm405_vm0, %v4092_v60  ;;  %v4971_v60 = vld [vmem:[#allocation6_spill] sm:$0xff]  ;;  %v2380_v23 = vld [vmem:[#allocation2 + $0xb0] sm:$0xff] }
 0x1a4   : > { %3475 = vmatmul.msk.f32.gmra.mxu3 %vm405_vm0, %v4018_v42  ;;  %v962_v42 = vadd.f32 %v961_v40, %v4226_v36  ;;  %v4973_v36 = vld [vmem:[#allocation20_spill] sm:$0xff] }
 0x1a5   : > { %3410 = vmatmul.msk.f32.gmra.mxu1 %vm405_vm0, %v4102_v61  ;;  %3509 = vmatmul.msk.f32.gmra.mxu0 %vm405_vm0, %v4130_v27 }
 0x1a6   : > { %v1201_v58 = vpop.f32.mrf.mxu2 }
 0x1a7   : > { %v1259_v59 = vadd.f32 %v1201_v58, %v959_v37  ;;  %v1476_v25 = vpop.f32.mrf.mxu3  ;;  %v4978_v58 = vld [vmem:[#allocation7_spill] sm:$0xff] }
 0x1a9   : > { %v1534_v28 = vadd.f32 %v1476_v25, %v1259_v59  ;;  %v4979_v59 = vld [vmem:[#allocation27_spill] sm:$0xff] }
 0x1aa   : > { %v964_v10 = vpop.f32.mrf.mxu1  ;;  %v1757_v3 = vpop.f32.mrf.mxu0 }
 0x1ab   : > { %v4519_v21 = vadd.f32 %v1751_v47, %v1534_v28  ;;  %3443 = vmatmul.msk.f32.gmra.mxu2 %vm405_vm0, %v4104_v62  ;;  %v4972_v62 = vld [vmem:[#allocation3_spill] sm:$0xff]  ;;  %v965_v51 = vadd.f32 %v964_v10, %v4973_v36 }
 0x1ac   : > { %3476 = vmatmul.msk.f32.gmra.mxu3 %vm405_vm0, %v2377_v13  ;;  %v4980_v28 = vld [vmem:[#allocation15_spill] sm:$0xff] }
 0x1ad   : > { %3411 = vmatmul.msk.f32.gmra.mxu1 %vm405_vm0, %v4116_v0  ;;  %3510 = vmatmul.msk.f32.gmra.mxu0 %vm405_vm0, %v4971_v60  ;;  %v4974_v0 = vld [vmem:[#allocation9_spill] sm:$0xff] }
 0x1ae   : > { %v1204_v61 = vpop.f32.mrf.mxu2 }
 0x1af   : > { %v1260_v29 = vadd.f32 %v1204_v61, %v962_v42  ;;  %v1479_v43 = vpop.f32.mrf.mxu3 }
 0x1b1   : > { %v1535_v32 = vadd.f32 %v1479_v43, %v1260_v29 }
 0x1b2   : > { %v967_v19 = vpop.f32.mrf.mxu1  ;;  %v1760_v53 = vpop.f32.mrf.mxu0 }
 0x1b3   : > { %v4529_v8 = vadd.f32 %v1754_v49, %v1535_v32  ;;  %3444 = vmatmul.msk.f32.gmra.mxu2 %vm405_vm0, %v4972_v62  ;;  %v968_v47 = vadd.f32 %v967_v19, %v4976_v17  ;;  %v4981_v32 = vld [vmem:[#allocation10_spill] sm:$0xff] }
 0x1b4   : > { %3477 = vmatmul.msk.f32.gmra.mxu3 %vm405_vm0, %v2378_v38  ;;  %v4982_v38 = vld [vmem:[#allocation5_spill] sm:$0xff] }
 0x1b5   : > { %3412 = vmatmul.msk.f32.gmra.mxu1 %vm405_vm0, %v4130_v27  ;;  %3511 = vmatmul.msk.f32.gmra.mxu0 %vm405_vm0, %v4974_v0  ;;  %v4977_v27 = vld [vmem:[#allocation12_spill] sm:$0xff] }
 0x1b6   : > { %v1207_v6 = vpop.f32.mrf.mxu2 }
 0x1b7   : > { %v1261_v52 = vadd.f32 %v1207_v6, %v965_v51  ;;  %v1482_v12 = vpop.f32.mrf.mxu3  ;;  %v2382_v6 = vld [vmem:[#allocation2 + $0xd0] sm:$0xff] }
 0x1b9   : > { %v1536_v35 = vadd.f32 %v1482_v12, %v1261_v52 }
 0x1ba   : > { %v970_v55 = vpop.f32.mrf.mxu1  ;;  %v1763_v50 = vpop.f32.mrf.mxu0 }
 0x1bb   : > { %v4539_v9 = vadd.f32 %v1757_v3, %v1536_v35  ;;  %3445 = vmatmul.msk.f32.gmra.mxu2 %vm405_vm0, %v4975_v48  ;;  %v971_v25 = vadd.f32 %v970_v55, %v4979_v59  ;;  %v4985_v55 = vld [vmem:[#allocation8_spill] sm:$0xff]  ;;  %v4986_v48 = vld [vmem:[#allocation22_spill] sm:$0xff] }
 0x1bc   : > { %3478 = vmatmul.msk.f32.gmra.mxu3 %vm405_vm0, %v2379_v54  ;;  %v4984_v54 = vld [vmem:[#allocation13_spill] sm:$0xff]  ;;  %v4989_v59 = vld [vmem:[#allocation26_spill] sm:$0xff] }
 0x1bd   : > { %3413 = vmatmul.msk.f32.gmra.mxu1 %vm405_vm0, %v4971_v60  ;;  %3512 = vmatmul.msk.f32.gmra.mxu0 %vm405_vm0, %v4977_v27  ;;  %v2381_v60 = vld [vmem:[#allocation2 + $0xc8] sm:$0xff] }
 0x1be   : > { %v1210_v56 = vpop.f32.mrf.mxu2 }
 0x1bf   : > { %v1262_v57 = vadd.f32 %v1210_v56, %v968_v47  ;;  %v1485_v14 = vpop.f32.mrf.mxu3 }
 0x1c1   : > { %v1537_v18 = vadd.f32 %v1485_v14, %v1262_v57  ;;  %v2383_v57 = vld [vmem:[#allocation2 + $0xe8] sm:$0xff] }
 0x1c2   : > { %v973_v40 = vpop.f32.mrf.mxu1  ;;  %v1766_v49 = vpop.f32.mrf.mxu0 }
 0x1c3   : > { %v4549_v37 = vadd.f32 %v1760_v53, %v1537_v18  ;;  %3446 = vmatmul.msk.f32.gmra.mxu2 %vm405_vm0, %v4978_v58  ;;  %v974_v19 = vadd.f32 %v973_v40, %v4982_v38  ;;  %v4983_v53 = vld [vmem:[#allocation18_spill] sm:$0xff]  ;;  %v4987_v40 = vld [vmem:[#allocation16_spill] sm:$0xff] }
 0x1c4   : > { %3479 = vmatmul.msk.f32.gmra.mxu3 %vm405_vm0, %v2380_v23 }
 0x1c5   : > { %3414 = vmatmul.msk.f32.gmra.mxu1 %vm405_vm0, %v4974_v0  ;;  %3513 = vmatmul.msk.f32.gmra.mxu0 %vm405_vm0, %v4980_v28 }
 0x1c6   : > { %v1213_v13 = vpop.f32.mrf.mxu2 }
 0x1c7   : > { %v1263_v10 = vadd.f32 %v1213_v13, %v971_v25  ;;  %v1488_v3 = vpop.f32.mrf.mxu3 }
 0x1c9   : > { %v1538_v42 = vadd.f32 %v1488_v3, %v1263_v10  ;;  %v2384_v3 = vld [vmem:[#allocation2 + $0xf0] sm:$0xff] }
 0x1ca   : > { %v976_v61 = vpop.f32.mrf.mxu1  ;;  %v1769_v29 = vpop.f32.mrf.mxu0 }
 0x1cb   : > { %v4559_v43 = vadd.f32 %v1763_v50, %v1538_v42  ;;  %3447 = vmatmul.msk.f32.gmra.mxu2 %vm405_vm0, %v4981_v32  ;;  %v977_v50 = vadd.f32 %v976_v61, %v4985_v55  ;;  %v4991_v32 = vld [vmem:[#allocation14_spill] sm:$0xff]  ;;  %v4994_v55 = vld [vmem:[#allocation17_spill] sm:$0xff] }
 0x1cc   : > { %3480 = vmatmul.msk.f32.gmra.mxu3 %vm405_vm0, %v2381_v60 }
 0x1cd   : > { %3415 = vmatmul.msk.f32.gmra.mxu1 %vm405_vm0, %v4977_v27  ;;  %3514 = vmatmul.msk.f32.gmra.mxu0 %vm405_vm0, %v4983_v53 }
 0x1ce   : > { %v1216_v62 = vpop.f32.mrf.mxu2 }
 0x1cf   : > { %v1264_v36 = vadd.f32 %v1216_v62, %v974_v19  ;;  %v1491_v51 = vpop.f32.mrf.mxu3  ;;  %v4992_v19 = vld [vmem:[#allocation29_spill] sm:$0xff] }
 0x1d1   : > { %v1539_v0 = vadd.f32 %v1491_v51, %v1264_v36 }
 0x1d2   : > { %v979_v52 = vpop.f32.mrf.mxu1  ;;  %v1772_v12 = vpop.f32.mrf.mxu0 }
 0x1d3   : > { %v4569_v35 = vadd.f32 %v1766_v49, %v1539_v0  ;;  %3448 = vmatmul.msk.f32.gmra.mxu2 %vm405_vm0, %v4984_v54  ;;  %v4988_v49 = vld [vmem:[#allocation11_spill] sm:$0xff]  ;;  %v2385_v0 = vld [vmem:[#allocation2 + $0x108] sm:$0xff] }
 0x1d4   : > { %3481 = vmatmul.msk.f32.gmra.mxu3 %vm405_vm0, %v2382_v6  ;;  %v980_v58 = vadd.f32 %v979_v52, %v4988_v49  ;;  %v4993_v54 = vld [vmem:[#allocation23_spill] sm:$0xff] }
 0x1d5   : > { %3416 = vmatmul.msk.f32.gmra.mxu1 %vm405_vm0, %v4980_v28  ;;  %3515 = vmatmul.msk.f32.gmra.mxu0 %vm405_vm0, %v4986_v48 }
 0x1d6   : > { %v1219_v17 = vpop.f32.mrf.mxu2 }
 0x1d7   : > { %v1265_v47 = vadd.f32 %v1219_v17, %v977_v50  ;;  %v1494_v27 = vpop.f32.mrf.mxu3 }
 0x1d9   : > { %v1540_v56 = vadd.f32 %v1494_v27, %v1265_v47 }
 0x1da   : > { %v982_v14 = vpop.f32.mrf.mxu1  ;;  %v1775_v18 = vpop.f32.mrf.mxu0 }
 0x1db   : > { %v4579_v23 = vadd.f32 %v1769_v29, %v1540_v56  ;;  %3449 = vmatmul.msk.f32.gmra.mxu2 %vm405_vm0, %v4987_v40  ;;  %v4990_v29 = vld [vmem:[#allocation19_spill] sm:$0xff]  ;;  %v983_v38 = vadd.f32 %v982_v14, %v4991_v32  ;;  %v2386_v56 = vld [vmem:[#allocation2 + $0x110] sm:$0xff] }
 0x1dc   : > { %3482 = vmatmul.msk.f32.gmra.mxu3 %vm405_vm0, %v2383_v57  ;;  %v4995_v40 = vld [vmem:[#allocation21_spill] sm:$0xff] }
 0x1dd   : > { %3417 = vmatmul.msk.f32.gmra.mxu1 %vm405_vm0, %v4983_v53  ;;  %3516 = vmatmul.msk.f32.gmra.mxu0 %vm405_vm0, %v4989_v59 }
 0x1de   : > { %v1222_v25 = vpop.f32.mrf.mxu2 }
 0x1df   : > { %v1266_v28 = vadd.f32 %v1222_v25, %v980_v58  ;;  %v1497_v13 = vpop.f32.mrf.mxu3 }
 0x1e1   : > { %v1541_v10 = vadd.f32 %v1497_v13, %v1266_v28  ;;  %v2387_v13 = vld [vmem:[#allocation2 + $0x128] sm:$0xff] }
 0x1e2   : > { %v985_v42 = vpop.f32.mrf.mxu1  ;;  %v1778_v60 = vpop.f32.mrf.mxu0 }
 0x1e3   : > { %v4589_v61 = vadd.f32 %v1772_v12, %v1541_v10  ;;  %3450 = vmatmul.msk.f32.gmra.mxu2 %vm405_vm0, %v4990_v29  ;;  %v986_v50 = vadd.f32 %v985_v42, %v4994_v55  ;;  %v2389_v55 = vld [vmem:[#allocation2 + $0x148] sm:$0xff] }
 0x1e4   : > { %3483 = vmatmul.msk.f32.gmra.mxu3 %vm405_vm0, %v2384_v3 }
 0x1e5   : > { %3418 = vmatmul.msk.f32.gmra.mxu1 %vm405_vm0, %v4986_v48  ;;  %3517 = vmatmul.msk.f32.gmra.mxu0 %vm405_vm0, %v4992_v19 }
 0x1e6   : > { %v1225_v53 = vpop.f32.mrf.mxu2 }
 0x1e7   : > { %v1267_v62 = vadd.f32 %v1225_v53, %v983_v38  ;;  %v1500_v36 = vpop.f32.mrf.mxu3  ;;  %v2388_v53 = vld [vmem:[#allocation2 + $0x130] sm:$0xff] }
 0x1e9   : > { %v1542_v51 = vadd.f32 %v1500_v36, %v1267_v62 }
 0x1ea   : > { %v988_v6 = vpop.f32.mrf.mxu1  ;;  %v1781_v52 = vpop.f32.mrf.mxu0 }
 0x1eb   : > { %v4599_v12 = vadd.f32 %v1775_v18, %v1542_v51  ;;  %3451 = vmatmul.msk.f32.gmra.mxu2 %vm405_vm0, %v4993_v54  ;;  %v989_v49 = vadd.f32 %v988_v6, %v4995_v40 }
 0x1ec   : > { %3484 = vmatmul.msk.f32.gmra.mxu3 %vm405_vm0, %v2385_v0 }
 0x1ed   : > { %3419 = vmatmul.msk.f32.gmra.mxu1 %vm405_vm0, %v4989_v59  ;;  %3518 = vmatmul.msk.f32.gmra.mxu0 %vm405_vm0, %v4299_v44 }
 0x1ee   : > { %v1228_v48 = vpop.f32.mrf.mxu2 }
 0x1ef   : > { %v1268_v17 = vadd.f32 %v1228_v48, %v986_v50  ;;  %v1503_v47 = vpop.f32.mrf.mxu3 }
 0x1f1   : > { %v1543_v27 = vadd.f32 %v1503_v47, %v1268_v17 }
 0x1f2   : > { %v991_v57 = vpop.f32.mrf.mxu1  ;;  %v1784_v14 = vpop.f32.mrf.mxu0 }
 0x1f3   : > { %v4609_v18 = vadd.f32 %v1778_v60, %v1543_v27  ;;  %3452 = vmatmul.msk.f32.gmra.mxu2 %vm405_vm0, %v4272_v46  ;;  %v4996_v46 = vld [vmem:[#allocation25_spill] sm:$0xff] }
 0x1f4   : > { %3485 = vmatmul.msk.f32.gmra.mxu3 %vm405_vm0, %v2386_v56  ;;  %v992_v60 = vadd.f32 %v991_v57, %v4996_v46 }
 0x1f5   : > { %3420 = vmatmul.msk.f32.gmra.mxu1 %vm405_vm0, %v4992_v19  ;;  %3519 = vmatmul.msk.f32.gmra.mxu0 %vm405_vm0, %v4314_v1 }
 0x1f6   : > { %v1231_v58 = vpop.f32.mrf.mxu2 }
 0x1f7   : > { %v1269_v59 = vadd.f32 %v1231_v58, %v989_v49  ;;  %v1506_v25 = vpop.f32.mrf.mxu3 }
 0x1f9   : > { %v1544_v28 = vadd.f32 %v1506_v25, %v1269_v59 }
 0x1fa   : > { %v994_v10 = vpop.f32.mrf.mxu1  ;;  %v1787_v3 = vpop.f32.mrf.mxu0 }
 0x1fb   : > { %v4619_v42 = vadd.f32 %v1781_v52, %v1544_v28  ;;  %3453 = vmatmul.msk.f32.gmra.mxu2 %vm405_vm0, %v4288_v31  ;;  %v4997_v31 = vld [vmem:[#allocation28_spill] sm:$0xff] }
 0x1fc   : > { %3486 = vmatmul.msk.f32.gmra.mxu3 %vm405_vm0, %v2387_v13  ;;  %v995_v0 = vadd.f32 %v994_v10, %v4997_v31  ;;  %v2391_v10 = vld [vmem:[#allocation2 + $0x168] sm:$0xff] }
 0x1fd   : > { %3421 = vmatmul.msk.f32.gmra.mxu1 %vm405_vm0, %v4299_v44  ;;  %3520 = vmatmul.msk.f32.gmra.mxu0 %vm405_vm0, %v4329_v63 }
 0x1fe   : > { %v1234_v29 = vpop.f32.mrf.mxu2 }
 0x1ff   : > { %v1270_v32 = vadd.f32 %v1234_v29, %v992_v60  ;;  %v1509_v38 = vpop.f32.mrf.mxu3 }
 0x201   : > { %v1545_v19 = vadd.f32 %v1509_v38, %v1270_v32 }
 0x202   : > { %v1969_v62 = vpop.f32.mrf.mxu1  ;;  %v2795_v36 = vpop.f32.mrf.mxu0 }
 0x203   : > { %v4629_v51 = vadd.f32 %v1784_v14, %v1545_v19  ;;  %3454 = vmatmul.msk.f32.gmra.mxu2 %vm405_vm0, %v4301_v41  ;;  %v4998_v41 = vld [vmem:[#allocation30_spill] sm:$0xff]  ;;  %v2390_v14 = vld [vmem:[#allocation2 + $0x150] sm:$0xff] }
 0x204   : > { %3487 = vmatmul.msk.f32.gmra.mxu3 %vm405_vm0, %v2388_v53  ;;  %v5001_v53 = vld [vmem:[#allocation38_spill] sm:$0xff] }
 0x205   : > { %3422 = vmatmul.msk.f32.gmra.mxu1 %vm405_vm0, %v4314_v1  ;;  %3521 = vmatmul.msk.f32.gmra.mxu0 %vm405_vm0, %v4344_v5  ;;  %v2065_v1 = vadd.f32 %v1969_v62, %v4998_v41  ;;  %v5002_v41 = vld [vmem:[#allocation34_spill] sm:$0xff] }
 0x206   : > { %v1237_v44 = vpop.f32.mrf.mxu2 }
 0x207   : > { %v1271_v6 = vadd.f32 %v1237_v44, %v995_v0  ;;  %v1512_v52 = vpop.f32.mrf.mxu3 }
 0x209   : > { %v1546_v54 = vadd.f32 %v1512_v52, %v1271_v6 }
 0x20a   : > { %v1972_v50 = vpop.f32.mrf.mxu1  ;;  %v2798_v48 = vpop.f32.mrf.mxu0 }
 0x20b   : > { %v4639_v17 = vadd.f32 %v1787_v3, %v1546_v54  ;;  %3455 = vmatmul.msk.f32.gmra.mxu2 %vm405_vm0, %v4316_v30  ;;  %v2392_v54 = vld [vmem:[#allocation2 + $0x170] sm:$0xff] }
 0x20c   : > { %3488 = vmatmul.msk.f32.gmra.mxu3 %vm405_vm0, %v2389_v55 }
 0x20d   : > { %3423 = vmatmul.msk.f32.gmra.mxu1 %vm405_vm0, %v4329_v63  ;;  %3522 = vmatmul.msk.f32.gmra.mxu0 %vm405_vm0, %v4359_v16  ;;  %v4999_v63 = vld [vmem:[#allocation31_spill] sm:$0xff] }
 0x20e   : > { %v2245_v47 = vpop.f32.mrf.mxu2  ;;  %v2066_v58 = vadd.f32 %v1972_v50, %v4999_v63 }
 0x20f   : > { %v2341_v27 = vadd.f32 %v2245_v47, %v2065_v1  ;;  %v2520_v56 = vpop.f32.mrf.mxu3 }
 0x211   : > { %v2616_v57 = vadd.f32 %v2520_v56, %v2341_v27  ;;  %v5004_v56 = vld [vmem:[#allocation40_spill] sm:$0xff] }
 0x212   : > { %v1975_v30 = vpop.f32.mrf.mxu1  ;;  %v2801_v40 = vpop.f32.mrf.mxu0 }
 0x213   : > { %v2891_v49 = vadd.f32 %v2795_v36, %v2616_v57  ;;  %3456 = vmatmul.msk.f32.gmra.mxu2 %vm405_vm0, %v4331_v11 }
 0x214   : > { %3489 = vmatmul.msk.f32.gmra.mxu3 %vm405_vm0, %v2390_v14 }
 0x215   : > { %2923 = vst.msk [vmem:[%s4654_s10] sm:$0xff] %vm405_vm0, %v2891_v49  ;;  %3424 = vmatmul.msk.f32.gmra.mxu1 %vm405_vm0, %v4344_v5  ;;  %3523 = vmatmul.msk.f32.gmra.mxu0 %vm405_vm0, %v4374_v26  ;;  %v3025_v46 = vmul.f32 %v2891_v49, %v2891_v49  ;;  %v2955_v29 = vsel %vm405_vm0, %v2891_v49, 0.0  ;;  %v5000_v5 = vld [vmem:[#allocation32_spill] sm:$0xff] }
 0x216   : > { %v2248_v59 = vpop.f32.mrf.mxu2  ;;  %v2067_v32 = vadd.f32 %v1975_v30, %v5000_v5 }
 0x217   : > { %v2342_v25 = vadd.f32 %v2248_v59, %v2066_v58  ;;  %v2523_v28 = vpop.f32.mrf.mxu3  ;;  %v3057_v36 = vsel %vm405_vm0, %v3025_v46, 0.0  ;;  %v2393_v59 = vld [vmem:[#allocation2 + $0x188] sm:$0xff] }
 0x218   : > { %v5005_v46 = vld [vmem:[#allocation36_spill] sm:$0xff] }
 0x219   : > { %v2617_v13 = vadd.f32 %v2523_v28, %v2342_v25  ;;  %v1843_v28 = vld [vmem:[#allocation2 + $0x171] sm:$0xff] }
 0x21a   : > { %v1978_v3 = vpop.f32.mrf.mxu1  ;;  %v2804_v11 = vpop.f32.mrf.mxu0 }
 0x21b   : > { %v2892_v60 = vadd.f32 %v2798_v48, %v2617_v13  ;;  %3457 = vmatmul.msk.f32.gmra.mxu2 %vm405_vm0, %v4346_v20 }
 0x21c   : > { %3490 = vmatmul.msk.f32.gmra.mxu3 %vm405_vm0, %v2391_v10  ;;  %v2669_v10 = vld [vmem:[#allocation2 + $0x191] sm:$0xff] }
 0x21d   : > { %2924 = vst.msk [vmem:[%s4654_s10 + $0x8] sm:$0xff] %vm405_vm0, %v2892_v60  ;;  %v2956_v38 = vsel %vm405_vm0, %v2892_v60, 0.0  ;;  %v3026_v19 = vmul.f32 %v2892_v60, %v2892_v60  ;;  %3425 = vmatmul.msk.f32.gmra.mxu1 %vm405_vm0, %v4359_v16  ;;  %3524 = vmatmul.msk.f32.gmra.mxu0 %vm405_vm0, %v5001_v53  ;;  %v5003_v16 = vld [vmem:[#allocation33_spill] sm:$0xff] }
 0x21e   : > { %v2957_v62 = vadd.f32 %v2956_v38, %v2955_v29  ;;  %v2251_v20 = vpop.f32.mrf.mxu2  ;;  %v2068_v1 = vadd.f32 %v1978_v3, %v5003_v16 }
 0x21f   : > { %v3058_v31 = vsel %vm405_vm0, %v3026_v19, 0.0  ;;  %v2343_v0 = vadd.f32 %v2251_v20, %v2067_v32  ;;  %v2526_v44 = vpop.f32.mrf.mxu3  ;;  %v2119_v20 = vld [vmem:[#allocation2 + $0x18f] sm:$0xff] }
 0x220   : > { %v3059_v6 = vadd.f32 %v3058_v31, %v3057_v36  ;;  %v2394_v31 = vld [vmem:[#allocation2 + $0x190] sm:$0xff] }
 0x221   : > { %v2618_v52 = vadd.f32 %v2526_v44, %v2343_v0  ;;  %v1844_v44 = vld [vmem:[#allocation2 + $0x189] sm:$0xff] }
 0x222   : > { %v1981_v55 = vpop.f32.mrf.mxu1  ;;  %v2807_v50 = vpop.f32.mrf.mxu0 }
 0x223   : > { %v2893_v48 = vadd.f32 %v2801_v40, %v2618_v52  ;;  %3458 = vmatmul.msk.f32.gmra.mxu2 %vm405_vm0, %v5002_v41  ;;  %v2670_v52 = vld [vmem:[#allocation2 + $0x1a9] sm:$0xff] }
 0x224   : > { %3491 = vmatmul.msk.f32.gmra.mxu3 %vm405_vm0, %v2392_v54 }
 0x225   : > { %2925 = vst.msk [vmem:[%s4654_s10 + $0x10] sm:$0xff] %vm405_vm0, %v2893_v48  ;;  %v2958_v47 = vsel %vm405_vm0, %v2893_v48, 0.0  ;;  %v3027_v27 = vmul.f32 %v2893_v48, %v2893_v48  ;;  %3426 = vmatmul.msk.f32.gmra.mxu1 %vm405_vm0, %v4374_v26  ;;  %3525 = vmatmul.msk.f32.gmra.mxu0 %vm405_vm0, %v5004_v56  ;;  %v5006_v26 = vld [vmem:[#allocation35_spill] sm:$0xff] }
 0x226   : > { %v2959_v57 = vadd.f32 %v2958_v47, %v2957_v62  ;;  %v2254_v14 = vpop.f32.mrf.mxu2  ;;  %v2069_v60 = vadd.f32 %v1981_v55, %v5006_v26  ;;  %v5007_v55 = vld [vmem:[#allocation37_spill] sm:$0xff] }
 0x227   : > { %v3060_v30 = vsel %vm405_vm0, %v3027_v27, 0.0  ;;  %v2344_v40 = vadd.f32 %v2254_v14, %v2068_v1  ;;  %v2529_v49 = vpop.f32.mrf.mxu3  ;;  %v2120_v14 = vld [vmem:[#allocation2 + $0x1a7] sm:$0xff] }
 0x228   : > { %v3061_v63 = vadd.f32 %v3060_v30, %v3059_v6 }
 0x229   : > { %v2619_v58 = vadd.f32 %v2529_v49, %v2344_v40  ;;  %v2395_v40 = vld [vmem:[#allocation2 + $0x1a8] sm:$0xff] }
 0x22a   : > { %v1984_v25 = vpop.f32.mrf.mxu1  ;;  %v2810_v13 = vpop.f32.mrf.mxu0 }
 0x22b   : > { %v2894_v3 = vadd.f32 %v2804_v11, %v2619_v58  ;;  %3459 = vmatmul.msk.f32.gmra.mxu2 %vm405_vm0, %v5005_v46  ;;  %v2070_v48 = vadd.f32 %v1984_v25, %v5007_v55  ;;  %v2671_v58 = vld [vmem:[#allocation2 + $0x1b1] sm:$0xff]  ;;  %v5008_v25 = vld [vmem:[#allocation39_spill] sm:$0xff] }
 0x22c   : > { %3492 = vmatmul.msk.f32.gmra.mxu3 %vm405_vm0, %v2393_v59 }
 0x22d   : > { %2926 = vst.msk [vmem:[%s4654_s10 + $0x18] sm:$0xff] %vm405_vm0, %v2894_v3  ;;  %v2960_v29 = vsel %vm405_vm0, %v2894_v3, 0.0  ;;  %v3028_v5 = vmul.f32 %v2894_v3, %v2894_v3  ;;  %3427 = vmatmul.msk.f32.gmra.mxu1 %vm405_vm0, %v1843_v28  ;;  %3526 = vmatmul.msk.f32.gmra.mxu0 %vm405_vm0, %v2669_v10 }
 0x22e   : > { %v2961_v32 = vadd.f32 %v2960_v29, %v2959_v57  ;;  %v2257_v38 = vpop.f32.mrf.mxu2 }
 0x22f   : > { %v3062_v11 = vsel %vm405_vm0, %v3028_v5, 0.0  ;;  %v2345_v19 = vadd.f32 %v2257_v38, %v2069_v60  ;;  %v2532_v53 = vpop.f32.mrf.mxu3  ;;  %v2121_v38 = vld [vmem:[#allocation2 + $0x1af] sm:$0xff] }
 0x230   : > { %v3063_v62 = vadd.f32 %v3062_v11, %v3061_v63 }
 0x231   : > { %v2620_v36 = vadd.f32 %v2532_v53, %v2345_v19  ;;  %v2396_v19 = vld [vmem:[#allocation2 + $0x1b0] sm:$0xff] }
 0x232   : > { %v1987_v0 = vpop.f32.mrf.mxu1  ;;  %v2813_v6 = vpop.f32.mrf.mxu0 }
 0x233   : > { %v2895_v54 = vadd.f32 %v2807_v50, %v2620_v36  ;;  %3460 = vmatmul.msk.f32.gmra.mxu2 %vm405_vm0, %v2119_v20  ;;  %v2071_v28 = vadd.f32 %v1987_v0, %v5008_v25  ;;  %v2672_v20 = vld [vmem:[#allocation2 + $0x1c9] sm:$0xff] }
 0x234   : > { %3493 = vmatmul.msk.f32.gmra.mxu3 %vm405_vm0, %v2394_v31 }
 0x235   : > { %2927 = vst.msk [vmem:[%s4654_s10 + $0x20] sm:$0xff] %vm405_vm0, %v2895_v54  ;;  %v2962_v41 = vsel %vm405_vm0, %v2895_v54, 0.0  ;;  %v3029_v16 = vmul.f32 %v2895_v54, %v2895_v54  ;;  %3428 = vmatmul.msk.f32.gmra.mxu1 %vm405_vm0, %v1844_v44  ;;  %3527 = vmatmul.msk.f32.gmra.mxu0 %vm405_vm0, %v2670_v52 }
 0x236   : > { %v2963_v1 = vadd.f32 %v2962_v41, %v2961_v32  ;;  %v2260_v47 = vpop.f32.mrf.mxu2 }
 0x237   : > { %v3064_v50 = vsel %vm405_vm0, %v3029_v16, 0.0  ;;  %v2346_v27 = vadd.f32 %v2260_v47, %v2070_v48  ;;  %v2535_v56 = vpop.f32.mrf.mxu3 }
 0x238   : > { %v3065_v57 = vadd.f32 %v3064_v50, %v3063_v62  ;;  %v2397_v50 = vld [vmem:[#allocation2 + $0x1c8] sm:$0xff] }
 0x239   : > { %v2621_v30 = vadd.f32 %v2535_v56, %v2346_v27 }
 0x23a   : > { %v1990_v49 = vpop.f32.mrf.mxu1  ;;  %v2816_v63 = vpop.f32.mrf.mxu0 }
 0x23b   : > { %v2896_v59 = vadd.f32 %v2810_v13, %v2621_v30  ;;  %3461 = vmatmul.msk.f32.gmra.mxu2 %vm405_vm0, %v2120_v14 }
 0x23c   : > { %3494 = vmatmul.msk.f32.gmra.mxu3 %vm405_vm0, %v2395_v40 }
 0x23d   : > { %2928 = vst.msk [vmem:[%s4654_s10 + $0x28] sm:$0xff] %vm405_vm0, %v2896_v59  ;;  %v2964_v3 = vsel %vm405_vm0, %v2896_v59, 0.0  ;;  %v3030_v46 = vmul.f32 %v2896_v59, %v2896_v59  ;;  %3429 = vmatmul.msk.f32.gmra.mxu1 %vm405_vm0, %v2669_v10  ;;  %3528 = vmatmul.msk.f32.gmra.mxu0 %vm405_vm0, %v2671_v58  ;;  %v5009_v10 = vld [vmem:[#allocation41_spill] sm:$0xff] }
 0x23e   : > { %v2965_v26 = vadd.f32 %v2964_v3, %v2963_v1  ;;  %v2263_v60 = vpop.f32.mrf.mxu2  ;;  %v2072_v31 = vadd.f32 %v1990_v49, %v5009_v10  ;;  %v2122_v1 = vld [vmem:[#allocation2 + $0x1c7] sm:$0xff] }
 0x23f   : > { %v3066_v13 = vsel %vm405_vm0, %v3030_v46, 0.0  ;;  %v2347_v29 = vadd.f32 %v2263_v60, %v2071_v28  ;;  %v2538_v5 = vpop.f32.mrf.mxu3 }
 0x240   : > { %v3067_v32 = vadd.f32 %v3066_v13, %v3065_v57  ;;  %v2673_v57 = vld [vmem:[#allocation2 + $0x1d1] sm:$0xff] }
 0x241   : > { %v2622_v11 = vadd.f32 %v2538_v5, %v2347_v29  ;;  %v2398_v13 = vld [vmem:[#allocation2 + $0x1d0] sm:$0xff] }
 0x242   : > { %v1993_v53 = vpop.f32.mrf.mxu1  ;;  %v2819_v62 = vpop.f32.mrf.mxu0 }
 0x243   : > { %v2897_v36 = vadd.f32 %v2813_v6, %v2622_v11  ;;  %3462 = vmatmul.msk.f32.gmra.mxu2 %vm405_vm0, %v2121_v38 }
 0x244   : > { %3495 = vmatmul.msk.f32.gmra.mxu3 %vm405_vm0, %v2396_v19 }
 0x245   : > { %2929 = vst.msk [vmem:[%s4654_s10 + $0x30] sm:$0xff] %vm405_vm0, %v2897_v36  ;;  %v2966_v0 = vsel %vm405_vm0, %v2897_v36, 0.0  ;;  %v3031_v44 = vmul.f32 %v2897_v36, %v2897_v36  ;;  %3430 = vmatmul.msk.f32.gmra.mxu1 %vm405_vm0, %v2670_v52  ;;  %3529 = vmatmul.msk.f32.gmra.mxu0 %vm405_vm0, %v2672_v20  ;;  %v5010_v52 = vld [vmem:[#allocation42_spill] sm:$0xff] }
 0x246   : > { %v2967_v54 = vadd.f32 %v2966_v0, %v2965_v26  ;;  %v2266_v55 = vpop.f32.mrf.mxu2  ;;  %v2073_v30 = vadd.f32 %v1993_v53, %v5010_v52  ;;  %v2123_v26 = vld [vmem:[#allocation2 + $0x1cf] sm:$0xff] }
 0x247   : > { %v3068_v6 = vsel %vm405_vm0, %v3031_v44, 0.0  ;;  %v2348_v48 = vadd.f32 %v2266_v55, %v2072_v31  ;;  %v2541_v41 = vpop.f32.mrf.mxu3  ;;  %v2124_v44 = vld [vmem:[#allocation2 + $0x1e7] sm:$0xff] }
 0x248   : > { %v3069_v16 = vadd.f32 %v3068_v6, %v3067_v32  ;;  %v2674_v32 = vld [vmem:[#allocation2 + $0x1e9] sm:$0xff] }
 0x249   : > { %v2623_v47 = vadd.f32 %v2541_v41, %v2348_v48  ;;  %v2675_v48 = vld [vmem:[#allocation2 + $0x1f1] sm:$0xff] }
 0x24a   : > { %v1996_v27 = vpop.f32.mrf.mxu1  ;;  %v2822_v56 = vpop.f32.mrf.mxu0 }
 0x24b   : > { %v2898_v14 = vadd.f32 %v2816_v63, %v2623_v47  ;;  %3463 = vmatmul.msk.f32.gmra.mxu2 %vm405_vm0, %v2122_v1 }
 0x24c   : > { %3496 = vmatmul.msk.f32.gmra.mxu3 %vm405_vm0, %v2397_v50 }
 0x24d   : > { %2930 = vst.msk [vmem:[%s4654_s10 + $0x38] sm:$0xff] %vm405_vm0, %v2898_v14  ;;  %v2968_v40 = vsel %vm405_vm0, %v2898_v14, 0.0  ;;  %v3032_v49 = vmul.f32 %v2898_v14, %v2898_v14  ;;  %3431 = vmatmul.msk.f32.gmra.mxu1 %vm405_vm0, %v2671_v58  ;;  %3530 = vmatmul.msk.f32.gmra.mxu0 %vm405_vm0, %v2673_v57  ;;  %v2074_v58 = vadd.f32 %v1996_v27, %v4429_v33  ;;  %v2399_v33 = vld [vmem:[#allocation2 + $0x1e8] sm:$0xff] }
 0x24e   : > { %v2969_v59 = vadd.f32 %v2968_v40, %v2967_v54  ;;  %v2269_v25 = vpop.f32.mrf.mxu2 }
 0x24f   : > { %v3070_v63 = vsel %vm405_vm0, %v3032_v49, 0.0  ;;  %v2349_v28 = vadd.f32 %v2269_v25, %v2073_v30  ;;  %v2544_v3 = vpop.f32.mrf.mxu3  ;;  %v2125_v30 = vld [vmem:[#allocation2 + $0x1ef] sm:$0xff] }
 0x250   : > { %v3071_v46 = vadd.f32 %v3070_v63, %v3069_v16  ;;  %v2676_v25 = vld [vmem:[#allocation2 + $0x209] sm:$0xff] }
 0x251   : > { %v2624_v60 = vadd.f32 %v2544_v3, %v2349_v28 }
 0x252   : > { %v1999_v29 = vpop.f32.mrf.mxu1  ;;  %v2825_v5 = vpop.f32.mrf.mxu0 }
 0x253   : > { %v2899_v38 = vadd.f32 %v2819_v62, %v2624_v60  ;;  %3464 = vmatmul.msk.f32.gmra.mxu2 %vm405_vm0, %v2123_v26 }
 0x254   : > { %3497 = vmatmul.msk.f32.gmra.mxu3 %vm405_vm0, %v2398_v13 }
 0x255   : > { %2931 = vst.msk [vmem:[%s4654_s10 + $0x40] sm:$0xff] %vm405_vm0, %v2899_v38  ;;  %v2970_v11 = vsel %vm405_vm0, %v2899_v38, 0.0  ;;  %v3033_v19 = vmul.f32 %v2899_v38, %v2899_v38  ;;  %3432 = vmatmul.msk.f32.gmra.mxu1 %vm405_vm0, %v2672_v20  ;;  %3531 = vmatmul.msk.f32.gmra.mxu0 %vm405_vm0, %v2674_v32  ;;  %v2075_v20 = vadd.f32 %v1999_v29, %v4438_v34  ;;  %v2400_v34 = vld [vmem:[#allocation2 + $0x1f0] sm:$0xff]  ;;  %v2126_v38 = vld [vmem:[#allocation2 + $0x207] sm:$0xff] }
 0x256   : > { %v2971_v53 = vadd.f32 %v2970_v11, %v2969_v59  ;;  %v2272_v36 = vpop.f32.mrf.mxu2 }
 0x257   : > { %v3072_v62 = vsel %vm405_vm0, %v3033_v19, 0.0  ;;  %v2350_v10 = vadd.f32 %v2272_v36, %v2074_v58  ;;  %v2547_v31 = vpop.f32.mrf.mxu3 }
 0x258   : > { %v3073_v0 = vadd.f32 %v3072_v62, %v3071_v46 }
 0x259   : > { %v2625_v54 = vadd.f32 %v2547_v31, %v2350_v10 }
 0x25a   : > { %v2002_v55 = vpop.f32.mrf.mxu1  ;;  %v2828_v6 = vpop.f32.mrf.mxu0 }
 0x25b   : > { %v2900_v41 = vadd.f32 %v2822_v56, %v2625_v54  ;;  %3465 = vmatmul.msk.f32.gmra.mxu2 %vm405_vm0, %v2124_v44 }
 0x25c   : > { %3498 = vmatmul.msk.f32.gmra.mxu3 %vm405_vm0, %v2399_v33 }
 0x25d   : > { %2932 = vst.msk [vmem:[%s4654_s10 + $0x48] sm:$0xff] %vm405_vm0, %v2900_v41  ;;  %v2972_v16 = vsel %vm405_vm0, %v2900_v41, 0.0  ;;  %v3034_v1 = vmul.f32 %v2900_v41, %v2900_v41  ;;  %3433 = vmatmul.msk.f32.gmra.mxu1 %vm405_vm0, %v2673_v57  ;;  %3532 = vmatmul.msk.f32.gmra.mxu0 %vm405_vm0, %v2675_v48  ;;  %v2076_v57 = vadd.f32 %v2002_v55, %v4446_v4  ;;  %v2401_v4 = vld [vmem:[#allocation2 + $0x208] sm:$0xff] }
 0x25e   : > { %v2973_v47 = vadd.f32 %v2972_v16, %v2971_v53  ;;  %v2275_v50 = vpop.f32.mrf.mxu2  ;;  %v2677_v53 = vld [vmem:[#allocation2 + $0x211] sm:$0xff] }
 0x25f   : > { %v3074_v27 = vsel %vm405_vm0, %v3034_v1, 0.0  ;;  %v2351_v56 = vadd.f32 %v2275_v50, %v2075_v20  ;;  %v2550_v14 = vpop.f32.mrf.mxu3  ;;  %v2678_v1 = vld [vmem:[#allocation2 + $0x229] sm:$0xff] }
 0x260   : > { %v3075_v52 = vadd.f32 %v3074_v27, %v3073_v0 }
 0x261   : > { %v2626_v40 = vadd.f32 %v2550_v14, %v2351_v56 }
 0x262   : > { %v2005_v49 = vpop.f32.mrf.mxu1  ;;  %v2831_v59 = vpop.f32.mrf.mxu0 }
 0x263   : > { %v2901_v63 = vadd.f32 %v2825_v5, %v2626_v40  ;;  %3466 = vmatmul.msk.f32.gmra.mxu2 %vm405_vm0, %v2125_v30 }
 0x264   : > { %3499 = vmatmul.msk.f32.gmra.mxu3 %vm405_vm0, %v2400_v34 }
 0x265   : > { %2933 = vst.msk [vmem:[%s4654_s10 + $0x50] sm:$0xff] %vm405_vm0, %v2901_v63  ;;  %v2974_v28 = vsel %vm405_vm0, %v2901_v63, 0.0  ;;  %v3035_v3 = vmul.f32 %v2901_v63, %v2901_v63  ;;  %3434 = vmatmul.msk.f32.gmra.mxu1 %vm405_vm0, %v2674_v32  ;;  %3533 = vmatmul.msk.f32.gmra.mxu0 %vm405_vm0, %v2676_v25  ;;  %v2077_v32 = vadd.f32 %v2005_v49, %v4454_v7  ;;  %v2402_v7 = vld [vmem:[#allocation2 + $0x210] sm:$0xff]  ;;  %v2128_v49 = vld [vmem:[#allocation2 + $0x227] sm:$0xff] }
 0x266   : > { %v2975_v46 = vadd.f32 %v2974_v28, %v2973_v47  ;;  %v2278_v26 = vpop.f32.mrf.mxu2  ;;  %v2679_v28 = vld [vmem:[#allocation2 + $0x231] sm:$0xff] }
 0x267   : > { %v3076_v60 = vsel %vm405_vm0, %v3035_v3, 0.0  ;;  %v2352_v13 = vadd.f32 %v2278_v26, %v2076_v57  ;;  %v2553_v29 = vpop.f32.mrf.mxu3 }
 0x268   : > { %v3077_v5 = vadd.f32 %v3076_v60, %v3075_v52 }
 0x269   : > { %v2627_v58 = vadd.f32 %v2553_v29, %v2352_v13 }
 0x26a   : > { %v2008_v11 = vpop.f32.mrf.mxu1  ;;  %v2834_v19 = vpop.f32.mrf.mxu0 }
 0x26b   : > { %v2902_v36 = vadd.f32 %v2828_v6, %v2627_v58  ;;  %3467 = vmatmul.msk.f32.gmra.mxu2 %vm405_vm0, %v2126_v38  ;;  %v2127_v6 = vld [vmem:[#allocation2 + $0x20f] sm:$0xff] }
 0x26c   : > { %3500 = vmatmul.msk.f32.gmra.mxu3 %vm405_vm0, %v2401_v4  ;;  %v2129_v4 = vld [vmem:[#allocation2 + $0x22f] sm:$0xff] }
 0x26d   : > { %2934 = vst.msk [vmem:[%s4654_s10 + $0x58] sm:$0xff] %vm405_vm0, %v2902_v36  ;;  %v2976_v62 = vsel %vm405_vm0, %v2902_v36, 0.0  ;;  %v3036_v10 = vmul.f32 %v2902_v36, %v2902_v36  ;;  %3435 = vmatmul.msk.f32.gmra.mxu1 %vm405_vm0, %v2675_v48  ;;  %3534 = vmatmul.msk.f32.gmra.mxu0 %vm405_vm0, %v2677_v53  ;;  %v2078_v48 = vadd.f32 %v2008_v11, %v4461_v39  ;;  %v2403_v39 = vld [vmem:[#allocation2 + $0x228] sm:$0xff] }
 0x26e   : > { %v2977_v31 = vadd.f32 %v2976_v62, %v2975_v46  ;;  %v2281_v0 = vpop.f32.mrf.mxu2 }
 0x26f   : > { %v3078_v44 = vsel %vm405_vm0, %v3036_v10, 0.0  ;;  %v2353_v54 = vadd.f32 %v2281_v0, %v2077_v32  ;;  %v2556_v33 = vpop.f32.mrf.mxu3 }
 0x270   : > { %v3079_v55 = vadd.f32 %v3078_v44, %v3077_v5 }
 0x271   : > { %v2628_v41 = vadd.f32 %v2556_v33, %v2353_v54 }
 0x272   : > { %v2011_v20 = vpop.f32.mrf.mxu1  ;;  %v2837_v16 = vpop.f32.mrf.mxu0 }
 0x273   : > { %v2903_v47 = vadd.f32 %v2831_v59, %v2628_v41  ;;  %3468 = vmatmul.msk.f32.gmra.mxu2 %vm405_vm0, %v2127_v6 }
 0x274   : > { %3501 = vmatmul.msk.f32.gmra.mxu3 %vm405_vm0, %v2402_v7 }
 0x275   : > { %2935 = vst.msk [vmem:[%s4654_s10 + $0x60] sm:$0xff] %vm405_vm0, %v2903_v47  ;;  %v2978_v50 = vsel %vm405_vm0, %v2903_v47, 0.0  ;;  %v3037_v27 = vmul.f32 %v2903_v47, %v2903_v47  ;;  %3436 = vmatmul.msk.f32.gmra.mxu1 %vm405_vm0, %v2676_v25  ;;  %3535 = vmatmul.msk.f32.gmra.mxu0 %vm405_vm0, %v2678_v1  ;;  %v2079_v25 = vadd.f32 %v2011_v20, %v4468_v22  ;;  %v2404_v22 = vld [vmem:[#allocation2 + $0x230] sm:$0xff] }
 0x276   : > { %v2979_v56 = vadd.f32 %v2978_v50, %v2977_v31  ;;  %v2284_v14 = vpop.f32.mrf.mxu2 }
 0x277   : > { %v3080_v52 = vsel %vm405_vm0, %v3037_v27, 0.0  ;;  %v2354_v30 = vadd.f32 %v2284_v14, %v2078_v48  ;;  %v2559_v40 = vpop.f32.mrf.mxu3 }
 0x278   : > { %v3081_v34 = vadd.f32 %v3080_v52, %v3079_v55 }
 0x279   : > { %v2629_v59 = vadd.f32 %v2559_v40, %v2354_v30 }
 0x27a   : > { %v2014_v63 = vpop.f32.mrf.mxu1  ;;  %v2840_v57 = vpop.f32.mrf.mxu0 }
 0x27b   : > { %v2904_v3 = vadd.f32 %v2834_v19, %v2629_v59  ;;  %3469 = vmatmul.msk.f32.gmra.mxu2 %vm405_vm0, %v2128_v49 }
 0x27c   : > { %3502 = vmatmul.msk.f32.gmra.mxu3 %vm405_vm0, %v2403_v39 }
 0x27d   : > { %2936 = vst.msk [vmem:[%s4654_s10 + $0x68] sm:$0xff] %vm405_vm0, %v2904_v3  ;;  %v2980_v46 = vsel %vm405_vm0, %v2904_v3, 0.0  ;;  %v3038_v26 = vmul.f32 %v2904_v3, %v2904_v3  ;;  %3437 = vmatmul.msk.f32.gmra.mxu1 %vm405_vm0, %v2677_v53  ;;  %3536 = vmatmul.msk.f32.gmra.mxu0 %vm405_vm0, %v2679_v28  ;;  %v2080_v53 = vadd.f32 %v2014_v63, %v4477_v45 }
 0x27e   : > { %v2981_v60 = vadd.f32 %v2980_v46, %v2979_v56  ;;  %v2287_v13 = vpop.f32.mrf.mxu2 }
 0x27f   : > { %v3082_v29 = vsel %vm405_vm0, %v3038_v26, 0.0  ;;  %v2355_v5 = vadd.f32 %v2287_v13, %v2079_v25  ;;  %v2562_v38 = vpop.f32.mrf.mxu3 }
 0x280   : > { %v3083_v58 = vadd.f32 %v3082_v29, %v3081_v34 }
 0x281   : > { %v2630_v11 = vadd.f32 %v2562_v38, %v2355_v5 }
 0x282   : > { %v2017_v19 = vpop.f32.mrf.mxu1  ;;  %v2843_v36 = vpop.f32.mrf.mxu0 }
 0x283   : > { %v2905_v32 = vadd.f32 %v2837_v16, %v2630_v11  ;;  %3470 = vmatmul.msk.f32.gmra.mxu2 %vm405_vm0, %v2129_v4  ;;  %v2081_v16 = vadd.f32 %v2017_v19, %v4487_v15 }
 0x284   : > { %3503 = vmatmul.msk.f32.gmra.mxu3 %vm405_vm0, %v2404_v22 }
 0x285   : > { %2937 = vst.msk [vmem:[%s4654_s10 + $0x70] sm:$0xff] %vm405_vm0, %v2905_v32  ;;  %v2982_v62 = vsel %vm405_vm0, %v2905_v32, 0.0  ;;  %v3039_v10 = vmul.f32 %v2905_v32, %v2905_v32 }
 0x286   : > { %v2983_v31 = vadd.f32 %v2982_v62, %v2981_v60  ;;  %v2290_v0 = vpop.f32.mrf.mxu2 }
 0x287   : > { %v3084_v44 = vsel %vm405_vm0, %v3039_v10, 0.0  ;;  %v2356_v54 = vadd.f32 %v2290_v0, %v2080_v53  ;;  %v2565_v33 = vpop.f32.mrf.mxu3 }
 0x288   : > { %v3085_v55 = vadd.f32 %v3084_v44, %v3083_v58 }
 0x289   : > { %v2631_v6 = vadd.f32 %v2565_v33, %v2356_v54 }
 0x28a   : > { %v2020_v41 = vpop.f32.mrf.mxu1  ;;  %v2846_v7 = vpop.f32.mrf.mxu0 }
 0x28b   : > { %v2906_v20 = vadd.f32 %v2840_v57, %v2631_v6  ;;  %v2082_v49 = vadd.f32 %v2020_v41, %v4497_v2 }
 0x28d   : > { %2938 = vst.msk [vmem:[%s4654_s10 + $0x78] sm:$0xff] %vm405_vm0, %v2906_v20  ;;  %v2984_v45 = vsel %vm405_vm0, %v2906_v20, 0.0  ;;  %v3040_v1 = vmul.f32 %v2906_v20, %v2906_v20 }
 0x28e   : > { %v2985_v47 = vadd.f32 %v2984_v45, %v2983_v31  ;;  %v2293_v48 = vpop.f32.mrf.mxu2 }
 0x28f   : > { %v3086_v50 = vsel %vm405_vm0, %v3040_v1, 0.0  ;;  %v2357_v27 = vadd.f32 %v2293_v48, %v2081_v16  ;;  %v2568_v56 = vpop.f32.mrf.mxu3 }
 0x290   : > { %v3087_v14 = vadd.f32 %v3086_v50, %v3085_v55 }
 0x291   : > { %v2632_v52 = vadd.f32 %v2568_v56, %v2357_v27 }
 0x292   : > { %v2023_v30 = vpop.f32.mrf.mxu1  ;;  %v2849_v40 = vpop.f32.mrf.mxu0 }
 0x293   : > { %v2907_v34 = vadd.f32 %v2843_v36, %v2632_v52  ;;  %v2083_v29 = vadd.f32 %v2023_v30, %v4508_v24 }
 0x295   : > { %2939 = vst.msk [vmem:[%s4654_s10 + $0x80] sm:$0xff] %vm405_vm0, %v2907_v34  ;;  %v2986_v15 = vsel %vm405_vm0, %v2907_v34, 0.0  ;;  %v3041_v59 = vmul.f32 %v2907_v34, %v2907_v34 }
 0x296   : > { %v2987_v39 = vadd.f32 %v2986_v15, %v2985_v47  ;;  %v2296_v63 = vpop.f32.mrf.mxu2 }
 0x297   : > { %v3088_v57 = vsel %vm405_vm0, %v3041_v59, 0.0  ;;  %v2358_v28 = vadd.f32 %v2296_v63, %v2082_v49  ;;  %v2571_v3 = vpop.f32.mrf.mxu3 }
 0x298   : > { %v3089_v25 = vadd.f32 %v3088_v57, %v3087_v14 }
 0x299   : > { %v2633_v46 = vadd.f32 %v2571_v3, %v2358_v28 }
 0x29a   : > { %v2026_v26 = vpop.f32.mrf.mxu1  ;;  %v2852_v60 = vpop.f32.mrf.mxu0 }
 0x29b   : > { %v2908_v13 = vadd.f32 %v2846_v7, %v2633_v46  ;;  %v2084_v10 = vadd.f32 %v2026_v26, %v4519_v21 }
 0x29d   : > { %2940 = vst.msk [vmem:[%s4654_s10 + $0x88] sm:$0xff] %vm405_vm0, %v2908_v13  ;;  %v2988_v2 = vsel %vm405_vm0, %v2908_v13, 0.0  ;;  %v3042_v5 = vmul.f32 %v2908_v13, %v2908_v13 }
 0x29e   : > { %v2989_v38 = vadd.f32 %v2988_v2, %v2987_v39  ;;  %v2299_v58 = vpop.f32.mrf.mxu2 }
 0x29f   : > { %v3090_v4 = vsel %vm405_vm0, %v3042_v5, 0.0  ;;  %v2359_v11 = vadd.f32 %v2299_v58, %v2083_v29  ;;  %v2574_v22 = vpop.f32.mrf.mxu3 }
 0x2a0   : > { %v3091_v19 = vadd.f32 %v3090_v4, %v3089_v25 }
 0x2a1   : > { %v2634_v36 = vadd.f32 %v2574_v22, %v2359_v11 }
 0x2a2   : > { %v2029_v32 = vpop.f32.mrf.mxu1  ;;  %v2855_v53 = vpop.f32.mrf.mxu0 }
 0x2a3   : > { %v2909_v62 = vadd.f32 %v2849_v40, %v2634_v36  ;;  %v2085_v45 = vadd.f32 %v2029_v32, %v4529_v8 }
 0x2a5   : > { %2941 = vst.msk [vmem:[%s4654_s10 + $0x90] sm:$0xff] %vm405_vm0, %v2909_v62  ;;  %v2990_v24 = vsel %vm405_vm0, %v2909_v62, 0.0  ;;  %v3043_v31 = vmul.f32 %v2909_v62, %v2909_v62 }
 0x2a6   : > { %v2991_v0 = vadd.f32 %v2990_v24, %v2989_v38  ;;  %v2302_v44 = vpop.f32.mrf.mxu2 }
 0x2a7   : > { %v3092_v54 = vsel %vm405_vm0, %v3043_v31, 0.0  ;;  %v2360_v33 = vadd.f32 %v2302_v44, %v2084_v10  ;;  %v2577_v55 = vpop.f32.mrf.mxu3 }
 0x2a8   : > { %v3093_v6 = vadd.f32 %v3092_v54, %v3091_v19 }
 0x2a9   : > { %v2635_v41 = vadd.f32 %v2577_v55, %v2360_v33 }
 0x2aa   : > { %v2032_v7 = vpop.f32.mrf.mxu1  ;;  %v2858_v20 = vpop.f32.mrf.mxu0 }
 0x2ab   : > { %v2910_v16 = vadd.f32 %v2852_v60, %v2635_v41  ;;  %v2086_v49 = vadd.f32 %v2032_v7, %v4539_v9 }
 0x2ad   : > { %2942 = vst.msk [vmem:[%s4654_s10 + $0x98] sm:$0xff] %vm405_vm0, %v2910_v16  ;;  %v2992_v21 = vsel %vm405_vm0, %v2910_v16, 0.0  ;;  %v3044_v1 = vmul.f32 %v2910_v16, %v2910_v16 }
 0x2ae   : > { %v2993_v47 = vadd.f32 %v2992_v21, %v2991_v0  ;;  %v2305_v48 = vpop.f32.mrf.mxu2 }
 0x2af   : > { %v3094_v50 = vsel %vm405_vm0, %v3044_v1, 0.0  ;;  %v2361_v27 = vadd.f32 %v2305_v48, %v2085_v45  ;;  %v2580_v56 = vpop.f32.mrf.mxu3 }
 0x2b0   : > { %v3095_v14 = vadd.f32 %v3094_v50, %v3093_v6 }
 0x2b1   : > { %v2636_v52 = vadd.f32 %v2580_v56, %v2361_v27 }
 0x2b2   : > { %v2035_v30 = vpop.f32.mrf.mxu1  ;;  %v2861_v40 = vpop.f32.mrf.mxu0 }
 0x2b3   : > { %v2911_v34 = vadd.f32 %v2855_v53, %v2636_v52  ;;  %v2087_v13 = vadd.f32 %v2035_v30, %v4549_v37 }
 0x2b5   : > { %2943 = vst.msk [vmem:[%s4654_s10 + $0xa0] sm:$0xff] %vm405_vm0, %v2911_v34  ;;  %v2994_v8 = vsel %vm405_vm0, %v2911_v34, 0.0  ;;  %v3045_v15 = vmul.f32 %v2911_v34, %v2911_v34 }
 0x2b6   : > { %v2995_v59 = vadd.f32 %v2994_v8, %v2993_v47  ;;  %v2308_v39 = vpop.f32.mrf.mxu2 }
 0x2b7   : > { %v3096_v63 = vsel %vm405_vm0, %v3045_v15, 0.0  ;;  %v2362_v57 = vadd.f32 %v2308_v39, %v2086_v49  ;;  %v2583_v28 = vpop.f32.mrf.mxu3 }
 0x2b8   : > { %v3097_v3 = vadd.f32 %v3096_v63, %v3095_v14 }
 0x2b9   : > { %v2637_v25 = vadd.f32 %v2583_v28, %v2362_v57 }
 0x2ba   : > { %v2038_v46 = vpop.f32.mrf.mxu1  ;;  %v2864_v26 = vpop.f32.mrf.mxu0 }
 0x2bb   : > { %v2912_v60 = vadd.f32 %v2858_v20, %v2637_v25  ;;  %v2088_v53 = vadd.f32 %v2038_v46, %v4559_v43 }
 0x2bd   : > { %2944 = vst.msk [vmem:[%s4654_s10 + $0xa8] sm:$0xff] %vm405_vm0, %v2912_v60  ;;  %v2996_v9 = vsel %vm405_vm0, %v2912_v60, 0.0  ;;  %v3046_v29 = vmul.f32 %v2912_v60, %v2912_v60 }
 0x2be   : > { %v2997_v2 = vadd.f32 %v2996_v9, %v2995_v59  ;;  %v2311_v5 = vpop.f32.mrf.mxu2 }
 0x2bf   : > { %v3098_v38 = vsel %vm405_vm0, %v3046_v29, 0.0  ;;  %v2363_v58 = vadd.f32 %v2311_v5, %v2087_v13  ;;  %v2586_v4 = vpop.f32.mrf.mxu3 }
 0x2c0   : > { %v3099_v11 = vadd.f32 %v3098_v38, %v3097_v3 }
 0x2c1   : > { %v2638_v22 = vadd.f32 %v2586_v4, %v2363_v58 }
 0x2c2   : > { %v2041_v19 = vpop.f32.mrf.mxu1  ;;  %v2867_v36 = vpop.f32.mrf.mxu0 }
 0x2c3   : > { %v2913_v32 = vadd.f32 %v2861_v40, %v2638_v22  ;;  %v2089_v7 = vadd.f32 %v2041_v19, %v4569_v35 }
 0x2c5   : > { %2945 = vst.msk [vmem:[%s4654_s10 + $0xb0] sm:$0xff] %vm405_vm0, %v2913_v32  ;;  %v2998_v37 = vsel %vm405_vm0, %v2913_v32, 0.0  ;;  %v3047_v62 = vmul.f32 %v2913_v32, %v2913_v32 }
 0x2c6   : > { %v2999_v10 = vadd.f32 %v2998_v37, %v2997_v2  ;;  %v2314_v24 = vpop.f32.mrf.mxu2 }
 0x2c7   : > { %v3100_v31 = vsel %vm405_vm0, %v3047_v62, 0.0  ;;  %v2364_v0 = vadd.f32 %v2314_v24, %v2088_v53  ;;  %v2589_v44 = vpop.f32.mrf.mxu3 }
 0x2c8   : > { %v3101_v54 = vadd.f32 %v3100_v31, %v3099_v11 }
 0x2c9   : > { %v2639_v33 = vadd.f32 %v2589_v44, %v2364_v0 }
 0x2ca   : > { %v2044_v55 = vpop.f32.mrf.mxu1  ;;  %v2870_v41 = vpop.f32.mrf.mxu0 }
 0x2cb   : > { %v2914_v6 = vadd.f32 %v2864_v26, %v2639_v33  ;;  %v2090_v14 = vadd.f32 %v2044_v55, %v4579_v23 }
 0x2cd   : > { %2946 = vst.msk [vmem:[%s4654_s10 + $0xb8] sm:$0xff] %vm405_vm0, %v2914_v6  ;;  %v3000_v43 = vsel %vm405_vm0, %v2914_v6, 0.0  ;;  %v3048_v20 = vmul.f32 %v2914_v6, %v2914_v6 }
 0x2ce   : > { %v3001_v16 = vadd.f32 %v3000_v43, %v2999_v10  ;;  %v2317_v45 = vpop.f32.mrf.mxu2 }
 0x2cf   : > { %v3102_v21 = vsel %vm405_vm0, %v3048_v20, 0.0  ;;  %v2365_v1 = vadd.f32 %v2317_v45, %v2089_v7  ;;  %v2592_v47 = vpop.f32.mrf.mxu3 }
 0x2d0   : > { %v3103_v48 = vadd.f32 %v3102_v21, %v3101_v54 }
 0x2d1   : > { %v2640_v50 = vadd.f32 %v2592_v47, %v2365_v1 }
 0x2d2   : > { %v2047_v27 = vpop.f32.mrf.mxu1  ;;  %v2873_v34 = vpop.f32.mrf.mxu0 }
 0x2d3   : > { %v2915_v56 = vadd.f32 %v2867_v36, %v2640_v50  ;;  %v2091_v28 = vadd.f32 %v2047_v27, %v4589_v61 }
 0x2d5   : > { %2947 = vst.msk [vmem:[%s4654_s10 + $0xc0] sm:$0xff] %vm405_vm0, %v2915_v56  ;;  %v3002_v35 = vsel %vm405_vm0, %v2915_v56, 0.0  ;;  %v3049_v52 = vmul.f32 %v2915_v56, %v2915_v56 }
 0x2d6   : > { %v3003_v30 = vadd.f32 %v3002_v35, %v3001_v16  ;;  %v2320_v40 = vpop.f32.mrf.mxu2 }
 0x2d7   : > { %v3104_v49 = vsel %vm405_vm0, %v3049_v52, 0.0  ;;  %v2366_v8 = vadd.f32 %v2320_v40, %v2090_v14  ;;  %v2595_v15 = vpop.f32.mrf.mxu3 }
 0x2d8   : > { %v3105_v59 = vadd.f32 %v3104_v49, %v3103_v48 }
 0x2d9   : > { %v2641_v39 = vadd.f32 %v2595_v15, %v2366_v8 }
 0x2da   : > { %v2050_v63 = vpop.f32.mrf.mxu1  ;;  %v2876_v29 = vpop.f32.mrf.mxu0 }
 0x2db   : > { %v2916_v57 = vadd.f32 %v2870_v41, %v2641_v39  ;;  %v2092_v58 = vadd.f32 %v2050_v63, %v4599_v12 }
 0x2dd   : > { %2948 = vst.msk [vmem:[%s4654_s10 + $0xc8] sm:$0xff] %vm405_vm0, %v2916_v57  ;;  %v3004_v23 = vsel %vm405_vm0, %v2916_v57, 0.0  ;;  %v3050_v3 = vmul.f32 %v2916_v57, %v2916_v57 }
 0x2de   : > { %v3005_v25 = vadd.f32 %v3004_v23, %v3003_v30  ;;  %v2323_v46 = vpop.f32.mrf.mxu2 }
 0x2df   : > { %v3106_v26 = vsel %vm405_vm0, %v3050_v3, 0.0  ;;  %v2367_v60 = vadd.f32 %v2323_v46, %v2091_v28  ;;  %v2598_v13 = vpop.f32.mrf.mxu3 }
 0x2e0   : > { %v3107_v9 = vadd.f32 %v3106_v26, %v3105_v59 }
 0x2e1   : > { %v2642_v2 = vadd.f32 %v2598_v13, %v2367_v60 }
 0x2e2   : > { %v2053_v38 = vpop.f32.mrf.mxu1  ;;  %v2879_v62 = vpop.f32.mrf.mxu0 }
 0x2e3   : > { %v2917_v5 = vadd.f32 %v2873_v34, %v2642_v2  ;;  %v2093_v24 = vadd.f32 %v2053_v38, %v4609_v18 }
 0x2e5   : > { %2949 = vst.msk [vmem:[%s4654_s10 + $0xd0] sm:$0xff] %vm405_vm0, %v2917_v5  ;;  %v3006_v61 = vsel %vm405_vm0, %v2917_v5, 0.0  ;;  %v3051_v4 = vmul.f32 %v2917_v5, %v2917_v5 }
 0x2e6   : > { %v3007_v11 = vadd.f32 %v3006_v61, %v3005_v25  ;;  %v2326_v22 = vpop.f32.mrf.mxu2 }
 0x2e7   : > { %v3108_v19 = vsel %vm405_vm0, %v3051_v4, 0.0  ;;  %v2368_v36 = vadd.f32 %v2326_v22, %v2092_v58  ;;  %v2601_v32 = vpop.f32.mrf.mxu3 }
 0x2e8   : > { %v3109_v53 = vadd.f32 %v3108_v19, %v3107_v9 }
 0x2e9   : > { %v2643_v37 = vadd.f32 %v2601_v32, %v2368_v36 }
 0x2ea   : > { %v2056_v54 = vpop.f32.mrf.mxu1  ;;  %v2882_v20 = vpop.f32.mrf.mxu0 }
 0x2eb   : > { %v2918_v10 = vadd.f32 %v2876_v29, %v2643_v37  ;;  %v2094_v16 = vadd.f32 %v2056_v54, %v4619_v42 }
 0x2ed   : > { %2950 = vst.msk [vmem:[%s4654_s10 + $0xd8] sm:$0xff] %vm405_vm0, %v2918_v10  ;;  %v3008_v12 = vsel %vm405_vm0, %v2918_v10, 0.0  ;;  %v3052_v31 = vmul.f32 %v2918_v10, %v2918_v10 }
 0x2ee   : > { %v3009_v0 = vadd.f32 %v3008_v12, %v3007_v11  ;;  %v2329_v44 = vpop.f32.mrf.mxu2 }
 0x2ef   : > { %v3110_v33 = vsel %vm405_vm0, %v3052_v31, 0.0  ;;  %v2369_v55 = vadd.f32 %v2329_v44, %v2093_v24  ;;  %v2604_v6 = vpop.f32.mrf.mxu3 }
 0x2f0   : > { %v3111_v41 = vadd.f32 %v3110_v33, %v3109_v53 }
 0x2f1   : > { %v2644_v7 = vadd.f32 %v2604_v6, %v2369_v55 }
 0x2f2   : > { %v2059_v56 = vpop.f32.mrf.mxu1  ;;  %v2885_v49 = vpop.f32.mrf.mxu0 }
 0x2f3   : > { %v2919_v43 = vadd.f32 %v2879_v62, %v2644_v7  ;;  %v2095_v52 = vadd.f32 %v2059_v56, %v4629_v51 }
 0x2f5   : > { %2951 = vst.msk [vmem:[%s4654_s10 + $0xe0] sm:$0xff] %vm405_vm0, %v2919_v43  ;;  %v3010_v18 = vsel %vm405_vm0, %v2919_v43, 0.0  ;;  %v3053_v45 = vmul.f32 %v2919_v43, %v2919_v43 }
 0x2f6   : > { %v3011_v21 = vadd.f32 %v3010_v18, %v3009_v0  ;;  %v2332_v1 = vpop.f32.mrf.mxu2 }
 0x2f7   : > { %v3112_v47 = vsel %vm405_vm0, %v3053_v45, 0.0  ;;  %v2370_v48 = vadd.f32 %v2332_v1, %v2094_v16  ;;  %v2607_v50 = vpop.f32.mrf.mxu3 }
 0x2f8   : > { %v3113_v27 = vadd.f32 %v3112_v47, %v3111_v41 }
 0x2f9   : > { %v2645_v14 = vadd.f32 %v2607_v50, %v2370_v48 }
 0x2fa   : > { %v2062_v57 = vpop.f32.mrf.mxu1  ;;  %v2888_v29 = vpop.f32.mrf.mxu0 }
 0x2fb   : > { %v2920_v35 = vadd.f32 %v2882_v20, %v2645_v14  ;;  %v2096_v23 = vadd.f32 %v2062_v57, %v4639_v17 }
 0x2fd   : > { %2952 = vst.msk [vmem:[%s4654_s10 + $0xe8] sm:$0xff] %vm405_vm0, %v2920_v35  ;;  %v3012_v42 = vsel %vm405_vm0, %v2920_v35, 0.0  ;;  %v3054_v30 = vmul.f32 %v2920_v35, %v2920_v35 }
 0x2fe   : > { %v3013_v40 = vadd.f32 %v3012_v42, %v3011_v21  ;;  %v2335_v34 = vpop.f32.mrf.mxu2 }
 0x2ff   : > { %v3114_v8 = vsel %vm405_vm0, %v3054_v30, 0.0  ;;  %v2371_v15 = vadd.f32 %v2335_v34, %v2095_v52  ;;  %v2610_v59 = vpop.f32.mrf.mxu3 }
 0x300   : > { %v3115_v39 = vadd.f32 %v3114_v8, %v3113_v27 }
 0x301   : > { %v2646_v63 = vadd.f32 %v2610_v59, %v2371_v15 }
 0x303   : > { %v2921_v28 = vadd.f32 %v2885_v49, %v2646_v63 }
 0x305   : > { %2953 = vst.msk [vmem:[%s4654_s10 + $0xf0] sm:$0xff] %vm405_vm0, %v2921_v28  ;;  %v3014_v51 = vsel %vm405_vm0, %v2921_v28, 0.0  ;;  %v3055_v3 = vmul.f32 %v2921_v28, %v2921_v28 }
 0x306   : > { %v3015_v25 = vadd.f32 %v3014_v51, %v3013_v40  ;;  %v2338_v46 = vpop.f32.mrf.mxu2 }
 0x307   : > { %v3116_v26 = vsel %vm405_vm0, %v3055_v3, 0.0  ;;  %v2372_v60 = vadd.f32 %v2338_v46, %v2096_v23  ;;  %v2613_v13 = vpop.f32.mrf.mxu3 }
 0x308   : > { %v3117_v9 = vadd.f32 %v3116_v26, %v3115_v39 }
 0x309   : > { %v2647_v2 = vadd.f32 %v2613_v13, %v2372_v60 }
 0x30b   : > { %v2922_v5 = vadd.f32 %v2888_v29, %v2647_v2 }
 0x30d   : > { %2954 = vst.msk [vmem:[%s4654_s10 + $0xf8] sm:$0xff] %vm405_vm0, %v2922_v5  ;;  %v3016_v17 = vsel %vm405_vm0, %v2922_v5, 0.0  ;;  %v3056_v38 = vmul.f32 %v2922_v5, %v2922_v5 }
 0x30e   : > { %v3017_v58 = vadd.f32 %v3016_v17, %v3015_v25 }
 0x30f   : > { %v3118_v61 = vsel %vm405_vm0, %v3056_v38, 0.0 }
 0x310   : > { %v3018_v4 = vrot.slane %v3017_v58, 4  ;;  %v3119_v11 = vadd.f32 %v3118_v61, %v3117_v9 }
 0x312   : > { %v3019_v22 = vadd.f32 %v3018_v4, %v3017_v58  ;;  %v3120_v19 = vrot.slane %v3119_v11, 4 }
 0x314   : > { %v3020_v36 = vrot.slane %v3019_v22, 2  ;;  %v3121_v32 = vadd.f32 %v3120_v19, %v3119_v11 }
 0x316   : > { %v3021_v53 = vadd.f32 %v3020_v36, %v3019_v22  ;;  %v3122_v37 = vrot.slane %v3121_v32, 2 }
 0x318   : > { %v3022_v62 = vrot.slane %v3021_v53, 1  ;;  %v3123_v10 = vadd.f32 %v3122_v37, %v3121_v32 }
 0x31a   : > { %v3023_v24 = vadd.f32 %v3022_v62, %v3021_v53  ;;  %v3124_v12 = vrot.slane %v3123_v10, 1 }
 0x31c   : > { %3024 = vst.msk [vmem:[%s265_s12] sm:$0x1] %vm409_vm1, %v3023_v24  ;;  %v3125_v31 = vadd.f32 %v3124_v12, %v3123_v10 }
 0x31e   : > { %3126 = vst.msk [vmem:[%s268_s15] sm:$0x1] %vm409_vm1, %v3125_v31 }
 0x31f PF: > { %s17_s21 = sadd.s32 1, %s3563_s21  }
 0x320   : > { %p14_p4 = scmp.ge.s32.totalorder %s17_s21, 4  }
 0x322   :  { %16 = sbr.rel (!%p14_p4) target bundleno = 1 (0x1), region = 100 }

// kernel: intermediate_forward.12
= control target key start
LH: loop header
LB: loop body
LE: loop exit
PB: predicated region body
PF: predicated region fallthrough
CT: control target
= control target key end

     0   :  { %s3468_s15 = smov 0   ;;  %s4709_s0 = inlined_call_operand.vmem [shape: f32[2,16,16,4], index: 0, kind: input, shape index: {}]   ;;  %s4710_s1 = inlined_call_operand.vmem [shape: f32[3,3,4,8], index: 1, kind: input, shape index: {}]   ;;  %s4711_s2 = inlined_call_operand.vmem [shape: f32[2,16,16,8], index: 2, kind: output, shape index: {0}]   ;;  %s4712_s3 = inlined_call_operand.vmem [shape: f32[2,1,8], index: 3, kind: output, shape index: {1}]   ;;  %s4713_s4 = inlined_call_operand.vmem [shape: f32[2,1,8], index: 4, kind: output, shape index: {2}]  }
   0x1 LB: > { %s3104_s16 = sadd.s32 4294967295, %s3440_s15   ;;  %p3108_p0 = scmp.ge.s32.totalorder %s3440_s15, 1  ;;  %s3440_s15 = sphi %s3468_s15, %s15_s15  }
   0x2   : > { %p167_p1 = scmp.lt.s32.totalorder %s3440_s15, 3 }
   0x4   : > { %p168_p2 = pnand %p3108_p0, %p167_p1 }
   0x6   : > { %171 = sbr.rel (%p168_p2) target bundleno = 799 (0x31f), region = 28 }
   0xb   : > { %v3113_v0 = vld [vmem:[%s4710_s1 + $0x4] sm:$0xf]  ;;  %vm517_vm0 = vcmask 1043456   ;;  %p199_p3 = scmp.lt.s32.totalorder %s3104_s16, 1  ;;  %vm247_vm1 = vcmask 31744   ;;  %v3442_v1 = vmov 0.0  }
   0xc   : > { %3422 = vmatpush.msk.msra.mxu1 %vm517_vm0, %v3113_v0  ;;  %3423 = vmatpush.msk.msra.mxu2 %vm517_vm0, %v3113_v0  ;;  %266 = vst.msk [vmem:[#allocation2 + $0x88] sm:$0xff] %vm247_vm1, %v3442_v1  ;;  %v3180_v4 = vld [vmem:[%s4710_s1 + $0x8] sm:$0xf]  ;;  %v3214_v5 = vld [vmem:[%s4710_s1 + $0xc] sm:$0xf]  ;;  %vm251_vm2 = vcmask 24576  }
   0xd   : > { %s4819_s16 = smov (!%p199_p3, %s3104_s16), 1  ;;  %248 = vst.msk [vmem:[#allocation2] sm:$0xff] %vm247_vm1, %v3442_v1  ;;  %3424 = vmatpush.msk.msra.mxu3 %vm517_vm0, %v3113_v0  ;;  %3114 = vmatpush.msk.msra.mxu0 %vm517_vm0, %v3113_v0  ;;  %v386_v6 = vld [vmem:[%s4710_s1] sm:$0xf]  ;;  %v3248_v8 = vld [vmem:[%s4710_s1 + $0x10] sm:$0xf] }
   0xe   : > { %249 = vst.msk [vmem:[#allocation2 + $0x8] sm:$0xff] %vm247_vm1, %v3442_v1  ;;  %s3420_s19 = sshll.u32 %s4819_s16, 8  ;;  %3181 = vmatpush.msk.msrb.mxu2 %vm517_vm0, %v3180_v4  ;;  %3147 = vmatpush.msk.msrb.mxu1 %vm517_vm0, %v386_v6  ;;  %v3316_v58 = vld [vmem:[%s4710_s1 + $0x18] sm:$0xf]  ;;  %v3350_v59 = vld [vmem:[%s4710_s1 + $0x1c] sm:$0xf]  ;;  %s211_s20 = scalar_lea.vmem %s4712_s3, %s4819_s16 }
   0xf   : > { %250 = vst.msk [vmem:[#allocation2 + $0x10] sm:$0xff] %vm247_vm1, %v3442_v1  ;;  %s3499_s22 = scalar_lea.vmem %s4709_s0, %s3420_s19  ;;  %3215 = vmatpush.msk.msrb.mxu3 %vm517_vm0, %v3214_v5  ;;  %3249 = vmatpush.msk.msrb.mxu0 %vm517_vm0, %v3248_v8  ;;  %v3282_v60 = vld [vmem:[%s4710_s1 + $0x14] sm:$0xf]  ;;  %s4466_s17 = scalar_lea.vmem %s4711_s2, %s3420_s19  ;;  %vm2793_vm3 = vcmask 64512   ;;  %vm2895_vm4 = vcmask 57344  }
  0x10   : > { %253 = vst.msk [vmem:[#allocation2 + $0x20] sm:$0xff] %vm247_vm1, %v3442_v1  ;;  %v221_v2 = vld [vmem:[%s3499_s22 + $0x30] sm:$0xff]  ;;  %v222_v12 = vld [vmem:[%s3499_s22 + $0x38] sm:$0xff]  ;;  %v223_v15 = vld [vmem:[%s3499_s22 + $0x40] sm:$0xff]  ;;  %s214_s23 = scalar_lea.vmem %s4713_s4, %s4819_s16 }
  0x11   : > { %254 = vst.msk [vmem:[#allocation2 + $0x28] sm:$0xff] %vm247_vm1, %v3442_v1  ;;  %v229_v10 = vld [vmem:[%s3499_s22 + $0x70] sm:$0xff]  ;;  %v230_v13 = vld [vmem:[%s3499_s22 + $0x78] sm:$0xff]  ;;  %v231_v16 = vld [vmem:[%s3499_s22 + $0x80] sm:$0xff] }
  0x12   : > { %328 = vst.msk [vmem:[#allocation2 + $0x88] sm:$0xff] %vm247_vm1, %v221_v2  ;;  %v237_v11 = vld [vmem:[%s3499_s22 + $0xb0] sm:$0xff]  ;;  %v238_v14 = vld [vmem:[%s3499_s22 + $0xb8] sm:$0xff]  ;;  %v239_v17 = vld [vmem:[%s3499_s22 + $0xc0] sm:$0xff] }
  0x13   : > { %255 = vst.msk [vmem:[#allocation2 + $0x30] sm:$0xff] %vm247_vm1, %v3442_v1  ;;  %v224_v18 = vld [vmem:[%s3499_s22 + $0x48] sm:$0xff]  ;;  %v215_v21 = vld [vmem:[%s3499_s22] sm:$0xff]  ;;  %v225_v25 = vld [vmem:[%s3499_s22 + $0x50] sm:$0xff] }
  0x14   : > { %257 = vst.msk [vmem:[#allocation2 + $0x40] sm:$0xff] %vm247_vm1, %v3442_v1  ;;  %v232_v19 = vld [vmem:[%s3499_s22 + $0x88] sm:$0xff]  ;;  %v233_v26 = vld [vmem:[%s3499_s22 + $0x90] sm:$0xff]  ;;  %v226_v30 = vld [vmem:[%s3499_s22 + $0x58] sm:$0xff] }
  0x15   : > { %258 = vst.msk [vmem:[#allocation2 + $0x48] sm:$0xff] %vm247_vm1, %v3442_v1  ;;  %v387_v7 = vld [vmem:[#allocation2 + $0x8] sm:$0xff]  ;;  %v241_v28 = vld [vmem:[%s3499_s22 + $0xd0] sm:$0xff]  ;;  %v234_v32 = vld [vmem:[%s3499_s22 + $0x98] sm:$0xff] }
  0x16   : > { %259 = vst.msk [vmem:[#allocation2 + $0x50] sm:$0xff] %vm247_vm1, %v3442_v1  ;;  %3115 = vmatmul.msk.f32.vlgmr.msra.gmra.mxu0 %vm247_vm1, %v387_v7  ;;  %v388_v9 = vld [vmem:[#allocation2 + $0x10] sm:$0xff]  ;;  %v240_v23 = vld [vmem:[%s3499_s22 + $0xc8] sm:$0xff]  ;;  %v242_v35 = vld [vmem:[%s3499_s22 + $0xd8] sm:$0xff] }
  0x17   : > { %261 = vst.msk [vmem:[#allocation2 + $0x60] sm:$0xff] %vm247_vm1, %v3442_v1  ;;  %v216_v27 = vld [vmem:[%s3499_s22 + $0x8] sm:$0xff]  ;;  %v217_v34 = vld [vmem:[%s3499_s22 + $0x10] sm:$0xff]  ;;  %v227_v37 = vld [vmem:[%s3499_s22 + $0x60] sm:$0xff] }
  0x18   : > { %262 = vst.msk [vmem:[#allocation2 + $0x68] sm:$0xff] %vm247_vm1, %v3442_v1  ;;  %v235_v38 = vld [vmem:[%s3499_s22 + $0xa0] sm:$0xff]  ;;  %v218_v39 = vld [vmem:[%s3499_s22 + $0x18] sm:$0xff]  ;;  %v228_v45 = vld [vmem:[%s3499_s22 + $0x68] sm:$0xff] }
  0x19   : > { %v3519_v3 = vld [vmem:[#allocation2 + $0x88] sm:$0xff]  ;;  %263 = vst.msk [vmem:[#allocation2 + $0x70] sm:$0xff] %vm247_vm1, %v3442_v1  ;;  %v243_v40 = vld [vmem:[%s3499_s22 + $0xe0] sm:$0xff] }
  0x1a   : > { %3123 = vmatmul.msk.f32.vlgmr.msra.gmra.mxu1 %vm247_vm1, %v3519_v3  ;;  %265 = vst.msk [vmem:[#allocation2 + $0x80] sm:$0xff] %vm247_vm1, %v3442_v1  ;;  %v236_v46 = vld [vmem:[%s3499_s22 + $0xa8] sm:$0xff]  ;;  %v219_v47 = vld [vmem:[%s3499_s22 + $0x20] sm:$0xff] }
  0x1b   : > { %267 = vst.msk [vmem:[#allocation2 + $0x90] sm:$0xff] %vm247_vm1, %v3442_v1  ;;  %v244_v48 = vld [vmem:[%s3499_s22 + $0xe8] sm:$0xff]  ;;  %3283 = vmatpush.msk.msra.mxu1 %vm517_vm0, %v3282_v60  ;;  %v3384_v2 = vld [vmem:[%s4710_s1 + $0x20] sm:$0xf] }
  0x1c   : > { %269 = vst.msk [vmem:[#allocation2 + $0xa0] sm:$0xff] %vm247_vm1, %v3442_v1  ;;  %v220_v53 = vld [vmem:[%s3499_s22 + $0x28] sm:$0xff]  ;;  %3385 = vmatpush.msk.msra.mxu0 %vm517_vm0, %v3384_v2 }
  0x1d   : > { %270 = vst.msk [vmem:[#allocation2 + $0xa8] sm:$0xff] %vm247_vm1, %v3442_v1 }
  0x1e   : > { %271 = vst.msk [vmem:[#allocation2 + $0xb0] sm:$0xff] %vm247_vm1, %v3442_v1  ;;  %3116 = vmatmul.msk.f32.gmra.mxu0 %vm247_vm1, %v388_v9 }
  0x1f   : > { %273 = vst.msk [vmem:[#allocation2 + $0xc0] sm:$0xff] %vm247_vm1, %v3442_v1 }
  0x20   : > { %274 = vst.msk [vmem:[#allocation2 + $0xc8] sm:$0xff] %vm247_vm1, %v3442_v1 }
  0x21   : > { %275 = vst.msk [vmem:[#allocation2 + $0xd0] sm:$0xff] %vm247_vm1, %v3442_v1 }
  0x22   : > { %277 = vst.msk [vmem:[#allocation2 + $0xe0] sm:$0xff] %vm247_vm1, %v3442_v1 }
  0x23   : > { %278 = vst.msk [vmem:[#allocation2 + $0xe8] sm:$0xff] %vm247_vm1, %v3442_v1 }
  0x24   : > { %279 = vst.msk [vmem:[#allocation2 + $0xf0] sm:$0xff] %vm247_vm1, %v3442_v1 }
  0x25   : > { %281 = vst.msk [vmem:[#allocation2 + $0x100] sm:$0xff] %vm247_vm1, %v3442_v1 }
  0x26   : > { %282 = vst.msk [vmem:[#allocation2 + $0x108] sm:$0xff] %vm247_vm1, %v3442_v1 }
  0x27   : > { %283 = vst.msk [vmem:[#allocation2 + $0x110] sm:$0xff] %vm247_vm1, %v3442_v1 }
  0x28   : > { %285 = vst.msk [vmem:[#allocation2 + $0x120] sm:$0xff] %vm247_vm1, %v3442_v1 }
  0x29   : > { %286 = vst.msk [vmem:[#allocation2 + $0x128] sm:$0xff] %vm247_vm1, %v3442_v1 }
  0x2a   : > { %287 = vst.msk [vmem:[#allocation2 + $0x130] sm:$0xff] %vm247_vm1, %v3442_v1 }
  0x2b   : > { %289 = vst.msk [vmem:[#allocation2 + $0x140] sm:$0xff] %vm247_vm1, %v3442_v1 }
  0x2c   : > { %290 = vst.msk [vmem:[#allocation2 + $0x148] sm:$0xff] %vm247_vm1, %v3442_v1 }
  0x2d   : > { %291 = vst.msk [vmem:[#allocation2 + $0x150] sm:$0xff] %vm247_vm1, %v3442_v1 }
  0x2e   : > { %293 = vst.msk [vmem:[#allocation2 + $0x160] sm:$0xff] %vm247_vm1, %v3442_v1 }
  0x2f   : > { %294 = vst.msk [vmem:[#allocation2 + $0x168] sm:$0xff] %vm247_vm1, %v3442_v1 }
  0x30   : > { %295 = vst.msk [vmem:[#allocation2 + $0x170] sm:$0xff] %vm247_vm1, %v3442_v1 }
  0x31   : > { %297 = vst.msk [vmem:[#allocation2 + $0x180] sm:$0xff] %vm247_vm1, %v3442_v1 }
  0x32   : > { %298 = vst.msk [vmem:[#allocation2 + $0x188] sm:$0xff] %vm247_vm1, %v3442_v1 }
  0x33   : > { %299 = vst.msk [vmem:[#allocation2 + $0x190] sm:$0xff] %vm247_vm1, %v3442_v1 }
  0x34   : > { %301 = vst.msk [vmem:[#allocation2 + $0x1a0] sm:$0xff] %vm247_vm1, %v3442_v1 }
  0x35   : > { %302 = vst.msk [vmem:[#allocation2 + $0x1a8] sm:$0xff] %vm247_vm1, %v3442_v1 }
  0x36   : > { %303 = vst.msk [vmem:[#allocation2 + $0x1b0] sm:$0xff] %vm247_vm1, %v3442_v1 }
  0x37   : > { %305 = vst.msk [vmem:[#allocation2 + $0x1c0] sm:$0xff] %vm247_vm1, %v3442_v1 }
  0x38   : > { %306 = vst.msk [vmem:[#allocation2 + $0x1c8] sm:$0xff] %vm247_vm1, %v3442_v1 }
  0x39   : > { %307 = vst.msk [vmem:[#allocation2 + $0x1d0] sm:$0xff] %vm247_vm1, %v3442_v1 }
  0x3a   : > { %309 = vst.msk [vmem:[#allocation2 + $0x1e0] sm:$0xff] %vm247_vm1, %v3442_v1 }
  0x3b   : > { %310 = vst.msk [vmem:[#allocation2 + $0x1e8] sm:$0xff] %vm247_vm1, %v3442_v1 }
  0x3c   : > { %311 = vst.msk [vmem:[#allocation2 + $0x1f0] sm:$0xff] %vm247_vm1, %v3442_v1 }
  0x3d   : > { %313 = vst.msk [vmem:[#allocation2 + $0x200] sm:$0xff] %vm247_vm1, %v3442_v1 }
  0x3e   : > { %314 = vst.msk [vmem:[#allocation2 + $0x208] sm:$0xff] %vm247_vm1, %v3442_v1 }
  0x3f   : > { %315 = vst.msk [vmem:[#allocation2 + $0x210] sm:$0xff] %vm247_vm1, %v3442_v1 }
  0x40   : > { %317 = vst.msk [vmem:[#allocation2 + $0x220] sm:$0xff] %vm247_vm1, %v3442_v1 }
  0x41   : > { %318 = vst.msk [vmem:[#allocation2 + $0x228] sm:$0xff] %vm247_vm1, %v3442_v1 }
  0x42   : > { %319 = vst.msk [vmem:[#allocation2 + $0x230] sm:$0xff] %vm247_vm1, %v3442_v1 }
  0x43   : > { %336 = vst.msk [vmem:[#allocation2 + $0x108] sm:$0xff] %vm247_vm1, %v229_v10  ;;  %v354_v10 = vld [vmem:[#allocation2 + $0x7] sm:$0xff] }
  0x44   : > { %344 = vst.msk [vmem:[#allocation2 + $0x188] sm:$0xff] %vm247_vm1, %v237_v11  ;;  %v846_v11 = vld [vmem:[#allocation2 + $0x9] sm:$0xff] }
  0x45   : > { %329 = vst.msk [vmem:[#allocation2 + $0x90] sm:$0xff] %vm247_vm1, %v222_v12 }
  0x46   : > { %337 = vst.msk [vmem:[#allocation2 + $0x110] sm:$0xff] %vm247_vm1, %v230_v13  ;;  %v355_v13 = vld [vmem:[#allocation2 + $0xf] sm:$0xff] }
  0x47   : > { %345 = vst.msk [vmem:[#allocation2 + $0x190] sm:$0xff] %vm247_vm1, %v238_v14 }
  0x48   : > { %330 = vst.msk [vmem:[#allocation2 + $0xa8] sm:$0xff] %vm247_vm1, %v223_v15 }
  0x49   : > { %338 = vst.msk [vmem:[#allocation2 + $0x128] sm:$0xff] %vm247_vm1, %v231_v16 }
  0x4a   : > { %v3642_v20 = vld [vmem:[#allocation2 + $0x108] sm:$0xff]  ;;  %346 = vst.msk [vmem:[#allocation2 + $0x1a8] sm:$0xff] %vm247_vm1, %v239_v17 }
  0x4b   : > { %3131 = vmatmul.msk.f32.vlgmr.msra.gmra.mxu2 %vm247_vm1, %v3642_v20  ;;  %v3648_v22 = vld [vmem:[#allocation2 + $0x188] sm:$0xff]  ;;  %331 = vst.msk [vmem:[#allocation2 + $0xb0] sm:$0xff] %vm247_vm1, %v224_v18 }
  0x4c   : > { %3139 = vmatmul.msk.f32.vlgmr.msra.gmra.mxu3 %vm247_vm1, %v3648_v22  ;;  %v3654_v24 = vld [vmem:[#allocation2 + $0x90] sm:$0xff]  ;;  %339 = vst.msk [vmem:[#allocation2 + $0x130] sm:$0xff] %vm247_vm1, %v232_v19  ;;  %3317 = vmatpush.msk.msra.mxu2 %vm517_vm0, %v3316_v58 }
  0x4d   : > { %3124 = vmatmul.msk.f32.gmra.mxu1 %vm247_vm1, %v3654_v24  ;;  %322 = vst.msk [vmem:[#allocation2 + $0x28] sm:$0xff] %vm247_vm1, %v215_v21  ;;  %v3666_v29 = vld [vmem:[#allocation2 + $0x110] sm:$0xff]  ;;  %3351 = vmatpush.msk.msra.mxu3 %vm517_vm0, %v3350_v59 }
  0x4e   : > { %347 = vst.msk [vmem:[#allocation2 + $0x1b0] sm:$0xff] %vm247_vm1, %v240_v23  ;;  %v3670_v31 = vld [vmem:[#allocation2 + $0x190] sm:$0xff] }
  0x4f   : > { %332 = vst.msk [vmem:[#allocation2 + $0xc8] sm:$0xff] %vm247_vm1, %v225_v25  ;;  %v3674_v33 = vld [vmem:[#allocation2 + $0xa8] sm:$0xff] }
  0x50   : > { %340 = vst.msk [vmem:[#allocation2 + $0x148] sm:$0xff] %vm247_vm1, %v233_v26  ;;  %v3698_v41 = vld [vmem:[#allocation2 + $0x128] sm:$0xff] }
  0x51   : > { %323 = vst.msk [vmem:[#allocation2 + $0x30] sm:$0xff] %vm247_vm1, %v216_v27  ;;  %v3701_v42 = vld [vmem:[#allocation2 + $0x1a8] sm:$0xff] }
  0x52   : > { %348 = vst.msk [vmem:[#allocation2 + $0x1c8] sm:$0xff] %vm247_vm1, %v241_v28  ;;  %v3703_v43 = vld [vmem:[#allocation2 + $0xb0] sm:$0xff]  ;;  %v3913_v27 = vld [vmem:[#allocation2 + $0x87] sm:$0xff] }
  0x53   : > { %3132 = vmatmul.msk.f32.gmra.mxu2 %vm247_vm1, %v3666_v29  ;;  %333 = vst.msk [vmem:[#allocation2 + $0xd0] sm:$0xff] %vm247_vm1, %v226_v30  ;;  %v3725_v49 = vld [vmem:[#allocation2 + $0x130] sm:$0xff] }
  0x54   : > { %3140 = vmatmul.msk.f32.gmra.mxu3 %vm247_vm1, %v3670_v31  ;;  %v3684_v36 = vld [vmem:[#allocation2 + $0x28] sm:$0xff]  ;;  %341 = vst.msk [vmem:[#allocation2 + $0x150] sm:$0xff] %vm247_vm1, %v234_v32 }
  0x55   : > { %3125 = vmatmul.msk.f32.gmra.mxu1 %vm247_vm1, %v3674_v33  ;;  %3117 = vmatmul.msk.f32.gmra.mxu0 %vm247_vm1, %v3684_v36  ;;  %324 = vst.msk [vmem:[#allocation2 + $0x48] sm:$0xff] %vm247_vm1, %v217_v34  ;;  %v3727_v50 = vld [vmem:[#allocation2 + $0x1b0] sm:$0xff]  ;;  %v1124_v12 = vld [vmem:[#allocation2 + $0x27] sm:$0xff] }
  0x56   : > { %349 = vst.msk [vmem:[#allocation2 + $0x1d0] sm:$0xff] %vm247_vm1, %v242_v35  ;;  %v3729_v51 = vld [vmem:[#allocation2 + $0xc8] sm:$0xff] }
  0x57   : > { %334 = vst.msk [vmem:[#allocation2 + $0xe8] sm:$0xff] %vm247_vm1, %v227_v37  ;;  %v3743_v54 = vld [vmem:[#allocation2 + $0x148] sm:$0xff] }
  0x58   : > { %342 = vst.msk [vmem:[#allocation2 + $0x168] sm:$0xff] %vm247_vm1, %v235_v38  ;;  %v3706_v44 = vld [vmem:[#allocation2 + $0x30] sm:$0xff]  ;;  %v3943_v35 = vld [vmem:[#allocation2 + $0xa7] sm:$0xff] }
  0x59   : > { %325 = vst.msk [vmem:[#allocation2 + $0x50] sm:$0xff] %vm247_vm1, %v218_v39  ;;  %v3745_v55 = vld [vmem:[#allocation2 + $0x1c8] sm:$0xff] }
  0x5a   : > { %350 = vst.msk [vmem:[#allocation2 + $0x1e8] sm:$0xff] %vm247_vm1, %v243_v40  ;;  %v3747_v56 = vld [vmem:[#allocation2 + $0xd0] sm:$0xff] }
  0x5b   : > { %3133 = vmatmul.msk.f32.gmra.mxu2 %vm247_vm1, %v3698_v41  ;;  %335 = vst.msk [vmem:[#allocation2 + $0xf0] sm:$0xff] %vm247_vm1, %v228_v45  ;;  %v3779_v61 = vld [vmem:[#allocation2 + $0x150] sm:$0xff] }
  0x5c   : > { %3141 = vmatmul.msk.f32.gmra.mxu3 %vm247_vm1, %v3701_v42  ;;  %343 = vst.msk [vmem:[#allocation2 + $0x170] sm:$0xff] %vm247_vm1, %v236_v46  ;;  %v3731_v52 = vld [vmem:[#allocation2 + $0x48] sm:$0xff] }
  0x5d   : > { %3126 = vmatmul.msk.f32.gmra.mxu1 %vm247_vm1, %v3703_v43  ;;  %3118 = vmatmul.msk.f32.gmra.mxu0 %vm247_vm1, %v3706_v44  ;;  %326 = vst.msk [vmem:[#allocation2 + $0x68] sm:$0xff] %vm247_vm1, %v219_v47  ;;  %v3783_v62 = vld [vmem:[#allocation2 + $0x1d0] sm:$0xff]  ;;  %v3866_v16 = vld [vmem:[#allocation2 + $0x47] sm:$0xff] }
  0x5e   : > { %351 = vst.msk [vmem:[#allocation2 + $0x1f0] sm:$0xff] %vm247_vm1, %v244_v48  ;;  %v3787_v63 = vld [vmem:[#allocation2 + $0xe8] sm:$0xff] }
  0x5f   : > { %327 = vst.msk [vmem:[#allocation2 + $0x70] sm:$0xff] %vm247_vm1, %v220_v53  ;;  %v3815_v4 = vld [vmem:[#allocation2 + $0x168] sm:$0xff] }
  0x60   : > { %v3749_v57 = vld [vmem:[#allocation2 + $0x50] sm:$0xff]  ;;  %252 = vst.msk [vmem:[#allocation2 + $0x18] sm:$0x1] %vm251_vm2, %v3442_v1  ;;  %v3981_v47 = vld [vmem:[#allocation2 + $0xc7] sm:$0xff] }
  0x61   : > { %256 = vst.msk [vmem:[#allocation2 + $0x38] sm:$0x1] %vm251_vm2, %v3442_v1  ;;  %v3819_v5 = vld [vmem:[#allocation2 + $0x1e8] sm:$0xff] }
  0x62   : > { %260 = vst.msk [vmem:[#allocation2 + $0x58] sm:$0x1] %vm251_vm2, %v3442_v1  ;;  %v3823_v6 = vld [vmem:[#allocation2 + $0xf0] sm:$0xff] }
  0x63   : > { %3134 = vmatmul.msk.f32.gmra.mxu2 %vm247_vm1, %v3725_v49  ;;  %264 = vst.msk [vmem:[#allocation2 + $0x78] sm:$0x1] %vm251_vm2, %v3442_v1  ;;  %v3843_v8 = vld [vmem:[#allocation2 + $0x170] sm:$0xff] }
  0x64   : > { %3142 = vmatmul.msk.f32.gmra.mxu3 %vm247_vm1, %v3727_v50  ;;  %268 = vst.msk [vmem:[#allocation2 + $0x98] sm:$0x1] %vm251_vm2, %v3442_v1  ;;  %v3789_v0 = vld [vmem:[#allocation2 + $0x68] sm:$0xff] }
  0x65   : > { %3127 = vmatmul.msk.f32.gmra.mxu1 %vm247_vm1, %v3729_v51  ;;  %3119 = vmatmul.msk.f32.gmra.mxu0 %vm247_vm1, %v3731_v52  ;;  %272 = vst.msk [vmem:[#allocation2 + $0xb8] sm:$0x1] %vm251_vm2, %v3442_v1  ;;  %v3845_v9 = vld [vmem:[#allocation2 + $0x1f0] sm:$0xff]  ;;  %v3889_v21 = vld [vmem:[#allocation2 + $0x67] sm:$0xff] }
  0x66   : > { %276 = vst.msk [vmem:[#allocation2 + $0xd8] sm:$0x1] %vm251_vm2, %v3442_v1  ;;  %v3825_v7 = vld [vmem:[#allocation2 + $0x70] sm:$0xff] }
  0x67   : > { %280 = vst.msk [vmem:[#allocation2 + $0xf8] sm:$0x1] %vm251_vm2, %v3442_v1  ;;  %v1125_v14 = vld [vmem:[#allocation2 + $0x2f] sm:$0xff] }
  0x68   : > { %284 = vst.msk [vmem:[#allocation2 + $0x118] sm:$0x1] %vm251_vm2, %v3442_v1  ;;  %v3864_v15 = vld [vmem:[#allocation2 + $0x29] sm:$0xff]  ;;  %v3875_v17 = vld [vmem:[#allocation2 + $0x31] sm:$0xff] }
  0x69   : > { %288 = vst.msk [vmem:[#allocation2 + $0x138] sm:$0x1] %vm251_vm2, %v3442_v1  ;;  %v3877_v18 = vld [vmem:[#allocation2 + $0x4f] sm:$0xff] }
  0x6a   : > { %292 = vst.msk [vmem:[#allocation2 + $0x158] sm:$0x1] %vm251_vm2, %v3442_v1  ;;  %v3887_v19 = vld [vmem:[#allocation2 + $0x49] sm:$0xff]  ;;  %v3899_v23 = vld [vmem:[#allocation2 + $0x51] sm:$0xff] }
  0x6b   : > { %3135 = vmatmul.msk.f32.gmra.mxu2 %vm247_vm1, %v3743_v54  ;;  %296 = vst.msk [vmem:[#allocation2 + $0x178] sm:$0x1] %vm251_vm2, %v3442_v1  ;;  %v3901_v25 = vld [vmem:[#allocation2 + $0x6f] sm:$0xff] }
  0x6c   : > { %3143 = vmatmul.msk.f32.gmra.mxu3 %vm247_vm1, %v3745_v55  ;;  %300 = vst.msk [vmem:[#allocation2 + $0x198] sm:$0x1] %vm251_vm2, %v3442_v1  ;;  %v3911_v26 = vld [vmem:[#allocation2 + $0x69] sm:$0xff]  ;;  %v3925_v30 = vld [vmem:[#allocation2 + $0x71] sm:$0xff] }
  0x6d   : > { %3128 = vmatmul.msk.f32.gmra.mxu1 %vm247_vm1, %v3747_v56  ;;  %3120 = vmatmul.msk.f32.gmra.mxu0 %vm247_vm1, %v3749_v57  ;;  %304 = vst.msk [vmem:[#allocation2 + $0x1b8] sm:$0x1] %vm251_vm2, %v3442_v1  ;;  %v3929_v32 = vld [vmem:[#allocation2 + $0x8f] sm:$0xff] }
  0x6e   : > { %308 = vst.msk [vmem:[#allocation2 + $0x1d8] sm:$0x1] %vm251_vm2, %v3442_v1  ;;  %v3959_v38 = vld [vmem:[#allocation2 + $0x91] sm:$0xff]  ;;  %v3979_v46 = vld [vmem:[#allocation2 + $0xa9] sm:$0xff] }
  0x6f   : > { %312 = vst.msk [vmem:[#allocation2 + $0x1f8] sm:$0x1] %vm251_vm2, %v3442_v1  ;;  %v3961_v39 = vld [vmem:[#allocation2 + $0xaf] sm:$0xff] }
  0x70   : > { %316 = vst.msk [vmem:[#allocation2 + $0x218] sm:$0x1] %vm251_vm2, %v3442_v1  ;;  %v3999_v59 = vld [vmem:[#allocation2 + $0xb1] sm:$0xff] }
  0x71   : > { %320 = vst.msk [vmem:[#allocation2 + $0x238] sm:$0x1] %vm251_vm2, %v3442_v1  ;;  %v847_v1 = vld [vmem:[#allocation2 + $0x11] sm:$0xff] }
  0x72   : > { %4740 = vst [vmem:[#allocation3_spill] sm:$0xff] %v3913_v27  ;;  %v4001_v60 = vld [vmem:[#allocation2 + $0xcf] sm:$0xff] }
  0x73   : > { %3136 = vmatmul.msk.f32.gmra.mxu2 %vm247_vm1, %v3779_v61  ;;  %4741 = vst [vmem:[#allocation4_spill] sm:$0xff] %v3929_v32 }
  0x74   : > { %3144 = vmatmul.msk.f32.gmra.mxu3 %vm247_vm1, %v3783_v62  ;;  %4742 = vst [vmem:[#allocation5_spill] sm:$0xff] %v3943_v35 }
  0x75   : > { %3129 = vmatmul.msk.f32.gmra.mxu1 %vm247_vm1, %v3787_v63  ;;  %3121 = vmatmul.msk.f32.gmra.mxu0 %vm247_vm1, %v3789_v0  ;;  %4744 = vst [vmem:[#allocation7_spill] sm:$0xff] %v3959_v38 }
  0x76   : > { %4745 = vst [vmem:[#allocation8_spill] sm:$0xff] %v3961_v39 }
  0x77   : > { %4747 = vst [vmem:[#allocation10_spill] sm:$0xff] %v3979_v46 }
  0x78   : > { %4748 = vst [vmem:[#allocation11_spill] sm:$0xff] %v3981_v47 }
  0x79   : > { %4750 = vst [vmem:[#allocation13_spill] sm:$0xff] %v3999_v59 }
  0x7a   : > { %4751 = vst [vmem:[#allocation14_spill] sm:$0xff] %v4001_v60 }
  0x7b   : > { %3137 = vmatmul.msk.f32.gmra.mxu2 %vm247_vm1, %v3815_v4 }
  0x7c   : > { %3145 = vmatmul.msk.f32.gmra.mxu3 %vm247_vm1, %v3819_v5 }
  0x7d   : > { %3130 = vmatmul.msk.f32.gmra.mxu1 %vm247_vm1, %v3823_v6  ;;  %3122 = vmatmul.msk.f32.gmra.mxu0 %vm247_vm1, %v3825_v7 }
  0x83   : > { %3138 = vmatmul.msk.f32.gmra.mxu2 %vm247_vm1, %v3843_v8 }
  0x84   : > { %3146 = vmatmul.msk.f32.gmra.mxu3 %vm247_vm1, %v3845_v9 }
  0x85   : > { %3148 = vmatmul.msk.f32.vlgmr.msrb.gmra.mxu1 %vm247_vm1, %v354_v10  ;;  %3250 = vmatmul.msk.f32.vlgmr.msrb.gmra.mxu0 %vm247_vm1, %v3684_v36 }
  0x8b   : > { %3182 = vmatmul.msk.f32.vlgmr.msrb.gmra.mxu2 %vm247_vm1, %v846_v11 }
  0x8c   : > { %3216 = vmatmul.msk.f32.vlgmr.msrb.gmra.mxu3 %vm247_vm1, %v1124_v12 }
  0x8d   : > { %3149 = vmatmul.msk.f32.gmra.mxu1 %vm247_vm1, %v355_v13  ;;  %3251 = vmatmul.msk.f32.gmra.mxu0 %vm247_vm1, %v3706_v44  ;;  %v4021_v13 = vld [vmem:[#allocation2 + $0xe7] sm:$0xff] }
  0x8e   : > { %4754 = vst [vmem:[#allocation17_spill] sm:$0xff] %v4021_v13 }
  0x93   : > { %3183 = vmatmul.msk.f32.gmra.mxu2 %vm247_vm1, %v847_v1  ;;  %v3923_v28 = vpop.f32.mrf.mxu0 }
  0x94   : > { %3217 = vmatmul.msk.f32.gmra.mxu3 %vm247_vm1, %v1125_v14 }
  0x95   : > { %3150 = vmatmul.msk.f32.gmra.mxu1 %vm247_vm1, %v1124_v12  ;;  %3252 = vmatmul.msk.f32.gmra.mxu0 %vm247_vm1, %v3731_v52  ;;  %v4019_v12 = vld [vmem:[#allocation2 + $0xc9] sm:$0xff] }
  0x96   : > { %4753 = vst [vmem:[#allocation16_spill] sm:$0xff] %v4019_v12 }
  0x9b   : > { %3184 = vmatmul.msk.f32.gmra.mxu2 %vm247_vm1, %v3864_v15  ;;  %v3941_v34 = vpop.f32.mrf.mxu0 }
  0x9c   : > { %3218 = vmatmul.msk.f32.gmra.mxu3 %vm247_vm1, %v3866_v16 }
  0x9d   : > { %3151 = vmatmul.msk.f32.gmra.mxu1 %vm247_vm1, %v1125_v14  ;;  %3253 = vmatmul.msk.f32.gmra.mxu0 %vm247_vm1, %v3749_v57 }
  0xa3   : > { %3185 = vmatmul.msk.f32.gmra.mxu2 %vm247_vm1, %v3875_v17 }
  0xa4   : > { %3219 = vmatmul.msk.f32.gmra.mxu3 %vm247_vm1, %v3877_v18 }
  0xa5   : > { %3152 = vmatmul.msk.f32.gmra.mxu1 %vm247_vm1, %v3866_v16  ;;  %3254 = vmatmul.msk.f32.gmra.mxu0 %vm247_vm1, %v3789_v0 }
  0xab   : > { %3186 = vmatmul.msk.f32.gmra.mxu2 %vm247_vm1, %v3887_v19 }
  0xac   : > { %3220 = vmatmul.msk.f32.gmra.mxu3 %vm247_vm1, %v3889_v21 }
  0xad   : > { %3153 = vmatmul.msk.f32.gmra.mxu1 %vm247_vm1, %v3877_v18  ;;  %3255 = vmatmul.msk.f32.gmra.mxu0 %vm247_vm1, %v3825_v7 }
  0xb3   : > { %3187 = vmatmul.msk.f32.gmra.mxu2 %vm247_vm1, %v3899_v23 }
  0xb4   : > { %3221 = vmatmul.msk.f32.gmra.mxu3 %vm247_vm1, %v3901_v25 }
  0xb5   : > { %3154 = vmatmul.msk.f32.gmra.mxu1 %vm247_vm1, %v3889_v21  ;;  %3256 = vmatmul.msk.f32.gmra.mxu0 %vm247_vm1, %v3519_v3  ;;  %v3927_v3 = vpop.f32.mrf.mxu1 }
  0xbb   : > { %3188 = vmatmul.msk.f32.gmra.mxu2 %vm247_vm1, %v3911_v26 }
  0xbc   : > { %3222 = vmatmul.msk.f32.gmra.mxu3 %vm247_vm1, %v3913_v27 }
  0xbd   : > { %3155 = vmatmul.msk.f32.gmra.mxu1 %vm247_vm1, %v3901_v25  ;;  %3257 = vmatmul.msk.f32.gmra.mxu0 %vm247_vm1, %v3654_v24  ;;  %v3939_v24 = vld [vmem:[#allocation2 + $0x89] sm:$0xff] }
  0xc3   : > { %3189 = vmatmul.msk.f32.gmra.mxu2 %vm247_vm1, %v3925_v30 }
  0xc4   : > { %3223 = vmatmul.msk.f32.gmra.mxu3 %vm247_vm1, %v3929_v32 }
  0xc5   : > { %3156 = vmatmul.msk.f32.gmra.mxu1 %vm247_vm1, %v3913_v27  ;;  %3258 = vmatmul.msk.f32.gmra.mxu0 %vm247_vm1, %v3674_v33 }
  0xca   : > { %v3945_v36 = vpop.f32.mrf.mxu1 }
  0xcb   : > { %3190 = vmatmul.msk.f32.gmra.mxu2 %vm247_vm1, %v3939_v24 }
  0xcc   : > { %3224 = vmatmul.msk.f32.gmra.mxu3 %vm247_vm1, %v3943_v35 }
  0xcd   : > { %3157 = vmatmul.msk.f32.gmra.mxu1 %vm247_vm1, %v3929_v32  ;;  %3259 = vmatmul.msk.f32.gmra.mxu0 %vm247_vm1, %v3703_v43 }
  0xce   : > { %v3955_v33 = vpop.f32.mrf.mxu2 }
  0xcf   : > { %v3957_v37 = vpop.f32.mrf.mxu3 }
  0xd0   : > { %4743 = vst [vmem:[#allocation6_spill] sm:$0xff] %v3957_v37 }
  0xd2   : > { %v3963_v40 = vpop.f32.mrf.mxu1  ;;  %v3965_v44 = vpop.f32.mrf.mxu0 }
  0xd3   : > { %3191 = vmatmul.msk.f32.gmra.mxu2 %vm247_vm1, %v3959_v38  ;;  %v4110_v38 = vld [vmem:[#allocation2 + $0x12f] sm:$0xff] }
  0xd4   : > { %3225 = vmatmul.msk.f32.gmra.mxu3 %vm247_vm1, %v3961_v39 }
  0xd5   : > { %3158 = vmatmul.msk.f32.gmra.mxu1 %vm247_vm1, %v3943_v35  ;;  %3260 = vmatmul.msk.f32.gmra.mxu0 %vm247_vm1, %v3729_v51 }
  0xd6   : > { %v3975_v43 = vpop.f32.mrf.mxu2 }
  0xd7   : > { %v3977_v45 = vpop.f32.mrf.mxu3 }
  0xd8   : > { %4746 = vst [vmem:[#allocation9_spill] sm:$0xff] %v3977_v45  ;;  %v4041_v45 = vld [vmem:[#allocation2 + $0xef] sm:$0xff] }
  0xd9   : > { %4758 = vst [vmem:[#allocation21_spill] sm:$0xff] %v4041_v45 }
  0xda   : > { %v3983_v48 = vpop.f32.mrf.mxu1  ;;  %v3985_v53 = vpop.f32.mrf.mxu0 }
  0xdb   : > { %3192 = vmatmul.msk.f32.gmra.mxu2 %vm247_vm1, %v3979_v46 }
  0xdc   : > { %3226 = vmatmul.msk.f32.gmra.mxu3 %vm247_vm1, %v3981_v47 }
  0xdd   : > { %3159 = vmatmul.msk.f32.gmra.mxu1 %vm247_vm1, %v3961_v39  ;;  %3261 = vmatmul.msk.f32.gmra.mxu0 %vm247_vm1, %v3747_v56 }
  0xde   : > { %v3995_v51 = vpop.f32.mrf.mxu2 }
  0xdf   : > { %v3997_v58 = vpop.f32.mrf.mxu3 }
  0xe0   : > { %4749 = vst [vmem:[#allocation12_spill] sm:$0xff] %v3997_v58  ;;  %v4039_v58 = vld [vmem:[#allocation2 + $0xd1] sm:$0xff] }
  0xe1   : > { %4757 = vst [vmem:[#allocation20_spill] sm:$0xff] %v4039_v58 }
  0xe2   : > { %v4003_v2 = vpop.f32.mrf.mxu1  ;;  %v4005_v10 = vpop.f32.mrf.mxu0 }
  0xe3   : > { %3193 = vmatmul.msk.f32.gmra.mxu2 %vm247_vm1, %v3999_v59  ;;  %v4081_v59 = vld [vmem:[#allocation2 + $0x10f] sm:$0xff] }
  0xe4   : > { %3227 = vmatmul.msk.f32.gmra.mxu3 %vm247_vm1, %v4001_v60 }
  0xe5   : > { %3160 = vmatmul.msk.f32.gmra.mxu1 %vm247_vm1, %v3981_v47  ;;  %3262 = vmatmul.msk.f32.gmra.mxu0 %vm247_vm1, %v3787_v63 }
  0xe6   : > { %v4015_v56 = vpop.f32.mrf.mxu2 }
  0xe7   : > { %v4017_v11 = vpop.f32.mrf.mxu3 }
  0xe8   : > { %4752 = vst [vmem:[#allocation15_spill] sm:$0xff] %v4017_v11 }
  0xea   : > { %v4023_v1 = vpop.f32.mrf.mxu1  ;;  %v4025_v14 = vpop.f32.mrf.mxu0 }
  0xeb   : > { %3194 = vmatmul.msk.f32.gmra.mxu2 %vm247_vm1, %v4019_v12  ;;  %v4061_v12 = vld [vmem:[#allocation2 + $0x107] sm:$0xff] }
  0xec   : > { %3228 = vmatmul.msk.f32.gmra.mxu3 %vm247_vm1, %v4021_v13  ;;  %4762 = vst [vmem:[#allocation25_spill] sm:$0xff] %v4061_v12 }
  0xed   : > { %3161 = vmatmul.msk.f32.gmra.mxu1 %vm247_vm1, %v4001_v60  ;;  %3263 = vmatmul.msk.f32.gmra.mxu0 %vm247_vm1, %v3823_v6  ;;  %v4059_v60 = vld [vmem:[#allocation2 + $0xe9] sm:$0xff] }
  0xee   : > { %v4035_v63 = vpop.f32.mrf.mxu2  ;;  %4761 = vst [vmem:[#allocation24_spill] sm:$0xff] %v4059_v60 }
  0xef   : > { %4755 = vst [vmem:[#allocation18_spill] sm:$0xff] %v4035_v63  ;;  %v4037_v11 = vpop.f32.mrf.mxu3 }
  0xf0   : > { %4756 = vst [vmem:[#allocation19_spill] sm:$0xff] %v4037_v11 }
  0xf2   : > { %v4043_v37 = vpop.f32.mrf.mxu1  ;;  %v4045_v47 = vpop.f32.mrf.mxu0 }
  0xf3   : > { %3195 = vmatmul.msk.f32.gmra.mxu2 %vm247_vm1, %v4039_v58 }
  0xf4   : > { %3229 = vmatmul.msk.f32.gmra.mxu3 %vm247_vm1, %v4041_v45 }
  0xf5   : > { %3162 = vmatmul.msk.f32.gmra.mxu1 %vm247_vm1, %v4021_v13  ;;  %3264 = vmatmul.msk.f32.gmra.mxu0 %vm247_vm1, %v3642_v20  ;;  %v4079_v13 = vld [vmem:[#allocation2 + $0xf1] sm:$0xff] }
  0xf6   : > { %v4055_v6 = vpop.f32.mrf.mxu2  ;;  %4765 = vst [vmem:[#allocation28_spill] sm:$0xff] %v4079_v13 }
  0xf7   : > { %4759 = vst [vmem:[#allocation22_spill] sm:$0xff] %v4055_v6  ;;  %v4057_v11 = vpop.f32.mrf.mxu3 }
  0xf8   : > { %4760 = vst [vmem:[#allocation23_spill] sm:$0xff] %v4057_v11 }
  0xfa   : > { %v4063_v39 = vpop.f32.mrf.mxu1  ;;  %v4065_v58 = vpop.f32.mrf.mxu0 }
  0xfb   : > { %3196 = vmatmul.msk.f32.gmra.mxu2 %vm247_vm1, %v4059_v60  ;;  %v4097_v60 = vld [vmem:[#allocation2 + $0x127] sm:$0xff] }
  0xfc   : > { %3230 = vmatmul.msk.f32.gmra.mxu3 %vm247_vm1, %v4061_v12 }
  0xfd   : > { %3163 = vmatmul.msk.f32.gmra.mxu1 %vm247_vm1, %v4041_v45  ;;  %3265 = vmatmul.msk.f32.gmra.mxu0 %vm247_vm1, %v3666_v29  ;;  %v4095_v45 = vld [vmem:[#allocation2 + $0x109] sm:$0xff] }
  0xfe   : > { %v4075_v20 = vpop.f32.mrf.mxu2  ;;  %4768 = vst [vmem:[#allocation31_spill] sm:$0xff] %v4095_v45 }
  0xff   : > { %4763 = vst [vmem:[#allocation26_spill] sm:$0xff] %v4075_v20  ;;  %v4077_v11 = vpop.f32.mrf.mxu3 }
 0x100   : > { %4764 = vst [vmem:[#allocation27_spill] sm:$0xff] %v4077_v11 }
 0x102   : > { %v750_v35 = vpop.f32.mrf.mxu1  ;;  %v1552_v46 = vpop.f32.mrf.mxu0 }
 0x103   : > { %3197 = vmatmul.msk.f32.gmra.mxu2 %vm247_vm1, %v4079_v13 }
 0x104   : > { %3231 = vmatmul.msk.f32.gmra.mxu3 %vm247_vm1, %v4081_v59 }
 0x105   : > { %3164 = vmatmul.msk.f32.gmra.mxu1 %vm247_vm1, %v4061_v12  ;;  %3266 = vmatmul.msk.f32.gmra.mxu0 %vm247_vm1, %v3698_v41  ;;  %v751_v12 = vadd.f32 %v750_v35, %v3923_v28 }
 0x106   : > { %v4091_v29 = vpop.f32.mrf.mxu2 }
 0x107   : > { %4766 = vst [vmem:[#allocation29_spill] sm:$0xff] %v4091_v29  ;;  %v4093_v11 = vpop.f32.mrf.mxu3  ;;  %v4108_v29 = vld [vmem:[#allocation2 + $0x111] sm:$0xff] }
 0x108   : > { %4767 = vst [vmem:[#allocation30_spill] sm:$0xff] %v4093_v11 }
 0x10a   : > { %v753_v20 = vpop.f32.mrf.mxu1  ;;  %v1555_v6 = vpop.f32.mrf.mxu0 }
 0x10b   : > { %3198 = vmatmul.msk.f32.gmra.mxu2 %vm247_vm1, %v4095_v45 }
 0x10c   : > { %3232 = vmatmul.msk.f32.gmra.mxu3 %vm247_vm1, %v4097_v60 }
 0x10d   : > { %3165 = vmatmul.msk.f32.gmra.mxu1 %vm247_vm1, %v4081_v59  ;;  %3267 = vmatmul.msk.f32.gmra.mxu0 %vm247_vm1, %v3725_v49  ;;  %v754_v49 = vadd.f32 %v753_v20, %v3941_v34 }
 0x10e   : > { %v996_v41 = vpop.f32.mrf.mxu2 }
 0x10f   : > { %v1092_v11 = vadd.f32 %v996_v41, %v751_v12  ;;  %v1274_v13 = vpop.f32.mrf.mxu3  ;;  %v4123_v12 = vld [vmem:[#allocation2 + $0x129] sm:$0xff] }
 0x111   : > { %v1370_v32 = vadd.f32 %v1274_v13, %v1092_v11 }
 0x112   : > { %v756_v45 = vpop.f32.mrf.mxu1  ;;  %v1558_v63 = vpop.f32.mrf.mxu0 }
 0x113   : > { %v4112_v27 = vadd.f32 %v1552_v46, %v1370_v32  ;;  %3199 = vmatmul.msk.f32.gmra.mxu2 %vm247_vm1, %v4108_v29  ;;  %v4125_v46 = vld [vmem:[#allocation2 + $0x147] sm:$0xff] }
 0x114   : > { %3233 = vmatmul.msk.f32.gmra.mxu3 %vm247_vm1, %v4110_v38 }
 0x115   : > { %4769 = vst [vmem:[#allocation32_spill] sm:$0xff] %v4112_v27  ;;  %3166 = vmatmul.msk.f32.gmra.mxu1 %vm247_vm1, %v4097_v60  ;;  %3268 = vmatmul.msk.f32.gmra.mxu0 %vm247_vm1, %v3743_v54  ;;  %v757_v54 = vadd.f32 %v756_v45, %v3965_v44 }
 0x116   : > { %v999_v28 = vpop.f32.mrf.mxu2 }
 0x117   : > { %v1093_v35 = vadd.f32 %v999_v28, %v754_v49  ;;  %v1277_v11 = vpop.f32.mrf.mxu3  ;;  %v4138_v28 = vld [vmem:[#allocation2 + $0x131] sm:$0xff] }
 0x119   : > { %v1371_v32 = vadd.f32 %v1277_v11, %v1093_v35  ;;  %v4140_v35 = vld [vmem:[#allocation2 + $0x14f] sm:$0xff] }
 0x11a   : > { %v759_v13 = vpop.f32.mrf.mxu1  ;;  %v1561_v41 = vpop.f32.mrf.mxu0 }
 0x11b   : > { %v4127_v27 = vadd.f32 %v1555_v6, %v1371_v32  ;;  %3200 = vmatmul.msk.f32.gmra.mxu2 %vm247_vm1, %v4123_v12 }
 0x11c   : > { %3234 = vmatmul.msk.f32.gmra.mxu3 %vm247_vm1, %v4125_v46 }
 0x11d   : > { %4770 = vst [vmem:[#allocation33_spill] sm:$0xff] %v4127_v27  ;;  %3167 = vmatmul.msk.f32.gmra.mxu1 %vm247_vm1, %v4110_v38  ;;  %3269 = vmatmul.msk.f32.gmra.mxu0 %vm247_vm1, %v3779_v61  ;;  %v760_v61 = vadd.f32 %v759_v13, %v3985_v53 }
 0x11e   : > { %v1002_v34 = vpop.f32.mrf.mxu2 }
 0x11f   : > { %v1094_v20 = vadd.f32 %v1002_v34, %v757_v54  ;;  %v1280_v49 = vpop.f32.mrf.mxu3  ;;  %v4153_v34 = vld [vmem:[#allocation2 + $0x149] sm:$0xff] }
 0x121   : > { %v1372_v6 = vadd.f32 %v1280_v49, %v1094_v20  ;;  %v4155_v20 = vld [vmem:[#allocation2 + $0x167] sm:$0xff] }
 0x122   : > { %v762_v11 = vpop.f32.mrf.mxu1  ;;  %v1564_v32 = vpop.f32.mrf.mxu0 }
 0x123   : > { %v4142_v27 = vadd.f32 %v1558_v63, %v1372_v6  ;;  %3201 = vmatmul.msk.f32.gmra.mxu2 %vm247_vm1, %v4138_v28 }
 0x124   : > { %3235 = vmatmul.msk.f32.gmra.mxu3 %vm247_vm1, %v4140_v35 }
 0x125   : > { %4771 = vst [vmem:[#allocation34_spill] sm:$0xff] %v4142_v27  ;;  %3168 = vmatmul.msk.f32.gmra.mxu1 %vm247_vm1, %v4125_v46  ;;  %3270 = vmatmul.msk.f32.gmra.mxu0 %vm247_vm1, %v3815_v4  ;;  %v763_v4 = vadd.f32 %v762_v11, %v4005_v10 }
 0x126   : > { %v1005_v44 = vpop.f32.mrf.mxu2 }
 0x127   : > { %v1095_v45 = vadd.f32 %v1005_v44, %v760_v61  ;;  %v1283_v54 = vpop.f32.mrf.mxu3  ;;  %v4168_v44 = vld [vmem:[#allocation2 + $0x151] sm:$0xff] }
 0x129   : > { %v1373_v63 = vadd.f32 %v1283_v54, %v1095_v45  ;;  %v4170_v45 = vld [vmem:[#allocation2 + $0x16f] sm:$0xff] }
 0x12a   : > { %v765_v49 = vpop.f32.mrf.mxu1  ;;  %v1567_v6 = vpop.f32.mrf.mxu0 }
 0x12b   : > { %v4157_v27 = vadd.f32 %v1561_v41, %v1373_v63  ;;  %3202 = vmatmul.msk.f32.gmra.mxu2 %vm247_vm1, %v4153_v34 }
 0x12c   : > { %3236 = vmatmul.msk.f32.gmra.mxu3 %vm247_vm1, %v4155_v20 }
 0x12d   : > { %4772 = vst [vmem:[#allocation35_spill] sm:$0xff] %v4157_v27  ;;  %3169 = vmatmul.msk.f32.gmra.mxu1 %vm247_vm1, %v4140_v35  ;;  %3271 = vmatmul.msk.f32.gmra.mxu0 %vm247_vm1, %v3843_v8  ;;  %v766_v8 = vadd.f32 %v765_v49, %v4025_v14 }
 0x12e   : > { %v1008_v53 = vpop.f32.mrf.mxu2 }
 0x12f   : > { %v1096_v13 = vadd.f32 %v1008_v53, %v763_v4  ;;  %v1286_v61 = vpop.f32.mrf.mxu3  ;;  %v4183_v53 = vld [vmem:[#allocation2 + $0x169] sm:$0xff] }
 0x131   : > { %v1374_v41 = vadd.f32 %v1286_v61, %v1096_v13  ;;  %v4185_v13 = vld [vmem:[#allocation2 + $0x187] sm:$0xff] }
 0x132   : > { %v768_v54 = vpop.f32.mrf.mxu1  ;;  %v1570_v63 = vpop.f32.mrf.mxu0 }
 0x133   : > { %v4172_v27 = vadd.f32 %v1564_v32, %v1374_v41  ;;  %3203 = vmatmul.msk.f32.gmra.mxu2 %vm247_vm1, %v4168_v44 }
 0x134   : > { %3237 = vmatmul.msk.f32.gmra.mxu3 %vm247_vm1, %v4170_v45 }
 0x135   : > { %4773 = vst [vmem:[#allocation36_spill] sm:$0xff] %v4172_v27  ;;  %3170 = vmatmul.msk.f32.gmra.mxu1 %vm247_vm1, %v4155_v20  ;;  %3272 = vmatmul.msk.f32.gmra.mxu0 %vm247_vm1, %v3648_v22  ;;  %v769_v22 = vadd.f32 %v768_v54, %v4045_v47 }
 0x136   : > { %v1011_v10 = vpop.f32.mrf.mxu2 }
 0x137   : > { %v1097_v11 = vadd.f32 %v1011_v10, %v766_v8  ;;  %v1289_v4 = vpop.f32.mrf.mxu3  ;;  %v4198_v10 = vld [vmem:[#allocation2 + $0x171] sm:$0xff] }
 0x139   : > { %v1375_v32 = vadd.f32 %v1289_v4, %v1097_v11  ;;  %v4200_v11 = vld [vmem:[#allocation2 + $0x18f] sm:$0xff] }
 0x13a   : > { %v771_v61 = vpop.f32.mrf.mxu1  ;;  %v1573_v41 = vpop.f32.mrf.mxu0  ;;  %4775 = vst [vmem:[#allocation38_spill] sm:$0xff] %v4200_v11 }
 0x13b   : > { %v4187_v27 = vadd.f32 %v1567_v6, %v1375_v32  ;;  %3204 = vmatmul.msk.f32.gmra.mxu2 %vm247_vm1, %v4183_v53 }
 0x13c   : > { %3238 = vmatmul.msk.f32.gmra.mxu3 %vm247_vm1, %v4185_v13 }
 0x13d   : > { %4774 = vst [vmem:[#allocation37_spill] sm:$0xff] %v4187_v27  ;;  %3171 = vmatmul.msk.f32.gmra.mxu1 %vm247_vm1, %v4170_v45  ;;  %3273 = vmatmul.msk.f32.gmra.mxu0 %vm247_vm1, %v3670_v31  ;;  %v772_v31 = vadd.f32 %v771_v61, %v4065_v58 }
 0x13e   : > { %v1014_v14 = vpop.f32.mrf.mxu2 }
 0x13f   : > { %v1098_v49 = vadd.f32 %v1014_v14, %v769_v22  ;;  %v1292_v8 = vpop.f32.mrf.mxu3  ;;  %v4213_v14 = vld [vmem:[#allocation2 + $0x189] sm:$0xff] }
 0x141   : > { %v1376_v6 = vadd.f32 %v1292_v8, %v1098_v49  ;;  %v1148_v49 = vld [vmem:[#allocation2 + $0x1a7] sm:$0xff] }
 0x142   : > { %v774_v4 = vpop.f32.mrf.mxu1  ;;  %v1576_v32 = vpop.f32.mrf.mxu0 }
 0x143   : > { %v4202_v27 = vadd.f32 %v1570_v63, %v1376_v6  ;;  %3205 = vmatmul.msk.f32.gmra.mxu2 %vm247_vm1, %v4198_v10  ;;  %v775_v58 = vadd.f32 %v774_v4, %v3927_v3  ;;  %v245_v3 = vld [vmem:[%s3499_s22 + $0xf0] sm:$0xff] }
 0x144   : > { %3239 = vmatmul.msk.f32.gmra.mxu3 %vm247_vm1, %v4200_v11  ;;  %352 = vst.msk [vmem:[#allocation2 + $0x208] sm:$0xff] %vm247_vm1, %v245_v3 }
 0x145   : > { %4776 = vst [vmem:[#allocation39_spill] sm:$0xff] %v4202_v27  ;;  %3172 = vmatmul.msk.f32.gmra.mxu1 %vm247_vm1, %v4185_v13  ;;  %3274 = vmatmul.msk.f32.gmra.mxu0 %vm247_vm1, %v3701_v42 }
 0x146   : > { %v1017_v47 = vpop.f32.mrf.mxu2 }
 0x147   : > { %v1099_v54 = vadd.f32 %v1017_v47, %v772_v31  ;;  %v1295_v22 = vpop.f32.mrf.mxu3  ;;  %v4225_v47 = vld [vmem:[#allocation2 + $0x191] sm:$0xff] }
 0x149   : > { %v1377_v63 = vadd.f32 %v1295_v22, %v1099_v54  ;;  %v1149_v54 = vld [vmem:[#allocation2 + $0x1af] sm:$0xff] }
 0x14a   : > { %v777_v8 = vpop.f32.mrf.mxu1  ;;  %v1579_v6 = vpop.f32.mrf.mxu0 }
 0x14b   : > { %v4215_v27 = vadd.f32 %v1573_v41, %v1377_v63  ;;  %3206 = vmatmul.msk.f32.gmra.mxu2 %vm247_vm1, %v4213_v14 }
 0x14c   : > { %3240 = vmatmul.msk.f32.gmra.mxu3 %vm247_vm1, %v1148_v49 }
 0x14d   : > { %4777 = vst [vmem:[#allocation40_spill] sm:$0xff] %v4215_v27  ;;  %3173 = vmatmul.msk.f32.gmra.mxu1 %vm247_vm1, %v4200_v11  ;;  %3275 = vmatmul.msk.f32.gmra.mxu0 %vm247_vm1, %v3727_v50  ;;  %v778_v50 = vadd.f32 %v777_v8, %v3945_v36  ;;  %v246_v36 = vld [vmem:[%s3499_s22 + $0xf8] sm:$0xff] }
 0x14e   : > { %v1020_v42 = vpop.f32.mrf.mxu2  ;;  %353 = vst.msk [vmem:[#allocation2 + $0x210] sm:$0xff] %vm247_vm1, %v246_v36 }
 0x14f   : > { %v1100_v61 = vadd.f32 %v1020_v42, %v775_v58  ;;  %v1298_v31 = vpop.f32.mrf.mxu3  ;;  %v872_v42 = vld [vmem:[#allocation2 + $0x1a9] sm:$0xff] }
 0x151   : > { %v1378_v41 = vadd.f32 %v1298_v31, %v1100_v61  ;;  %v1150_v31 = vld [vmem:[#allocation2 + $0x1c7] sm:$0xff] }
 0x152   : > { %v780_v22 = vpop.f32.mrf.mxu1  ;;  %v1582_v63 = vpop.f32.mrf.mxu0 }
 0x153   : > { %v4227_v27 = vadd.f32 %v1576_v32, %v1378_v41  ;;  %3207 = vmatmul.msk.f32.gmra.mxu2 %vm247_vm1, %v4225_v47 }
 0x154   : > { %3241 = vmatmul.msk.f32.gmra.mxu3 %vm247_vm1, %v1149_v54 }
 0x155   : > { %4778 = vst [vmem:[#allocation41_spill] sm:$0xff] %v4227_v27  ;;  %3174 = vmatmul.msk.f32.gmra.mxu1 %vm247_vm1, %v1148_v49  ;;  %3276 = vmatmul.msk.f32.gmra.mxu0 %vm247_vm1, %v3745_v55  ;;  %v781_v49 = vadd.f32 %v780_v22, %v3963_v40 }
 0x156   : > { %v1023_v4 = vpop.f32.mrf.mxu2 }
 0x157   : > { %v1101_v58 = vadd.f32 %v1023_v4, %v778_v50  ;;  %v1301_v32 = vpop.f32.mrf.mxu3  ;;  %v873_v50 = vld [vmem:[#allocation2 + $0x1b1] sm:$0xff] }
 0x158   : > { %v1151_v4 = vld [vmem:[#allocation2 + $0x1cf] sm:$0xff] }
 0x159   : > { %v1379_v61 = vadd.f32 %v1301_v32, %v1101_v58 }
 0x15a   : > { %v783_v41 = vpop.f32.mrf.mxu1  ;;  %v1585_v27 = vpop.f32.mrf.mxu0 }
 0x15b   : > { %v4238_v11 = vadd.f32 %v1579_v6, %v1379_v61  ;;  %3208 = vmatmul.msk.f32.gmra.mxu2 %vm247_vm1, %v872_v42  ;;  %v784_v40 = vadd.f32 %v783_v41, %v3983_v48  ;;  %v874_v61 = vld [vmem:[#allocation2 + $0x1c9] sm:$0xff] }
 0x15c   : > { %3242 = vmatmul.msk.f32.gmra.mxu3 %vm247_vm1, %v1150_v31 }
 0x15d   : > { %3175 = vmatmul.msk.f32.gmra.mxu1 %vm247_vm1, %v1149_v54  ;;  %3277 = vmatmul.msk.f32.gmra.mxu0 %vm247_vm1, %v3783_v62 }
 0x15e   : > { %v1026_v55 = vpop.f32.mrf.mxu2 }
 0x15f   : > { %v1102_v8 = vadd.f32 %v1026_v55, %v781_v49  ;;  %v1304_v3 = vpop.f32.mrf.mxu3  ;;  %v1152_v49 = vld [vmem:[#allocation2 + $0x1e7] sm:$0xff] }
 0x161   : > { %v1380_v6 = vadd.f32 %v1304_v3, %v1102_v8  ;;  %v875_v3 = vld [vmem:[#allocation2 + $0x1d1] sm:$0xff] }
 0x162   : > { %v786_v58 = vpop.f32.mrf.mxu1  ;;  %v1588_v32 = vpop.f32.mrf.mxu0 }
 0x163   : > { %v4248_v42 = vadd.f32 %v1582_v63, %v1380_v6  ;;  %3209 = vmatmul.msk.f32.gmra.mxu2 %vm247_vm1, %v873_v50  ;;  %v787_v48 = vadd.f32 %v786_v58, %v4003_v2  ;;  %v1153_v6 = vld [vmem:[#allocation2 + $0x1ef] sm:$0xff] }
 0x164   : > { %3243 = vmatmul.msk.f32.gmra.mxu3 %vm247_vm1, %v1151_v4 }
 0x165   : > { %3176 = vmatmul.msk.f32.gmra.mxu1 %vm247_vm1, %v1150_v31  ;;  %3278 = vmatmul.msk.f32.gmra.mxu0 %vm247_vm1, %v3819_v5 }
 0x166   : > { %v1029_v62 = vpop.f32.mrf.mxu2 }
 0x167   : > { %v1103_v54 = vadd.f32 %v1029_v62, %v784_v40  ;;  %v1307_v22 = vpop.f32.mrf.mxu3  ;;  %v1432_v62 = vld [vmem:[#allocation2 + $0x208] sm:$0xff] }
 0x169   : > { %v1381_v36 = vadd.f32 %v1307_v22, %v1103_v54  ;;  %v876_v22 = vld [vmem:[#allocation2 + $0x1e9] sm:$0xff] }
 0x16a   : > { %v789_v55 = vpop.f32.mrf.mxu1  ;;  %v1591_v63 = vpop.f32.mrf.mxu0 }
 0x16b   : > { %v4256_v8 = vadd.f32 %v1585_v27, %v1381_v36  ;;  %3210 = vmatmul.msk.f32.gmra.mxu2 %vm247_vm1, %v874_v61  ;;  %v790_v2 = vadd.f32 %v789_v55, %v4023_v1  ;;  %v1154_v36 = vld [vmem:[#allocation2 + $0x207] sm:$0xff] }
 0x16c   : > { %3244 = vmatmul.msk.f32.gmra.mxu3 %vm247_vm1, %v1152_v49 }
 0x16d   : > { %3177 = vmatmul.msk.f32.gmra.mxu1 %vm247_vm1, %v1151_v4  ;;  %3279 = vmatmul.msk.f32.gmra.mxu0 %vm247_vm1, %v3845_v9 }
 0x16e   : > { %v1032_v5 = vpop.f32.mrf.mxu2 }
 0x16f   : > { %v1104_v31 = vadd.f32 %v1032_v5, %v787_v48  ;;  %v1310_v41 = vpop.f32.mrf.mxu3 }
 0x171   : > { %v1382_v50 = vadd.f32 %v1310_v41, %v1104_v31 }
 0x172   : > { %v792_v40 = vpop.f32.mrf.mxu1  ;;  %v1594_v27 = vpop.f32.mrf.mxu0 }
 0x173   : > { %v4264_v54 = vadd.f32 %v1588_v32, %v1382_v50  ;;  %3211 = vmatmul.msk.f32.gmra.mxu2 %vm247_vm1, %v875_v3  ;;  %v1433_v32 = vld [vmem:[#allocation2 + $0x210] sm:$0xff]  ;;  %v793_v1 = vadd.f32 %v792_v40, %v4043_v37 }
 0x174   : > { %3245 = vmatmul.msk.f32.gmra.mxu3 %vm247_vm1, %v1153_v6  ;;  %v877_v3 = vld [vmem:[#allocation2 + $0x1f1] sm:$0xff] }
 0x175   : > { %3178 = vmatmul.msk.f32.gmra.mxu1 %vm247_vm1, %v1152_v49  ;;  %3280 = vmatmul.msk.f32.gmra.mxu0 %vm247_vm1, %v1432_v62  ;;  %v1155_v62 = vld [vmem:[#allocation2 + $0x20f] sm:$0xff] }
 0x176   : > { %v1035_v9 = vpop.f32.mrf.mxu2 }
 0x177   : > { %v1105_v4 = vadd.f32 %v1035_v9, %v790_v2  ;;  %v1313_v58 = vpop.f32.mrf.mxu3 }
 0x179   : > { %v1383_v61 = vadd.f32 %v1313_v58, %v1105_v4 }
 0x17a   : > { %v795_v48 = vpop.f32.mrf.mxu1  ;;  %v1597_v5 = vpop.f32.mrf.mxu0 }
 0x17b   : > { %v4271_v31 = vadd.f32 %v1591_v63, %v1383_v61  ;;  %3212 = vmatmul.msk.f32.gmra.mxu2 %vm247_vm1, %v876_v22  ;;  %v796_v37 = vadd.f32 %v795_v48, %v4063_v39 }
 0x17c   : > { %3246 = vmatmul.msk.f32.gmra.mxu3 %vm247_vm1, %v1154_v36 }
 0x17d   : > { %3179 = vmatmul.msk.f32.gmra.mxu1 %vm247_vm1, %v1153_v6  ;;  %3281 = vmatmul.msk.f32.gmra.mxu0 %vm247_vm1, %v1433_v32 }
 0x17e   : > { %v1038_v49 = vpop.f32.mrf.mxu2 }
 0x17f   : > { %v1106_v55 = vadd.f32 %v1038_v49, %v793_v1  ;;  %v1316_v41 = vpop.f32.mrf.mxu3 }
 0x181   : > { %v1384_v50 = vadd.f32 %v1316_v41, %v1106_v55 }
 0x182   : > { %v798_v2 = vpop.f32.mrf.mxu1  ;;  %v1600_v9 = vpop.f32.mrf.mxu0 }
 0x183   : > { %v4278_v63 = vadd.f32 %v1594_v27, %v1384_v50  ;;  %3213 = vmatmul.msk.f32.gmra.mxu2 %vm247_vm1, %v877_v3  ;;  %v799_v39 = vadd.f32 %v798_v2, %v3955_v33 }
 0x184   : > { %3247 = vmatmul.msk.f32.gmra.mxu3 %vm247_vm1, %v1155_v62 }
 0x185   : > { %3284 = vmatmul.msk.f32.vlgmr.msra.gmra.mxu1 %vm247_vm1, %v3864_v15  ;;  %3386 = vmatmul.msk.f32.vlgmr.msra.gmra.mxu0 %vm247_vm1, %v3887_v19 }
 0x186   : > { %v1041_v6 = vpop.f32.mrf.mxu2 }
 0x187   : > { %v1107_v40 = vadd.f32 %v1041_v6, %v796_v37  ;;  %v1319_v4 = vpop.f32.mrf.mxu3 }
 0x189   : > { %v1385_v58 = vadd.f32 %v1319_v4, %v1107_v40  ;;  %v2241_v40 = vld [vmem:[#allocation2 + $0x88] sm:$0xff] }
 0x18a   : > { %v801_v22 = vpop.f32.mrf.mxu1  ;;  %v1603_v61 = vpop.f32.mrf.mxu0 }
 0x18b   : > { %v4287_v27 = vadd.f32 %v1597_v5, %v1385_v58  ;;  %3318 = vmatmul.msk.f32.vlgmr.msra.gmra.mxu2 %vm247_vm1, %v3866_v16 }
 0x18c   : > { %3352 = vmatmul.msk.f32.vlgmr.msra.gmra.mxu3 %vm247_vm1, %v3731_v52  ;;  %v802_v52 = vadd.f32 %v801_v22, %v3975_v43 }
 0x18d   : > { %3285 = vmatmul.msk.f32.gmra.mxu1 %vm247_vm1, %v3875_v17  ;;  %3387 = vmatmul.msk.f32.gmra.mxu0 %vm247_vm1, %v3899_v23 }
 0x18e   : > { %v1044_v15 = vpop.f32.mrf.mxu2 }
 0x18f   : > { %v1108_v36 = vadd.f32 %v1044_v15, %v799_v39  ;;  %v1322_v48 = vpop.f32.mrf.mxu3 }
 0x191   : > { %v1386_v32 = vadd.f32 %v1322_v48, %v1108_v36  ;;  %v2242_v48 = vld [vmem:[#allocation2 + $0x90] sm:$0xff] }
 0x192   : > { %v804_v5 = vpop.f32.mrf.mxu1  ;;  %v1606_v1 = vpop.f32.mrf.mxu0 }
 0x193   : > { %v4298_v49 = vadd.f32 %v1600_v9, %v1386_v32  ;;  %3319 = vmatmul.msk.f32.gmra.mxu2 %vm247_vm1, %v3877_v18 }
 0x194   : > { %3353 = vmatmul.msk.f32.gmra.mxu3 %vm247_vm1, %v3749_v57  ;;  %v805_v57 = vadd.f32 %v804_v5, %v3995_v51 }
 0x195   : > { %3286 = vmatmul.msk.f32.gmra.mxu1 %vm247_vm1, %v3887_v19  ;;  %3388 = vmatmul.msk.f32.gmra.mxu0 %vm247_vm1, %v3911_v26 }
 0x196   : > { %v1047_v16 = vpop.f32.mrf.mxu2 }
 0x197   : > { %v1109_v17 = vadd.f32 %v1047_v16, %v802_v52  ;;  %v1325_v33 = vpop.f32.mrf.mxu3  ;;  %v4782_v52 = vld [vmem:[#allocation4_spill] sm:$0xff]  ;;  %v4783_v16 = vld [vmem:[#allocation22_spill] sm:$0xff] }
 0x199   : > { %v1387_v55 = vadd.f32 %v1325_v33, %v1109_v17 }
 0x19a   : > { %v807_v41 = vpop.f32.mrf.mxu1  ;;  %v1609_v3 = vpop.f32.mrf.mxu0 }
 0x19b   : > { %v4309_v50 = vadd.f32 %v1603_v61, %v1387_v55  ;;  %3320 = vmatmul.msk.f32.gmra.mxu2 %vm247_vm1, %v3889_v21 }
 0x19c   : > { %3354 = vmatmul.msk.f32.gmra.mxu3 %vm247_vm1, %v3789_v0  ;;  %v808_v0 = vadd.f32 %v807_v41, %v4015_v56 }
 0x19d   : > { %3287 = vmatmul.msk.f32.gmra.mxu1 %vm247_vm1, %v3899_v23  ;;  %3389 = vmatmul.msk.f32.gmra.mxu0 %vm247_vm1, %v3925_v30 }
 0x19e   : > { %v1050_v18 = vpop.f32.mrf.mxu2 }
 0x19f   : > { %v1110_v19 = vadd.f32 %v1050_v18, %v805_v57  ;;  %v1328_v43 = vpop.f32.mrf.mxu3  ;;  %v2243_v57 = vld [vmem:[#allocation2 + $0xa8] sm:$0xff] }
 0x1a1   : > { %v1388_v62 = vadd.f32 %v1328_v43, %v1110_v19 }
 0x1a2   : > { %v810_v2 = vpop.f32.mrf.mxu1  ;;  %v1612_v9 = vpop.f32.mrf.mxu0 }
 0x1a3   : > { %v4320_v37 = vadd.f32 %v1606_v1, %v1388_v62  ;;  %3321 = vmatmul.msk.f32.gmra.mxu2 %vm247_vm1, %v3901_v25  ;;  %v4779_v25 = vld [vmem:[#allocation3_spill] sm:$0xff]  ;;  %v4785_v62 = vld [vmem:[#allocation5_spill] sm:$0xff] }
 0x1a4   : > { %3355 = vmatmul.msk.f32.gmra.mxu3 %vm247_vm1, %v3825_v7  ;;  %v4780_v7 = vld [vmem:[#allocation18_spill] sm:$0xff] }
 0x1a5   : > { %3288 = vmatmul.msk.f32.gmra.mxu1 %vm247_vm1, %v3911_v26  ;;  %3390 = vmatmul.msk.f32.gmra.mxu0 %vm247_vm1, %v3939_v24  ;;  %v811_v56 = vadd.f32 %v810_v2, %v4780_v7  ;;  %v4781_v26 = vld [vmem:[#allocation7_spill] sm:$0xff]  ;;  %v4786_v2 = vld [vmem:[#allocation26_spill] sm:$0xff]  ;;  %v4789_v7 = vld [vmem:[#allocation29_spill] sm:$0xff] }
 0x1a6   : > { %v1053_v21 = vpop.f32.mrf.mxu2 }
 0x1a7   : > { %v1111_v23 = vadd.f32 %v1053_v21, %v808_v0  ;;  %v1331_v51 = vpop.f32.mrf.mxu3 }
 0x1a9   : > { %v1389_v6 = vadd.f32 %v1331_v51, %v1111_v23 }
 0x1aa   : > { %v813_v4 = vpop.f32.mrf.mxu1  ;;  %v1615_v58 = vpop.f32.mrf.mxu0 }
 0x1ab   : > { %v4331_v22 = vadd.f32 %v1609_v3, %v1389_v6  ;;  %3322 = vmatmul.msk.f32.gmra.mxu2 %vm247_vm1, %v4779_v25  ;;  %v814_v17 = vadd.f32 %v813_v4, %v4783_v16  ;;  %v2244_v6 = vld [vmem:[#allocation2 + $0xb0] sm:$0xff]  ;;  %v4788_v25 = vld [vmem:[#allocation8_spill] sm:$0xff]  ;;  %v4791_v16 = vld [vmem:[#allocation11_spill] sm:$0xff] }
 0x1ac   : > { %3356 = vmatmul.msk.f32.gmra.mxu3 %vm247_vm1, %v2241_v40 }
 0x1ad   : > { %3289 = vmatmul.msk.f32.gmra.mxu1 %vm247_vm1, %v3925_v30  ;;  %3391 = vmatmul.msk.f32.gmra.mxu0 %vm247_vm1, %v4781_v26  ;;  %v4784_v30 = vld [vmem:[#allocation10_spill] sm:$0xff] }
 0x1ae   : > { %v1056_v61 = vpop.f32.mrf.mxu2 }
 0x1af   : > { %v1112_v39 = vadd.f32 %v1056_v61, %v811_v56  ;;  %v1334_v15 = vpop.f32.mrf.mxu3 }
 0x1b1   : > { %v1390_v36 = vadd.f32 %v1334_v15, %v1112_v39 }
 0x1b2   : > { %v816_v32 = vpop.f32.mrf.mxu1  ;;  %v1618_v5 = vpop.f32.mrf.mxu0 }
 0x1b3   : > { %v4341_v1 = vadd.f32 %v1612_v9, %v1390_v36  ;;  %3323 = vmatmul.msk.f32.gmra.mxu2 %vm247_vm1, %v4782_v52  ;;  %v817_v9 = vadd.f32 %v816_v32, %v4786_v2 }
 0x1b4   : > { %3357 = vmatmul.msk.f32.gmra.mxu3 %vm247_vm1, %v2242_v48  ;;  %v2245_v48 = vld [vmem:[#allocation2 + $0xc8] sm:$0xff] }
 0x1b5   : > { %3290 = vmatmul.msk.f32.gmra.mxu1 %vm247_vm1, %v3939_v24  ;;  %3392 = vmatmul.msk.f32.gmra.mxu0 %vm247_vm1, %v4784_v30  ;;  %v4787_v24 = vld [vmem:[#allocation13_spill] sm:$0xff] }
 0x1b6   : > { %v1059_v33 = vpop.f32.mrf.mxu2 }
 0x1b7   : > { %v1113_v55 = vadd.f32 %v1059_v33, %v814_v17  ;;  %v1337_v41 = vpop.f32.mrf.mxu3  ;;  %v4792_v17 = vld [vmem:[#allocation6_spill] sm:$0xff] }
 0x1b9   : > { %v1391_v3 = vadd.f32 %v1337_v41, %v1113_v55 }
 0x1ba   : > { %v819_v18 = vpop.f32.mrf.mxu1  ;;  %v1621_v19 = vpop.f32.mrf.mxu0 }
 0x1bb   : > { %v4351_v43 = vadd.f32 %v1615_v58, %v1391_v3  ;;  %3324 = vmatmul.msk.f32.gmra.mxu2 %vm247_vm1, %v4785_v62  ;;  %v820_v56 = vadd.f32 %v819_v18, %v4789_v7  ;;  %v2246_v18 = vld [vmem:[#allocation2 + $0xd0] sm:$0xff] }
 0x1bc   : > { %3358 = vmatmul.msk.f32.gmra.mxu3 %vm247_vm1, %v2243_v57 }
 0x1bd   : > { %3291 = vmatmul.msk.f32.gmra.mxu1 %vm247_vm1, %v4781_v26  ;;  %3393 = vmatmul.msk.f32.gmra.mxu0 %vm247_vm1, %v4787_v24  ;;  %v4790_v26 = vld [vmem:[#allocation16_spill] sm:$0xff] }
 0x1be   : > { %v1062_v0 = vpop.f32.mrf.mxu2 }
 0x1bf   : > { %v1114_v21 = vadd.f32 %v1062_v0, %v817_v9  ;;  %v1340_v23 = vpop.f32.mrf.mxu3  ;;  %v4794_v9 = vld [vmem:[#allocation14_spill] sm:$0xff]  ;;  %v4795_v0 = vld [vmem:[#allocation9_spill] sm:$0xff] }
 0x1c1   : > { %v1392_v51 = vadd.f32 %v1340_v23, %v1114_v21 }
 0x1c2   : > { %v822_v40 = vpop.f32.mrf.mxu1  ;;  %v1624_v4 = vpop.f32.mrf.mxu0 }
 0x1c3   : > { %v4361_v58 = vadd.f32 %v1618_v5, %v1392_v51  ;;  %3325 = vmatmul.msk.f32.gmra.mxu2 %vm247_vm1, %v4788_v25  ;;  %v823_v33 = vadd.f32 %v822_v40, %v4792_v17  ;;  %v2247_v25 = vld [vmem:[#allocation2 + $0xe8] sm:$0xff]  ;;  %v2248_v17 = vld [vmem:[#allocation2 + $0xf0] sm:$0xff] }
 0x1c4   : > { %3359 = vmatmul.msk.f32.gmra.mxu3 %vm247_vm1, %v2244_v6 }
 0x1c5   : > { %3292 = vmatmul.msk.f32.gmra.mxu1 %vm247_vm1, %v4784_v30  ;;  %3394 = vmatmul.msk.f32.gmra.mxu0 %vm247_vm1, %v4790_v26  ;;  %v4793_v30 = vld [vmem:[#allocation20_spill] sm:$0xff] }
 0x1c6   : > { %v1065_v61 = vpop.f32.mrf.mxu2 }
 0x1c7   : > { %v1115_v39 = vadd.f32 %v1065_v61, %v820_v56  ;;  %v1343_v15 = vpop.f32.mrf.mxu3  ;;  %v4797_v61 = vld [vmem:[#allocation17_spill] sm:$0xff] }
 0x1c9   : > { %v1393_v36 = vadd.f32 %v1343_v15, %v1115_v39  ;;  %v4798_v39 = vld [vmem:[#allocation12_spill] sm:$0xff] }
 0x1ca   : > { %v825_v32 = vpop.f32.mrf.mxu1  ;;  %v1627_v5 = vpop.f32.mrf.mxu0 }
 0x1cb   : > { %v4371_v52 = vadd.f32 %v1621_v19, %v1393_v36  ;;  %3326 = vmatmul.msk.f32.gmra.mxu2 %vm247_vm1, %v4791_v16  ;;  %v826_v21 = vadd.f32 %v825_v32, %v4795_v0 }
 0x1cc   : > { %3360 = vmatmul.msk.f32.gmra.mxu3 %vm247_vm1, %v2245_v48 }
 0x1cd   : > { %3293 = vmatmul.msk.f32.gmra.mxu1 %vm247_vm1, %v4787_v24  ;;  %3395 = vmatmul.msk.f32.gmra.mxu0 %vm247_vm1, %v4793_v30  ;;  %v4796_v24 = vld [vmem:[#allocation24_spill] sm:$0xff] }
 0x1ce   : > { %v1068_v55 = vpop.f32.mrf.mxu2 }
 0x1cf   : > { %v1116_v41 = vadd.f32 %v1068_v55, %v823_v33  ;;  %v1346_v3 = vpop.f32.mrf.mxu3 }
 0x1d1   : > { %v1394_v57 = vadd.f32 %v1346_v3, %v1116_v41  ;;  %v4800_v41 = vld [vmem:[#allocation21_spill] sm:$0xff]  ;;  %v4801_v3 = vld [vmem:[#allocation15_spill] sm:$0xff] }
 0x1d2   : > { %v828_v19 = vpop.f32.mrf.mxu1  ;;  %v1630_v62 = vpop.f32.mrf.mxu0 }
 0x1d3   : > { %v4381_v2 = vadd.f32 %v1624_v4, %v1394_v57  ;;  %3327 = vmatmul.msk.f32.gmra.mxu2 %vm247_vm1, %v4794_v9  ;;  %v829_v15 = vadd.f32 %v828_v19, %v4798_v39 }
 0x1d4   : > { %3361 = vmatmul.msk.f32.gmra.mxu3 %vm247_vm1, %v2246_v18 }
 0x1d5   : > { %3294 = vmatmul.msk.f32.gmra.mxu1 %vm247_vm1, %v4790_v26  ;;  %3396 = vmatmul.msk.f32.gmra.mxu0 %vm247_vm1, %v4796_v24  ;;  %v4799_v26 = vld [vmem:[#allocation28_spill] sm:$0xff] }
 0x1d6   : > { %v1071_v23 = vpop.f32.mrf.mxu2 }
 0x1d7   : > { %v1117_v51 = vadd.f32 %v1071_v23, %v826_v21  ;;  %v1349_v6 = vpop.f32.mrf.mxu3  ;;  %v2249_v21 = vld [vmem:[#allocation2 + $0x108] sm:$0xff] }
 0x1d9   : > { %v1395_v40 = vadd.f32 %v1349_v6, %v1117_v51  ;;  %v4803_v6 = vld [vmem:[#allocation25_spill] sm:$0xff] }
 0x1da   : > { %v831_v4 = vpop.f32.mrf.mxu1  ;;  %v1633_v7 = vpop.f32.mrf.mxu0 }
 0x1db   : > { %v4391_v56 = vadd.f32 %v1627_v5, %v1395_v40  ;;  %3328 = vmatmul.msk.f32.gmra.mxu2 %vm247_vm1, %v4797_v61  ;;  %v832_v57 = vadd.f32 %v831_v4, %v4801_v3  ;;  %v4804_v40 = vld [vmem:[#allocation19_spill] sm:$0xff]  ;;  %v2251_v3 = vld [vmem:[#allocation2 + $0x128] sm:$0xff] }
 0x1dc   : > { %3362 = vmatmul.msk.f32.gmra.mxu3 %vm247_vm1, %v2247_v25 }
 0x1dd   : > { %3295 = vmatmul.msk.f32.gmra.mxu1 %vm247_vm1, %v4793_v30  ;;  %3397 = vmatmul.msk.f32.gmra.mxu0 %vm247_vm1, %v4799_v26  ;;  %v4802_v30 = vld [vmem:[#allocation31_spill] sm:$0xff] }
 0x1de   : > { %v1074_v36 = vpop.f32.mrf.mxu2 }
 0x1df   : > { %v1118_v48 = vadd.f32 %v1074_v36, %v829_v15  ;;  %v1352_v32 = vpop.f32.mrf.mxu3  ;;  %v2250_v15 = vld [vmem:[#allocation2 + $0x110] sm:$0xff] }
 0x1e1   : > { %v1396_v16 = vadd.f32 %v1352_v32, %v1118_v48  ;;  %v4805_v32 = vld [vmem:[#allocation23_spill] sm:$0xff] }
 0x1e2   : > { %v834_v5 = vpop.f32.mrf.mxu1  ;;  %v1636_v33 = vpop.f32.mrf.mxu0 }
 0x1e3   : > { %v4401_v55 = vadd.f32 %v1630_v62, %v1396_v16  ;;  %3329 = vmatmul.msk.f32.gmra.mxu2 %vm247_vm1, %v4800_v41  ;;  %v835_v25 = vadd.f32 %v834_v5, %v4804_v40 }
 0x1e4   : > { %3363 = vmatmul.msk.f32.gmra.mxu3 %vm247_vm1, %v2248_v17 }
 0x1e5   : > { %3296 = vmatmul.msk.f32.gmra.mxu1 %vm247_vm1, %v4796_v24  ;;  %3398 = vmatmul.msk.f32.gmra.mxu0 %vm247_vm1, %v4802_v30 }
 0x1e6   : > { %v1077_v18 = vpop.f32.mrf.mxu2 }
 0x1e7   : > { %v1119_v19 = vadd.f32 %v1077_v18, %v832_v57  ;;  %v1355_v9 = vpop.f32.mrf.mxu3 }
 0x1e9   : > { %v1397_v0 = vadd.f32 %v1355_v9, %v1119_v19 }
 0x1ea   : > { %v837_v62 = vpop.f32.mrf.mxu1  ;;  %v1639_v23 = vpop.f32.mrf.mxu0 }
 0x1eb   : > { %v4411_v51 = vadd.f32 %v1633_v7, %v1397_v0  ;;  %3330 = vmatmul.msk.f32.gmra.mxu2 %vm247_vm1, %v4803_v6  ;;  %v838_v16 = vadd.f32 %v837_v62, %v4805_v32  ;;  %v2252_v62 = vld [vmem:[#allocation2 + $0x130] sm:$0xff] }
 0x1ec   : > { %3364 = vmatmul.msk.f32.gmra.mxu3 %vm247_vm1, %v2249_v21 }
 0x1ed   : > { %3297 = vmatmul.msk.f32.gmra.mxu1 %vm247_vm1, %v4799_v26  ;;  %3399 = vmatmul.msk.f32.gmra.mxu0 %vm247_vm1, %v4108_v29 }
 0x1ee   : > { %v1080_v24 = vpop.f32.mrf.mxu2 }
 0x1ef   : > { %v1120_v4 = vadd.f32 %v1080_v24, %v835_v25  ;;  %v1358_v61 = vpop.f32.mrf.mxu3 }
 0x1f1   : > { %v1398_v39 = vadd.f32 %v1358_v61, %v1120_v4 }
 0x1f2   : > { %v840_v7 = vpop.f32.mrf.mxu1  ;;  %v1642_v36 = vpop.f32.mrf.mxu0 }
 0x1f3   : > { %v4421_v48 = vadd.f32 %v1636_v33, %v1398_v39  ;;  %3331 = vmatmul.msk.f32.gmra.mxu2 %vm247_vm1, %v4081_v59  ;;  %v4806_v59 = vld [vmem:[#allocation27_spill] sm:$0xff]  ;;  %v2253_v39 = vld [vmem:[#allocation2 + $0x148] sm:$0xff] }
 0x1f4   : > { %3365 = vmatmul.msk.f32.gmra.mxu3 %vm247_vm1, %v2250_v15  ;;  %v841_v19 = vadd.f32 %v840_v7, %v4806_v59 }
 0x1f5   : > { %3298 = vmatmul.msk.f32.gmra.mxu1 %vm247_vm1, %v4802_v30  ;;  %3400 = vmatmul.msk.f32.gmra.mxu0 %vm247_vm1, %v4123_v12 }
 0x1f6   : > { %v1083_v26 = vpop.f32.mrf.mxu2 }
 0x1f7   : > { %v1121_v17 = vadd.f32 %v1083_v26, %v838_v16  ;;  %v1361_v5 = vpop.f32.mrf.mxu3 }
 0x1f9   : > { %v1399_v41 = vadd.f32 %v1361_v5, %v1121_v17  ;;  %v2254_v5 = vld [vmem:[#allocation2 + $0x150] sm:$0xff] }
 0x1fa   : > { %v843_v33 = vpop.f32.mrf.mxu1  ;;  %v1645_v57 = vpop.f32.mrf.mxu0 }
 0x1fb   : > { %v4431_v18 = vadd.f32 %v1639_v23, %v1399_v41  ;;  %3332 = vmatmul.msk.f32.gmra.mxu2 %vm247_vm1, %v4097_v60  ;;  %v4807_v60 = vld [vmem:[#allocation30_spill] sm:$0xff] }
 0x1fc   : > { %3366 = vmatmul.msk.f32.gmra.mxu3 %vm247_vm1, %v2251_v3  ;;  %v844_v25 = vadd.f32 %v843_v33, %v4807_v60 }
 0x1fd   : > { %3299 = vmatmul.msk.f32.gmra.mxu1 %vm247_vm1, %v4108_v29  ;;  %3401 = vmatmul.msk.f32.gmra.mxu0 %vm247_vm1, %v4138_v28 }
 0x1fe   : > { %v1086_v30 = vpop.f32.mrf.mxu2 }
 0x1ff   : > { %v1122_v9 = vadd.f32 %v1086_v30, %v841_v19  ;;  %v1364_v0 = vpop.f32.mrf.mxu3 }
 0x201   : > { %v1400_v21 = vadd.f32 %v1364_v0, %v1122_v9  ;;  %v2255_v9 = vld [vmem:[#allocation2 + $0x168] sm:$0xff] }
 0x202   : > { %v1830_v23 = vpop.f32.mrf.mxu1  ;;  %v2665_v6 = vpop.f32.mrf.mxu0 }
 0x203   : > { %v4441_v40 = vadd.f32 %v1642_v36, %v1400_v21  ;;  %3333 = vmatmul.msk.f32.gmra.mxu2 %vm247_vm1, %v4110_v38  ;;  %v4808_v38 = vld [vmem:[#allocation32_spill] sm:$0xff] }
 0x204   : > { %3367 = vmatmul.msk.f32.gmra.mxu3 %vm247_vm1, %v2252_v62 }
 0x205   : > { %3300 = vmatmul.msk.f32.gmra.mxu1 %vm247_vm1, %v4123_v12  ;;  %3402 = vmatmul.msk.f32.gmra.mxu0 %vm247_vm1, %v4153_v34  ;;  %v1926_v12 = vadd.f32 %v1830_v23, %v4808_v38  ;;  %v2256_v38 = vld [vmem:[#allocation2 + $0x170] sm:$0xff] }
 0x206   : > { %v1089_v29 = vpop.f32.mrf.mxu2 }
 0x207   : > { %v1123_v24 = vadd.f32 %v1089_v29, %v844_v25  ;;  %v1367_v4 = vpop.f32.mrf.mxu3 }
 0x209   : > { %v1401_v61 = vadd.f32 %v1367_v4, %v1123_v24 }
 0x20a   : > { %v1833_v15 = vpop.f32.mrf.mxu1  ;;  %v2668_v7 = vpop.f32.mrf.mxu0 }
 0x20b   : > { %v4451_v36 = vadd.f32 %v1645_v57, %v1401_v61  ;;  %3334 = vmatmul.msk.f32.gmra.mxu2 %vm247_vm1, %v4125_v46 }
 0x20c   : > { %3368 = vmatmul.msk.f32.gmra.mxu3 %vm247_vm1, %v2253_v39 }
 0x20d   : > { %3301 = vmatmul.msk.f32.gmra.mxu1 %vm247_vm1, %v4138_v28  ;;  %3403 = vmatmul.msk.f32.gmra.mxu0 %vm247_vm1, %v4168_v44  ;;  %v4809_v28 = vld [vmem:[#allocation33_spill] sm:$0xff] }
 0x20e   : > { %v2109_v32 = vpop.f32.mrf.mxu2  ;;  %v1927_v33 = vadd.f32 %v1833_v15, %v4809_v28 }
 0x20f   : > { %v2205_v16 = vadd.f32 %v2109_v32, %v1926_v12  ;;  %v2387_v26 = vpop.f32.mrf.mxu3 }
 0x211   : > { %v2483_v17 = vadd.f32 %v2387_v26, %v2205_v16 }
 0x212   : > { %v1836_v46 = vpop.f32.mrf.mxu1  ;;  %v2671_v41 = vpop.f32.mrf.mxu0 }
 0x213   : > { %v2761_v3 = vadd.f32 %v2665_v6, %v2483_v17  ;;  %3335 = vmatmul.msk.f32.gmra.mxu2 %vm247_vm1, %v4140_v35 }
 0x214   : > { %3369 = vmatmul.msk.f32.gmra.mxu3 %vm247_vm1, %v2254_v5 }
 0x215   : > { %2794 = vst.msk [vmem:[%s4466_s17] sm:$0xff] %vm2793_vm3, %v2761_v3  ;;  %3302 = vmatmul.msk.f32.gmra.mxu1 %vm247_vm1, %v4153_v34  ;;  %3404 = vmatmul.msk.f32.gmra.mxu0 %vm247_vm1, %v4183_v53  ;;  %v2897_v21 = vmul.f32 %v2761_v3, %v2761_v3  ;;  %v2826_v23 = vsel %vm2793_vm3, %v2761_v3, 0.0  ;;  %v4810_v34 = vld [vmem:[#allocation34_spill] sm:$0xff] }
 0x216   : > { %v2112_v57 = vpop.f32.mrf.mxu2  ;;  %v1928_v6 = vadd.f32 %v1836_v46, %v4810_v34 }
 0x217   : > { %v2206_v59 = vadd.f32 %v2112_v57, %v1927_v33  ;;  %v2390_v19 = vpop.f32.mrf.mxu3  ;;  %v2929_v24 = vsel %vm2793_vm3, %v2897_v21, 0.0 }
 0x219   : > { %v2484_v30 = vadd.f32 %v2390_v19, %v2206_v59  ;;  %v2257_v59 = vld [vmem:[#allocation2 + $0x188] sm:$0xff] }
 0x21a   : > { %v1839_v0 = vpop.f32.mrf.mxu1  ;;  %v2674_v35 = vpop.f32.mrf.mxu0 }
 0x21b   : > { %v2762_v62 = vadd.f32 %v2668_v7, %v2484_v30  ;;  %3336 = vmatmul.msk.f32.gmra.mxu2 %vm247_vm1, %v4155_v20 }
 0x21c   : > { %3370 = vmatmul.msk.f32.gmra.mxu3 %vm247_vm1, %v2255_v9 }
 0x21d   : > { %2795 = vst.msk [vmem:[%s4466_s17 + $0x8] sm:$0xff] %vm2793_vm3, %v2762_v62  ;;  %v2827_v60 = vsel %vm2793_vm3, %v2762_v62, 0.0  ;;  %v2898_v25 = vmul.f32 %v2762_v62, %v2762_v62  ;;  %3303 = vmatmul.msk.f32.gmra.mxu1 %vm247_vm1, %v4168_v44  ;;  %3405 = vmatmul.msk.f32.gmra.mxu0 %vm247_vm1, %v4198_v10  ;;  %v4811_v44 = vld [vmem:[#allocation35_spill] sm:$0xff] }
 0x21e   : > { %v2828_v29 = vadd.f32 %v2827_v60, %v2826_v23  ;;  %v2115_v20 = vpop.f32.mrf.mxu2  ;;  %v1929_v26 = vadd.f32 %v1839_v0, %v4811_v44 }
 0x21f   : > { %v2930_v4 = vsel %vm2793_vm3, %v2898_v25, 0.0  ;;  %v2207_v61 = vadd.f32 %v2115_v20, %v1928_v6  ;;  %v2393_v39 = vpop.f32.mrf.mxu3  ;;  %v2258_v25 = vld [vmem:[#allocation2 + $0x190] sm:$0xff] }
 0x220   : > { %v2931_v15 = vadd.f32 %v2930_v4, %v2929_v24  ;;  %v1702_v20 = vld [vmem:[#allocation2 + $0x189] sm:$0xff] }
 0x221   : > { %v2485_v7 = vadd.f32 %v2393_v39, %v2207_v61  ;;  %v2537_v4 = vld [vmem:[#allocation2 + $0x1a9] sm:$0xff]  ;;  %v4813_v39 = vld [vmem:[#allocation38_spill] sm:$0xff] }
 0x222   : > { %v1842_v12 = vpop.f32.mrf.mxu1  ;;  %v2677_v32 = vpop.f32.mrf.mxu0 }
 0x223   : > { %v2763_v16 = vadd.f32 %v2671_v41, %v2485_v7  ;;  %3337 = vmatmul.msk.f32.gmra.mxu2 %vm247_vm1, %v4170_v45 }
 0x224   : > { %3371 = vmatmul.msk.f32.gmra.mxu3 %vm247_vm1, %v2256_v38 }
 0x225   : > { %2796 = vst.msk [vmem:[%s4466_s17 + $0x10] sm:$0xff] %vm2793_vm3, %v2763_v16  ;;  %v2829_v17 = vsel %vm2793_vm3, %v2763_v16, 0.0  ;;  %v2899_v5 = vmul.f32 %v2763_v16, %v2763_v16  ;;  %3304 = vmatmul.msk.f32.gmra.mxu1 %vm247_vm1, %v4183_v53  ;;  %3406 = vmatmul.msk.f32.gmra.mxu0 %vm247_vm1, %v4213_v14  ;;  %v4812_v53 = vld [vmem:[#allocation36_spill] sm:$0xff] }
 0x226   : > { %v2830_v46 = vadd.f32 %v2829_v17, %v2828_v29  ;;  %v2118_v41 = vpop.f32.mrf.mxu2  ;;  %v1930_v0 = vadd.f32 %v1842_v12, %v4812_v53  ;;  %v1981_v17 = vld [vmem:[#allocation2 + $0x1a7] sm:$0xff] }
 0x227   : > { %v2932_v45 = vsel %vm2793_vm3, %v2899_v5, 0.0  ;;  %v2208_v3 = vadd.f32 %v2118_v41, %v1929_v26  ;;  %v2396_v28 = vpop.f32.mrf.mxu3 }
 0x228   : > { %v2933_v33 = vadd.f32 %v2932_v45, %v2931_v15  ;;  %v1703_v45 = vld [vmem:[#allocation2 + $0x191] sm:$0xff] }
 0x229   : > { %v2486_v57 = vadd.f32 %v2396_v28, %v2208_v3  ;;  %v2538_v28 = vld [vmem:[#allocation2 + $0x1b1] sm:$0xff] }
 0x22a   : > { %v1845_v19 = vpop.f32.mrf.mxu1  ;;  %v2680_v30 = vpop.f32.mrf.mxu0 }
 0x22b   : > { %v2764_v9 = vadd.f32 %v2674_v35, %v2486_v57  ;;  %3338 = vmatmul.msk.f32.gmra.mxu2 %vm247_vm1, %v4185_v13  ;;  %v4815_v57 = vld [vmem:[#allocation39_spill] sm:$0xff] }
 0x22c   : > { %3372 = vmatmul.msk.f32.gmra.mxu3 %vm247_vm1, %v2257_v59 }
 0x22d   : > { %2797 = vst.msk [vmem:[%s4466_s17 + $0x18] sm:$0xff] %vm2793_vm3, %v2764_v9  ;;  %v2831_v14 = vsel %vm2793_vm3, %v2764_v9, 0.0  ;;  %v2900_v21 = vmul.f32 %v2764_v9, %v2764_v9  ;;  %3305 = vmatmul.msk.f32.gmra.mxu1 %vm247_vm1, %v4198_v10  ;;  %3407 = vmatmul.msk.f32.gmra.mxu0 %vm247_vm1, %v4225_v47  ;;  %v4814_v10 = vld [vmem:[#allocation37_spill] sm:$0xff] }
 0x22e   : > { %v2832_v62 = vadd.f32 %v2831_v14, %v2830_v46  ;;  %v2121_v35 = vpop.f32.mrf.mxu2  ;;  %v1931_v47 = vadd.f32 %v1845_v19, %v4814_v10  ;;  %v2259_v46 = vld [vmem:[#allocation2 + $0x1a8] sm:$0xff] }
 0x22f   : > { %v2934_v13 = vsel %vm2793_vm3, %v2900_v21, 0.0  ;;  %v2209_v23 = vadd.f32 %v2121_v35, %v1930_v0  ;;  %v2399_v34 = vpop.f32.mrf.mxu3  ;;  %v1982_v35 = vld [vmem:[#allocation2 + $0x1af] sm:$0xff] }
 0x230   : > { %v2935_v6 = vadd.f32 %v2934_v13, %v2933_v33 }
 0x231   : > { %v2487_v60 = vadd.f32 %v2399_v34, %v2209_v23  ;;  %v2260_v23 = vld [vmem:[#allocation2 + $0x1b0] sm:$0xff] }
 0x232   : > { %v1848_v29 = vpop.f32.mrf.mxu1  ;;  %v2683_v24 = vpop.f32.mrf.mxu0 }
 0x233   : > { %v2765_v61 = vadd.f32 %v2677_v32, %v2487_v60  ;;  %3339 = vmatmul.msk.f32.gmra.mxu2 %vm247_vm1, %v4813_v39  ;;  %v1932_v59 = vadd.f32 %v1848_v29, %v4815_v57  ;;  %v2539_v60 = vld [vmem:[#allocation2 + $0x1c9] sm:$0xff] }
 0x234   : > { %3373 = vmatmul.msk.f32.gmra.mxu3 %vm247_vm1, %v2258_v25  ;;  %v4816_v29 = vld [vmem:[#allocation40_spill] sm:$0xff] }
 0x235   : > { %2798 = vst.msk [vmem:[%s4466_s17 + $0x20] sm:$0xff] %vm2793_vm3, %v2765_v61  ;;  %v2833_v15 = vsel %vm2793_vm3, %v2765_v61, 0.0  ;;  %v2901_v7 = vmul.f32 %v2765_v61, %v2765_v61  ;;  %3306 = vmatmul.msk.f32.gmra.mxu1 %vm247_vm1, %v1702_v20  ;;  %3408 = vmatmul.msk.f32.gmra.mxu0 %vm247_vm1, %v2537_v4 }
 0x236   : > { %v2834_v38 = vadd.f32 %v2833_v15, %v2832_v62  ;;  %v2124_v12 = vpop.f32.mrf.mxu2 }
 0x237   : > { %v2936_v32 = vsel %vm2793_vm3, %v2901_v7, 0.0  ;;  %v2210_v16 = vadd.f32 %v2124_v12, %v1931_v47  ;;  %v2402_v44 = vpop.f32.mrf.mxu3  ;;  %v1983_v12 = vld [vmem:[#allocation2 + $0x1c7] sm:$0xff] }
 0x238   : > { %v2937_v26 = vadd.f32 %v2936_v32, %v2935_v6 }
 0x239   : > { %v2488_v5 = vadd.f32 %v2402_v44, %v2210_v16  ;;  %v2261_v16 = vld [vmem:[#allocation2 + $0x1c8] sm:$0xff] }
 0x23a   : > { %v1851_v41 = vpop.f32.mrf.mxu1  ;;  %v2686_v3 = vpop.f32.mrf.mxu0 }
 0x23b   : > { %v2766_v33 = vadd.f32 %v2680_v30, %v2488_v5  ;;  %3340 = vmatmul.msk.f32.gmra.mxu2 %vm247_vm1, %v1981_v17  ;;  %v1933_v20 = vadd.f32 %v1851_v41, %v4816_v29  ;;  %v2540_v17 = vld [vmem:[#allocation2 + $0x1d1] sm:$0xff] }
 0x23c   : > { %3374 = vmatmul.msk.f32.gmra.mxu3 %vm247_vm1, %v2259_v46 }
 0x23d   : > { %2799 = vst.msk [vmem:[%s4466_s17 + $0x28] sm:$0xff] %vm2793_vm3, %v2766_v33  ;;  %v2835_v19 = vsel %vm2793_vm3, %v2766_v33, 0.0  ;;  %v2902_v9 = vmul.f32 %v2766_v33, %v2766_v33  ;;  %3307 = vmatmul.msk.f32.gmra.mxu1 %vm247_vm1, %v1703_v45  ;;  %3409 = vmatmul.msk.f32.gmra.mxu0 %vm247_vm1, %v2538_v28 }
 0x23e   : > { %v2836_v53 = vadd.f32 %v2835_v19, %v2834_v38  ;;  %v2127_v0 = vpop.f32.mrf.mxu2 }
 0x23f   : > { %v2938_v30 = vsel %vm2793_vm3, %v2902_v9, 0.0  ;;  %v2211_v14 = vadd.f32 %v2127_v0, %v1932_v59  ;;  %v2405_v21 = vpop.f32.mrf.mxu3 }
 0x240   : > { %v2939_v62 = vadd.f32 %v2938_v30, %v2937_v26  ;;  %v2262_v30 = vld [vmem:[#allocation2 + $0x1d0] sm:$0xff] }
 0x241   : > { %v2489_v13 = vadd.f32 %v2405_v21, %v2211_v14 }
 0x242   : > { %v1854_v34 = vpop.f32.mrf.mxu1  ;;  %v2689_v6 = vpop.f32.mrf.mxu0 }
 0x243   : > { %v2767_v25 = vadd.f32 %v2683_v24, %v2489_v13  ;;  %3341 = vmatmul.msk.f32.gmra.mxu2 %vm247_vm1, %v1982_v35 }
 0x244   : > { %3375 = vmatmul.msk.f32.gmra.mxu3 %vm247_vm1, %v2260_v23 }
 0x245   : > { %2800 = vst.msk [vmem:[%s4466_s17 + $0x30] sm:$0xff] %vm2793_vm3, %v2767_v25  ;;  %v2837_v61 = vsel %vm2793_vm3, %v2767_v25, 0.0  ;;  %v2903_v39 = vmul.f32 %v2767_v25, %v2767_v25  ;;  %3308 = vmatmul.msk.f32.gmra.mxu1 %vm247_vm1, %v2537_v4  ;;  %3410 = vmatmul.msk.f32.gmra.mxu0 %vm247_vm1, %v2539_v60  ;;  %v4817_v4 = vld [vmem:[#allocation41_spill] sm:$0xff] }
 0x246   : > { %v2838_v10 = vadd.f32 %v2837_v61, %v2836_v53  ;;  %v2130_v47 = vpop.f32.mrf.mxu2  ;;  %v1934_v46 = vadd.f32 %v1854_v34, %v4817_v4  ;;  %v1984_v53 = vld [vmem:[#allocation2 + $0x1cf] sm:$0xff] }
 0x247   : > { %v2940_v24 = vsel %vm2793_vm3, %v2903_v39, 0.0  ;;  %v2212_v15 = vadd.f32 %v2130_v47, %v1933_v20  ;;  %v2408_v7 = vpop.f32.mrf.mxu3  ;;  %v1985_v39 = vld [vmem:[#allocation2 + $0x1e7] sm:$0xff] }
 0x248   : > { %v2941_v38 = vadd.f32 %v2940_v24, %v2939_v62  ;;  %v2541_v62 = vld [vmem:[#allocation2 + $0x1e9] sm:$0xff] }
 0x249   : > { %v2490_v32 = vadd.f32 %v2408_v7, %v2212_v15  ;;  %v2542_v15 = vld [vmem:[#allocation2 + $0x1f1] sm:$0xff] }
 0x24a   : > { %v1857_v44 = vpop.f32.mrf.mxu1  ;;  %v2692_v26 = vpop.f32.mrf.mxu0 }
 0x24b   : > { %v2768_v5 = vadd.f32 %v2686_v3, %v2490_v32  ;;  %3342 = vmatmul.msk.f32.gmra.mxu2 %vm247_vm1, %v1983_v12 }
 0x24c   : > { %3376 = vmatmul.msk.f32.gmra.mxu3 %vm247_vm1, %v2261_v16 }
 0x24d   : > { %2801 = vst.msk [vmem:[%s4466_s17 + $0x38] sm:$0xff] %vm2793_vm3, %v2768_v5  ;;  %v2839_v41 = vsel %vm2793_vm3, %v2768_v5, 0.0  ;;  %v2904_v45 = vmul.f32 %v2768_v5, %v2768_v5  ;;  %3309 = vmatmul.msk.f32.gmra.mxu1 %vm247_vm1, %v2538_v28  ;;  %3411 = vmatmul.msk.f32.gmra.mxu0 %vm247_vm1, %v2540_v17  ;;  %v1935_v28 = vadd.f32 %v1857_v44, %v4238_v11  ;;  %v2263_v11 = vld [vmem:[#allocation2 + $0x1e8] sm:$0xff] }
 0x24e   : > { %v2840_v33 = vadd.f32 %v2839_v41, %v2838_v10  ;;  %v2133_v57 = vpop.f32.mrf.mxu2 }
 0x24f   : > { %v2942_v3 = vsel %vm2793_vm3, %v2904_v45, 0.0  ;;  %v2213_v59 = vadd.f32 %v2133_v57, %v1934_v46  ;;  %v2411_v19 = vpop.f32.mrf.mxu3  ;;  %v1986_v46 = vld [vmem:[#allocation2 + $0x1ef] sm:$0xff] }
 0x250   : > { %v2943_v9 = vadd.f32 %v2942_v3, %v2941_v38  ;;  %v2543_v57 = vld [vmem:[#allocation2 + $0x209] sm:$0xff] }
 0x251   : > { %v2491_v0 = vadd.f32 %v2411_v19, %v2213_v59 }
 0x252   : > { %v1860_v14 = vpop.f32.mrf.mxu1  ;;  %v2695_v21 = vpop.f32.mrf.mxu0 }
 0x253   : > { %v2769_v35 = vadd.f32 %v2689_v6, %v2491_v0  ;;  %3343 = vmatmul.msk.f32.gmra.mxu2 %vm247_vm1, %v1984_v53 }
 0x254   : > { %3377 = vmatmul.msk.f32.gmra.mxu3 %vm247_vm1, %v2262_v30 }
 0x255   : > { %2802 = vst.msk [vmem:[%s4466_s17 + $0x40] sm:$0xff] %vm2793_vm3, %v2769_v35  ;;  %v2841_v13 = vsel %vm2793_vm3, %v2769_v35, 0.0  ;;  %v2905_v23 = vmul.f32 %v2769_v35, %v2769_v35  ;;  %3310 = vmatmul.msk.f32.gmra.mxu1 %vm247_vm1, %v2539_v60  ;;  %3412 = vmatmul.msk.f32.gmra.mxu0 %vm247_vm1, %v2541_v62  ;;  %v1936_v60 = vadd.f32 %v1860_v14, %v4248_v42  ;;  %v2264_v42 = vld [vmem:[#allocation2 + $0x1f0] sm:$0xff]  ;;  %v1987_v35 = vld [vmem:[#allocation2 + $0x207] sm:$0xff] }
 0x256   : > { %v2842_v34 = vadd.f32 %v2841_v13, %v2840_v33  ;;  %v2136_v25 = vpop.f32.mrf.mxu2 }
 0x257   : > { %v2944_v6 = vsel %vm2793_vm3, %v2905_v23, 0.0  ;;  %v2214_v29 = vadd.f32 %v2136_v25, %v1935_v28  ;;  %v2414_v20 = vpop.f32.mrf.mxu3 }
 0x258   : > { %v2945_v61 = vadd.f32 %v2944_v6, %v2943_v9 }
 0x259   : > { %v2492_v10 = vadd.f32 %v2414_v20, %v2214_v29 }
 0x25a   : > { %v1863_v47 = vpop.f32.mrf.mxu1  ;;  %v2698_v24 = vpop.f32.mrf.mxu0 }
 0x25b   : > { %v2770_v7 = vadd.f32 %v2692_v26, %v2492_v10  ;;  %3344 = vmatmul.msk.f32.gmra.mxu2 %vm247_vm1, %v1985_v39 }
 0x25c   : > { %3378 = vmatmul.msk.f32.gmra.mxu3 %vm247_vm1, %v2263_v11 }
 0x25d   : > { %2803 = vst.msk [vmem:[%s4466_s17 + $0x48] sm:$0xff] %vm2793_vm3, %v2770_v7  ;;  %v2843_v38 = vsel %vm2793_vm3, %v2770_v7, 0.0  ;;  %v2906_v12 = vmul.f32 %v2770_v7, %v2770_v7  ;;  %3311 = vmatmul.msk.f32.gmra.mxu1 %vm247_vm1, %v2540_v17  ;;  %3413 = vmatmul.msk.f32.gmra.mxu0 %vm247_vm1, %v2542_v15  ;;  %v1937_v17 = vadd.f32 %v1863_v47, %v4256_v8  ;;  %v2265_v8 = vld [vmem:[#allocation2 + $0x208] sm:$0xff] }
 0x25e   : > { %v2844_v32 = vadd.f32 %v2843_v38, %v2842_v34  ;;  %v2139_v16 = vpop.f32.mrf.mxu2  ;;  %v2544_v34 = vld [vmem:[#allocation2 + $0x211] sm:$0xff] }
 0x25f   : > { %v2946_v44 = vsel %vm2793_vm3, %v2906_v12, 0.0  ;;  %v2215_v26 = vadd.f32 %v2139_v16, %v1936_v60  ;;  %v2417_v5 = vpop.f32.mrf.mxu3  ;;  %v2545_v12 = vld [vmem:[#allocation2 + $0x229] sm:$0xff] }
 0x260   : > { %v2947_v4 = vadd.f32 %v2946_v44, %v2945_v61 }
 0x261   : > { %v2493_v41 = vadd.f32 %v2417_v5, %v2215_v26 }
 0x262   : > { %v1866_v45 = vpop.f32.mrf.mxu1  ;;  %v2701_v33 = vpop.f32.mrf.mxu0 }
 0x263   : > { %v2771_v3 = vadd.f32 %v2695_v21, %v2493_v41  ;;  %3345 = vmatmul.msk.f32.gmra.mxu2 %vm247_vm1, %v1986_v46 }
 0x264   : > { %3379 = vmatmul.msk.f32.gmra.mxu3 %vm247_vm1, %v2264_v42 }
 0x265   : > { %2804 = vst.msk [vmem:[%s4466_s17 + $0x50] sm:$0xff] %vm2793_vm3, %v2771_v3  ;;  %v2845_v59 = vsel %vm2793_vm3, %v2771_v3, 0.0  ;;  %v2907_v19 = vmul.f32 %v2771_v3, %v2771_v3  ;;  %3312 = vmatmul.msk.f32.gmra.mxu1 %vm247_vm1, %v2541_v62  ;;  %3414 = vmatmul.msk.f32.gmra.mxu0 %vm247_vm1, %v2543_v57  ;;  %v1938_v62 = vadd.f32 %v1866_v45, %v4264_v54  ;;  %v2266_v54 = vld [vmem:[#allocation2 + $0x210] sm:$0xff]  ;;  %v1989_v45 = vld [vmem:[#allocation2 + $0x227] sm:$0xff] }
 0x266   : > { %v2846_v9 = vadd.f32 %v2845_v59, %v2844_v32  ;;  %v2142_v53 = vpop.f32.mrf.mxu2  ;;  %v2546_v59 = vld [vmem:[#allocation2 + $0x231] sm:$0xff] }
 0x267   : > { %v2948_v0 = vsel %vm2793_vm3, %v2907_v19, 0.0  ;;  %v2216_v30 = vadd.f32 %v2142_v53, %v1937_v17  ;;  %v2420_v14 = vpop.f32.mrf.mxu3 }
 0x268   : > { %v2949_v21 = vadd.f32 %v2948_v0, %v2947_v4 }
 0x269   : > { %v2494_v28 = vadd.f32 %v2420_v14, %v2216_v30 }
 0x26a   : > { %v1869_v13 = vpop.f32.mrf.mxu1  ;;  %v2704_v23 = vpop.f32.mrf.mxu0 }
 0x26b   : > { %v2772_v25 = vadd.f32 %v2698_v24, %v2494_v28  ;;  %3346 = vmatmul.msk.f32.gmra.mxu2 %vm247_vm1, %v1987_v35  ;;  %v1988_v24 = vld [vmem:[#allocation2 + $0x20f] sm:$0xff] }
 0x26c   : > { %3380 = vmatmul.msk.f32.gmra.mxu3 %vm247_vm1, %v2265_v8  ;;  %v1990_v8 = vld [vmem:[#allocation2 + $0x22f] sm:$0xff] }
 0x26d   : > { %2805 = vst.msk [vmem:[%s4466_s17 + $0x58] sm:$0xff] %vm2793_vm3, %v2772_v25  ;;  %v2847_v6 = vsel %vm2793_vm3, %v2772_v25, 0.0  ;;  %v2908_v29 = vmul.f32 %v2772_v25, %v2772_v25  ;;  %3313 = vmatmul.msk.f32.gmra.mxu1 %vm247_vm1, %v2542_v15  ;;  %3415 = vmatmul.msk.f32.gmra.mxu0 %vm247_vm1, %v2544_v34  ;;  %v1939_v15 = vadd.f32 %v1869_v13, %v4271_v31  ;;  %v2267_v31 = vld [vmem:[#allocation2 + $0x228] sm:$0xff] }
 0x26e   : > { %v2848_v20 = vadd.f32 %v2847_v6, %v2846_v9  ;;  %v2145_v61 = vpop.f32.mrf.mxu2 }
 0x26f   : > { %v2950_v39 = vsel %vm2793_vm3, %v2908_v29, 0.0  ;;  %v2217_v10 = vadd.f32 %v2145_v61, %v1938_v62  ;;  %v2423_v11 = vpop.f32.mrf.mxu3 }
 0x270   : > { %v2951_v47 = vadd.f32 %v2950_v39, %v2949_v21 }
 0x271   : > { %v2495_v7 = vadd.f32 %v2423_v11, %v2217_v10 }
 0x272   : > { %v1872_v60 = vpop.f32.mrf.mxu1  ;;  %v2707_v38 = vpop.f32.mrf.mxu0 }
 0x273   : > { %v2773_v32 = vadd.f32 %v2701_v33, %v2495_v7  ;;  %3347 = vmatmul.msk.f32.gmra.mxu2 %vm247_vm1, %v1988_v24 }
 0x274   : > { %3381 = vmatmul.msk.f32.gmra.mxu3 %vm247_vm1, %v2266_v54 }
 0x275   : > { %2806 = vst.msk [vmem:[%s4466_s17 + $0x60] sm:$0xff] %vm2793_vm3, %v2773_v32  ;;  %v2849_v16 = vsel %vm2793_vm3, %v2773_v32, 0.0  ;;  %v2909_v44 = vmul.f32 %v2773_v32, %v2773_v32  ;;  %3314 = vmatmul.msk.f32.gmra.mxu1 %vm247_vm1, %v2543_v57  ;;  %3416 = vmatmul.msk.f32.gmra.mxu0 %vm247_vm1, %v2545_v12  ;;  %v1940_v57 = vadd.f32 %v1872_v60, %v4278_v63  ;;  %v2268_v63 = vld [vmem:[#allocation2 + $0x230] sm:$0xff] }
 0x276   : > { %v2850_v26 = vadd.f32 %v2849_v16, %v2848_v20  ;;  %v2148_v5 = vpop.f32.mrf.mxu2 }
 0x277   : > { %v2952_v4 = vsel %vm2793_vm3, %v2909_v44, 0.0  ;;  %v2218_v46 = vadd.f32 %v2148_v5, %v1939_v15  ;;  %v2426_v41 = vpop.f32.mrf.mxu3 }
 0x278   : > { %v2953_v42 = vadd.f32 %v2952_v4, %v2951_v47 }
 0x279   : > { %v2496_v33 = vadd.f32 %v2426_v41, %v2218_v46 }
 0x27a   : > { %v1875_v3 = vpop.f32.mrf.mxu1  ;;  %v2710_v17 = vpop.f32.mrf.mxu0 }
 0x27b   : > { %v2774_v19 = vadd.f32 %v2704_v23, %v2496_v33  ;;  %3348 = vmatmul.msk.f32.gmra.mxu2 %vm247_vm1, %v1989_v45 }
 0x27c   : > { %3382 = vmatmul.msk.f32.gmra.mxu3 %vm247_vm1, %v2267_v31 }
 0x27d   : > { %2807 = vst.msk [vmem:[%s4466_s17 + $0x68] sm:$0xff] %vm2793_vm3, %v2774_v19  ;;  %v2851_v9 = vsel %vm2793_vm3, %v2774_v19, 0.0  ;;  %v2910_v53 = vmul.f32 %v2774_v19, %v2774_v19  ;;  %3315 = vmatmul.msk.f32.gmra.mxu1 %vm247_vm1, %v2544_v34  ;;  %3417 = vmatmul.msk.f32.gmra.mxu0 %vm247_vm1, %v2546_v59  ;;  %v1941_v34 = vadd.f32 %v1875_v3, %v4287_v27 }
 0x27e   : > { %v2852_v0 = vadd.f32 %v2851_v9, %v2850_v26  ;;  %v2151_v30 = vpop.f32.mrf.mxu2 }
 0x27f   : > { %v2954_v14 = vsel %vm2793_vm3, %v2910_v53, 0.0  ;;  %v2219_v21 = vadd.f32 %v2151_v30, %v1940_v57  ;;  %v2429_v35 = vpop.f32.mrf.mxu3 }
 0x280   : > { %v2955_v28 = vadd.f32 %v2954_v14, %v2953_v42 }
 0x281   : > { %v2497_v13 = vadd.f32 %v2429_v35, %v2219_v21 }
 0x282   : > { %v1878_v23 = vpop.f32.mrf.mxu1  ;;  %v2713_v25 = vpop.f32.mrf.mxu0 }
 0x283   : > { %v2775_v62 = vadd.f32 %v2707_v38, %v2497_v13  ;;  %3349 = vmatmul.msk.f32.gmra.mxu2 %vm247_vm1, %v1990_v8  ;;  %v1942_v38 = vadd.f32 %v1878_v23, %v4298_v49 }
 0x284   : > { %3383 = vmatmul.msk.f32.gmra.mxu3 %vm247_vm1, %v2268_v63 }
 0x285   : > { %2808 = vst.msk [vmem:[%s4466_s17 + $0x70] sm:$0xff] %vm2793_vm3, %v2775_v62  ;;  %v2853_v6 = vsel %vm2793_vm3, %v2775_v62, 0.0  ;;  %v2911_v29 = vmul.f32 %v2775_v62, %v2775_v62 }
 0x286   : > { %v2854_v20 = vadd.f32 %v2853_v6, %v2852_v0  ;;  %v2154_v61 = vpop.f32.mrf.mxu2 }
 0x287   : > { %v2956_v39 = vsel %vm2793_vm3, %v2911_v29, 0.0  ;;  %v2220_v10 = vadd.f32 %v2154_v61, %v1941_v34  ;;  %v2432_v11 = vpop.f32.mrf.mxu3 }
 0x288   : > { %v2957_v47 = vadd.f32 %v2956_v39, %v2955_v28 }
 0x289   : > { %v2498_v24 = vadd.f32 %v2432_v11, %v2220_v10 }
 0x28a   : > { %v1881_v7 = vpop.f32.mrf.mxu1  ;;  %v2716_v54 = vpop.f32.mrf.mxu0 }
 0x28b   : > { %v2776_v60 = vadd.f32 %v2710_v17, %v2498_v24  ;;  %v1943_v45 = vadd.f32 %v1881_v7, %v4309_v50 }
 0x28d   : > { %2809 = vst.msk [vmem:[%s4466_s17 + $0x78] sm:$0xff] %vm2793_vm3, %v2776_v60  ;;  %v2855_v27 = vsel %vm2793_vm3, %v2776_v60, 0.0  ;;  %v2912_v12 = vmul.f32 %v2776_v60, %v2776_v60 }
 0x28e   : > { %v2856_v32 = vadd.f32 %v2855_v27, %v2854_v20  ;;  %v2157_v15 = vpop.f32.mrf.mxu2 }
 0x28f   : > { %v2958_v16 = vsel %vm2793_vm3, %v2912_v12, 0.0  ;;  %v2221_v44 = vadd.f32 %v2157_v15, %v1942_v38  ;;  %v2435_v26 = vpop.f32.mrf.mxu3 }
 0x290   : > { %v2959_v5 = vadd.f32 %v2958_v16, %v2957_v47 }
 0x291   : > { %v2499_v4 = vadd.f32 %v2435_v26, %v2221_v44 }
 0x292   : > { %v1884_v46 = vpop.f32.mrf.mxu1  ;;  %v2719_v41 = vpop.f32.mrf.mxu0 }
 0x293   : > { %v2777_v42 = vadd.f32 %v2713_v25, %v2499_v4  ;;  %v1944_v14 = vadd.f32 %v1884_v46, %v4320_v37 }
 0x295   : > { %2810 = vst.msk [vmem:[%s4466_s17 + $0x80] sm:$0xff] %vm2793_vm3, %v2777_v42  ;;  %v2857_v49 = vsel %vm2793_vm3, %v2777_v42, 0.0  ;;  %v2913_v33 = vmul.f32 %v2777_v42, %v2777_v42 }
 0x296   : > { %v2858_v31 = vadd.f32 %v2857_v49, %v2856_v32  ;;  %v2160_v3 = vpop.f32.mrf.mxu2 }
 0x297   : > { %v2960_v17 = vsel %vm2793_vm3, %v2913_v33, 0.0  ;;  %v2222_v59 = vadd.f32 %v2160_v3, %v1943_v45  ;;  %v2438_v19 = vpop.f32.mrf.mxu3 }
 0x298   : > { %v2961_v57 = vadd.f32 %v2960_v17, %v2959_v5 }
 0x299   : > { %v2500_v9 = vadd.f32 %v2438_v19, %v2222_v59 }
 0x29a   : > { %v1887_v53 = vpop.f32.mrf.mxu1  ;;  %v2722_v0 = vpop.f32.mrf.mxu0 }
 0x29b   : > { %v2778_v30 = vadd.f32 %v2716_v54, %v2500_v9  ;;  %v1945_v29 = vadd.f32 %v1887_v53, %v4331_v22 }
 0x29d   : > { %2811 = vst.msk [vmem:[%s4466_s17 + $0x88] sm:$0xff] %vm2793_vm3, %v2778_v30  ;;  %v2859_v50 = vsel %vm2793_vm3, %v2778_v30, 0.0  ;;  %v2914_v21 = vmul.f32 %v2778_v30, %v2778_v30 }
 0x29e   : > { %v2860_v35 = vadd.f32 %v2859_v50, %v2858_v31  ;;  %v2163_v28 = vpop.f32.mrf.mxu2 }
 0x29f   : > { %v2962_v8 = vsel %vm2793_vm3, %v2914_v21, 0.0  ;;  %v2223_v13 = vadd.f32 %v2163_v28, %v1944_v14  ;;  %v2441_v63 = vpop.f32.mrf.mxu3 }
 0x2a0   : > { %v2963_v23 = vadd.f32 %v2962_v8, %v2961_v57 }
 0x2a1   : > { %v2501_v25 = vadd.f32 %v2441_v63, %v2223_v13 }
 0x2a2   : > { %v1890_v62 = vpop.f32.mrf.mxu1  ;;  %v2725_v34 = vpop.f32.mrf.mxu0 }
 0x2a3   : > { %v2779_v6 = vadd.f32 %v2719_v41, %v2501_v25  ;;  %v1946_v27 = vadd.f32 %v1890_v62, %v4341_v1 }
 0x2a5   : > { %2812 = vst.msk [vmem:[%s4466_s17 + $0x90] sm:$0xff] %vm2793_vm3, %v2779_v6  ;;  %v2861_v37 = vsel %vm2793_vm3, %v2779_v6, 0.0  ;;  %v2915_v20 = vmul.f32 %v2779_v6, %v2779_v6 }
 0x2a6   : > { %v2862_v61 = vadd.f32 %v2861_v37, %v2860_v35  ;;  %v2166_v39 = vpop.f32.mrf.mxu2 }
 0x2a7   : > { %v2964_v10 = vsel %vm2793_vm3, %v2915_v20, 0.0  ;;  %v2224_v11 = vadd.f32 %v2166_v39, %v1945_v29  ;;  %v2444_v47 = vpop.f32.mrf.mxu3 }
 0x2a8   : > { %v2965_v24 = vadd.f32 %v2964_v10, %v2963_v23 }
 0x2a9   : > { %v2502_v7 = vadd.f32 %v2444_v47, %v2224_v11 }
 0x2aa   : > { %v1893_v54 = vpop.f32.mrf.mxu1  ;;  %v2728_v60 = vpop.f32.mrf.mxu0 }
 0x2ab   : > { %v2780_v38 = vadd.f32 %v2722_v0, %v2502_v7  ;;  %v1947_v45 = vadd.f32 %v1893_v54, %v4351_v43 }
 0x2ad   : > { %2813 = vst.msk [vmem:[%s4466_s17 + $0x98] sm:$0xff] %vm2793_vm3, %v2780_v38  ;;  %v2863_v22 = vsel %vm2793_vm3, %v2780_v38, 0.0  ;;  %v2916_v12 = vmul.f32 %v2780_v38, %v2780_v38 }
 0x2ae   : > { %v2864_v32 = vadd.f32 %v2863_v22, %v2862_v61  ;;  %v2169_v15 = vpop.f32.mrf.mxu2 }
 0x2af   : > { %v2966_v16 = vsel %vm2793_vm3, %v2916_v12, 0.0  ;;  %v2225_v44 = vadd.f32 %v2169_v15, %v1946_v27  ;;  %v2447_v26 = vpop.f32.mrf.mxu3 }
 0x2b0   : > { %v2967_v5 = vadd.f32 %v2966_v16, %v2965_v24 }
 0x2b1   : > { %v2503_v4 = vadd.f32 %v2447_v26, %v2225_v44 }
 0x2b2   : > { %v1896_v46 = vpop.f32.mrf.mxu1  ;;  %v2731_v41 = vpop.f32.mrf.mxu0 }
 0x2b3   : > { %v2781_v42 = vadd.f32 %v2725_v34, %v2503_v4  ;;  %v1948_v30 = vadd.f32 %v1896_v46, %v4361_v58 }
 0x2b5   : > { %2814 = vst.msk [vmem:[%s4466_s17 + $0xa0] sm:$0xff] %vm2793_vm3, %v2781_v42  ;;  %v2865_v1 = vsel %vm2793_vm3, %v2781_v42, 0.0  ;;  %v2917_v49 = vmul.f32 %v2781_v42, %v2781_v42 }
 0x2b6   : > { %v2866_v33 = vadd.f32 %v2865_v1, %v2864_v32  ;;  %v2172_v31 = vpop.f32.mrf.mxu2 }
 0x2b7   : > { %v2968_v3 = vsel %vm2793_vm3, %v2917_v49, 0.0  ;;  %v2226_v17 = vadd.f32 %v2172_v31, %v1947_v45  ;;  %v2450_v59 = vpop.f32.mrf.mxu3 }
 0x2b8   : > { %v2969_v19 = vadd.f32 %v2968_v3, %v2967_v5 }
 0x2b9   : > { %v2504_v57 = vadd.f32 %v2450_v59, %v2226_v17 }
 0x2ba   : > { %v1899_v9 = vpop.f32.mrf.mxu1  ;;  %v2734_v53 = vpop.f32.mrf.mxu0 }
 0x2bb   : > { %v2782_v0 = vadd.f32 %v2728_v60, %v2504_v57  ;;  %v1949_v34 = vadd.f32 %v1899_v9, %v4371_v52 }
 0x2bd   : > { %2815 = vst.msk [vmem:[%s4466_s17 + $0xa8] sm:$0xff] %vm2793_vm3, %v2782_v0  ;;  %v2867_v43 = vsel %vm2793_vm3, %v2782_v0, 0.0  ;;  %v2918_v14 = vmul.f32 %v2782_v0, %v2782_v0 }
 0x2be   : > { %v2868_v50 = vadd.f32 %v2867_v43, %v2866_v33  ;;  %v2175_v21 = vpop.f32.mrf.mxu2 }
 0x2bf   : > { %v2970_v35 = vsel %vm2793_vm3, %v2918_v14, 0.0  ;;  %v2227_v28 = vadd.f32 %v2175_v21, %v1948_v30  ;;  %v2453_v8 = vpop.f32.mrf.mxu3 }
 0x2c0   : > { %v2971_v13 = vadd.f32 %v2970_v35, %v2969_v19 }
 0x2c1   : > { %v2505_v63 = vadd.f32 %v2453_v8, %v2227_v28 }
 0x2c2   : > { %v1902_v23 = vpop.f32.mrf.mxu1  ;;  %v2737_v25 = vpop.f32.mrf.mxu0 }
 0x2c3   : > { %v2783_v62 = vadd.f32 %v2731_v41, %v2505_v63  ;;  %v1950_v54 = vadd.f32 %v1902_v23, %v4381_v2 }
 0x2c5   : > { %2816 = vst.msk [vmem:[%s4466_s17 + $0xb0] sm:$0xff] %vm2793_vm3, %v2783_v62  ;;  %v2869_v58 = vsel %vm2793_vm3, %v2783_v62, 0.0  ;;  %v2919_v6 = vmul.f32 %v2783_v62, %v2783_v62 }
 0x2c6   : > { %v2870_v29 = vadd.f32 %v2869_v58, %v2868_v50  ;;  %v2178_v37 = vpop.f32.mrf.mxu2 }
 0x2c7   : > { %v2972_v20 = vsel %vm2793_vm3, %v2919_v6, 0.0  ;;  %v2228_v61 = vadd.f32 %v2178_v37, %v1949_v34  ;;  %v2456_v39 = vpop.f32.mrf.mxu3 }
 0x2c8   : > { %v2973_v10 = vadd.f32 %v2972_v20, %v2971_v13 }
 0x2c9   : > { %v2506_v11 = vadd.f32 %v2456_v39, %v2228_v61 }
 0x2ca   : > { %v1905_v47 = vpop.f32.mrf.mxu1  ;;  %v2740_v7 = vpop.f32.mrf.mxu0 }
 0x2cb   : > { %v2784_v24 = vadd.f32 %v2734_v53, %v2506_v11  ;;  %v1951_v5 = vadd.f32 %v1905_v47, %v4391_v56 }
 0x2cd   : > { %2817 = vst.msk [vmem:[%s4466_s17 + $0xb8] sm:$0xff] %vm2793_vm3, %v2784_v24  ;;  %v2871_v52 = vsel %vm2793_vm3, %v2784_v24, 0.0  ;;  %v2920_v60 = vmul.f32 %v2784_v24, %v2784_v24 }
 0x2ce   : > { %v2872_v38 = vadd.f32 %v2871_v52, %v2870_v29  ;;  %v2181_v27 = vpop.f32.mrf.mxu2 }
 0x2cf   : > { %v2974_v22 = vsel %vm2793_vm3, %v2920_v60, 0.0  ;;  %v2229_v12 = vadd.f32 %v2181_v27, %v1950_v54  ;;  %v2459_v32 = vpop.f32.mrf.mxu3 }
 0x2d0   : > { %v2975_v15 = vadd.f32 %v2974_v22, %v2973_v10 }
 0x2d1   : > { %v2507_v16 = vadd.f32 %v2459_v32, %v2229_v12 }
 0x2d2   : > { %v1908_v44 = vpop.f32.mrf.mxu1  ;;  %v2743_v42 = vpop.f32.mrf.mxu0 }
 0x2d3   : > { %v2785_v26 = vadd.f32 %v2737_v25, %v2507_v16  ;;  %v1952_v59 = vadd.f32 %v1908_v44, %v4401_v55 }
 0x2d5   : > { %2818 = vst.msk [vmem:[%s4466_s17 + $0xc0] sm:$0xff] %vm2793_vm3, %v2785_v26  ;;  %v2873_v2 = vsel %vm2793_vm3, %v2785_v26, 0.0  ;;  %v2921_v4 = vmul.f32 %v2785_v26, %v2785_v26 }
 0x2d6   : > { %v2874_v46 = vadd.f32 %v2873_v2, %v2872_v38  ;;  %v2184_v41 = vpop.f32.mrf.mxu2 }
 0x2d7   : > { %v2976_v45 = vsel %vm2793_vm3, %v2921_v4, 0.0  ;;  %v2230_v1 = vadd.f32 %v2184_v41, %v1951_v5  ;;  %v2462_v49 = vpop.f32.mrf.mxu3 }
 0x2d8   : > { %v2977_v33 = vadd.f32 %v2976_v45, %v2975_v15 }
 0x2d9   : > { %v2508_v31 = vadd.f32 %v2462_v49, %v2230_v1 }
 0x2da   : > { %v1911_v3 = vpop.f32.mrf.mxu1  ;;  %v2746_v14 = vpop.f32.mrf.mxu0 }
 0x2db   : > { %v2786_v17 = vadd.f32 %v2740_v7, %v2508_v31  ;;  %v1953_v28 = vadd.f32 %v1911_v3, %v4411_v51 }
 0x2dd   : > { %2819 = vst.msk [vmem:[%s4466_s17 + $0xc8] sm:$0xff] %vm2793_vm3, %v2786_v17  ;;  %v2875_v56 = vsel %vm2793_vm3, %v2786_v17, 0.0  ;;  %v2922_v19 = vmul.f32 %v2786_v17, %v2786_v17 }
 0x2de   : > { %v2876_v57 = vadd.f32 %v2875_v56, %v2874_v46  ;;  %v2187_v9 = vpop.f32.mrf.mxu2 }
 0x2df   : > { %v2978_v53 = vsel %vm2793_vm3, %v2922_v19, 0.0  ;;  %v2231_v0 = vadd.f32 %v2187_v9, %v1952_v59  ;;  %v2465_v30 = vpop.f32.mrf.mxu3 }
 0x2e0   : > { %v2979_v43 = vadd.f32 %v2978_v53, %v2977_v33 }
 0x2e1   : > { %v2509_v50 = vadd.f32 %v2465_v30, %v2231_v0 }
 0x2e2   : > { %v1914_v35 = vpop.f32.mrf.mxu1  ;;  %v2749_v6 = vpop.f32.mrf.mxu0 }
 0x2e3   : > { %v2787_v21 = vadd.f32 %v2743_v42, %v2509_v50  ;;  %v1954_v37 = vadd.f32 %v1914_v35, %v4421_v48 }
 0x2e5   : > { %2820 = vst.msk [vmem:[%s4466_s17 + $0xd0] sm:$0xff] %vm2793_vm3, %v2787_v21  ;;  %v2877_v55 = vsel %vm2793_vm3, %v2787_v21, 0.0  ;;  %v2923_v8 = vmul.f32 %v2787_v21, %v2787_v21 }
 0x2e6   : > { %v2878_v13 = vadd.f32 %v2877_v55, %v2876_v57  ;;  %v2190_v63 = vpop.f32.mrf.mxu2 }
 0x2e7   : > { %v2980_v23 = vsel %vm2793_vm3, %v2923_v8, 0.0  ;;  %v2232_v25 = vadd.f32 %v2190_v63, %v1953_v28  ;;  %v2468_v62 = vpop.f32.mrf.mxu3 }
 0x2e8   : > { %v2981_v34 = vadd.f32 %v2980_v23, %v2979_v43 }
 0x2e9   : > { %v2510_v58 = vadd.f32 %v2468_v62, %v2232_v25 }
 0x2ea   : > { %v1917_v10 = vpop.f32.mrf.mxu1  ;;  %v2752_v60 = vpop.f32.mrf.mxu0 }
 0x2eb   : > { %v2788_v29 = vadd.f32 %v2746_v14, %v2510_v58  ;;  %v1955_v38 = vadd.f32 %v1917_v10, %v4431_v18 }
 0x2ed   : > { %2821 = vst.msk [vmem:[%s4466_s17 + $0xd8] sm:$0xff] %vm2793_vm3, %v2788_v29  ;;  %v2879_v51 = vsel %vm2793_vm3, %v2788_v29, 0.0  ;;  %v2924_v20 = vmul.f32 %v2788_v29, %v2788_v29 }
 0x2ee   : > { %v2880_v61 = vadd.f32 %v2879_v51, %v2878_v13  ;;  %v2193_v39 = vpop.f32.mrf.mxu2 }
 0x2ef   : > { %v2982_v11 = vsel %vm2793_vm3, %v2924_v20, 0.0  ;;  %v2233_v47 = vadd.f32 %v2193_v39, %v1954_v37  ;;  %v2471_v24 = vpop.f32.mrf.mxu3 }
 0x2f0   : > { %v2983_v7 = vadd.f32 %v2982_v11, %v2981_v34 }
 0x2f1   : > { %v2511_v54 = vadd.f32 %v2471_v24, %v2233_v47 }
 0x2f2   : > { %v1920_v26 = vpop.f32.mrf.mxu1  ;;  %v2755_v45 = vpop.f32.mrf.mxu0 }
 0x2f3   : > { %v2789_v52 = vadd.f32 %v2749_v6, %v2511_v54  ;;  %v1956_v4 = vadd.f32 %v1920_v26, %v4441_v40 }
 0x2f5   : > { %2822 = vst.msk [vmem:[%s4466_s17 + $0xe0] sm:$0xff] %vm2793_vm3, %v2789_v52  ;;  %v2881_v48 = vsel %vm2793_vm3, %v2789_v52, 0.0  ;;  %v2925_v27 = vmul.f32 %v2789_v52, %v2789_v52 }
 0x2f6   : > { %v2882_v22 = vadd.f32 %v2881_v48, %v2880_v61  ;;  %v2196_v12 = vpop.f32.mrf.mxu2 }
 0x2f7   : > { %v2984_v32 = vsel %vm2793_vm3, %v2925_v27, 0.0  ;;  %v2234_v15 = vadd.f32 %v2196_v12, %v1955_v38  ;;  %v2474_v16 = vpop.f32.mrf.mxu3 }
 0x2f8   : > { %v2985_v44 = vadd.f32 %v2984_v32, %v2983_v7 }
 0x2f9   : > { %v2512_v5 = vadd.f32 %v2474_v16, %v2234_v15 }
 0x2fa   : > { %v1923_v17 = vpop.f32.mrf.mxu1  ;;  %v2758_v14 = vpop.f32.mrf.mxu0 }
 0x2fb   : > { %v2790_v2 = vadd.f32 %v2752_v60, %v2512_v5  ;;  %v1957_v56 = vadd.f32 %v1923_v17, %v4451_v36 }
 0x2fd   : > { %2823 = vst.msk [vmem:[%s4466_s17 + $0xe8] sm:$0xff] %vm2793_vm3, %v2790_v2  ;;  %v2883_v18 = vsel %vm2793_vm3, %v2790_v2, 0.0  ;;  %v2926_v46 = vmul.f32 %v2790_v2, %v2790_v2 }
 0x2fe   : > { %v2884_v41 = vadd.f32 %v2883_v18, %v2882_v22  ;;  %v2199_v42 = vpop.f32.mrf.mxu2 }
 0x2ff   : > { %v2986_v1 = vsel %vm2793_vm3, %v2926_v46, 0.0  ;;  %v2235_v49 = vadd.f32 %v2199_v42, %v1956_v4  ;;  %v2477_v33 = vpop.f32.mrf.mxu3 }
 0x300   : > { %v2987_v31 = vadd.f32 %v2986_v1, %v2985_v44 }
 0x301   : > { %v2513_v3 = vadd.f32 %v2477_v33, %v2235_v49 }
 0x303   : > { %v2791_v59 = vadd.f32 %v2755_v45, %v2513_v3 }
 0x305   : > { %2824 = vst.msk [vmem:[%s4466_s17 + $0xf0] sm:$0xff] %vm2793_vm3, %v2791_v59  ;;  %v2885_v40 = vsel %vm2793_vm3, %v2791_v59, 0.0  ;;  %v2927_v19 = vmul.f32 %v2791_v59, %v2791_v59 }
 0x306   : > { %v2886_v57 = vadd.f32 %v2885_v40, %v2884_v41  ;;  %v2202_v9 = vpop.f32.mrf.mxu2 }
 0x307   : > { %v2988_v53 = vsel %vm2793_vm3, %v2927_v19, 0.0  ;;  %v2236_v0 = vadd.f32 %v2202_v9, %v1957_v56  ;;  %v2480_v30 = vpop.f32.mrf.mxu3 }
 0x308   : > { %v2989_v43 = vadd.f32 %v2988_v53, %v2987_v31 }
 0x309   : > { %v2514_v50 = vadd.f32 %v2480_v30, %v2236_v0 }
 0x30b   : > { %v2792_v21 = vadd.f32 %v2758_v14, %v2514_v50 }
 0x30d   : > { %2825 = vst.msk [vmem:[%s4466_s17 + $0xf8] sm:$0xff] %vm2793_vm3, %v2792_v21  ;;  %v2887_v36 = vsel %vm2793_vm3, %v2792_v21, 0.0  ;;  %v2928_v35 = vmul.f32 %v2792_v21, %v2792_v21 }
 0x30e   : > { %v2888_v28 = vadd.f32 %v2887_v36, %v2886_v57 }
 0x30f   : > { %v2990_v55 = vsel %vm2793_vm3, %v2928_v35, 0.0 }
 0x310   : > { %v2889_v8 = vrot.slane %v2888_v28, 4  ;;  %v2991_v13 = vadd.f32 %v2990_v55, %v2989_v43 }
 0x312   : > { %v2890_v63 = vadd.f32 %v2889_v8, %v2888_v28  ;;  %v2992_v23 = vrot.slane %v2991_v13, 4 }
 0x314   : > { %v2891_v25 = vrot.slane %v2890_v63, 2  ;;  %v2993_v62 = vadd.f32 %v2992_v23, %v2991_v13 }
 0x316   : > { %v2892_v34 = vadd.f32 %v2891_v25, %v2890_v63  ;;  %v2994_v58 = vrot.slane %v2993_v62, 2 }
 0x318   : > { %v2893_v6 = vrot.slane %v2892_v34, 1  ;;  %v2995_v29 = vadd.f32 %v2994_v58, %v2993_v62 }
 0x31a   : > { %v2894_v37 = vadd.f32 %v2893_v6, %v2892_v34  ;;  %v2996_v51 = vrot.slane %v2995_v29, 1 }
 0x31c   : > { %2896 = vst.msk [vmem:[%s211_s20] sm:$0x1] %vm2895_vm4, %v2894_v37  ;;  %v2997_v20 = vadd.f32 %v2996_v51, %v2995_v29 }
 0x31e   : > { %2998 = vst.msk [vmem:[%s214_s23] sm:$0x1] %vm2895_vm4, %v2997_v20 }
 0x31f PF: > { %s15_s15 = sadd.s32 1, %s3440_s15  }
 0x320   : > { %p12_p4 = scmp.ge.s32.totalorder %s15_s15, 4  }
 0x322   :  { %14 = sbr.rel (!%p12_p4) target bundleno = 1 (0x1), region = 92 }

// kernel: intermediate_forward.15
= control target key start
LH: loop header
LB: loop body
LE: loop exit
PB: predicated region body
PF: predicated region fallthrough
CT: control target
= control target key end

     0   :  { %s3429_s15 = smov 0   ;;  %s4660_s0 = inlined_call_operand.vmem [shape: f32[2,16,16,8], index: 0, kind: input, shape index: {}]   ;;  %s4661_s1 = inlined_call_operand.vmem [shape: f32[3,3,8,8], index: 1, kind: input, shape index: {}]   ;;  %s4662_s2 = inlined_call_operand.vmem [shape: f32[2,16,16,8], index: 2, kind: output, shape index: {0}]   ;;  %s4663_s3 = inlined_call_operand.vmem [shape: f32[2,1,8], index: 3, kind: output, shape index: {1}]   ;;  %s4664_s4 = inlined_call_operand.vmem [shape: f32[2,1,8], index: 4, kind: output, shape index: {2}]  }
   0x1 LB: > { %s3074_s16 = sadd.s32 4294967295, %s3401_s15   ;;  %p3078_p0 = scmp.ge.s32.totalorder %s3401_s15, 1  ;;  %s3401_s15 = sphi %s3429_s15, %s15_s15  }
   0x2   : > { %p167_p1 = scmp.lt.s32.totalorder %s3401_s15, 3 }
   0x4   : > { %p168_p2 = pnand %p3078_p0, %p167_p1 }
   0x6   : > { %171 = sbr.rel (%p168_p2) target bundleno = 799 (0x31f), region = 28 }
   0xb   : > { %v3083_v0 = vld [vmem:[%s4661_s1 + $0x8] sm:$0xff]  ;;  %p199_p3 = scmp.lt.s32.totalorder %s3074_s16, 1  ;;  %vm247_vm0 = vcmask 64512   ;;  %v3403_v1 = vmov 0.0   ;;  %v3148_v4 = vld [vmem:[%s4661_s1 + $0x10] sm:$0xff]  ;;  %v3181_v5 = vld [vmem:[%s4661_s1 + $0x18] sm:$0xff] }
   0xc   : > { %3383 = vmatpush.msra.mxu1 %v3083_v0  ;;  %3384 = vmatpush.msra.mxu2 %v3083_v0  ;;  %266 = vst.msk [vmem:[#allocation2 + $0x88] sm:$0xff] %vm247_vm0, %v3403_v1  ;;  %v386_v6 = vld [vmem:[%s4661_s1] sm:$0xff]  ;;  %vm251_vm1 = vcmask 57344   ;;  %v3280_v58 = vld [vmem:[%s4661_s1 + $0x30] sm:$0xff]  ;;  %v3313_v59 = vld [vmem:[%s4661_s1 + $0x38] sm:$0xff] }
   0xd   : > { %s4770_s16 = smov (!%p199_p3, %s3074_s16), 1  ;;  %248 = vst.msk [vmem:[#allocation2] sm:$0xff] %vm247_vm0, %v3403_v1  ;;  %3385 = vmatpush.msra.mxu3 %v3083_v0  ;;  %532 = vmatpush.msra.mxu0 %v3083_v0  ;;  %v3214_v8 = vld [vmem:[%s4661_s1 + $0x20] sm:$0xff]  ;;  %v3247_v60 = vld [vmem:[%s4661_s1 + $0x28] sm:$0xff] }
   0xe   : > { %249 = vst.msk [vmem:[#allocation2 + $0x8] sm:$0xff] %vm247_vm0, %v3403_v1  ;;  %s3381_s19 = sshll.u32 %s4770_s16, 8  ;;  %984 = vmatpush.msrb.mxu2 %v3148_v4  ;;  %741 = vmatpush.msrb.mxu1 %v386_v6  ;;  %s211_s20 = scalar_lea.vmem %s4663_s3, %s4770_s16 }
   0xf   : > { %250 = vst.msk [vmem:[#allocation2 + $0x10] sm:$0xff] %vm247_vm0, %v3403_v1  ;;  %s3456_s22 = scalar_lea.vmem %s4660_s0, %s3381_s19  ;;  %1259 = vmatpush.msrb.mxu3 %v3181_v5  ;;  %1534 = vmatpush.msrb.mxu0 %v3214_v8  ;;  %s4415_s17 = scalar_lea.vmem %s4662_s2, %s3381_s19 }
  0x10   : > { %253 = vst.msk [vmem:[#allocation2 + $0x20] sm:$0xff] %vm247_vm0, %v3403_v1  ;;  %v221_v2 = vld [vmem:[%s3456_s22 + $0x30] sm:$0xff]  ;;  %v222_v12 = vld [vmem:[%s3456_s22 + $0x38] sm:$0xff]  ;;  %v223_v15 = vld [vmem:[%s3456_s22 + $0x40] sm:$0xff]  ;;  %s214_s23 = scalar_lea.vmem %s4664_s4, %s4770_s16 }
  0x11   : > { %254 = vst.msk [vmem:[#allocation2 + $0x28] sm:$0xff] %vm247_vm0, %v3403_v1  ;;  %v229_v10 = vld [vmem:[%s3456_s22 + $0x70] sm:$0xff]  ;;  %v230_v13 = vld [vmem:[%s3456_s22 + $0x78] sm:$0xff]  ;;  %v231_v16 = vld [vmem:[%s3456_s22 + $0x80] sm:$0xff] }
  0x12   : > { %328 = vst.msk [vmem:[#allocation2 + $0x88] sm:$0xff] %vm247_vm0, %v221_v2  ;;  %v237_v11 = vld [vmem:[%s3456_s22 + $0xb0] sm:$0xff]  ;;  %v238_v14 = vld [vmem:[%s3456_s22 + $0xb8] sm:$0xff]  ;;  %v239_v17 = vld [vmem:[%s3456_s22 + $0xc0] sm:$0xff] }
  0x13   : > { %255 = vst.msk [vmem:[#allocation2 + $0x30] sm:$0xff] %vm247_vm0, %v3403_v1  ;;  %v224_v18 = vld [vmem:[%s3456_s22 + $0x48] sm:$0xff]  ;;  %v215_v21 = vld [vmem:[%s3456_s22] sm:$0xff]  ;;  %v225_v25 = vld [vmem:[%s3456_s22 + $0x50] sm:$0xff] }
  0x14   : > { %257 = vst.msk [vmem:[#allocation2 + $0x40] sm:$0xff] %vm247_vm0, %v3403_v1  ;;  %v232_v19 = vld [vmem:[%s3456_s22 + $0x88] sm:$0xff]  ;;  %v233_v26 = vld [vmem:[%s3456_s22 + $0x90] sm:$0xff]  ;;  %v226_v30 = vld [vmem:[%s3456_s22 + $0x58] sm:$0xff] }
  0x15   : > { %258 = vst.msk [vmem:[#allocation2 + $0x48] sm:$0xff] %vm247_vm0, %v3403_v1  ;;  %v387_v7 = vld [vmem:[#allocation2 + $0x8] sm:$0xff]  ;;  %v241_v28 = vld [vmem:[%s3456_s22 + $0xd0] sm:$0xff]  ;;  %v234_v32 = vld [vmem:[%s3456_s22 + $0x98] sm:$0xff] }
  0x16   : > { %259 = vst.msk [vmem:[#allocation2 + $0x50] sm:$0xff] %vm247_vm0, %v3403_v1  ;;  %3084 = vmatmul.msk.f32.vlgmr.msra.gmra.mxu0 %vm247_vm0, %v387_v7  ;;  %v388_v9 = vld [vmem:[#allocation2 + $0x10] sm:$0xff]  ;;  %v240_v23 = vld [vmem:[%s3456_s22 + $0xc8] sm:$0xff]  ;;  %v242_v35 = vld [vmem:[%s3456_s22 + $0xd8] sm:$0xff] }
  0x17   : > { %261 = vst.msk [vmem:[#allocation2 + $0x60] sm:$0xff] %vm247_vm0, %v3403_v1  ;;  %v216_v27 = vld [vmem:[%s3456_s22 + $0x8] sm:$0xff]  ;;  %v217_v34 = vld [vmem:[%s3456_s22 + $0x10] sm:$0xff]  ;;  %v227_v37 = vld [vmem:[%s3456_s22 + $0x60] sm:$0xff] }
  0x18   : > { %262 = vst.msk [vmem:[#allocation2 + $0x68] sm:$0xff] %vm247_vm0, %v3403_v1  ;;  %v235_v38 = vld [vmem:[%s3456_s22 + $0xa0] sm:$0xff]  ;;  %v218_v39 = vld [vmem:[%s3456_s22 + $0x18] sm:$0xff]  ;;  %v228_v45 = vld [vmem:[%s3456_s22 + $0x68] sm:$0xff] }
  0x19   : > { %v3476_v3 = vld [vmem:[#allocation2 + $0x88] sm:$0xff]  ;;  %263 = vst.msk [vmem:[#allocation2 + $0x70] sm:$0xff] %vm247_vm0, %v3403_v1  ;;  %v243_v40 = vld [vmem:[%s3456_s22 + $0xe0] sm:$0xff] }
  0x1a   : > { %3092 = vmatmul.msk.f32.vlgmr.msra.gmra.mxu1 %vm247_vm0, %v3476_v3  ;;  %265 = vst.msk [vmem:[#allocation2 + $0x80] sm:$0xff] %vm247_vm0, %v3403_v1  ;;  %v236_v46 = vld [vmem:[%s3456_s22 + $0xa8] sm:$0xff]  ;;  %v219_v47 = vld [vmem:[%s3456_s22 + $0x20] sm:$0xff] }
  0x1b   : > { %267 = vst.msk [vmem:[#allocation2 + $0x90] sm:$0xff] %vm247_vm0, %v3403_v1  ;;  %v244_v48 = vld [vmem:[%s3456_s22 + $0xe8] sm:$0xff]  ;;  %1809 = vmatpush.msra.mxu1 %v3247_v60  ;;  %v3346_v2 = vld [vmem:[%s4661_s1 + $0x40] sm:$0xff] }
  0x1c   : > { %269 = vst.msk [vmem:[#allocation2 + $0xa0] sm:$0xff] %vm247_vm0, %v3403_v1  ;;  %v220_v53 = vld [vmem:[%s3456_s22 + $0x28] sm:$0xff]  ;;  %2635 = vmatpush.msra.mxu0 %v3346_v2 }
  0x1d   : > { %270 = vst.msk [vmem:[#allocation2 + $0xa8] sm:$0xff] %vm247_vm0, %v3403_v1 }
  0x1e   : > { %271 = vst.msk [vmem:[#allocation2 + $0xb0] sm:$0xff] %vm247_vm0, %v3403_v1  ;;  %3085 = vmatmul.msk.f32.gmra.mxu0 %vm247_vm0, %v388_v9 }
  0x1f   : > { %273 = vst.msk [vmem:[#allocation2 + $0xc0] sm:$0xff] %vm247_vm0, %v3403_v1 }
  0x20   : > { %274 = vst.msk [vmem:[#allocation2 + $0xc8] sm:$0xff] %vm247_vm0, %v3403_v1 }
  0x21   : > { %275 = vst.msk [vmem:[#allocation2 + $0xd0] sm:$0xff] %vm247_vm0, %v3403_v1 }
  0x22   : > { %277 = vst.msk [vmem:[#allocation2 + $0xe0] sm:$0xff] %vm247_vm0, %v3403_v1 }
  0x23   : > { %278 = vst.msk [vmem:[#allocation2 + $0xe8] sm:$0xff] %vm247_vm0, %v3403_v1 }
  0x24   : > { %279 = vst.msk [vmem:[#allocation2 + $0xf0] sm:$0xff] %vm247_vm0, %v3403_v1 }
  0x25   : > { %281 = vst.msk [vmem:[#allocation2 + $0x100] sm:$0xff] %vm247_vm0, %v3403_v1 }
  0x26   : > { %282 = vst.msk [vmem:[#allocation2 + $0x108] sm:$0xff] %vm247_vm0, %v3403_v1 }
  0x27   : > { %283 = vst.msk [vmem:[#allocation2 + $0x110] sm:$0xff] %vm247_vm0, %v3403_v1 }
  0x28   : > { %285 = vst.msk [vmem:[#allocation2 + $0x120] sm:$0xff] %vm247_vm0, %v3403_v1 }
  0x29   : > { %286 = vst.msk [vmem:[#allocation2 + $0x128] sm:$0xff] %vm247_vm0, %v3403_v1 }
  0x2a   : > { %287 = vst.msk [vmem:[#allocation2 + $0x130] sm:$0xff] %vm247_vm0, %v3403_v1 }
  0x2b   : > { %289 = vst.msk [vmem:[#allocation2 + $0x140] sm:$0xff] %vm247_vm0, %v3403_v1 }
  0x2c   : > { %290 = vst.msk [vmem:[#allocation2 + $0x148] sm:$0xff] %vm247_vm0, %v3403_v1 }
  0x2d   : > { %291 = vst.msk [vmem:[#allocation2 + $0x150] sm:$0xff] %vm247_vm0, %v3403_v1 }
  0x2e   : > { %293 = vst.msk [vmem:[#allocation2 + $0x160] sm:$0xff] %vm247_vm0, %v3403_v1 }
  0x2f   : > { %294 = vst.msk [vmem:[#allocation2 + $0x168] sm:$0xff] %vm247_vm0, %v3403_v1 }
  0x30   : > { %295 = vst.msk [vmem:[#allocation2 + $0x170] sm:$0xff] %vm247_vm0, %v3403_v1 }
  0x31   : > { %297 = vst.msk [vmem:[#allocation2 + $0x180] sm:$0xff] %vm247_vm0, %v3403_v1 }
  0x32   : > { %298 = vst.msk [vmem:[#allocation2 + $0x188] sm:$0xff] %vm247_vm0, %v3403_v1 }
  0x33   : > { %299 = vst.msk [vmem:[#allocation2 + $0x190] sm:$0xff] %vm247_vm0, %v3403_v1 }
  0x34   : > { %301 = vst.msk [vmem:[#allocation2 + $0x1a0] sm:$0xff] %vm247_vm0, %v3403_v1 }
  0x35   : > { %302 = vst.msk [vmem:[#allocation2 + $0x1a8] sm:$0xff] %vm247_vm0, %v3403_v1 }
  0x36   : > { %303 = vst.msk [vmem:[#allocation2 + $0x1b0] sm:$0xff] %vm247_vm0, %v3403_v1 }
  0x37   : > { %305 = vst.msk [vmem:[#allocation2 + $0x1c0] sm:$0xff] %vm247_vm0, %v3403_v1 }
  0x38   : > { %306 = vst.msk [vmem:[#allocation2 + $0x1c8] sm:$0xff] %vm247_vm0, %v3403_v1 }
  0x39   : > { %307 = vst.msk [vmem:[#allocation2 + $0x1d0] sm:$0xff] %vm247_vm0, %v3403_v1 }
  0x3a   : > { %309 = vst.msk [vmem:[#allocation2 + $0x1e0] sm:$0xff] %vm247_vm0, %v3403_v1 }
  0x3b   : > { %310 = vst.msk [vmem:[#allocation2 + $0x1e8] sm:$0xff] %vm247_vm0, %v3403_v1 }
  0x3c   : > { %311 = vst.msk [vmem:[#allocation2 + $0x1f0] sm:$0xff] %vm247_vm0, %v3403_v1 }
  0x3d   : > { %313 = vst.msk [vmem:[#allocation2 + $0x200] sm:$0xff] %vm247_vm0, %v3403_v1 }
  0x3e   : > { %314 = vst.msk [vmem:[#allocation2 + $0x208] sm:$0xff] %vm247_vm0, %v3403_v1 }
  0x3f   : > { %315 = vst.msk [vmem:[#allocation2 + $0x210] sm:$0xff] %vm247_vm0, %v3403_v1 }
  0x40   : > { %317 = vst.msk [vmem:[#allocation2 + $0x220] sm:$0xff] %vm247_vm0, %v3403_v1 }
  0x41   : > { %318 = vst.msk [vmem:[#allocation2 + $0x228] sm:$0xff] %vm247_vm0, %v3403_v1 }
  0x42   : > { %319 = vst.msk [vmem:[#allocation2 + $0x230] sm:$0xff] %vm247_vm0, %v3403_v1 }
  0x43   : > { %336 = vst.msk [vmem:[#allocation2 + $0x108] sm:$0xff] %vm247_vm0, %v229_v10  ;;  %v354_v10 = vld [vmem:[#allocation2 + $0x7] sm:$0xff] }
  0x44   : > { %344 = vst.msk [vmem:[#allocation2 + $0x188] sm:$0xff] %vm247_vm0, %v237_v11 }
  0x45   : > { %329 = vst.msk [vmem:[#allocation2 + $0x90] sm:$0xff] %vm247_vm0, %v222_v12  ;;  %v355_v12 = vld [vmem:[#allocation2 + $0xf] sm:$0xff] }
  0x46   : > { %337 = vst.msk [vmem:[#allocation2 + $0x110] sm:$0xff] %vm247_vm0, %v230_v13 }
  0x47   : > { %345 = vst.msk [vmem:[#allocation2 + $0x190] sm:$0xff] %vm247_vm0, %v238_v14 }
  0x48   : > { %330 = vst.msk [vmem:[#allocation2 + $0xa8] sm:$0xff] %vm247_vm0, %v223_v15 }
  0x49   : > { %338 = vst.msk [vmem:[#allocation2 + $0x128] sm:$0xff] %vm247_vm0, %v231_v16 }
  0x4a   : > { %v3595_v20 = vld [vmem:[#allocation2 + $0x108] sm:$0xff]  ;;  %346 = vst.msk [vmem:[#allocation2 + $0x1a8] sm:$0xff] %vm247_vm0, %v239_v17 }
  0x4b   : > { %3100 = vmatmul.msk.f32.vlgmr.msra.gmra.mxu2 %vm247_vm0, %v3595_v20  ;;  %v3601_v22 = vld [vmem:[#allocation2 + $0x188] sm:$0xff]  ;;  %331 = vst.msk [vmem:[#allocation2 + $0xb0] sm:$0xff] %vm247_vm0, %v224_v18 }
  0x4c   : > { %3108 = vmatmul.msk.f32.vlgmr.msra.gmra.mxu3 %vm247_vm0, %v3601_v22  ;;  %v3607_v24 = vld [vmem:[#allocation2 + $0x90] sm:$0xff]  ;;  %339 = vst.msk [vmem:[#allocation2 + $0x130] sm:$0xff] %vm247_vm0, %v232_v19  ;;  %2085 = vmatpush.msra.mxu2 %v3280_v58 }
  0x4d   : > { %3093 = vmatmul.msk.f32.gmra.mxu1 %vm247_vm0, %v3607_v24  ;;  %322 = vst.msk [vmem:[#allocation2 + $0x28] sm:$0xff] %vm247_vm0, %v215_v21  ;;  %v3619_v29 = vld [vmem:[#allocation2 + $0x110] sm:$0xff]  ;;  %2360 = vmatpush.msra.mxu3 %v3313_v59 }
  0x4e   : > { %347 = vst.msk [vmem:[#allocation2 + $0x1b0] sm:$0xff] %vm247_vm0, %v240_v23  ;;  %v3623_v31 = vld [vmem:[#allocation2 + $0x190] sm:$0xff] }
  0x4f   : > { %332 = vst.msk [vmem:[#allocation2 + $0xc8] sm:$0xff] %vm247_vm0, %v225_v25  ;;  %v3627_v33 = vld [vmem:[#allocation2 + $0xa8] sm:$0xff] }
  0x50   : > { %340 = vst.msk [vmem:[#allocation2 + $0x148] sm:$0xff] %vm247_vm0, %v233_v26  ;;  %v3651_v41 = vld [vmem:[#allocation2 + $0x128] sm:$0xff] }
  0x51   : > { %323 = vst.msk [vmem:[#allocation2 + $0x30] sm:$0xff] %vm247_vm0, %v216_v27  ;;  %v3654_v42 = vld [vmem:[#allocation2 + $0x1a8] sm:$0xff] }
  0x52   : > { %348 = vst.msk [vmem:[#allocation2 + $0x1c8] sm:$0xff] %vm247_vm0, %v241_v28  ;;  %v3656_v43 = vld [vmem:[#allocation2 + $0xb0] sm:$0xff]  ;;  %v3862_v27 = vld [vmem:[#allocation2 + $0x87] sm:$0xff] }
  0x53   : > { %3101 = vmatmul.msk.f32.gmra.mxu2 %vm247_vm0, %v3619_v29  ;;  %333 = vst.msk [vmem:[#allocation2 + $0xd0] sm:$0xff] %vm247_vm0, %v226_v30  ;;  %v3678_v49 = vld [vmem:[#allocation2 + $0x130] sm:$0xff] }
  0x54   : > { %3109 = vmatmul.msk.f32.gmra.mxu3 %vm247_vm0, %v3623_v31  ;;  %v3637_v36 = vld [vmem:[#allocation2 + $0x28] sm:$0xff]  ;;  %341 = vst.msk [vmem:[#allocation2 + $0x150] sm:$0xff] %vm247_vm0, %v234_v32 }
  0x55   : > { %3094 = vmatmul.msk.f32.gmra.mxu1 %vm247_vm0, %v3627_v33  ;;  %3086 = vmatmul.msk.f32.gmra.mxu0 %vm247_vm0, %v3637_v36  ;;  %324 = vst.msk [vmem:[#allocation2 + $0x48] sm:$0xff] %vm247_vm0, %v217_v34  ;;  %v3680_v50 = vld [vmem:[#allocation2 + $0x1b0] sm:$0xff]  ;;  %v1114_v11 = vld [vmem:[#allocation2 + $0x27] sm:$0xff] }
  0x56   : > { %349 = vst.msk [vmem:[#allocation2 + $0x1d0] sm:$0xff] %vm247_vm0, %v242_v35  ;;  %v3682_v51 = vld [vmem:[#allocation2 + $0xc8] sm:$0xff] }
  0x57   : > { %334 = vst.msk [vmem:[#allocation2 + $0xe8] sm:$0xff] %vm247_vm0, %v227_v37  ;;  %v3696_v54 = vld [vmem:[#allocation2 + $0x148] sm:$0xff] }
  0x58   : > { %342 = vst.msk [vmem:[#allocation2 + $0x168] sm:$0xff] %vm247_vm0, %v235_v38  ;;  %v3659_v44 = vld [vmem:[#allocation2 + $0x30] sm:$0xff]  ;;  %v3892_v35 = vld [vmem:[#allocation2 + $0xa7] sm:$0xff] }
  0x59   : > { %325 = vst.msk [vmem:[#allocation2 + $0x50] sm:$0xff] %vm247_vm0, %v218_v39  ;;  %v3698_v55 = vld [vmem:[#allocation2 + $0x1c8] sm:$0xff] }
  0x5a   : > { %350 = vst.msk [vmem:[#allocation2 + $0x1e8] sm:$0xff] %vm247_vm0, %v243_v40  ;;  %v3700_v56 = vld [vmem:[#allocation2 + $0xd0] sm:$0xff] }
  0x5b   : > { %3102 = vmatmul.msk.f32.gmra.mxu2 %vm247_vm0, %v3651_v41  ;;  %335 = vst.msk [vmem:[#allocation2 + $0xf0] sm:$0xff] %vm247_vm0, %v228_v45  ;;  %v3731_v61 = vld [vmem:[#allocation2 + $0x150] sm:$0xff] }
  0x5c   : > { %3110 = vmatmul.msk.f32.gmra.mxu3 %vm247_vm0, %v3654_v42  ;;  %343 = vst.msk [vmem:[#allocation2 + $0x170] sm:$0xff] %vm247_vm0, %v236_v46  ;;  %v3684_v52 = vld [vmem:[#allocation2 + $0x48] sm:$0xff] }
  0x5d   : > { %3095 = vmatmul.msk.f32.gmra.mxu1 %vm247_vm0, %v3656_v43  ;;  %3087 = vmatmul.msk.f32.gmra.mxu0 %vm247_vm0, %v3659_v44  ;;  %326 = vst.msk [vmem:[#allocation2 + $0x68] sm:$0xff] %vm247_vm0, %v219_v47  ;;  %v3735_v62 = vld [vmem:[#allocation2 + $0x1d0] sm:$0xff]  ;;  %v3815_v16 = vld [vmem:[#allocation2 + $0x47] sm:$0xff] }
  0x5e   : > { %351 = vst.msk [vmem:[#allocation2 + $0x1f0] sm:$0xff] %vm247_vm0, %v244_v48  ;;  %v3739_v63 = vld [vmem:[#allocation2 + $0xe8] sm:$0xff] }
  0x5f   : > { %327 = vst.msk [vmem:[#allocation2 + $0x70] sm:$0xff] %vm247_vm0, %v220_v53  ;;  %v3766_v4 = vld [vmem:[#allocation2 + $0x168] sm:$0xff] }
  0x60   : > { %v3702_v57 = vld [vmem:[#allocation2 + $0x50] sm:$0xff]  ;;  %252 = vst.msk [vmem:[#allocation2 + $0x18] sm:$0x1] %vm251_vm1, %v3403_v1  ;;  %v3930_v47 = vld [vmem:[#allocation2 + $0xc7] sm:$0xff] }
  0x61   : > { %256 = vst.msk [vmem:[#allocation2 + $0x38] sm:$0x1] %vm251_vm1, %v3403_v1  ;;  %v3770_v5 = vld [vmem:[#allocation2 + $0x1e8] sm:$0xff] }
  0x62   : > { %260 = vst.msk [vmem:[#allocation2 + $0x58] sm:$0x1] %vm251_vm1, %v3403_v1  ;;  %v3774_v6 = vld [vmem:[#allocation2 + $0xf0] sm:$0xff] }
  0x63   : > { %3103 = vmatmul.msk.f32.gmra.mxu2 %vm247_vm0, %v3678_v49  ;;  %264 = vst.msk [vmem:[#allocation2 + $0x78] sm:$0x1] %vm251_vm1, %v3403_v1  ;;  %v3792_v8 = vld [vmem:[#allocation2 + $0x170] sm:$0xff] }
  0x64   : > { %3111 = vmatmul.msk.f32.gmra.mxu3 %vm247_vm0, %v3680_v50  ;;  %268 = vst.msk [vmem:[#allocation2 + $0x98] sm:$0x1] %vm251_vm1, %v3403_v1  ;;  %v3741_v0 = vld [vmem:[#allocation2 + $0x68] sm:$0xff] }
  0x65   : > { %3096 = vmatmul.msk.f32.gmra.mxu1 %vm247_vm0, %v3682_v51  ;;  %3088 = vmatmul.msk.f32.gmra.mxu0 %vm247_vm0, %v3684_v52  ;;  %272 = vst.msk [vmem:[#allocation2 + $0xb8] sm:$0x1] %vm251_vm1, %v3403_v1  ;;  %v3794_v9 = vld [vmem:[#allocation2 + $0x1f0] sm:$0xff]  ;;  %v3838_v21 = vld [vmem:[#allocation2 + $0x67] sm:$0xff] }
  0x66   : > { %276 = vst.msk [vmem:[#allocation2 + $0xd8] sm:$0x1] %vm251_vm1, %v3403_v1  ;;  %v3776_v7 = vld [vmem:[#allocation2 + $0x70] sm:$0xff] }
  0x67   : > { %280 = vst.msk [vmem:[#allocation2 + $0xf8] sm:$0x1] %vm251_vm1, %v3403_v1  ;;  %v840_v13 = vld [vmem:[#allocation2 + $0x11] sm:$0xff]  ;;  %v3813_v15 = vld [vmem:[#allocation2 + $0x29] sm:$0xff] }
  0x68   : > { %284 = vst.msk [vmem:[#allocation2 + $0x118] sm:$0x1] %vm251_vm1, %v3403_v1  ;;  %v1115_v14 = vld [vmem:[#allocation2 + $0x2f] sm:$0xff] }
  0x69   : > { %288 = vst.msk [vmem:[#allocation2 + $0x138] sm:$0x1] %vm251_vm1, %v3403_v1  ;;  %v3824_v17 = vld [vmem:[#allocation2 + $0x31] sm:$0xff]  ;;  %v3836_v19 = vld [vmem:[#allocation2 + $0x49] sm:$0xff] }
  0x6a   : > { %292 = vst.msk [vmem:[#allocation2 + $0x158] sm:$0x1] %vm251_vm1, %v3403_v1  ;;  %v3826_v18 = vld [vmem:[#allocation2 + $0x4f] sm:$0xff] }
  0x6b   : > { %3104 = vmatmul.msk.f32.gmra.mxu2 %vm247_vm0, %v3696_v54  ;;  %296 = vst.msk [vmem:[#allocation2 + $0x178] sm:$0x1] %vm251_vm1, %v3403_v1  ;;  %v3848_v23 = vld [vmem:[#allocation2 + $0x51] sm:$0xff]  ;;  %v3860_v26 = vld [vmem:[#allocation2 + $0x69] sm:$0xff] }
  0x6c   : > { %3112 = vmatmul.msk.f32.gmra.mxu3 %vm247_vm0, %v3698_v55  ;;  %300 = vst.msk [vmem:[#allocation2 + $0x198] sm:$0x1] %vm251_vm1, %v3403_v1  ;;  %v3850_v25 = vld [vmem:[#allocation2 + $0x6f] sm:$0xff] }
  0x6d   : > { %3097 = vmatmul.msk.f32.gmra.mxu1 %vm247_vm0, %v3700_v56  ;;  %3089 = vmatmul.msk.f32.gmra.mxu0 %vm247_vm0, %v3702_v57  ;;  %304 = vst.msk [vmem:[#allocation2 + $0x1b8] sm:$0x1] %vm251_vm1, %v3403_v1  ;;  %v3874_v30 = vld [vmem:[#allocation2 + $0x71] sm:$0xff]  ;;  %v3928_v46 = vld [vmem:[#allocation2 + $0xa9] sm:$0xff] }
  0x6e   : > { %308 = vst.msk [vmem:[#allocation2 + $0x1d8] sm:$0x1] %vm251_vm1, %v3403_v1  ;;  %v3878_v32 = vld [vmem:[#allocation2 + $0x8f] sm:$0xff] }
  0x6f   : > { %312 = vst.msk [vmem:[#allocation2 + $0x1f8] sm:$0x1] %vm251_vm1, %v3403_v1  ;;  %v3908_v38 = vld [vmem:[#allocation2 + $0x91] sm:$0xff] }
  0x70   : > { %316 = vst.msk [vmem:[#allocation2 + $0x218] sm:$0x1] %vm251_vm1, %v3403_v1  ;;  %v3910_v39 = vld [vmem:[#allocation2 + $0xaf] sm:$0xff] }
  0x71   : > { %320 = vst.msk [vmem:[#allocation2 + $0x238] sm:$0x1] %vm251_vm1, %v3403_v1  ;;  %v839_v1 = vld [vmem:[#allocation2 + $0x9] sm:$0xff]  ;;  %v3948_v59 = vld [vmem:[#allocation2 + $0xb1] sm:$0xff] }
  0x72   : > { %4691 = vst [vmem:[#allocation3_spill] sm:$0xff] %v3862_v27  ;;  %v3950_v60 = vld [vmem:[#allocation2 + $0xcf] sm:$0xff] }
  0x73   : > { %3105 = vmatmul.msk.f32.gmra.mxu2 %vm247_vm0, %v3731_v61  ;;  %4692 = vst [vmem:[#allocation4_spill] sm:$0xff] %v3878_v32 }
  0x74   : > { %3113 = vmatmul.msk.f32.gmra.mxu3 %vm247_vm0, %v3735_v62  ;;  %4693 = vst [vmem:[#allocation5_spill] sm:$0xff] %v3892_v35 }
  0x75   : > { %3098 = vmatmul.msk.f32.gmra.mxu1 %vm247_vm0, %v3739_v63  ;;  %3090 = vmatmul.msk.f32.gmra.mxu0 %vm247_vm0, %v3741_v0  ;;  %4695 = vst [vmem:[#allocation7_spill] sm:$0xff] %v3908_v38 }
  0x76   : > { %4696 = vst [vmem:[#allocation8_spill] sm:$0xff] %v3910_v39 }
  0x77   : > { %4698 = vst [vmem:[#allocation10_spill] sm:$0xff] %v3928_v46 }
  0x78   : > { %4699 = vst [vmem:[#allocation11_spill] sm:$0xff] %v3930_v47 }
  0x79   : > { %4701 = vst [vmem:[#allocation13_spill] sm:$0xff] %v3948_v59 }
  0x7a   : > { %4702 = vst [vmem:[#allocation14_spill] sm:$0xff] %v3950_v60 }
  0x7b   : > { %3106 = vmatmul.msk.f32.gmra.mxu2 %vm247_vm0, %v3766_v4 }
  0x7c   : > { %3114 = vmatmul.msk.f32.gmra.mxu3 %vm247_vm0, %v3770_v5 }
  0x7d   : > { %3099 = vmatmul.msk.f32.gmra.mxu1 %vm247_vm0, %v3774_v6  ;;  %3091 = vmatmul.msk.f32.gmra.mxu0 %vm247_vm0, %v3776_v7 }
  0x83   : > { %3107 = vmatmul.msk.f32.gmra.mxu2 %vm247_vm0, %v3792_v8 }
  0x84   : > { %3115 = vmatmul.msk.f32.gmra.mxu3 %vm247_vm0, %v3794_v9 }
  0x85   : > { %3116 = vmatmul.msk.f32.vlgmr.msrb.gmra.mxu1 %vm247_vm0, %v354_v10  ;;  %3215 = vmatmul.msk.f32.vlgmr.msrb.gmra.mxu0 %vm247_vm0, %v3637_v36 }
  0x8b   : > { %3149 = vmatmul.msk.f32.vlgmr.msrb.gmra.mxu2 %vm247_vm0, %v839_v1 }
  0x8c   : > { %3182 = vmatmul.msk.f32.vlgmr.msrb.gmra.mxu3 %vm247_vm0, %v1114_v11 }
  0x8d   : > { %3117 = vmatmul.msk.f32.gmra.mxu1 %vm247_vm0, %v355_v12  ;;  %3216 = vmatmul.msk.f32.gmra.mxu0 %vm247_vm0, %v3659_v44  ;;  %v3970_v12 = vld [vmem:[#allocation2 + $0xe7] sm:$0xff] }
  0x8e   : > { %4705 = vst [vmem:[#allocation17_spill] sm:$0xff] %v3970_v12 }
  0x93   : > { %3150 = vmatmul.msk.f32.gmra.mxu2 %vm247_vm0, %v840_v13  ;;  %v3872_v28 = vpop.f32.mrf.mxu0 }
  0x94   : > { %3183 = vmatmul.msk.f32.gmra.mxu3 %vm247_vm0, %v1115_v14 }
  0x95   : > { %3118 = vmatmul.msk.f32.gmra.mxu1 %vm247_vm0, %v1114_v11  ;;  %3217 = vmatmul.msk.f32.gmra.mxu0 %vm247_vm0, %v3684_v52  ;;  %v3968_v11 = vld [vmem:[#allocation2 + $0xc9] sm:$0xff] }
  0x96   : > { %4704 = vst [vmem:[#allocation16_spill] sm:$0xff] %v3968_v11 }
  0x9b   : > { %3151 = vmatmul.msk.f32.gmra.mxu2 %vm247_vm0, %v3813_v15  ;;  %v3890_v34 = vpop.f32.mrf.mxu0 }
  0x9c   : > { %3184 = vmatmul.msk.f32.gmra.mxu3 %vm247_vm0, %v3815_v16 }
  0x9d   : > { %3119 = vmatmul.msk.f32.gmra.mxu1 %vm247_vm0, %v1115_v14  ;;  %3218 = vmatmul.msk.f32.gmra.mxu0 %vm247_vm0, %v3702_v57 }
  0xa3   : > { %3152 = vmatmul.msk.f32.gmra.mxu2 %vm247_vm0, %v3824_v17 }
  0xa4   : > { %3185 = vmatmul.msk.f32.gmra.mxu3 %vm247_vm0, %v3826_v18 }
  0xa5   : > { %3120 = vmatmul.msk.f32.gmra.mxu1 %vm247_vm0, %v3815_v16  ;;  %3219 = vmatmul.msk.f32.gmra.mxu0 %vm247_vm0, %v3741_v0 }
  0xab   : > { %3153 = vmatmul.msk.f32.gmra.mxu2 %vm247_vm0, %v3836_v19 }
  0xac   : > { %3186 = vmatmul.msk.f32.gmra.mxu3 %vm247_vm0, %v3838_v21 }
  0xad   : > { %3121 = vmatmul.msk.f32.gmra.mxu1 %vm247_vm0, %v3826_v18  ;;  %3220 = vmatmul.msk.f32.gmra.mxu0 %vm247_vm0, %v3776_v7 }
  0xb3   : > { %3154 = vmatmul.msk.f32.gmra.mxu2 %vm247_vm0, %v3848_v23 }
  0xb4   : > { %3187 = vmatmul.msk.f32.gmra.mxu3 %vm247_vm0, %v3850_v25 }
  0xb5   : > { %3122 = vmatmul.msk.f32.gmra.mxu1 %vm247_vm0, %v3838_v21  ;;  %3221 = vmatmul.msk.f32.gmra.mxu0 %vm247_vm0, %v3476_v3  ;;  %v3876_v3 = vpop.f32.mrf.mxu1 }
  0xbb   : > { %3155 = vmatmul.msk.f32.gmra.mxu2 %vm247_vm0, %v3860_v26 }
  0xbc   : > { %3188 = vmatmul.msk.f32.gmra.mxu3 %vm247_vm0, %v3862_v27 }
  0xbd   : > { %3123 = vmatmul.msk.f32.gmra.mxu1 %vm247_vm0, %v3850_v25  ;;  %3222 = vmatmul.msk.f32.gmra.mxu0 %vm247_vm0, %v3607_v24  ;;  %v3888_v24 = vld [vmem:[#allocation2 + $0x89] sm:$0xff] }
  0xc3   : > { %3156 = vmatmul.msk.f32.gmra.mxu2 %vm247_vm0, %v3874_v30 }
  0xc4   : > { %3189 = vmatmul.msk.f32.gmra.mxu3 %vm247_vm0, %v3878_v32 }
  0xc5   : > { %3124 = vmatmul.msk.f32.gmra.mxu1 %vm247_vm0, %v3862_v27  ;;  %3223 = vmatmul.msk.f32.gmra.mxu0 %vm247_vm0, %v3627_v33 }
  0xca   : > { %v3894_v36 = vpop.f32.mrf.mxu1 }
  0xcb   : > { %3157 = vmatmul.msk.f32.gmra.mxu2 %vm247_vm0, %v3888_v24 }
  0xcc   : > { %3190 = vmatmul.msk.f32.gmra.mxu3 %vm247_vm0, %v3892_v35 }
  0xcd   : > { %3125 = vmatmul.msk.f32.gmra.mxu1 %vm247_vm0, %v3878_v32  ;;  %3224 = vmatmul.msk.f32.gmra.mxu0 %vm247_vm0, %v3656_v43 }
  0xce   : > { %v3904_v33 = vpop.f32.mrf.mxu2 }
  0xcf   : > { %v3906_v37 = vpop.f32.mrf.mxu3 }
  0xd0   : > { %4694 = vst [vmem:[#allocation6_spill] sm:$0xff] %v3906_v37 }
  0xd2   : > { %v3912_v40 = vpop.f32.mrf.mxu1  ;;  %v3914_v44 = vpop.f32.mrf.mxu0 }
  0xd3   : > { %3158 = vmatmul.msk.f32.gmra.mxu2 %vm247_vm0, %v3908_v38  ;;  %v4059_v38 = vld [vmem:[#allocation2 + $0x12f] sm:$0xff] }
  0xd4   : > { %3191 = vmatmul.msk.f32.gmra.mxu3 %vm247_vm0, %v3910_v39 }
  0xd5   : > { %3126 = vmatmul.msk.f32.gmra.mxu1 %vm247_vm0, %v3892_v35  ;;  %3225 = vmatmul.msk.f32.gmra.mxu0 %vm247_vm0, %v3682_v51 }
  0xd6   : > { %v3924_v43 = vpop.f32.mrf.mxu2 }
  0xd7   : > { %v3926_v45 = vpop.f32.mrf.mxu3 }
  0xd8   : > { %4697 = vst [vmem:[#allocation9_spill] sm:$0xff] %v3926_v45  ;;  %v3990_v45 = vld [vmem:[#allocation2 + $0xef] sm:$0xff] }
  0xd9   : > { %4709 = vst [vmem:[#allocation21_spill] sm:$0xff] %v3990_v45 }
  0xda   : > { %v3932_v48 = vpop.f32.mrf.mxu1  ;;  %v3934_v53 = vpop.f32.mrf.mxu0 }
  0xdb   : > { %3159 = vmatmul.msk.f32.gmra.mxu2 %vm247_vm0, %v3928_v46 }
  0xdc   : > { %3192 = vmatmul.msk.f32.gmra.mxu3 %vm247_vm0, %v3930_v47 }
  0xdd   : > { %3127 = vmatmul.msk.f32.gmra.mxu1 %vm247_vm0, %v3910_v39  ;;  %3226 = vmatmul.msk.f32.gmra.mxu0 %vm247_vm0, %v3700_v56 }
  0xde   : > { %v3944_v51 = vpop.f32.mrf.mxu2 }
  0xdf   : > { %v3946_v58 = vpop.f32.mrf.mxu3 }
  0xe0   : > { %4700 = vst [vmem:[#allocation12_spill] sm:$0xff] %v3946_v58  ;;  %v3988_v58 = vld [vmem:[#allocation2 + $0xd1] sm:$0xff] }
  0xe1   : > { %4708 = vst [vmem:[#allocation20_spill] sm:$0xff] %v3988_v58 }
  0xe2   : > { %v3952_v2 = vpop.f32.mrf.mxu1  ;;  %v3954_v10 = vpop.f32.mrf.mxu0 }
  0xe3   : > { %3160 = vmatmul.msk.f32.gmra.mxu2 %vm247_vm0, %v3948_v59  ;;  %v4030_v59 = vld [vmem:[#allocation2 + $0x10f] sm:$0xff] }
  0xe4   : > { %3193 = vmatmul.msk.f32.gmra.mxu3 %vm247_vm0, %v3950_v60 }
  0xe5   : > { %3128 = vmatmul.msk.f32.gmra.mxu1 %vm247_vm0, %v3930_v47  ;;  %3227 = vmatmul.msk.f32.gmra.mxu0 %vm247_vm0, %v3739_v63 }
  0xe6   : > { %v3964_v56 = vpop.f32.mrf.mxu2 }
  0xe7   : > { %v3966_v1 = vpop.f32.mrf.mxu3 }
  0xe8   : > { %4703 = vst [vmem:[#allocation15_spill] sm:$0xff] %v3966_v1 }
  0xea   : > { %v3972_v13 = vpop.f32.mrf.mxu1  ;;  %v3974_v14 = vpop.f32.mrf.mxu0 }
  0xeb   : > { %3161 = vmatmul.msk.f32.gmra.mxu2 %vm247_vm0, %v3968_v11  ;;  %v4010_v11 = vld [vmem:[#allocation2 + $0x107] sm:$0xff] }
  0xec   : > { %3194 = vmatmul.msk.f32.gmra.mxu3 %vm247_vm0, %v3970_v12  ;;  %4713 = vst [vmem:[#allocation25_spill] sm:$0xff] %v4010_v11 }
  0xed   : > { %3129 = vmatmul.msk.f32.gmra.mxu1 %vm247_vm0, %v3950_v60  ;;  %3228 = vmatmul.msk.f32.gmra.mxu0 %vm247_vm0, %v3774_v6  ;;  %v4008_v60 = vld [vmem:[#allocation2 + $0xe9] sm:$0xff] }
  0xee   : > { %v3984_v63 = vpop.f32.mrf.mxu2  ;;  %4712 = vst [vmem:[#allocation24_spill] sm:$0xff] %v4008_v60 }
  0xef   : > { %4706 = vst [vmem:[#allocation18_spill] sm:$0xff] %v3984_v63  ;;  %v3986_v1 = vpop.f32.mrf.mxu3 }
  0xf0   : > { %4707 = vst [vmem:[#allocation19_spill] sm:$0xff] %v3986_v1 }
  0xf2   : > { %v3992_v37 = vpop.f32.mrf.mxu1  ;;  %v3994_v47 = vpop.f32.mrf.mxu0 }
  0xf3   : > { %3162 = vmatmul.msk.f32.gmra.mxu2 %vm247_vm0, %v3988_v58 }
  0xf4   : > { %3195 = vmatmul.msk.f32.gmra.mxu3 %vm247_vm0, %v3990_v45 }
  0xf5   : > { %3130 = vmatmul.msk.f32.gmra.mxu1 %vm247_vm0, %v3970_v12  ;;  %3229 = vmatmul.msk.f32.gmra.mxu0 %vm247_vm0, %v3595_v20  ;;  %v4028_v12 = vld [vmem:[#allocation2 + $0xf1] sm:$0xff] }
  0xf6   : > { %v4004_v6 = vpop.f32.mrf.mxu2  ;;  %4716 = vst [vmem:[#allocation28_spill] sm:$0xff] %v4028_v12 }
  0xf7   : > { %4710 = vst [vmem:[#allocation22_spill] sm:$0xff] %v4004_v6  ;;  %v4006_v1 = vpop.f32.mrf.mxu3 }
  0xf8   : > { %4711 = vst [vmem:[#allocation23_spill] sm:$0xff] %v4006_v1 }
  0xfa   : > { %v4012_v39 = vpop.f32.mrf.mxu1  ;;  %v4014_v58 = vpop.f32.mrf.mxu0 }
  0xfb   : > { %3163 = vmatmul.msk.f32.gmra.mxu2 %vm247_vm0, %v4008_v60  ;;  %v4046_v60 = vld [vmem:[#allocation2 + $0x127] sm:$0xff] }
  0xfc   : > { %3196 = vmatmul.msk.f32.gmra.mxu3 %vm247_vm0, %v4010_v11 }
  0xfd   : > { %3131 = vmatmul.msk.f32.gmra.mxu1 %vm247_vm0, %v3990_v45  ;;  %3230 = vmatmul.msk.f32.gmra.mxu0 %vm247_vm0, %v3619_v29  ;;  %v4044_v45 = vld [vmem:[#allocation2 + $0x109] sm:$0xff] }
  0xfe   : > { %v4024_v20 = vpop.f32.mrf.mxu2  ;;  %4719 = vst [vmem:[#allocation31_spill] sm:$0xff] %v4044_v45 }
  0xff   : > { %4714 = vst [vmem:[#allocation26_spill] sm:$0xff] %v4024_v20  ;;  %v4026_v1 = vpop.f32.mrf.mxu3 }
 0x100   : > { %4715 = vst [vmem:[#allocation27_spill] sm:$0xff] %v4026_v1 }
 0x102   : > { %v743_v35 = vpop.f32.mrf.mxu1  ;;  %v1536_v46 = vpop.f32.mrf.mxu0 }
 0x103   : > { %3164 = vmatmul.msk.f32.gmra.mxu2 %vm247_vm0, %v4028_v12 }
 0x104   : > { %3197 = vmatmul.msk.f32.gmra.mxu3 %vm247_vm0, %v4030_v59 }
 0x105   : > { %3132 = vmatmul.msk.f32.gmra.mxu1 %vm247_vm0, %v4010_v11  ;;  %3231 = vmatmul.msk.f32.gmra.mxu0 %vm247_vm0, %v3651_v41  ;;  %v744_v11 = vadd.f32 %v743_v35, %v3872_v28 }
 0x106   : > { %v4040_v29 = vpop.f32.mrf.mxu2 }
 0x107   : > { %4717 = vst [vmem:[#allocation29_spill] sm:$0xff] %v4040_v29  ;;  %v4042_v1 = vpop.f32.mrf.mxu3  ;;  %v4057_v29 = vld [vmem:[#allocation2 + $0x111] sm:$0xff] }
 0x108   : > { %4718 = vst [vmem:[#allocation30_spill] sm:$0xff] %v4042_v1 }
 0x10a   : > { %v746_v20 = vpop.f32.mrf.mxu1  ;;  %v1539_v6 = vpop.f32.mrf.mxu0 }
 0x10b   : > { %3165 = vmatmul.msk.f32.gmra.mxu2 %vm247_vm0, %v4044_v45 }
 0x10c   : > { %3198 = vmatmul.msk.f32.gmra.mxu3 %vm247_vm0, %v4046_v60 }
 0x10d   : > { %3133 = vmatmul.msk.f32.gmra.mxu1 %vm247_vm0, %v4030_v59  ;;  %3232 = vmatmul.msk.f32.gmra.mxu0 %vm247_vm0, %v3678_v49  ;;  %v747_v49 = vadd.f32 %v746_v20, %v3890_v34 }
 0x10e   : > { %v986_v41 = vpop.f32.mrf.mxu2 }
 0x10f   : > { %v1082_v1 = vadd.f32 %v986_v41, %v744_v11  ;;  %v1261_v12 = vpop.f32.mrf.mxu3  ;;  %v4072_v11 = vld [vmem:[#allocation2 + $0x129] sm:$0xff] }
 0x111   : > { %v1357_v32 = vadd.f32 %v1261_v12, %v1082_v1 }
 0x112   : > { %v749_v45 = vpop.f32.mrf.mxu1  ;;  %v1542_v63 = vpop.f32.mrf.mxu0 }
 0x113   : > { %v4061_v27 = vadd.f32 %v1536_v46, %v1357_v32  ;;  %3166 = vmatmul.msk.f32.gmra.mxu2 %vm247_vm0, %v4057_v29  ;;  %v4074_v46 = vld [vmem:[#allocation2 + $0x147] sm:$0xff] }
 0x114   : > { %3199 = vmatmul.msk.f32.gmra.mxu3 %vm247_vm0, %v4059_v38 }
 0x115   : > { %4720 = vst [vmem:[#allocation32_spill] sm:$0xff] %v4061_v27  ;;  %3134 = vmatmul.msk.f32.gmra.mxu1 %vm247_vm0, %v4046_v60  ;;  %3233 = vmatmul.msk.f32.gmra.mxu0 %vm247_vm0, %v3696_v54  ;;  %v750_v54 = vadd.f32 %v749_v45, %v3914_v44 }
 0x116   : > { %v989_v28 = vpop.f32.mrf.mxu2 }
 0x117   : > { %v1083_v35 = vadd.f32 %v989_v28, %v747_v49  ;;  %v1264_v1 = vpop.f32.mrf.mxu3  ;;  %v4087_v28 = vld [vmem:[#allocation2 + $0x131] sm:$0xff] }
 0x119   : > { %v1358_v32 = vadd.f32 %v1264_v1, %v1083_v35  ;;  %v4089_v35 = vld [vmem:[#allocation2 + $0x14f] sm:$0xff] }
 0x11a   : > { %v752_v12 = vpop.f32.mrf.mxu1  ;;  %v1545_v41 = vpop.f32.mrf.mxu0 }
 0x11b   : > { %v4076_v27 = vadd.f32 %v1539_v6, %v1358_v32  ;;  %3167 = vmatmul.msk.f32.gmra.mxu2 %vm247_vm0, %v4072_v11 }
 0x11c   : > { %3200 = vmatmul.msk.f32.gmra.mxu3 %vm247_vm0, %v4074_v46 }
 0x11d   : > { %4721 = vst [vmem:[#allocation33_spill] sm:$0xff] %v4076_v27  ;;  %3135 = vmatmul.msk.f32.gmra.mxu1 %vm247_vm0, %v4059_v38  ;;  %3234 = vmatmul.msk.f32.gmra.mxu0 %vm247_vm0, %v3731_v61  ;;  %v753_v61 = vadd.f32 %v752_v12, %v3934_v53 }
 0x11e   : > { %v992_v34 = vpop.f32.mrf.mxu2 }
 0x11f   : > { %v1084_v20 = vadd.f32 %v992_v34, %v750_v54  ;;  %v1267_v49 = vpop.f32.mrf.mxu3  ;;  %v4102_v34 = vld [vmem:[#allocation2 + $0x149] sm:$0xff] }
 0x121   : > { %v1359_v6 = vadd.f32 %v1267_v49, %v1084_v20  ;;  %v4104_v20 = vld [vmem:[#allocation2 + $0x167] sm:$0xff] }
 0x122   : > { %v755_v1 = vpop.f32.mrf.mxu1  ;;  %v1548_v32 = vpop.f32.mrf.mxu0 }
 0x123   : > { %v4091_v27 = vadd.f32 %v1542_v63, %v1359_v6  ;;  %3168 = vmatmul.msk.f32.gmra.mxu2 %vm247_vm0, %v4087_v28 }
 0x124   : > { %3201 = vmatmul.msk.f32.gmra.mxu3 %vm247_vm0, %v4089_v35 }
 0x125   : > { %4722 = vst [vmem:[#allocation34_spill] sm:$0xff] %v4091_v27  ;;  %3136 = vmatmul.msk.f32.gmra.mxu1 %vm247_vm0, %v4074_v46  ;;  %3235 = vmatmul.msk.f32.gmra.mxu0 %vm247_vm0, %v3766_v4  ;;  %v756_v4 = vadd.f32 %v755_v1, %v3954_v10 }
 0x126   : > { %v995_v44 = vpop.f32.mrf.mxu2 }
 0x127   : > { %v1085_v45 = vadd.f32 %v995_v44, %v753_v61  ;;  %v1270_v54 = vpop.f32.mrf.mxu3  ;;  %v4117_v44 = vld [vmem:[#allocation2 + $0x151] sm:$0xff] }
 0x129   : > { %v1360_v63 = vadd.f32 %v1270_v54, %v1085_v45  ;;  %v4119_v45 = vld [vmem:[#allocation2 + $0x16f] sm:$0xff] }
 0x12a   : > { %v758_v49 = vpop.f32.mrf.mxu1  ;;  %v1551_v6 = vpop.f32.mrf.mxu0 }
 0x12b   : > { %v4106_v27 = vadd.f32 %v1545_v41, %v1360_v63  ;;  %3169 = vmatmul.msk.f32.gmra.mxu2 %vm247_vm0, %v4102_v34 }
 0x12c   : > { %3202 = vmatmul.msk.f32.gmra.mxu3 %vm247_vm0, %v4104_v20 }
 0x12d   : > { %4723 = vst [vmem:[#allocation35_spill] sm:$0xff] %v4106_v27  ;;  %3137 = vmatmul.msk.f32.gmra.mxu1 %vm247_vm0, %v4089_v35  ;;  %3236 = vmatmul.msk.f32.gmra.mxu0 %vm247_vm0, %v3792_v8  ;;  %v759_v8 = vadd.f32 %v758_v49, %v3974_v14 }
 0x12e   : > { %v998_v53 = vpop.f32.mrf.mxu2 }
 0x12f   : > { %v1086_v12 = vadd.f32 %v998_v53, %v756_v4  ;;  %v1273_v61 = vpop.f32.mrf.mxu3  ;;  %v4132_v53 = vld [vmem:[#allocation2 + $0x169] sm:$0xff] }
 0x131   : > { %v1361_v41 = vadd.f32 %v1273_v61, %v1086_v12  ;;  %v4134_v12 = vld [vmem:[#allocation2 + $0x187] sm:$0xff] }
 0x132   : > { %v761_v54 = vpop.f32.mrf.mxu1  ;;  %v1554_v63 = vpop.f32.mrf.mxu0 }
 0x133   : > { %v4121_v27 = vadd.f32 %v1548_v32, %v1361_v41  ;;  %3170 = vmatmul.msk.f32.gmra.mxu2 %vm247_vm0, %v4117_v44 }
 0x134   : > { %3203 = vmatmul.msk.f32.gmra.mxu3 %vm247_vm0, %v4119_v45 }
 0x135   : > { %4724 = vst [vmem:[#allocation36_spill] sm:$0xff] %v4121_v27  ;;  %3138 = vmatmul.msk.f32.gmra.mxu1 %vm247_vm0, %v4104_v20  ;;  %3237 = vmatmul.msk.f32.gmra.mxu0 %vm247_vm0, %v3601_v22  ;;  %v762_v22 = vadd.f32 %v761_v54, %v3994_v47 }
 0x136   : > { %v1001_v10 = vpop.f32.mrf.mxu2 }
 0x137   : > { %v1087_v1 = vadd.f32 %v1001_v10, %v759_v8  ;;  %v1276_v4 = vpop.f32.mrf.mxu3  ;;  %v4147_v10 = vld [vmem:[#allocation2 + $0x171] sm:$0xff] }
 0x139   : > { %v1362_v32 = vadd.f32 %v1276_v4, %v1087_v1  ;;  %v4149_v1 = vld [vmem:[#allocation2 + $0x18f] sm:$0xff] }
 0x13a   : > { %v764_v61 = vpop.f32.mrf.mxu1  ;;  %v1557_v41 = vpop.f32.mrf.mxu0  ;;  %4726 = vst [vmem:[#allocation38_spill] sm:$0xff] %v4149_v1 }
 0x13b   : > { %v4136_v27 = vadd.f32 %v1551_v6, %v1362_v32  ;;  %3171 = vmatmul.msk.f32.gmra.mxu2 %vm247_vm0, %v4132_v53 }
 0x13c   : > { %3204 = vmatmul.msk.f32.gmra.mxu3 %vm247_vm0, %v4134_v12 }
 0x13d   : > { %4725 = vst [vmem:[#allocation37_spill] sm:$0xff] %v4136_v27  ;;  %3139 = vmatmul.msk.f32.gmra.mxu1 %vm247_vm0, %v4119_v45  ;;  %3238 = vmatmul.msk.f32.gmra.mxu0 %vm247_vm0, %v3623_v31  ;;  %v765_v31 = vadd.f32 %v764_v61, %v4014_v58 }
 0x13e   : > { %v1004_v14 = vpop.f32.mrf.mxu2 }
 0x13f   : > { %v1088_v49 = vadd.f32 %v1004_v14, %v762_v22  ;;  %v1279_v8 = vpop.f32.mrf.mxu3  ;;  %v4162_v14 = vld [vmem:[#allocation2 + $0x189] sm:$0xff] }
 0x141   : > { %v1363_v6 = vadd.f32 %v1279_v8, %v1088_v49  ;;  %v1138_v49 = vld [vmem:[#allocation2 + $0x1a7] sm:$0xff] }
 0x142   : > { %v767_v4 = vpop.f32.mrf.mxu1  ;;  %v1560_v32 = vpop.f32.mrf.mxu0 }
 0x143   : > { %v4151_v27 = vadd.f32 %v1554_v63, %v1363_v6  ;;  %3172 = vmatmul.msk.f32.gmra.mxu2 %vm247_vm0, %v4147_v10  ;;  %v768_v58 = vadd.f32 %v767_v4, %v3876_v3  ;;  %v245_v3 = vld [vmem:[%s3456_s22 + $0xf0] sm:$0xff] }
 0x144   : > { %3205 = vmatmul.msk.f32.gmra.mxu3 %vm247_vm0, %v4149_v1  ;;  %352 = vst.msk [vmem:[#allocation2 + $0x208] sm:$0xff] %vm247_vm0, %v245_v3 }
 0x145   : > { %4727 = vst [vmem:[#allocation39_spill] sm:$0xff] %v4151_v27  ;;  %3140 = vmatmul.msk.f32.gmra.mxu1 %vm247_vm0, %v4134_v12  ;;  %3239 = vmatmul.msk.f32.gmra.mxu0 %vm247_vm0, %v3654_v42 }
 0x146   : > { %v1007_v47 = vpop.f32.mrf.mxu2 }
 0x147   : > { %v1089_v54 = vadd.f32 %v1007_v47, %v765_v31  ;;  %v1282_v22 = vpop.f32.mrf.mxu3  ;;  %v4174_v47 = vld [vmem:[#allocation2 + $0x191] sm:$0xff] }
 0x149   : > { %v1364_v63 = vadd.f32 %v1282_v22, %v1089_v54  ;;  %v1139_v54 = vld [vmem:[#allocation2 + $0x1af] sm:$0xff] }
 0x14a   : > { %v770_v8 = vpop.f32.mrf.mxu1  ;;  %v1563_v6 = vpop.f32.mrf.mxu0 }
 0x14b   : > { %v4164_v27 = vadd.f32 %v1557_v41, %v1364_v63  ;;  %3173 = vmatmul.msk.f32.gmra.mxu2 %vm247_vm0, %v4162_v14 }
 0x14c   : > { %3206 = vmatmul.msk.f32.gmra.mxu3 %vm247_vm0, %v1138_v49 }
 0x14d   : > { %4728 = vst [vmem:[#allocation40_spill] sm:$0xff] %v4164_v27  ;;  %3141 = vmatmul.msk.f32.gmra.mxu1 %vm247_vm0, %v4149_v1  ;;  %3240 = vmatmul.msk.f32.gmra.mxu0 %vm247_vm0, %v3680_v50  ;;  %v771_v50 = vadd.f32 %v770_v8, %v3894_v36  ;;  %v246_v36 = vld [vmem:[%s3456_s22 + $0xf8] sm:$0xff] }
 0x14e   : > { %v1010_v42 = vpop.f32.mrf.mxu2  ;;  %353 = vst.msk [vmem:[#allocation2 + $0x210] sm:$0xff] %vm247_vm0, %v246_v36 }
 0x14f   : > { %v1090_v61 = vadd.f32 %v1010_v42, %v768_v58  ;;  %v1285_v31 = vpop.f32.mrf.mxu3  ;;  %v865_v42 = vld [vmem:[#allocation2 + $0x1a9] sm:$0xff] }
 0x151   : > { %v1365_v41 = vadd.f32 %v1285_v31, %v1090_v61  ;;  %v1140_v31 = vld [vmem:[#allocation2 + $0x1c7] sm:$0xff] }
 0x152   : > { %v773_v22 = vpop.f32.mrf.mxu1  ;;  %v1566_v63 = vpop.f32.mrf.mxu0 }
 0x153   : > { %v4176_v27 = vadd.f32 %v1560_v32, %v1365_v41  ;;  %3174 = vmatmul.msk.f32.gmra.mxu2 %vm247_vm0, %v4174_v47 }
 0x154   : > { %3207 = vmatmul.msk.f32.gmra.mxu3 %vm247_vm0, %v1139_v54 }
 0x155   : > { %4729 = vst [vmem:[#allocation41_spill] sm:$0xff] %v4176_v27  ;;  %3142 = vmatmul.msk.f32.gmra.mxu1 %vm247_vm0, %v1138_v49  ;;  %3241 = vmatmul.msk.f32.gmra.mxu0 %vm247_vm0, %v3698_v55  ;;  %v774_v49 = vadd.f32 %v773_v22, %v3912_v40 }
 0x156   : > { %v1013_v4 = vpop.f32.mrf.mxu2 }
 0x157   : > { %v1091_v58 = vadd.f32 %v1013_v4, %v771_v50  ;;  %v1288_v32 = vpop.f32.mrf.mxu3  ;;  %v866_v50 = vld [vmem:[#allocation2 + $0x1b1] sm:$0xff] }
 0x158   : > { %v1141_v4 = vld [vmem:[#allocation2 + $0x1cf] sm:$0xff] }
 0x159   : > { %v1366_v61 = vadd.f32 %v1288_v32, %v1091_v58 }
 0x15a   : > { %v776_v41 = vpop.f32.mrf.mxu1  ;;  %v1569_v27 = vpop.f32.mrf.mxu0 }
 0x15b   : > { %v4187_v1 = vadd.f32 %v1563_v6, %v1366_v61  ;;  %3175 = vmatmul.msk.f32.gmra.mxu2 %vm247_vm0, %v865_v42  ;;  %v777_v40 = vadd.f32 %v776_v41, %v3932_v48  ;;  %v867_v61 = vld [vmem:[#allocation2 + $0x1c9] sm:$0xff] }
 0x15c   : > { %3208 = vmatmul.msk.f32.gmra.mxu3 %vm247_vm0, %v1140_v31 }
 0x15d   : > { %3143 = vmatmul.msk.f32.gmra.mxu1 %vm247_vm0, %v1139_v54  ;;  %3242 = vmatmul.msk.f32.gmra.mxu0 %vm247_vm0, %v3735_v62 }
 0x15e   : > { %v1016_v55 = vpop.f32.mrf.mxu2 }
 0x15f   : > { %v1092_v8 = vadd.f32 %v1016_v55, %v774_v49  ;;  %v1291_v3 = vpop.f32.mrf.mxu3  ;;  %v1142_v49 = vld [vmem:[#allocation2 + $0x1e7] sm:$0xff] }
 0x161   : > { %v1367_v6 = vadd.f32 %v1291_v3, %v1092_v8  ;;  %v868_v3 = vld [vmem:[#allocation2 + $0x1d1] sm:$0xff] }
 0x162   : > { %v779_v58 = vpop.f32.mrf.mxu1  ;;  %v1572_v32 = vpop.f32.mrf.mxu0 }
 0x163   : > { %v4197_v42 = vadd.f32 %v1566_v63, %v1367_v6  ;;  %3176 = vmatmul.msk.f32.gmra.mxu2 %vm247_vm0, %v866_v50  ;;  %v780_v48 = vadd.f32 %v779_v58, %v3952_v2  ;;  %v1143_v6 = vld [vmem:[#allocation2 + $0x1ef] sm:$0xff] }
 0x164   : > { %3209 = vmatmul.msk.f32.gmra.mxu3 %vm247_vm0, %v1141_v4 }
 0x165   : > { %3144 = vmatmul.msk.f32.gmra.mxu1 %vm247_vm0, %v1140_v31  ;;  %3243 = vmatmul.msk.f32.gmra.mxu0 %vm247_vm0, %v3770_v5 }
 0x166   : > { %v1019_v62 = vpop.f32.mrf.mxu2 }
 0x167   : > { %v1093_v54 = vadd.f32 %v1019_v62, %v777_v40  ;;  %v1294_v22 = vpop.f32.mrf.mxu3  ;;  %v1419_v62 = vld [vmem:[#allocation2 + $0x208] sm:$0xff] }
 0x169   : > { %v1368_v36 = vadd.f32 %v1294_v22, %v1093_v54  ;;  %v869_v22 = vld [vmem:[#allocation2 + $0x1e9] sm:$0xff] }
 0x16a   : > { %v782_v55 = vpop.f32.mrf.mxu1  ;;  %v1575_v63 = vpop.f32.mrf.mxu0 }
 0x16b   : > { %v4205_v8 = vadd.f32 %v1569_v27, %v1368_v36  ;;  %3177 = vmatmul.msk.f32.gmra.mxu2 %vm247_vm0, %v867_v61  ;;  %v783_v2 = vadd.f32 %v782_v55, %v3972_v13  ;;  %v1144_v36 = vld [vmem:[#allocation2 + $0x207] sm:$0xff] }
 0x16c   : > { %3210 = vmatmul.msk.f32.gmra.mxu3 %vm247_vm0, %v1142_v49 }
 0x16d   : > { %3145 = vmatmul.msk.f32.gmra.mxu1 %vm247_vm0, %v1141_v4  ;;  %3244 = vmatmul.msk.f32.gmra.mxu0 %vm247_vm0, %v3794_v9 }
 0x16e   : > { %v1022_v5 = vpop.f32.mrf.mxu2 }
 0x16f   : > { %v1094_v31 = vadd.f32 %v1022_v5, %v780_v48  ;;  %v1297_v41 = vpop.f32.mrf.mxu3 }
 0x171   : > { %v1369_v50 = vadd.f32 %v1297_v41, %v1094_v31 }
 0x172   : > { %v785_v40 = vpop.f32.mrf.mxu1  ;;  %v1578_v27 = vpop.f32.mrf.mxu0 }
 0x173   : > { %v4213_v54 = vadd.f32 %v1572_v32, %v1369_v50  ;;  %3178 = vmatmul.msk.f32.gmra.mxu2 %vm247_vm0, %v868_v3  ;;  %v1420_v32 = vld [vmem:[#allocation2 + $0x210] sm:$0xff]  ;;  %v786_v13 = vadd.f32 %v785_v40, %v3992_v37 }
 0x174   : > { %3211 = vmatmul.msk.f32.gmra.mxu3 %vm247_vm0, %v1143_v6  ;;  %v870_v3 = vld [vmem:[#allocation2 + $0x1f1] sm:$0xff] }
 0x175   : > { %3146 = vmatmul.msk.f32.gmra.mxu1 %vm247_vm0, %v1142_v49  ;;  %3245 = vmatmul.msk.f32.gmra.mxu0 %vm247_vm0, %v1419_v62  ;;  %v1145_v62 = vld [vmem:[#allocation2 + $0x20f] sm:$0xff] }
 0x176   : > { %v1025_v9 = vpop.f32.mrf.mxu2 }
 0x177   : > { %v1095_v4 = vadd.f32 %v1025_v9, %v783_v2  ;;  %v1300_v58 = vpop.f32.mrf.mxu3 }
 0x179   : > { %v1370_v61 = vadd.f32 %v1300_v58, %v1095_v4 }
 0x17a   : > { %v788_v48 = vpop.f32.mrf.mxu1  ;;  %v1581_v5 = vpop.f32.mrf.mxu0 }
 0x17b   : > { %v4220_v31 = vadd.f32 %v1575_v63, %v1370_v61  ;;  %3179 = vmatmul.msk.f32.gmra.mxu2 %vm247_vm0, %v869_v22  ;;  %v789_v37 = vadd.f32 %v788_v48, %v4012_v39 }
 0x17c   : > { %3212 = vmatmul.msk.f32.gmra.mxu3 %vm247_vm0, %v1144_v36 }
 0x17d   : > { %3147 = vmatmul.msk.f32.gmra.mxu1 %vm247_vm0, %v1143_v6  ;;  %3246 = vmatmul.msk.f32.gmra.mxu0 %vm247_vm0, %v1420_v32 }
 0x17e   : > { %v1028_v49 = vpop.f32.mrf.mxu2 }
 0x17f   : > { %v1096_v55 = vadd.f32 %v1028_v49, %v786_v13  ;;  %v1303_v41 = vpop.f32.mrf.mxu3 }
 0x181   : > { %v1371_v50 = vadd.f32 %v1303_v41, %v1096_v55 }
 0x182   : > { %v791_v2 = vpop.f32.mrf.mxu1  ;;  %v1584_v9 = vpop.f32.mrf.mxu0 }
 0x183   : > { %v4227_v63 = vadd.f32 %v1578_v27, %v1371_v50  ;;  %3180 = vmatmul.msk.f32.gmra.mxu2 %vm247_vm0, %v870_v3  ;;  %v792_v39 = vadd.f32 %v791_v2, %v3904_v33 }
 0x184   : > { %3213 = vmatmul.msk.f32.gmra.mxu3 %vm247_vm0, %v1145_v62 }
 0x185   : > { %3248 = vmatmul.msk.f32.vlgmr.msra.gmra.mxu1 %vm247_vm0, %v3813_v15  ;;  %3347 = vmatmul.msk.f32.vlgmr.msra.gmra.mxu0 %vm247_vm0, %v3836_v19 }
 0x186   : > { %v1031_v6 = vpop.f32.mrf.mxu2 }
 0x187   : > { %v1097_v40 = vadd.f32 %v1031_v6, %v789_v37  ;;  %v1306_v4 = vpop.f32.mrf.mxu3 }
 0x189   : > { %v1372_v58 = vadd.f32 %v1306_v4, %v1097_v40  ;;  %v2219_v40 = vld [vmem:[#allocation2 + $0x88] sm:$0xff] }
 0x18a   : > { %v794_v22 = vpop.f32.mrf.mxu1  ;;  %v1587_v61 = vpop.f32.mrf.mxu0 }
 0x18b   : > { %v4236_v27 = vadd.f32 %v1581_v5, %v1372_v58  ;;  %3281 = vmatmul.msk.f32.vlgmr.msra.gmra.mxu2 %vm247_vm0, %v3815_v16 }
 0x18c   : > { %3314 = vmatmul.msk.f32.vlgmr.msra.gmra.mxu3 %vm247_vm0, %v3684_v52  ;;  %v795_v52 = vadd.f32 %v794_v22, %v3924_v43 }
 0x18d   : > { %3249 = vmatmul.msk.f32.gmra.mxu1 %vm247_vm0, %v3824_v17  ;;  %3348 = vmatmul.msk.f32.gmra.mxu0 %vm247_vm0, %v3848_v23 }
 0x18e   : > { %v1034_v15 = vpop.f32.mrf.mxu2 }
 0x18f   : > { %v1098_v36 = vadd.f32 %v1034_v15, %v792_v39  ;;  %v1309_v48 = vpop.f32.mrf.mxu3 }
 0x191   : > { %v1373_v32 = vadd.f32 %v1309_v48, %v1098_v36  ;;  %v2220_v48 = vld [vmem:[#allocation2 + $0x90] sm:$0xff] }
 0x192   : > { %v797_v5 = vpop.f32.mrf.mxu1  ;;  %v1590_v13 = vpop.f32.mrf.mxu0 }
 0x193   : > { %v4247_v49 = vadd.f32 %v1584_v9, %v1373_v32  ;;  %3282 = vmatmul.msk.f32.gmra.mxu2 %vm247_vm0, %v3826_v18 }
 0x194   : > { %3315 = vmatmul.msk.f32.gmra.mxu3 %vm247_vm0, %v3702_v57  ;;  %v798_v57 = vadd.f32 %v797_v5, %v3944_v51 }
 0x195   : > { %3250 = vmatmul.msk.f32.gmra.mxu1 %vm247_vm0, %v3836_v19  ;;  %3349 = vmatmul.msk.f32.gmra.mxu0 %vm247_vm0, %v3860_v26 }
 0x196   : > { %v1037_v16 = vpop.f32.mrf.mxu2 }
 0x197   : > { %v1099_v17 = vadd.f32 %v1037_v16, %v795_v52  ;;  %v1312_v33 = vpop.f32.mrf.mxu3  ;;  %v4733_v52 = vld [vmem:[#allocation4_spill] sm:$0xff]  ;;  %v4734_v16 = vld [vmem:[#allocation22_spill] sm:$0xff] }
 0x199   : > { %v1374_v55 = vadd.f32 %v1312_v33, %v1099_v17 }
 0x19a   : > { %v800_v41 = vpop.f32.mrf.mxu1  ;;  %v1593_v3 = vpop.f32.mrf.mxu0 }
 0x19b   : > { %v4258_v50 = vadd.f32 %v1587_v61, %v1374_v55  ;;  %3283 = vmatmul.msk.f32.gmra.mxu2 %vm247_vm0, %v3838_v21 }
 0x19c   : > { %3316 = vmatmul.msk.f32.gmra.mxu3 %vm247_vm0, %v3741_v0  ;;  %v801_v0 = vadd.f32 %v800_v41, %v3964_v56 }
 0x19d   : > { %3251 = vmatmul.msk.f32.gmra.mxu1 %vm247_vm0, %v3848_v23  ;;  %3350 = vmatmul.msk.f32.gmra.mxu0 %vm247_vm0, %v3874_v30 }
 0x19e   : > { %v1040_v18 = vpop.f32.mrf.mxu2 }
 0x19f   : > { %v1100_v19 = vadd.f32 %v1040_v18, %v798_v57  ;;  %v1315_v43 = vpop.f32.mrf.mxu3  ;;  %v2221_v57 = vld [vmem:[#allocation2 + $0xa8] sm:$0xff] }
 0x1a1   : > { %v1375_v62 = vadd.f32 %v1315_v43, %v1100_v19 }
 0x1a2   : > { %v803_v2 = vpop.f32.mrf.mxu1  ;;  %v1596_v9 = vpop.f32.mrf.mxu0 }
 0x1a3   : > { %v4269_v37 = vadd.f32 %v1590_v13, %v1375_v62  ;;  %3284 = vmatmul.msk.f32.gmra.mxu2 %vm247_vm0, %v3850_v25  ;;  %v4730_v25 = vld [vmem:[#allocation3_spill] sm:$0xff]  ;;  %v4736_v62 = vld [vmem:[#allocation5_spill] sm:$0xff] }
 0x1a4   : > { %3317 = vmatmul.msk.f32.gmra.mxu3 %vm247_vm0, %v3776_v7  ;;  %v4731_v7 = vld [vmem:[#allocation18_spill] sm:$0xff] }
 0x1a5   : > { %3252 = vmatmul.msk.f32.gmra.mxu1 %vm247_vm0, %v3860_v26  ;;  %3351 = vmatmul.msk.f32.gmra.mxu0 %vm247_vm0, %v3888_v24  ;;  %v804_v56 = vadd.f32 %v803_v2, %v4731_v7  ;;  %v4732_v26 = vld [vmem:[#allocation7_spill] sm:$0xff]  ;;  %v4737_v2 = vld [vmem:[#allocation26_spill] sm:$0xff]  ;;  %v4740_v7 = vld [vmem:[#allocation29_spill] sm:$0xff] }
 0x1a6   : > { %v1043_v21 = vpop.f32.mrf.mxu2 }
 0x1a7   : > { %v1101_v23 = vadd.f32 %v1043_v21, %v801_v0  ;;  %v1318_v51 = vpop.f32.mrf.mxu3 }
 0x1a9   : > { %v1376_v6 = vadd.f32 %v1318_v51, %v1101_v23 }
 0x1aa   : > { %v806_v4 = vpop.f32.mrf.mxu1  ;;  %v1599_v58 = vpop.f32.mrf.mxu0 }
 0x1ab   : > { %v4280_v22 = vadd.f32 %v1593_v3, %v1376_v6  ;;  %3285 = vmatmul.msk.f32.gmra.mxu2 %vm247_vm0, %v4730_v25  ;;  %v807_v17 = vadd.f32 %v806_v4, %v4734_v16  ;;  %v2222_v6 = vld [vmem:[#allocation2 + $0xb0] sm:$0xff]  ;;  %v4739_v25 = vld [vmem:[#allocation8_spill] sm:$0xff]  ;;  %v4742_v16 = vld [vmem:[#allocation11_spill] sm:$0xff] }
 0x1ac   : > { %3318 = vmatmul.msk.f32.gmra.mxu3 %vm247_vm0, %v2219_v40 }
 0x1ad   : > { %3253 = vmatmul.msk.f32.gmra.mxu1 %vm247_vm0, %v3874_v30  ;;  %3352 = vmatmul.msk.f32.gmra.mxu0 %vm247_vm0, %v4732_v26  ;;  %v4735_v30 = vld [vmem:[#allocation10_spill] sm:$0xff] }
 0x1ae   : > { %v1046_v61 = vpop.f32.mrf.mxu2 }
 0x1af   : > { %v1102_v39 = vadd.f32 %v1046_v61, %v804_v56  ;;  %v1321_v15 = vpop.f32.mrf.mxu3 }
 0x1b1   : > { %v1377_v36 = vadd.f32 %v1321_v15, %v1102_v39 }
 0x1b2   : > { %v809_v32 = vpop.f32.mrf.mxu1  ;;  %v1602_v5 = vpop.f32.mrf.mxu0 }
 0x1b3   : > { %v4290_v13 = vadd.f32 %v1596_v9, %v1377_v36  ;;  %3286 = vmatmul.msk.f32.gmra.mxu2 %vm247_vm0, %v4733_v52  ;;  %v810_v9 = vadd.f32 %v809_v32, %v4737_v2 }
 0x1b4   : > { %3319 = vmatmul.msk.f32.gmra.mxu3 %vm247_vm0, %v2220_v48  ;;  %v2223_v48 = vld [vmem:[#allocation2 + $0xc8] sm:$0xff] }
 0x1b5   : > { %3254 = vmatmul.msk.f32.gmra.mxu1 %vm247_vm0, %v3888_v24  ;;  %3353 = vmatmul.msk.f32.gmra.mxu0 %vm247_vm0, %v4735_v30  ;;  %v4738_v24 = vld [vmem:[#allocation13_spill] sm:$0xff] }
 0x1b6   : > { %v1049_v33 = vpop.f32.mrf.mxu2 }
 0x1b7   : > { %v1103_v55 = vadd.f32 %v1049_v33, %v807_v17  ;;  %v1324_v41 = vpop.f32.mrf.mxu3  ;;  %v4743_v17 = vld [vmem:[#allocation6_spill] sm:$0xff] }
 0x1b9   : > { %v1378_v3 = vadd.f32 %v1324_v41, %v1103_v55 }
 0x1ba   : > { %v812_v18 = vpop.f32.mrf.mxu1  ;;  %v1605_v19 = vpop.f32.mrf.mxu0 }
 0x1bb   : > { %v4300_v43 = vadd.f32 %v1599_v58, %v1378_v3  ;;  %3287 = vmatmul.msk.f32.gmra.mxu2 %vm247_vm0, %v4736_v62  ;;  %v813_v56 = vadd.f32 %v812_v18, %v4740_v7  ;;  %v2224_v18 = vld [vmem:[#allocation2 + $0xd0] sm:$0xff] }
 0x1bc   : > { %3320 = vmatmul.msk.f32.gmra.mxu3 %vm247_vm0, %v2221_v57 }
 0x1bd   : > { %3255 = vmatmul.msk.f32.gmra.mxu1 %vm247_vm0, %v4732_v26  ;;  %3354 = vmatmul.msk.f32.gmra.mxu0 %vm247_vm0, %v4738_v24  ;;  %v4741_v26 = vld [vmem:[#allocation16_spill] sm:$0xff] }
 0x1be   : > { %v1052_v0 = vpop.f32.mrf.mxu2 }
 0x1bf   : > { %v1104_v21 = vadd.f32 %v1052_v0, %v810_v9  ;;  %v1327_v23 = vpop.f32.mrf.mxu3  ;;  %v4745_v9 = vld [vmem:[#allocation14_spill] sm:$0xff]  ;;  %v4746_v0 = vld [vmem:[#allocation9_spill] sm:$0xff] }
 0x1c1   : > { %v1379_v51 = vadd.f32 %v1327_v23, %v1104_v21 }
 0x1c2   : > { %v815_v40 = vpop.f32.mrf.mxu1  ;;  %v1608_v4 = vpop.f32.mrf.mxu0 }
 0x1c3   : > { %v4310_v58 = vadd.f32 %v1602_v5, %v1379_v51  ;;  %3288 = vmatmul.msk.f32.gmra.mxu2 %vm247_vm0, %v4739_v25  ;;  %v816_v33 = vadd.f32 %v815_v40, %v4743_v17  ;;  %v2225_v25 = vld [vmem:[#allocation2 + $0xe8] sm:$0xff]  ;;  %v2226_v17 = vld [vmem:[#allocation2 + $0xf0] sm:$0xff] }
 0x1c4   : > { %3321 = vmatmul.msk.f32.gmra.mxu3 %vm247_vm0, %v2222_v6 }
 0x1c5   : > { %3256 = vmatmul.msk.f32.gmra.mxu1 %vm247_vm0, %v4735_v30  ;;  %3355 = vmatmul.msk.f32.gmra.mxu0 %vm247_vm0, %v4741_v26  ;;  %v4744_v30 = vld [vmem:[#allocation20_spill] sm:$0xff] }
 0x1c6   : > { %v1055_v61 = vpop.f32.mrf.mxu2 }
 0x1c7   : > { %v1105_v39 = vadd.f32 %v1055_v61, %v813_v56  ;;  %v1330_v15 = vpop.f32.mrf.mxu3  ;;  %v4748_v61 = vld [vmem:[#allocation17_spill] sm:$0xff] }
 0x1c9   : > { %v1380_v36 = vadd.f32 %v1330_v15, %v1105_v39  ;;  %v4749_v39 = vld [vmem:[#allocation12_spill] sm:$0xff] }
 0x1ca   : > { %v818_v32 = vpop.f32.mrf.mxu1  ;;  %v1611_v5 = vpop.f32.mrf.mxu0 }
 0x1cb   : > { %v4320_v52 = vadd.f32 %v1605_v19, %v1380_v36  ;;  %3289 = vmatmul.msk.f32.gmra.mxu2 %vm247_vm0, %v4742_v16  ;;  %v819_v21 = vadd.f32 %v818_v32, %v4746_v0 }
 0x1cc   : > { %3322 = vmatmul.msk.f32.gmra.mxu3 %vm247_vm0, %v2223_v48 }
 0x1cd   : > { %3257 = vmatmul.msk.f32.gmra.mxu1 %vm247_vm0, %v4738_v24  ;;  %3356 = vmatmul.msk.f32.gmra.mxu0 %vm247_vm0, %v4744_v30  ;;  %v4747_v24 = vld [vmem:[#allocation24_spill] sm:$0xff] }
 0x1ce   : > { %v1058_v55 = vpop.f32.mrf.mxu2 }
 0x1cf   : > { %v1106_v41 = vadd.f32 %v1058_v55, %v816_v33  ;;  %v1333_v3 = vpop.f32.mrf.mxu3 }
 0x1d1   : > { %v1381_v57 = vadd.f32 %v1333_v3, %v1106_v41  ;;  %v4751_v41 = vld [vmem:[#allocation21_spill] sm:$0xff]  ;;  %v4752_v3 = vld [vmem:[#allocation15_spill] sm:$0xff] }
 0x1d2   : > { %v821_v19 = vpop.f32.mrf.mxu1  ;;  %v1614_v62 = vpop.f32.mrf.mxu0 }
 0x1d3   : > { %v4330_v2 = vadd.f32 %v1608_v4, %v1381_v57  ;;  %3290 = vmatmul.msk.f32.gmra.mxu2 %vm247_vm0, %v4745_v9  ;;  %v822_v15 = vadd.f32 %v821_v19, %v4749_v39 }
 0x1d4   : > { %3323 = vmatmul.msk.f32.gmra.mxu3 %vm247_vm0, %v2224_v18 }
 0x1d5   : > { %3258 = vmatmul.msk.f32.gmra.mxu1 %vm247_vm0, %v4741_v26  ;;  %3357 = vmatmul.msk.f32.gmra.mxu0 %vm247_vm0, %v4747_v24  ;;  %v4750_v26 = vld [vmem:[#allocation28_spill] sm:$0xff] }
 0x1d6   : > { %v1061_v23 = vpop.f32.mrf.mxu2 }
 0x1d7   : > { %v1107_v51 = vadd.f32 %v1061_v23, %v819_v21  ;;  %v1336_v6 = vpop.f32.mrf.mxu3  ;;  %v2227_v21 = vld [vmem:[#allocation2 + $0x108] sm:$0xff] }
 0x1d9   : > { %v1382_v40 = vadd.f32 %v1336_v6, %v1107_v51  ;;  %v4754_v6 = vld [vmem:[#allocation25_spill] sm:$0xff] }
 0x1da   : > { %v824_v4 = vpop.f32.mrf.mxu1  ;;  %v1617_v7 = vpop.f32.mrf.mxu0 }
 0x1db   : > { %v4340_v56 = vadd.f32 %v1611_v5, %v1382_v40  ;;  %3291 = vmatmul.msk.f32.gmra.mxu2 %vm247_vm0, %v4748_v61  ;;  %v825_v57 = vadd.f32 %v824_v4, %v4752_v3  ;;  %v4755_v40 = vld [vmem:[#allocation19_spill] sm:$0xff]  ;;  %v2229_v3 = vld [vmem:[#allocation2 + $0x128] sm:$0xff] }
 0x1dc   : > { %3324 = vmatmul.msk.f32.gmra.mxu3 %vm247_vm0, %v2225_v25 }
 0x1dd   : > { %3259 = vmatmul.msk.f32.gmra.mxu1 %vm247_vm0, %v4744_v30  ;;  %3358 = vmatmul.msk.f32.gmra.mxu0 %vm247_vm0, %v4750_v26  ;;  %v4753_v30 = vld [vmem:[#allocation31_spill] sm:$0xff] }
 0x1de   : > { %v1064_v36 = vpop.f32.mrf.mxu2 }
 0x1df   : > { %v1108_v48 = vadd.f32 %v1064_v36, %v822_v15  ;;  %v1339_v32 = vpop.f32.mrf.mxu3  ;;  %v2228_v15 = vld [vmem:[#allocation2 + $0x110] sm:$0xff] }
 0x1e1   : > { %v1383_v16 = vadd.f32 %v1339_v32, %v1108_v48  ;;  %v4756_v32 = vld [vmem:[#allocation23_spill] sm:$0xff] }
 0x1e2   : > { %v827_v5 = vpop.f32.mrf.mxu1  ;;  %v1620_v33 = vpop.f32.mrf.mxu0 }
 0x1e3   : > { %v4350_v55 = vadd.f32 %v1614_v62, %v1383_v16  ;;  %3292 = vmatmul.msk.f32.gmra.mxu2 %vm247_vm0, %v4751_v41  ;;  %v828_v25 = vadd.f32 %v827_v5, %v4755_v40 }
 0x1e4   : > { %3325 = vmatmul.msk.f32.gmra.mxu3 %vm247_vm0, %v2226_v17 }
 0x1e5   : > { %3260 = vmatmul.msk.f32.gmra.mxu1 %vm247_vm0, %v4747_v24  ;;  %3359 = vmatmul.msk.f32.gmra.mxu0 %vm247_vm0, %v4753_v30 }
 0x1e6   : > { %v1067_v18 = vpop.f32.mrf.mxu2 }
 0x1e7   : > { %v1109_v19 = vadd.f32 %v1067_v18, %v825_v57  ;;  %v1342_v9 = vpop.f32.mrf.mxu3 }
 0x1e9   : > { %v1384_v0 = vadd.f32 %v1342_v9, %v1109_v19 }
 0x1ea   : > { %v830_v62 = vpop.f32.mrf.mxu1  ;;  %v1623_v23 = vpop.f32.mrf.mxu0 }
 0x1eb   : > { %v4360_v51 = vadd.f32 %v1617_v7, %v1384_v0  ;;  %3293 = vmatmul.msk.f32.gmra.mxu2 %vm247_vm0, %v4754_v6  ;;  %v831_v16 = vadd.f32 %v830_v62, %v4756_v32  ;;  %v2230_v62 = vld [vmem:[#allocation2 + $0x130] sm:$0xff] }
 0x1ec   : > { %3326 = vmatmul.msk.f32.gmra.mxu3 %vm247_vm0, %v2227_v21 }
 0x1ed   : > { %3261 = vmatmul.msk.f32.gmra.mxu1 %vm247_vm0, %v4750_v26  ;;  %3360 = vmatmul.msk.f32.gmra.mxu0 %vm247_vm0, %v4057_v29 }
 0x1ee   : > { %v1070_v24 = vpop.f32.mrf.mxu2 }
 0x1ef   : > { %v1110_v4 = vadd.f32 %v1070_v24, %v828_v25  ;;  %v1345_v61 = vpop.f32.mrf.mxu3 }
 0x1f1   : > { %v1385_v39 = vadd.f32 %v1345_v61, %v1110_v4 }
 0x1f2   : > { %v833_v7 = vpop.f32.mrf.mxu1  ;;  %v1626_v36 = vpop.f32.mrf.mxu0 }
 0x1f3   : > { %v4370_v48 = vadd.f32 %v1620_v33, %v1385_v39  ;;  %3294 = vmatmul.msk.f32.gmra.mxu2 %vm247_vm0, %v4030_v59  ;;  %v4757_v59 = vld [vmem:[#allocation27_spill] sm:$0xff]  ;;  %v2231_v39 = vld [vmem:[#allocation2 + $0x148] sm:$0xff] }
 0x1f4   : > { %3327 = vmatmul.msk.f32.gmra.mxu3 %vm247_vm0, %v2228_v15  ;;  %v834_v19 = vadd.f32 %v833_v7, %v4757_v59 }
 0x1f5   : > { %3262 = vmatmul.msk.f32.gmra.mxu1 %vm247_vm0, %v4753_v30  ;;  %3361 = vmatmul.msk.f32.gmra.mxu0 %vm247_vm0, %v4072_v11 }
 0x1f6   : > { %v1073_v26 = vpop.f32.mrf.mxu2 }
 0x1f7   : > { %v1111_v17 = vadd.f32 %v1073_v26, %v831_v16  ;;  %v1348_v5 = vpop.f32.mrf.mxu3 }
 0x1f9   : > { %v1386_v41 = vadd.f32 %v1348_v5, %v1111_v17  ;;  %v2232_v5 = vld [vmem:[#allocation2 + $0x150] sm:$0xff] }
 0x1fa   : > { %v836_v33 = vpop.f32.mrf.mxu1  ;;  %v1629_v57 = vpop.f32.mrf.mxu0 }
 0x1fb   : > { %v4380_v18 = vadd.f32 %v1623_v23, %v1386_v41  ;;  %3295 = vmatmul.msk.f32.gmra.mxu2 %vm247_vm0, %v4046_v60  ;;  %v4758_v60 = vld [vmem:[#allocation30_spill] sm:$0xff] }
 0x1fc   : > { %3328 = vmatmul.msk.f32.gmra.mxu3 %vm247_vm0, %v2229_v3  ;;  %v837_v25 = vadd.f32 %v836_v33, %v4758_v60 }
 0x1fd   : > { %3263 = vmatmul.msk.f32.gmra.mxu1 %vm247_vm0, %v4057_v29  ;;  %3362 = vmatmul.msk.f32.gmra.mxu0 %vm247_vm0, %v4087_v28 }
 0x1fe   : > { %v1076_v30 = vpop.f32.mrf.mxu2 }
 0x1ff   : > { %v1112_v9 = vadd.f32 %v1076_v30, %v834_v19  ;;  %v1351_v0 = vpop.f32.mrf.mxu3 }
 0x201   : > { %v1387_v21 = vadd.f32 %v1351_v0, %v1112_v9  ;;  %v2233_v9 = vld [vmem:[#allocation2 + $0x168] sm:$0xff] }
 0x202   : > { %v1811_v23 = vpop.f32.mrf.mxu1  ;;  %v2637_v6 = vpop.f32.mrf.mxu0 }
 0x203   : > { %v4390_v40 = vadd.f32 %v1626_v36, %v1387_v21  ;;  %3296 = vmatmul.msk.f32.gmra.mxu2 %vm247_vm0, %v4059_v38  ;;  %v4759_v38 = vld [vmem:[#allocation32_spill] sm:$0xff] }
 0x204   : > { %3329 = vmatmul.msk.f32.gmra.mxu3 %vm247_vm0, %v2230_v62 }
 0x205   : > { %3264 = vmatmul.msk.f32.gmra.mxu1 %vm247_vm0, %v4072_v11  ;;  %3363 = vmatmul.msk.f32.gmra.mxu0 %vm247_vm0, %v4102_v34  ;;  %v1907_v11 = vadd.f32 %v1811_v23, %v4759_v38  ;;  %v2234_v38 = vld [vmem:[#allocation2 + $0x170] sm:$0xff] }
 0x206   : > { %v1079_v29 = vpop.f32.mrf.mxu2 }
 0x207   : > { %v1113_v24 = vadd.f32 %v1079_v29, %v837_v25  ;;  %v1354_v4 = vpop.f32.mrf.mxu3 }
 0x209   : > { %v1388_v61 = vadd.f32 %v1354_v4, %v1113_v24 }
 0x20a   : > { %v1814_v15 = vpop.f32.mrf.mxu1  ;;  %v2640_v7 = vpop.f32.mrf.mxu0 }
 0x20b   : > { %v4400_v36 = vadd.f32 %v1629_v57, %v1388_v61  ;;  %3297 = vmatmul.msk.f32.gmra.mxu2 %vm247_vm0, %v4074_v46 }
 0x20c   : > { %3330 = vmatmul.msk.f32.gmra.mxu3 %vm247_vm0, %v2231_v39 }
 0x20d   : > { %3265 = vmatmul.msk.f32.gmra.mxu1 %vm247_vm0, %v4087_v28  ;;  %3364 = vmatmul.msk.f32.gmra.mxu0 %vm247_vm0, %v4117_v44  ;;  %v4760_v28 = vld [vmem:[#allocation33_spill] sm:$0xff] }
 0x20e   : > { %v2087_v32 = vpop.f32.mrf.mxu2  ;;  %v1908_v33 = vadd.f32 %v1814_v15, %v4760_v28 }
 0x20f   : > { %v2183_v16 = vadd.f32 %v2087_v32, %v1907_v11  ;;  %v2362_v26 = vpop.f32.mrf.mxu3 }
 0x211   : > { %v2458_v17 = vadd.f32 %v2362_v26, %v2183_v16 }
 0x212   : > { %v1817_v46 = vpop.f32.mrf.mxu1  ;;  %v2643_v41 = vpop.f32.mrf.mxu0 }
 0x213   : > { %v2733_v3 = vadd.f32 %v2637_v6, %v2458_v17  ;;  %3298 = vmatmul.msk.f32.gmra.mxu2 %vm247_vm0, %v4089_v35 }
 0x214   : > { %3331 = vmatmul.msk.f32.gmra.mxu3 %vm247_vm0, %v2232_v5 }
 0x215   : > { %2765 = vst.msk [vmem:[%s4415_s17] sm:$0xff] %vm247_vm0, %v2733_v3  ;;  %3266 = vmatmul.msk.f32.gmra.mxu1 %vm247_vm0, %v4102_v34  ;;  %3365 = vmatmul.msk.f32.gmra.mxu0 %vm247_vm0, %v4132_v53  ;;  %v2867_v21 = vmul.f32 %v2733_v3, %v2733_v3  ;;  %v2797_v23 = vsel %vm247_vm0, %v2733_v3, 0.0  ;;  %v4761_v34 = vld [vmem:[#allocation34_spill] sm:$0xff] }
 0x216   : > { %v2090_v57 = vpop.f32.mrf.mxu2  ;;  %v1909_v6 = vadd.f32 %v1817_v46, %v4761_v34 }
 0x217   : > { %v2184_v59 = vadd.f32 %v2090_v57, %v1908_v33  ;;  %v2365_v19 = vpop.f32.mrf.mxu3  ;;  %v2899_v24 = vsel %vm247_vm0, %v2867_v21, 0.0 }
 0x219   : > { %v2459_v30 = vadd.f32 %v2365_v19, %v2184_v59  ;;  %v2235_v59 = vld [vmem:[#allocation2 + $0x188] sm:$0xff] }
 0x21a   : > { %v1820_v0 = vpop.f32.mrf.mxu1  ;;  %v2646_v35 = vpop.f32.mrf.mxu0 }
 0x21b   : > { %v2734_v62 = vadd.f32 %v2640_v7, %v2459_v30  ;;  %3299 = vmatmul.msk.f32.gmra.mxu2 %vm247_vm0, %v4104_v20 }
 0x21c   : > { %3332 = vmatmul.msk.f32.gmra.mxu3 %vm247_vm0, %v2233_v9 }
 0x21d   : > { %2766 = vst.msk [vmem:[%s4415_s17 + $0x8] sm:$0xff] %vm247_vm0, %v2734_v62  ;;  %v2798_v60 = vsel %vm247_vm0, %v2734_v62, 0.0  ;;  %v2868_v25 = vmul.f32 %v2734_v62, %v2734_v62  ;;  %3267 = vmatmul.msk.f32.gmra.mxu1 %vm247_vm0, %v4117_v44  ;;  %3366 = vmatmul.msk.f32.gmra.mxu0 %vm247_vm0, %v4147_v10  ;;  %v4762_v44 = vld [vmem:[#allocation35_spill] sm:$0xff] }
 0x21e   : > { %v2799_v29 = vadd.f32 %v2798_v60, %v2797_v23  ;;  %v2093_v20 = vpop.f32.mrf.mxu2  ;;  %v1910_v26 = vadd.f32 %v1820_v0, %v4762_v44 }
 0x21f   : > { %v2900_v4 = vsel %vm247_vm0, %v2868_v25, 0.0  ;;  %v2185_v61 = vadd.f32 %v2093_v20, %v1909_v6  ;;  %v2368_v39 = vpop.f32.mrf.mxu3  ;;  %v2236_v25 = vld [vmem:[#allocation2 + $0x190] sm:$0xff] }
 0x220   : > { %v2901_v15 = vadd.f32 %v2900_v4, %v2899_v24  ;;  %v1686_v20 = vld [vmem:[#allocation2 + $0x189] sm:$0xff] }
 0x221   : > { %v2460_v7 = vadd.f32 %v2368_v39, %v2185_v61  ;;  %v2512_v4 = vld [vmem:[#allocation2 + $0x1a9] sm:$0xff]  ;;  %v4764_v39 = vld [vmem:[#allocation38_spill] sm:$0xff] }
 0x222   : > { %v1823_v11 = vpop.f32.mrf.mxu1  ;;  %v2649_v32 = vpop.f32.mrf.mxu0 }
 0x223   : > { %v2735_v16 = vadd.f32 %v2643_v41, %v2460_v7  ;;  %3300 = vmatmul.msk.f32.gmra.mxu2 %vm247_vm0, %v4119_v45 }
 0x224   : > { %3333 = vmatmul.msk.f32.gmra.mxu3 %vm247_vm0, %v2234_v38 }
 0x225   : > { %2767 = vst.msk [vmem:[%s4415_s17 + $0x10] sm:$0xff] %vm247_vm0, %v2735_v16  ;;  %v2800_v17 = vsel %vm247_vm0, %v2735_v16, 0.0  ;;  %v2869_v5 = vmul.f32 %v2735_v16, %v2735_v16  ;;  %3268 = vmatmul.msk.f32.gmra.mxu1 %vm247_vm0, %v4132_v53  ;;  %3367 = vmatmul.msk.f32.gmra.mxu0 %vm247_vm0, %v4162_v14  ;;  %v4763_v53 = vld [vmem:[#allocation36_spill] sm:$0xff] }
 0x226   : > { %v2801_v46 = vadd.f32 %v2800_v17, %v2799_v29  ;;  %v2096_v41 = vpop.f32.mrf.mxu2  ;;  %v1911_v0 = vadd.f32 %v1823_v11, %v4763_v53  ;;  %v1962_v17 = vld [vmem:[#allocation2 + $0x1a7] sm:$0xff] }
 0x227   : > { %v2902_v45 = vsel %vm247_vm0, %v2869_v5, 0.0  ;;  %v2186_v3 = vadd.f32 %v2096_v41, %v1910_v26  ;;  %v2371_v28 = vpop.f32.mrf.mxu3 }
 0x228   : > { %v2903_v33 = vadd.f32 %v2902_v45, %v2901_v15  ;;  %v1687_v45 = vld [vmem:[#allocation2 + $0x191] sm:$0xff] }
 0x229   : > { %v2461_v57 = vadd.f32 %v2371_v28, %v2186_v3  ;;  %v2513_v28 = vld [vmem:[#allocation2 + $0x1b1] sm:$0xff] }
 0x22a   : > { %v1826_v19 = vpop.f32.mrf.mxu1  ;;  %v2652_v30 = vpop.f32.mrf.mxu0 }
 0x22b   : > { %v2736_v9 = vadd.f32 %v2646_v35, %v2461_v57  ;;  %3301 = vmatmul.msk.f32.gmra.mxu2 %vm247_vm0, %v4134_v12  ;;  %v4766_v57 = vld [vmem:[#allocation39_spill] sm:$0xff] }
 0x22c   : > { %3334 = vmatmul.msk.f32.gmra.mxu3 %vm247_vm0, %v2235_v59 }
 0x22d   : > { %2768 = vst.msk [vmem:[%s4415_s17 + $0x18] sm:$0xff] %vm247_vm0, %v2736_v9  ;;  %v2802_v14 = vsel %vm247_vm0, %v2736_v9, 0.0  ;;  %v2870_v21 = vmul.f32 %v2736_v9, %v2736_v9  ;;  %3269 = vmatmul.msk.f32.gmra.mxu1 %vm247_vm0, %v4147_v10  ;;  %3368 = vmatmul.msk.f32.gmra.mxu0 %vm247_vm0, %v4174_v47  ;;  %v4765_v10 = vld [vmem:[#allocation37_spill] sm:$0xff] }
 0x22e   : > { %v2803_v62 = vadd.f32 %v2802_v14, %v2801_v46  ;;  %v2099_v35 = vpop.f32.mrf.mxu2  ;;  %v1912_v47 = vadd.f32 %v1826_v19, %v4765_v10  ;;  %v2237_v46 = vld [vmem:[#allocation2 + $0x1a8] sm:$0xff] }
 0x22f   : > { %v2904_v12 = vsel %vm247_vm0, %v2870_v21, 0.0  ;;  %v2187_v23 = vadd.f32 %v2099_v35, %v1911_v0  ;;  %v2374_v34 = vpop.f32.mrf.mxu3  ;;  %v1963_v35 = vld [vmem:[#allocation2 + $0x1af] sm:$0xff] }
 0x230   : > { %v2905_v6 = vadd.f32 %v2904_v12, %v2903_v33 }
 0x231   : > { %v2462_v60 = vadd.f32 %v2374_v34, %v2187_v23  ;;  %v2238_v23 = vld [vmem:[#allocation2 + $0x1b0] sm:$0xff] }
 0x232   : > { %v1829_v29 = vpop.f32.mrf.mxu1  ;;  %v2655_v24 = vpop.f32.mrf.mxu0 }
 0x233   : > { %v2737_v61 = vadd.f32 %v2649_v32, %v2462_v60  ;;  %3302 = vmatmul.msk.f32.gmra.mxu2 %vm247_vm0, %v4764_v39  ;;  %v1913_v59 = vadd.f32 %v1829_v29, %v4766_v57  ;;  %v2514_v60 = vld [vmem:[#allocation2 + $0x1c9] sm:$0xff] }
 0x234   : > { %3335 = vmatmul.msk.f32.gmra.mxu3 %vm247_vm0, %v2236_v25  ;;  %v4767_v29 = vld [vmem:[#allocation40_spill] sm:$0xff] }
 0x235   : > { %2769 = vst.msk [vmem:[%s4415_s17 + $0x20] sm:$0xff] %vm247_vm0, %v2737_v61  ;;  %v2804_v15 = vsel %vm247_vm0, %v2737_v61, 0.0  ;;  %v2871_v7 = vmul.f32 %v2737_v61, %v2737_v61  ;;  %3270 = vmatmul.msk.f32.gmra.mxu1 %vm247_vm0, %v1686_v20  ;;  %3369 = vmatmul.msk.f32.gmra.mxu0 %vm247_vm0, %v2512_v4 }
 0x236   : > { %v2805_v38 = vadd.f32 %v2804_v15, %v2803_v62  ;;  %v2102_v11 = vpop.f32.mrf.mxu2 }
 0x237   : > { %v2906_v32 = vsel %vm247_vm0, %v2871_v7, 0.0  ;;  %v2188_v16 = vadd.f32 %v2102_v11, %v1912_v47  ;;  %v2377_v44 = vpop.f32.mrf.mxu3  ;;  %v1964_v11 = vld [vmem:[#allocation2 + $0x1c7] sm:$0xff] }
 0x238   : > { %v2907_v26 = vadd.f32 %v2906_v32, %v2905_v6 }
 0x239   : > { %v2463_v5 = vadd.f32 %v2377_v44, %v2188_v16  ;;  %v2239_v16 = vld [vmem:[#allocation2 + $0x1c8] sm:$0xff] }
 0x23a   : > { %v1832_v41 = vpop.f32.mrf.mxu1  ;;  %v2658_v3 = vpop.f32.mrf.mxu0 }
 0x23b   : > { %v2738_v33 = vadd.f32 %v2652_v30, %v2463_v5  ;;  %3303 = vmatmul.msk.f32.gmra.mxu2 %vm247_vm0, %v1962_v17  ;;  %v1914_v20 = vadd.f32 %v1832_v41, %v4767_v29  ;;  %v2515_v17 = vld [vmem:[#allocation2 + $0x1d1] sm:$0xff] }
 0x23c   : > { %3336 = vmatmul.msk.f32.gmra.mxu3 %vm247_vm0, %v2237_v46 }
 0x23d   : > { %2770 = vst.msk [vmem:[%s4415_s17 + $0x28] sm:$0xff] %vm247_vm0, %v2738_v33  ;;  %v2806_v19 = vsel %vm247_vm0, %v2738_v33, 0.0  ;;  %v2872_v9 = vmul.f32 %v2738_v33, %v2738_v33  ;;  %3271 = vmatmul.msk.f32.gmra.mxu1 %vm247_vm0, %v1687_v45  ;;  %3370 = vmatmul.msk.f32.gmra.mxu0 %vm247_vm0, %v2513_v28 }
 0x23e   : > { %v2807_v53 = vadd.f32 %v2806_v19, %v2805_v38  ;;  %v2105_v0 = vpop.f32.mrf.mxu2 }
 0x23f   : > { %v2908_v30 = vsel %vm247_vm0, %v2872_v9, 0.0  ;;  %v2189_v14 = vadd.f32 %v2105_v0, %v1913_v59  ;;  %v2380_v21 = vpop.f32.mrf.mxu3 }
 0x240   : > { %v2909_v62 = vadd.f32 %v2908_v30, %v2907_v26  ;;  %v2240_v30 = vld [vmem:[#allocation2 + $0x1d0] sm:$0xff] }
 0x241   : > { %v2464_v12 = vadd.f32 %v2380_v21, %v2189_v14 }
 0x242   : > { %v1835_v34 = vpop.f32.mrf.mxu1  ;;  %v2661_v6 = vpop.f32.mrf.mxu0 }
 0x243   : > { %v2739_v25 = vadd.f32 %v2655_v24, %v2464_v12  ;;  %3304 = vmatmul.msk.f32.gmra.mxu2 %vm247_vm0, %v1963_v35 }
 0x244   : > { %3337 = vmatmul.msk.f32.gmra.mxu3 %vm247_vm0, %v2238_v23 }
 0x245   : > { %2771 = vst.msk [vmem:[%s4415_s17 + $0x30] sm:$0xff] %vm247_vm0, %v2739_v25  ;;  %v2808_v61 = vsel %vm247_vm0, %v2739_v25, 0.0  ;;  %v2873_v39 = vmul.f32 %v2739_v25, %v2739_v25  ;;  %3272 = vmatmul.msk.f32.gmra.mxu1 %vm247_vm0, %v2512_v4  ;;  %3371 = vmatmul.msk.f32.gmra.mxu0 %vm247_vm0, %v2514_v60  ;;  %v4768_v4 = vld [vmem:[#allocation41_spill] sm:$0xff] }
 0x246   : > { %v2809_v10 = vadd.f32 %v2808_v61, %v2807_v53  ;;  %v2108_v47 = vpop.f32.mrf.mxu2  ;;  %v1915_v46 = vadd.f32 %v1835_v34, %v4768_v4  ;;  %v1965_v53 = vld [vmem:[#allocation2 + $0x1cf] sm:$0xff] }
 0x247   : > { %v2910_v24 = vsel %vm247_vm0, %v2873_v39, 0.0  ;;  %v2190_v15 = vadd.f32 %v2108_v47, %v1914_v20  ;;  %v2383_v7 = vpop.f32.mrf.mxu3  ;;  %v1966_v39 = vld [vmem:[#allocation2 + $0x1e7] sm:$0xff] }
 0x248   : > { %v2911_v38 = vadd.f32 %v2910_v24, %v2909_v62  ;;  %v2516_v62 = vld [vmem:[#allocation2 + $0x1e9] sm:$0xff] }
 0x249   : > { %v2465_v32 = vadd.f32 %v2383_v7, %v2190_v15  ;;  %v2517_v15 = vld [vmem:[#allocation2 + $0x1f1] sm:$0xff] }
 0x24a   : > { %v1838_v44 = vpop.f32.mrf.mxu1  ;;  %v2664_v26 = vpop.f32.mrf.mxu0 }
 0x24b   : > { %v2740_v5 = vadd.f32 %v2658_v3, %v2465_v32  ;;  %3305 = vmatmul.msk.f32.gmra.mxu2 %vm247_vm0, %v1964_v11 }
 0x24c   : > { %3338 = vmatmul.msk.f32.gmra.mxu3 %vm247_vm0, %v2239_v16 }
 0x24d   : > { %2772 = vst.msk [vmem:[%s4415_s17 + $0x38] sm:$0xff] %vm247_vm0, %v2740_v5  ;;  %v2810_v41 = vsel %vm247_vm0, %v2740_v5, 0.0  ;;  %v2874_v45 = vmul.f32 %v2740_v5, %v2740_v5  ;;  %3273 = vmatmul.msk.f32.gmra.mxu1 %vm247_vm0, %v2513_v28  ;;  %3372 = vmatmul.msk.f32.gmra.mxu0 %vm247_vm0, %v2515_v17  ;;  %v1916_v28 = vadd.f32 %v1838_v44, %v4187_v1  ;;  %v2241_v1 = vld [vmem:[#allocation2 + $0x1e8] sm:$0xff] }
 0x24e   : > { %v2811_v33 = vadd.f32 %v2810_v41, %v2809_v10  ;;  %v2111_v57 = vpop.f32.mrf.mxu2 }
 0x24f   : > { %v2912_v3 = vsel %vm247_vm0, %v2874_v45, 0.0  ;;  %v2191_v59 = vadd.f32 %v2111_v57, %v1915_v46  ;;  %v2386_v19 = vpop.f32.mrf.mxu3  ;;  %v1967_v46 = vld [vmem:[#allocation2 + $0x1ef] sm:$0xff] }
 0x250   : > { %v2913_v9 = vadd.f32 %v2912_v3, %v2911_v38  ;;  %v2518_v57 = vld [vmem:[#allocation2 + $0x209] sm:$0xff] }
 0x251   : > { %v2466_v0 = vadd.f32 %v2386_v19, %v2191_v59 }
 0x252   : > { %v1841_v14 = vpop.f32.mrf.mxu1  ;;  %v2667_v21 = vpop.f32.mrf.mxu0 }
 0x253   : > { %v2741_v35 = vadd.f32 %v2661_v6, %v2466_v0  ;;  %3306 = vmatmul.msk.f32.gmra.mxu2 %vm247_vm0, %v1965_v53 }
 0x254   : > { %3339 = vmatmul.msk.f32.gmra.mxu3 %vm247_vm0, %v2240_v30 }
 0x255   : > { %2773 = vst.msk [vmem:[%s4415_s17 + $0x40] sm:$0xff] %vm247_vm0, %v2741_v35  ;;  %v2812_v12 = vsel %vm247_vm0, %v2741_v35, 0.0  ;;  %v2875_v23 = vmul.f32 %v2741_v35, %v2741_v35  ;;  %3274 = vmatmul.msk.f32.gmra.mxu1 %vm247_vm0, %v2514_v60  ;;  %3373 = vmatmul.msk.f32.gmra.mxu0 %vm247_vm0, %v2516_v62  ;;  %v1917_v60 = vadd.f32 %v1841_v14, %v4197_v42  ;;  %v2242_v42 = vld [vmem:[#allocation2 + $0x1f0] sm:$0xff]  ;;  %v1968_v35 = vld [vmem:[#allocation2 + $0x207] sm:$0xff] }
 0x256   : > { %v2813_v34 = vadd.f32 %v2812_v12, %v2811_v33  ;;  %v2114_v25 = vpop.f32.mrf.mxu2 }
 0x257   : > { %v2914_v6 = vsel %vm247_vm0, %v2875_v23, 0.0  ;;  %v2192_v29 = vadd.f32 %v2114_v25, %v1916_v28  ;;  %v2389_v20 = vpop.f32.mrf.mxu3 }
 0x258   : > { %v2915_v61 = vadd.f32 %v2914_v6, %v2913_v9 }
 0x259   : > { %v2467_v10 = vadd.f32 %v2389_v20, %v2192_v29 }
 0x25a   : > { %v1844_v47 = vpop.f32.mrf.mxu1  ;;  %v2670_v24 = vpop.f32.mrf.mxu0 }
 0x25b   : > { %v2742_v7 = vadd.f32 %v2664_v26, %v2467_v10  ;;  %3307 = vmatmul.msk.f32.gmra.mxu2 %vm247_vm0, %v1966_v39 }
 0x25c   : > { %3340 = vmatmul.msk.f32.gmra.mxu3 %vm247_vm0, %v2241_v1 }
 0x25d   : > { %2774 = vst.msk [vmem:[%s4415_s17 + $0x48] sm:$0xff] %vm247_vm0, %v2742_v7  ;;  %v2814_v38 = vsel %vm247_vm0, %v2742_v7, 0.0  ;;  %v2876_v11 = vmul.f32 %v2742_v7, %v2742_v7  ;;  %3275 = vmatmul.msk.f32.gmra.mxu1 %vm247_vm0, %v2515_v17  ;;  %3374 = vmatmul.msk.f32.gmra.mxu0 %vm247_vm0, %v2517_v15  ;;  %v1918_v17 = vadd.f32 %v1844_v47, %v4205_v8  ;;  %v2243_v8 = vld [vmem:[#allocation2 + $0x208] sm:$0xff] }
 0x25e   : > { %v2815_v32 = vadd.f32 %v2814_v38, %v2813_v34  ;;  %v2117_v16 = vpop.f32.mrf.mxu2  ;;  %v2519_v34 = vld [vmem:[#allocation2 + $0x211] sm:$0xff] }
 0x25f   : > { %v2916_v44 = vsel %vm247_vm0, %v2876_v11, 0.0  ;;  %v2193_v26 = vadd.f32 %v2117_v16, %v1917_v60  ;;  %v2392_v5 = vpop.f32.mrf.mxu3  ;;  %v2520_v11 = vld [vmem:[#allocation2 + $0x229] sm:$0xff] }
 0x260   : > { %v2917_v4 = vadd.f32 %v2916_v44, %v2915_v61 }
 0x261   : > { %v2468_v41 = vadd.f32 %v2392_v5, %v2193_v26 }
 0x262   : > { %v1847_v45 = vpop.f32.mrf.mxu1  ;;  %v2673_v33 = vpop.f32.mrf.mxu0 }
 0x263   : > { %v2743_v3 = vadd.f32 %v2667_v21, %v2468_v41  ;;  %3308 = vmatmul.msk.f32.gmra.mxu2 %vm247_vm0, %v1967_v46 }
 0x264   : > { %3341 = vmatmul.msk.f32.gmra.mxu3 %vm247_vm0, %v2242_v42 }
 0x265   : > { %2775 = vst.msk [vmem:[%s4415_s17 + $0x50] sm:$0xff] %vm247_vm0, %v2743_v3  ;;  %v2816_v59 = vsel %vm247_vm0, %v2743_v3, 0.0  ;;  %v2877_v19 = vmul.f32 %v2743_v3, %v2743_v3  ;;  %3276 = vmatmul.msk.f32.gmra.mxu1 %vm247_vm0, %v2516_v62  ;;  %3375 = vmatmul.msk.f32.gmra.mxu0 %vm247_vm0, %v2518_v57  ;;  %v1919_v62 = vadd.f32 %v1847_v45, %v4213_v54  ;;  %v2244_v54 = vld [vmem:[#allocation2 + $0x210] sm:$0xff]  ;;  %v1970_v45 = vld [vmem:[#allocation2 + $0x227] sm:$0xff] }
 0x266   : > { %v2817_v9 = vadd.f32 %v2816_v59, %v2815_v32  ;;  %v2120_v53 = vpop.f32.mrf.mxu2  ;;  %v2521_v59 = vld [vmem:[#allocation2 + $0x231] sm:$0xff] }
 0x267   : > { %v2918_v0 = vsel %vm247_vm0, %v2877_v19, 0.0  ;;  %v2194_v30 = vadd.f32 %v2120_v53, %v1918_v17  ;;  %v2395_v14 = vpop.f32.mrf.mxu3 }
 0x268   : > { %v2919_v21 = vadd.f32 %v2918_v0, %v2917_v4 }
 0x269   : > { %v2469_v28 = vadd.f32 %v2395_v14, %v2194_v30 }
 0x26a   : > { %v1850_v12 = vpop.f32.mrf.mxu1  ;;  %v2676_v23 = vpop.f32.mrf.mxu0 }
 0x26b   : > { %v2744_v25 = vadd.f32 %v2670_v24, %v2469_v28  ;;  %3309 = vmatmul.msk.f32.gmra.mxu2 %vm247_vm0, %v1968_v35  ;;  %v1969_v24 = vld [vmem:[#allocation2 + $0x20f] sm:$0xff] }
 0x26c   : > { %3342 = vmatmul.msk.f32.gmra.mxu3 %vm247_vm0, %v2243_v8  ;;  %v1971_v8 = vld [vmem:[#allocation2 + $0x22f] sm:$0xff] }
 0x26d   : > { %2776 = vst.msk [vmem:[%s4415_s17 + $0x58] sm:$0xff] %vm247_vm0, %v2744_v25  ;;  %v2818_v6 = vsel %vm247_vm0, %v2744_v25, 0.0  ;;  %v2878_v29 = vmul.f32 %v2744_v25, %v2744_v25  ;;  %3277 = vmatmul.msk.f32.gmra.mxu1 %vm247_vm0, %v2517_v15  ;;  %3376 = vmatmul.msk.f32.gmra.mxu0 %vm247_vm0, %v2519_v34  ;;  %v1920_v15 = vadd.f32 %v1850_v12, %v4220_v31  ;;  %v2245_v31 = vld [vmem:[#allocation2 + $0x228] sm:$0xff] }
 0x26e   : > { %v2819_v20 = vadd.f32 %v2818_v6, %v2817_v9  ;;  %v2123_v61 = vpop.f32.mrf.mxu2 }
 0x26f   : > { %v2920_v39 = vsel %vm247_vm0, %v2878_v29, 0.0  ;;  %v2195_v10 = vadd.f32 %v2123_v61, %v1919_v62  ;;  %v2398_v1 = vpop.f32.mrf.mxu3 }
 0x270   : > { %v2921_v47 = vadd.f32 %v2920_v39, %v2919_v21 }
 0x271   : > { %v2470_v7 = vadd.f32 %v2398_v1, %v2195_v10 }
 0x272   : > { %v1853_v60 = vpop.f32.mrf.mxu1  ;;  %v2679_v38 = vpop.f32.mrf.mxu0 }
 0x273   : > { %v2745_v32 = vadd.f32 %v2673_v33, %v2470_v7  ;;  %3310 = vmatmul.msk.f32.gmra.mxu2 %vm247_vm0, %v1969_v24 }
 0x274   : > { %3343 = vmatmul.msk.f32.gmra.mxu3 %vm247_vm0, %v2244_v54 }
 0x275   : > { %2777 = vst.msk [vmem:[%s4415_s17 + $0x60] sm:$0xff] %vm247_vm0, %v2745_v32  ;;  %v2820_v16 = vsel %vm247_vm0, %v2745_v32, 0.0  ;;  %v2879_v44 = vmul.f32 %v2745_v32, %v2745_v32  ;;  %3278 = vmatmul.msk.f32.gmra.mxu1 %vm247_vm0, %v2518_v57  ;;  %3377 = vmatmul.msk.f32.gmra.mxu0 %vm247_vm0, %v2520_v11  ;;  %v1921_v57 = vadd.f32 %v1853_v60, %v4227_v63  ;;  %v2246_v63 = vld [vmem:[#allocation2 + $0x230] sm:$0xff] }
 0x276   : > { %v2821_v26 = vadd.f32 %v2820_v16, %v2819_v20  ;;  %v2126_v5 = vpop.f32.mrf.mxu2 }
 0x277   : > { %v2922_v4 = vsel %vm247_vm0, %v2879_v44, 0.0  ;;  %v2196_v46 = vadd.f32 %v2126_v5, %v1920_v15  ;;  %v2401_v41 = vpop.f32.mrf.mxu3 }
 0x278   : > { %v2923_v42 = vadd.f32 %v2922_v4, %v2921_v47 }
 0x279   : > { %v2471_v33 = vadd.f32 %v2401_v41, %v2196_v46 }
 0x27a   : > { %v1856_v3 = vpop.f32.mrf.mxu1  ;;  %v2682_v17 = vpop.f32.mrf.mxu0 }
 0x27b   : > { %v2746_v19 = vadd.f32 %v2676_v23, %v2471_v33  ;;  %3311 = vmatmul.msk.f32.gmra.mxu2 %vm247_vm0, %v1970_v45 }
 0x27c   : > { %3344 = vmatmul.msk.f32.gmra.mxu3 %vm247_vm0, %v2245_v31 }
 0x27d   : > { %2778 = vst.msk [vmem:[%s4415_s17 + $0x68] sm:$0xff] %vm247_vm0, %v2746_v19  ;;  %v2822_v9 = vsel %vm247_vm0, %v2746_v19, 0.0  ;;  %v2880_v53 = vmul.f32 %v2746_v19, %v2746_v19  ;;  %3279 = vmatmul.msk.f32.gmra.mxu1 %vm247_vm0, %v2519_v34  ;;  %3378 = vmatmul.msk.f32.gmra.mxu0 %vm247_vm0, %v2521_v59  ;;  %v1922_v34 = vadd.f32 %v1856_v3, %v4236_v27 }
 0x27e   : > { %v2823_v0 = vadd.f32 %v2822_v9, %v2821_v26  ;;  %v2129_v30 = vpop.f32.mrf.mxu2 }
 0x27f   : > { %v2924_v14 = vsel %vm247_vm0, %v2880_v53, 0.0  ;;  %v2197_v21 = vadd.f32 %v2129_v30, %v1921_v57  ;;  %v2404_v35 = vpop.f32.mrf.mxu3 }
 0x280   : > { %v2925_v28 = vadd.f32 %v2924_v14, %v2923_v42 }
 0x281   : > { %v2472_v12 = vadd.f32 %v2404_v35, %v2197_v21 }
 0x282   : > { %v1859_v23 = vpop.f32.mrf.mxu1  ;;  %v2685_v25 = vpop.f32.mrf.mxu0 }
 0x283   : > { %v2747_v62 = vadd.f32 %v2679_v38, %v2472_v12  ;;  %3312 = vmatmul.msk.f32.gmra.mxu2 %vm247_vm0, %v1971_v8  ;;  %v1923_v38 = vadd.f32 %v1859_v23, %v4247_v49 }
 0x284   : > { %3345 = vmatmul.msk.f32.gmra.mxu3 %vm247_vm0, %v2246_v63 }
 0x285   : > { %2779 = vst.msk [vmem:[%s4415_s17 + $0x70] sm:$0xff] %vm247_vm0, %v2747_v62  ;;  %v2824_v6 = vsel %vm247_vm0, %v2747_v62, 0.0  ;;  %v2881_v29 = vmul.f32 %v2747_v62, %v2747_v62 }
 0x286   : > { %v2825_v20 = vadd.f32 %v2824_v6, %v2823_v0  ;;  %v2132_v61 = vpop.f32.mrf.mxu2 }
 0x287   : > { %v2926_v39 = vsel %vm247_vm0, %v2881_v29, 0.0  ;;  %v2198_v10 = vadd.f32 %v2132_v61, %v1922_v34  ;;  %v2407_v1 = vpop.f32.mrf.mxu3 }
 0x288   : > { %v2927_v47 = vadd.f32 %v2926_v39, %v2925_v28 }
 0x289   : > { %v2473_v24 = vadd.f32 %v2407_v1, %v2198_v10 }
 0x28a   : > { %v1862_v7 = vpop.f32.mrf.mxu1  ;;  %v2688_v54 = vpop.f32.mrf.mxu0 }
 0x28b   : > { %v2748_v60 = vadd.f32 %v2682_v17, %v2473_v24  ;;  %v1924_v45 = vadd.f32 %v1862_v7, %v4258_v50 }
 0x28d   : > { %2780 = vst.msk [vmem:[%s4415_s17 + $0x78] sm:$0xff] %vm247_vm0, %v2748_v60  ;;  %v2826_v27 = vsel %vm247_vm0, %v2748_v60, 0.0  ;;  %v2882_v11 = vmul.f32 %v2748_v60, %v2748_v60 }
 0x28e   : > { %v2827_v32 = vadd.f32 %v2826_v27, %v2825_v20  ;;  %v2135_v15 = vpop.f32.mrf.mxu2 }
 0x28f   : > { %v2928_v16 = vsel %vm247_vm0, %v2882_v11, 0.0  ;;  %v2199_v44 = vadd.f32 %v2135_v15, %v1923_v38  ;;  %v2410_v26 = vpop.f32.mrf.mxu3 }
 0x290   : > { %v2929_v5 = vadd.f32 %v2928_v16, %v2927_v47 }
 0x291   : > { %v2474_v4 = vadd.f32 %v2410_v26, %v2199_v44 }
 0x292   : > { %v1865_v46 = vpop.f32.mrf.mxu1  ;;  %v2691_v41 = vpop.f32.mrf.mxu0 }
 0x293   : > { %v2749_v42 = vadd.f32 %v2685_v25, %v2474_v4  ;;  %v1925_v14 = vadd.f32 %v1865_v46, %v4269_v37 }
 0x295   : > { %2781 = vst.msk [vmem:[%s4415_s17 + $0x80] sm:$0xff] %vm247_vm0, %v2749_v42  ;;  %v2828_v49 = vsel %vm247_vm0, %v2749_v42, 0.0  ;;  %v2883_v33 = vmul.f32 %v2749_v42, %v2749_v42 }
 0x296   : > { %v2829_v31 = vadd.f32 %v2828_v49, %v2827_v32  ;;  %v2138_v3 = vpop.f32.mrf.mxu2 }
 0x297   : > { %v2930_v17 = vsel %vm247_vm0, %v2883_v33, 0.0  ;;  %v2200_v59 = vadd.f32 %v2138_v3, %v1924_v45  ;;  %v2413_v19 = vpop.f32.mrf.mxu3 }
 0x298   : > { %v2931_v57 = vadd.f32 %v2930_v17, %v2929_v5 }
 0x299   : > { %v2475_v9 = vadd.f32 %v2413_v19, %v2200_v59 }
 0x29a   : > { %v1868_v53 = vpop.f32.mrf.mxu1  ;;  %v2694_v0 = vpop.f32.mrf.mxu0 }
 0x29b   : > { %v2750_v30 = vadd.f32 %v2688_v54, %v2475_v9  ;;  %v1926_v29 = vadd.f32 %v1868_v53, %v4280_v22 }
 0x29d   : > { %2782 = vst.msk [vmem:[%s4415_s17 + $0x88] sm:$0xff] %vm247_vm0, %v2750_v30  ;;  %v2830_v50 = vsel %vm247_vm0, %v2750_v30, 0.0  ;;  %v2884_v21 = vmul.f32 %v2750_v30, %v2750_v30 }
 0x29e   : > { %v2831_v35 = vadd.f32 %v2830_v50, %v2829_v31  ;;  %v2141_v28 = vpop.f32.mrf.mxu2 }
 0x29f   : > { %v2932_v8 = vsel %vm247_vm0, %v2884_v21, 0.0  ;;  %v2201_v12 = vadd.f32 %v2141_v28, %v1925_v14  ;;  %v2416_v63 = vpop.f32.mrf.mxu3 }
 0x2a0   : > { %v2933_v23 = vadd.f32 %v2932_v8, %v2931_v57 }
 0x2a1   : > { %v2476_v25 = vadd.f32 %v2416_v63, %v2201_v12 }
 0x2a2   : > { %v1871_v62 = vpop.f32.mrf.mxu1  ;;  %v2697_v34 = vpop.f32.mrf.mxu0 }
 0x2a3   : > { %v2751_v6 = vadd.f32 %v2691_v41, %v2476_v25  ;;  %v1927_v27 = vadd.f32 %v1871_v62, %v4290_v13 }
 0x2a5   : > { %2783 = vst.msk [vmem:[%s4415_s17 + $0x90] sm:$0xff] %vm247_vm0, %v2751_v6  ;;  %v2832_v37 = vsel %vm247_vm0, %v2751_v6, 0.0  ;;  %v2885_v20 = vmul.f32 %v2751_v6, %v2751_v6 }
 0x2a6   : > { %v2833_v61 = vadd.f32 %v2832_v37, %v2831_v35  ;;  %v2144_v39 = vpop.f32.mrf.mxu2 }
 0x2a7   : > { %v2934_v10 = vsel %vm247_vm0, %v2885_v20, 0.0  ;;  %v2202_v1 = vadd.f32 %v2144_v39, %v1926_v29  ;;  %v2419_v47 = vpop.f32.mrf.mxu3 }
 0x2a8   : > { %v2935_v24 = vadd.f32 %v2934_v10, %v2933_v23 }
 0x2a9   : > { %v2477_v7 = vadd.f32 %v2419_v47, %v2202_v1 }
 0x2aa   : > { %v1874_v54 = vpop.f32.mrf.mxu1  ;;  %v2700_v60 = vpop.f32.mrf.mxu0 }
 0x2ab   : > { %v2752_v38 = vadd.f32 %v2694_v0, %v2477_v7  ;;  %v1928_v45 = vadd.f32 %v1874_v54, %v4300_v43 }
 0x2ad   : > { %2784 = vst.msk [vmem:[%s4415_s17 + $0x98] sm:$0xff] %vm247_vm0, %v2752_v38  ;;  %v2834_v22 = vsel %vm247_vm0, %v2752_v38, 0.0  ;;  %v2886_v11 = vmul.f32 %v2752_v38, %v2752_v38 }
 0x2ae   : > { %v2835_v32 = vadd.f32 %v2834_v22, %v2833_v61  ;;  %v2147_v15 = vpop.f32.mrf.mxu2 }
 0x2af   : > { %v2936_v16 = vsel %vm247_vm0, %v2886_v11, 0.0  ;;  %v2203_v44 = vadd.f32 %v2147_v15, %v1927_v27  ;;  %v2422_v26 = vpop.f32.mrf.mxu3 }
 0x2b0   : > { %v2937_v5 = vadd.f32 %v2936_v16, %v2935_v24 }
 0x2b1   : > { %v2478_v4 = vadd.f32 %v2422_v26, %v2203_v44 }
 0x2b2   : > { %v1877_v46 = vpop.f32.mrf.mxu1  ;;  %v2703_v41 = vpop.f32.mrf.mxu0 }
 0x2b3   : > { %v2753_v42 = vadd.f32 %v2697_v34, %v2478_v4  ;;  %v1929_v30 = vadd.f32 %v1877_v46, %v4310_v58 }
 0x2b5   : > { %2785 = vst.msk [vmem:[%s4415_s17 + $0xa0] sm:$0xff] %vm247_vm0, %v2753_v42  ;;  %v2836_v13 = vsel %vm247_vm0, %v2753_v42, 0.0  ;;  %v2887_v49 = vmul.f32 %v2753_v42, %v2753_v42 }
 0x2b6   : > { %v2837_v33 = vadd.f32 %v2836_v13, %v2835_v32  ;;  %v2150_v31 = vpop.f32.mrf.mxu2 }
 0x2b7   : > { %v2938_v3 = vsel %vm247_vm0, %v2887_v49, 0.0  ;;  %v2204_v17 = vadd.f32 %v2150_v31, %v1928_v45  ;;  %v2425_v59 = vpop.f32.mrf.mxu3 }
 0x2b8   : > { %v2939_v19 = vadd.f32 %v2938_v3, %v2937_v5 }
 0x2b9   : > { %v2479_v57 = vadd.f32 %v2425_v59, %v2204_v17 }
 0x2ba   : > { %v1880_v9 = vpop.f32.mrf.mxu1  ;;  %v2706_v53 = vpop.f32.mrf.mxu0 }
 0x2bb   : > { %v2754_v0 = vadd.f32 %v2700_v60, %v2479_v57  ;;  %v1930_v34 = vadd.f32 %v1880_v9, %v4320_v52 }
 0x2bd   : > { %2786 = vst.msk [vmem:[%s4415_s17 + $0xa8] sm:$0xff] %vm247_vm0, %v2754_v0  ;;  %v2838_v43 = vsel %vm247_vm0, %v2754_v0, 0.0  ;;  %v2888_v14 = vmul.f32 %v2754_v0, %v2754_v0 }
 0x2be   : > { %v2839_v50 = vadd.f32 %v2838_v43, %v2837_v33  ;;  %v2153_v21 = vpop.f32.mrf.mxu2 }
 0x2bf   : > { %v2940_v35 = vsel %vm247_vm0, %v2888_v14, 0.0  ;;  %v2205_v28 = vadd.f32 %v2153_v21, %v1929_v30  ;;  %v2428_v8 = vpop.f32.mrf.mxu3 }
 0x2c0   : > { %v2941_v12 = vadd.f32 %v2940_v35, %v2939_v19 }
 0x2c1   : > { %v2480_v63 = vadd.f32 %v2428_v8, %v2205_v28 }
 0x2c2   : > { %v1883_v23 = vpop.f32.mrf.mxu1  ;;  %v2709_v25 = vpop.f32.mrf.mxu0 }
 0x2c3   : > { %v2755_v62 = vadd.f32 %v2703_v41, %v2480_v63  ;;  %v1931_v54 = vadd.f32 %v1883_v23, %v4330_v2 }
 0x2c5   : > { %2787 = vst.msk [vmem:[%s4415_s17 + $0xb0] sm:$0xff] %vm247_vm0, %v2755_v62  ;;  %v2840_v58 = vsel %vm247_vm0, %v2755_v62, 0.0  ;;  %v2889_v6 = vmul.f32 %v2755_v62, %v2755_v62 }
 0x2c6   : > { %v2841_v29 = vadd.f32 %v2840_v58, %v2839_v50  ;;  %v2156_v37 = vpop.f32.mrf.mxu2 }
 0x2c7   : > { %v2942_v20 = vsel %vm247_vm0, %v2889_v6, 0.0  ;;  %v2206_v61 = vadd.f32 %v2156_v37, %v1930_v34  ;;  %v2431_v39 = vpop.f32.mrf.mxu3 }
 0x2c8   : > { %v2943_v10 = vadd.f32 %v2942_v20, %v2941_v12 }
 0x2c9   : > { %v2481_v1 = vadd.f32 %v2431_v39, %v2206_v61 }
 0x2ca   : > { %v1886_v47 = vpop.f32.mrf.mxu1  ;;  %v2712_v7 = vpop.f32.mrf.mxu0 }
 0x2cb   : > { %v2756_v24 = vadd.f32 %v2706_v53, %v2481_v1  ;;  %v1932_v5 = vadd.f32 %v1886_v47, %v4340_v56 }
 0x2cd   : > { %2788 = vst.msk [vmem:[%s4415_s17 + $0xb8] sm:$0xff] %vm247_vm0, %v2756_v24  ;;  %v2842_v52 = vsel %vm247_vm0, %v2756_v24, 0.0  ;;  %v2890_v60 = vmul.f32 %v2756_v24, %v2756_v24 }
 0x2ce   : > { %v2843_v38 = vadd.f32 %v2842_v52, %v2841_v29  ;;  %v2159_v27 = vpop.f32.mrf.mxu2 }
 0x2cf   : > { %v2944_v22 = vsel %vm247_vm0, %v2890_v60, 0.0  ;;  %v2207_v11 = vadd.f32 %v2159_v27, %v1931_v54  ;;  %v2434_v32 = vpop.f32.mrf.mxu3 }
 0x2d0   : > { %v2945_v15 = vadd.f32 %v2944_v22, %v2943_v10 }
 0x2d1   : > { %v2482_v16 = vadd.f32 %v2434_v32, %v2207_v11 }
 0x2d2   : > { %v1889_v44 = vpop.f32.mrf.mxu1  ;;  %v2715_v42 = vpop.f32.mrf.mxu0 }
 0x2d3   : > { %v2757_v26 = vadd.f32 %v2709_v25, %v2482_v16  ;;  %v1933_v59 = vadd.f32 %v1889_v44, %v4350_v55 }
 0x2d5   : > { %2789 = vst.msk [vmem:[%s4415_s17 + $0xc0] sm:$0xff] %vm247_vm0, %v2757_v26  ;;  %v2844_v2 = vsel %vm247_vm0, %v2757_v26, 0.0  ;;  %v2891_v4 = vmul.f32 %v2757_v26, %v2757_v26 }
 0x2d6   : > { %v2845_v46 = vadd.f32 %v2844_v2, %v2843_v38  ;;  %v2162_v41 = vpop.f32.mrf.mxu2 }
 0x2d7   : > { %v2946_v45 = vsel %vm247_vm0, %v2891_v4, 0.0  ;;  %v2208_v13 = vadd.f32 %v2162_v41, %v1932_v5  ;;  %v2437_v49 = vpop.f32.mrf.mxu3 }
 0x2d8   : > { %v2947_v33 = vadd.f32 %v2946_v45, %v2945_v15 }
 0x2d9   : > { %v2483_v31 = vadd.f32 %v2437_v49, %v2208_v13 }
 0x2da   : > { %v1892_v3 = vpop.f32.mrf.mxu1  ;;  %v2718_v14 = vpop.f32.mrf.mxu0 }
 0x2db   : > { %v2758_v17 = vadd.f32 %v2712_v7, %v2483_v31  ;;  %v1934_v28 = vadd.f32 %v1892_v3, %v4360_v51 }
 0x2dd   : > { %2790 = vst.msk [vmem:[%s4415_s17 + $0xc8] sm:$0xff] %vm247_vm0, %v2758_v17  ;;  %v2846_v56 = vsel %vm247_vm0, %v2758_v17, 0.0  ;;  %v2892_v19 = vmul.f32 %v2758_v17, %v2758_v17 }
 0x2de   : > { %v2847_v57 = vadd.f32 %v2846_v56, %v2845_v46  ;;  %v2165_v9 = vpop.f32.mrf.mxu2 }
 0x2df   : > { %v2948_v53 = vsel %vm247_vm0, %v2892_v19, 0.0  ;;  %v2209_v0 = vadd.f32 %v2165_v9, %v1933_v59  ;;  %v2440_v30 = vpop.f32.mrf.mxu3 }
 0x2e0   : > { %v2949_v43 = vadd.f32 %v2948_v53, %v2947_v33 }
 0x2e1   : > { %v2484_v50 = vadd.f32 %v2440_v30, %v2209_v0 }
 0x2e2   : > { %v1895_v35 = vpop.f32.mrf.mxu1  ;;  %v2721_v6 = vpop.f32.mrf.mxu0 }
 0x2e3   : > { %v2759_v21 = vadd.f32 %v2715_v42, %v2484_v50  ;;  %v1935_v37 = vadd.f32 %v1895_v35, %v4370_v48 }
 0x2e5   : > { %2791 = vst.msk [vmem:[%s4415_s17 + $0xd0] sm:$0xff] %vm247_vm0, %v2759_v21  ;;  %v2848_v55 = vsel %vm247_vm0, %v2759_v21, 0.0  ;;  %v2893_v8 = vmul.f32 %v2759_v21, %v2759_v21 }
 0x2e6   : > { %v2849_v12 = vadd.f32 %v2848_v55, %v2847_v57  ;;  %v2168_v63 = vpop.f32.mrf.mxu2 }
 0x2e7   : > { %v2950_v23 = vsel %vm247_vm0, %v2893_v8, 0.0  ;;  %v2210_v25 = vadd.f32 %v2168_v63, %v1934_v28  ;;  %v2443_v62 = vpop.f32.mrf.mxu3 }
 0x2e8   : > { %v2951_v34 = vadd.f32 %v2950_v23, %v2949_v43 }
 0x2e9   : > { %v2485_v58 = vadd.f32 %v2443_v62, %v2210_v25 }
 0x2ea   : > { %v1898_v10 = vpop.f32.mrf.mxu1  ;;  %v2724_v60 = vpop.f32.mrf.mxu0 }
 0x2eb   : > { %v2760_v29 = vadd.f32 %v2718_v14, %v2485_v58  ;;  %v1936_v38 = vadd.f32 %v1898_v10, %v4380_v18 }
 0x2ed   : > { %2792 = vst.msk [vmem:[%s4415_s17 + $0xd8] sm:$0xff] %vm247_vm0, %v2760_v29  ;;  %v2850_v51 = vsel %vm247_vm0, %v2760_v29, 0.0  ;;  %v2894_v20 = vmul.f32 %v2760_v29, %v2760_v29 }
 0x2ee   : > { %v2851_v61 = vadd.f32 %v2850_v51, %v2849_v12  ;;  %v2171_v39 = vpop.f32.mrf.mxu2 }
 0x2ef   : > { %v2952_v1 = vsel %vm247_vm0, %v2894_v20, 0.0  ;;  %v2211_v47 = vadd.f32 %v2171_v39, %v1935_v37  ;;  %v2446_v24 = vpop.f32.mrf.mxu3 }
 0x2f0   : > { %v2953_v7 = vadd.f32 %v2952_v1, %v2951_v34 }
 0x2f1   : > { %v2486_v54 = vadd.f32 %v2446_v24, %v2211_v47 }
 0x2f2   : > { %v1901_v26 = vpop.f32.mrf.mxu1  ;;  %v2727_v45 = vpop.f32.mrf.mxu0 }
 0x2f3   : > { %v2761_v52 = vadd.f32 %v2721_v6, %v2486_v54  ;;  %v1937_v4 = vadd.f32 %v1901_v26, %v4390_v40 }
 0x2f5   : > { %2793 = vst.msk [vmem:[%s4415_s17 + $0xe0] sm:$0xff] %vm247_vm0, %v2761_v52  ;;  %v2852_v48 = vsel %vm247_vm0, %v2761_v52, 0.0  ;;  %v2895_v27 = vmul.f32 %v2761_v52, %v2761_v52 }
 0x2f6   : > { %v2853_v22 = vadd.f32 %v2852_v48, %v2851_v61  ;;  %v2174_v11 = vpop.f32.mrf.mxu2 }
 0x2f7   : > { %v2954_v32 = vsel %vm247_vm0, %v2895_v27, 0.0  ;;  %v2212_v15 = vadd.f32 %v2174_v11, %v1936_v38  ;;  %v2449_v16 = vpop.f32.mrf.mxu3 }
 0x2f8   : > { %v2955_v44 = vadd.f32 %v2954_v32, %v2953_v7 }
 0x2f9   : > { %v2487_v5 = vadd.f32 %v2449_v16, %v2212_v15 }
 0x2fa   : > { %v1904_v17 = vpop.f32.mrf.mxu1  ;;  %v2730_v14 = vpop.f32.mrf.mxu0 }
 0x2fb   : > { %v2762_v2 = vadd.f32 %v2724_v60, %v2487_v5  ;;  %v1938_v56 = vadd.f32 %v1904_v17, %v4400_v36 }
 0x2fd   : > { %2794 = vst.msk [vmem:[%s4415_s17 + $0xe8] sm:$0xff] %vm247_vm0, %v2762_v2  ;;  %v2854_v18 = vsel %vm247_vm0, %v2762_v2, 0.0  ;;  %v2896_v46 = vmul.f32 %v2762_v2, %v2762_v2 }
 0x2fe   : > { %v2855_v41 = vadd.f32 %v2854_v18, %v2853_v22  ;;  %v2177_v42 = vpop.f32.mrf.mxu2 }
 0x2ff   : > { %v2956_v13 = vsel %vm247_vm0, %v2896_v46, 0.0  ;;  %v2213_v49 = vadd.f32 %v2177_v42, %v1937_v4  ;;  %v2452_v33 = vpop.f32.mrf.mxu3 }
 0x300   : > { %v2957_v31 = vadd.f32 %v2956_v13, %v2955_v44 }
 0x301   : > { %v2488_v3 = vadd.f32 %v2452_v33, %v2213_v49 }
 0x303   : > { %v2763_v59 = vadd.f32 %v2727_v45, %v2488_v3 }
 0x305   : > { %2795 = vst.msk [vmem:[%s4415_s17 + $0xf0] sm:$0xff] %vm247_vm0, %v2763_v59  ;;  %v2856_v40 = vsel %vm247_vm0, %v2763_v59, 0.0  ;;  %v2897_v19 = vmul.f32 %v2763_v59, %v2763_v59 }
 0x306   : > { %v2857_v57 = vadd.f32 %v2856_v40, %v2855_v41  ;;  %v2180_v9 = vpop.f32.mrf.mxu2 }
 0x307   : > { %v2958_v53 = vsel %vm247_vm0, %v2897_v19, 0.0  ;;  %v2214_v0 = vadd.f32 %v2180_v9, %v1938_v56  ;;  %v2455_v30 = vpop.f32.mrf.mxu3 }
 0x308   : > { %v2959_v43 = vadd.f32 %v2958_v53, %v2957_v31 }
 0x309   : > { %v2489_v50 = vadd.f32 %v2455_v30, %v2214_v0 }
 0x30b   : > { %v2764_v21 = vadd.f32 %v2730_v14, %v2489_v50 }
 0x30d   : > { %2796 = vst.msk [vmem:[%s4415_s17 + $0xf8] sm:$0xff] %vm247_vm0, %v2764_v21  ;;  %v2858_v36 = vsel %vm247_vm0, %v2764_v21, 0.0  ;;  %v2898_v35 = vmul.f32 %v2764_v21, %v2764_v21 }
 0x30e   : > { %v2859_v28 = vadd.f32 %v2858_v36, %v2857_v57 }
 0x30f   : > { %v2960_v55 = vsel %vm247_vm0, %v2898_v35, 0.0 }
 0x310   : > { %v2860_v8 = vrot.slane %v2859_v28, 4  ;;  %v2961_v12 = vadd.f32 %v2960_v55, %v2959_v43 }
 0x312   : > { %v2861_v63 = vadd.f32 %v2860_v8, %v2859_v28  ;;  %v2962_v23 = vrot.slane %v2961_v12, 4 }
 0x314   : > { %v2862_v25 = vrot.slane %v2861_v63, 2  ;;  %v2963_v62 = vadd.f32 %v2962_v23, %v2961_v12 }
 0x316   : > { %v2863_v34 = vadd.f32 %v2862_v25, %v2861_v63  ;;  %v2964_v58 = vrot.slane %v2963_v62, 2 }
 0x318   : > { %v2864_v6 = vrot.slane %v2863_v34, 1  ;;  %v2965_v29 = vadd.f32 %v2964_v58, %v2963_v62 }
 0x31a   : > { %v2865_v37 = vadd.f32 %v2864_v6, %v2863_v34  ;;  %v2966_v51 = vrot.slane %v2965_v29, 1 }
 0x31c   : > { %2866 = vst.msk [vmem:[%s211_s20] sm:$0x1] %vm251_vm1, %v2865_v37  ;;  %v2967_v20 = vadd.f32 %v2966_v51, %v2965_v29 }
 0x31e   : > { %2968 = vst.msk [vmem:[%s214_s23] sm:$0x1] %vm251_vm1, %v2967_v20 }
 0x31f PF: > { %s15_s15 = sadd.s32 1, %s3401_s15  }
 0x320   : > { %p12_p4 = scmp.ge.s32.totalorder %s15_s15, 4  }
 0x322   :  { %14 = sbr.rel (!%p12_p4) target bundleno = 1 (0x1), region = 92 }

</bundles_post_ra>
